<compile_context>
chip_gen: v5e
topology: v5e:2x2
jax: 0.10.0
libtpu: 0.0.40
codegen_flags: <defaults>
</compile_context>

<pallas_src>
import functools

import jax
import jax.numpy as jnp
from jax.experimental import pallas as pl
from jax.experimental.pallas import tpu as pltpu

BN_EPS = 1e-5
HIGH = jax.lax.Precision.HIGHEST


def _round_up(x, m):
    return (x + m - 1) // m * m


def _vmem_limit_bytes():
    # Leave ~16 MiB of headroom for compiler scratch; cap at 96 MiB.
    # TODO(synk): per-generation TH tuning (TH=32 pays off on v6e at 96 MiB).
    try:
        cap = int(pltpu.get_tpu_info().vmem_capacity_bytes)
    except Exception:
        cap = 64 << 20
    return int(min(max(cap - (16 << 20), 32 << 20), 96 << 20))


def _bottleneck_kernel(xm_ref, xt_ref, xb_ref, w1_ref, w2_ref, w3_ref,
                       b1_ref, b2_ref, b3_ref, out_ref, t1_ref,
                       *, w_img, use_xlu_roll):
    """One (batch, row-block) tile of the fused Bottleneck forward.

    xm_ref : (1, TH, Wp, Cp) bf16 -- image rows [i*TH, (i+1)*TH) (== output rows).
    xt_ref : (1, 1,  Wp, Cp) bf16 -- row i*TH-1 (clamped to 0; masked when i==0).
    xb_ref : (1, 1,  Wp, Cp) bf16 -- row (i+1)*TH (the all-zero pad row for the
                                     last tile; masked there anyway).
    out_ref: (1, TH, Wp, Cp) bf16.
    t1_ref : (TH+2, Wp, Pp) f32 scratch with conv1+bn1+relu outputs.
    """
    TH, Wp, Cp = xm_ref.shape[1], xm_ref.shape[2], xm_ref.shape[3]
    Pp = w1_ref.shape[1]

    i = pl.program_id(1)
    last = pl.num_programs(1) - 1

    # Column validity: image cols are [0, w_img); cols >= w_img are zero pad
    # that must stay exactly zero after bn1's bias (conv2's shifts read them).
    col_ok = jax.lax.broadcasted_iota(jnp.int32, (Wp, 1), 0) < w_img

    w1 = w1_ref[...]
    b1 = b1_ref[...]

    def conv1(x2d):                                  # (M, Cp) bf16 -> (M, Pp) f32
        t = jnp.dot(x2d, w1, preferred_element_type=jnp.float32)
        return jnp.maximum(t + b1, 0.0)              # bn1 scale folded into w1

    # ---- conv1 (1x1) + bn1 + relu on the TH main rows and 2 halo rows ------
    t1m = conv1(xm_ref[0].reshape(TH * Wp, Cp)).reshape(TH, Wp, Pp)
    t1_ref[1:TH + 1] = jnp.where(col_ok[None], t1m, 0.0)
    t1_ref[0] = jnp.where(jnp.logical_and(col_ok, i > 0),
                          conv1(xt_ref[0, 0]), 0.0)
    t1_ref[TH + 1] = jnp.where(jnp.logical_and(col_ok, i < last),
                               conv1(xb_ref[0, 0]), 0.0)

    # ---- conv2 (3x3, stride 1, pad 1) + bn2 + relu --------------------------
    # dx shift = sublane roll (wrap-around lands on masked zero columns, or on
    # discarded columns >= w_img); dy shift = leading-axis slice of the
    # scratch.  All matmuls run at full width Wp on the MXU.
    # TODO(synk): pack dy-taps along K (3*Pp) to fill the 256-wide MXU on
    # v6e/v7x; the 128x128 scheme below already matches v5e's MXU.
    roll = pltpu.roll if use_xlu_roll else jnp.roll
    t1_all = t1_ref[...]                             # (TH+2, Wp, Pp) f32
    acc = jnp.zeros((TH * Wp, Pp), jnp.float32)
    for dx in range(3):
        sh = (1 - dx) % Wp
        t1x = t1_all if sh == 0 else roll(t1_all, sh, 1)
        t1x = t1x.astype(jnp.bfloat16)
        for dy in range(3):
            patch = t1x[dy:dy + TH].reshape(TH * Wp, Pp)
            acc = acc + jnp.dot(patch, w2_ref[dy, dx],
                                preferred_element_type=jnp.float32)
    t2 = jnp.maximum(acc + b2_ref[...], 0.0).astype(jnp.bfloat16)

    # ---- conv3 (1x1) + bn3 + residual + relu --------------------------------
    t3 = jnp.dot(t2, w3_ref[...], preferred_element_type=jnp.float32)
    t3 = t3 + b3_ref[...]
    res = xm_ref[0].astype(jnp.float32).reshape(TH * Wp, Cp)
    out = jnp.maximum(t3 + res, 0.0)
    out_ref[0] = out.reshape(TH, Wp, Cp).astype(out_ref.dtype)


def _fold_bn(gamma, beta, mean, var):
    s = gamma / jnp.sqrt(var + BN_EPS)
    return s, beta - mean * s


def _pad_row(v, n):
    return jnp.zeros((1, n), jnp.float32).at[0, :v.shape[0]].set(
        v.astype(jnp.float32))


def bottleneck_forward(x_nchw, p, block_h=16, use_xlu_roll=True):
    """x_nchw: (N, Cin, H, W) float32 (PyTorch layout). Returns (N, Cout, H, W)."""
    N, Cin, H, W = x_nchw.shape
    P = p["w2"].shape[0]
    Cout = p["w3"].shape[0]
    assert Cout == Cin, "downsample=None requires inplanes == planes*expansion"

    # Largest row-tile height <= block_h that divides H (no parity constraint).
    TH = H
    for cand in range(min(block_h, H), 0, -1):
        if H % cand == 0:
            TH = cand
            break
    HB = H // TH

    Cp = _round_up(Cin, 128)          # channels on the 128-lane axis
    Pp = _round_up(P, 128)
    Wp = _round_up(W + 1, 8)          # >= W+1 so col W is a guaranteed zero pad

    # NCHW -> NHWC, zero-pad cols/channels, one extra all-zero row at index H
    # (shared top/bottom halo source for the edge tiles), cast to bf16.
    x = jnp.transpose(x_nchw, (0, 2, 3, 1)).astype(jnp.bfloat16)
    x_pad = jnp.zeros((N, H + 1, Wp, Cp), jnp.bfloat16)
    x_pad = x_pad.at[:, :H, :W, :Cin].set(x)

    # Fold eval-mode BN: scale into the bf16 weights, keep only the bias add.
    s1, b1 = _fold_bn(p["g1"], p["b1"], p["m1"], p["v1"])
    s2, b2 = _fold_bn(p["g2"], p["b2"], p["m2"], p["v2"])
    s3, b3 = _fold_bn(p["g3"], p["b3"], p["m3"], p["v3"])

    w1f = jnp.transpose(p["w1"][:, :, 0, 0], (1, 0)) * s1[None, :]          # (Cin, P)
    w2f = jnp.transpose(p["w2"], (2, 3, 1, 0)) * s2[None, None, None, :]    # (3,3,P,P)
    w3f = jnp.transpose(p["w3"][:, :, 0, 0], (1, 0)) * s3[None, :]          # (P, Cout)

    w1 = jnp.zeros((Cp, Pp), jnp.bfloat16).at[:Cin, :P].set(w1f.astype(jnp.bfloat16))
    w2 = jnp.zeros((3, 3, Pp, Pp), jnp.bfloat16).at[:, :, :P, :P].set(
        w2f.astype(jnp.bfloat16))
    w3 = jnp.zeros((Pp, Cp), jnp.bfloat16).at[:P, :Cout].set(w3f.astype(jnp.bfloat16))

    b1p, b2p, b3p = _pad_row(b1, Pp), _pad_row(b2, Pp), _pad_row(b3, Cp)

    const2 = lambda n, i: (0, 0)
    # TODO(synk): mark the constant-index weight specs pipeline_mode=pl.Buffered(1)
    # once verified on the target jax version (second buffer is wasted VMEM).
    in_specs = [
        pl.BlockSpec((1, TH, Wp, Cp), lambda n, i: (n, i, 0, 0)),
        pl.BlockSpec((1, 1, Wp, Cp),
                     lambda n, i: (n, jnp.maximum(i * TH - 1, 0), 0, 0)),
        pl.BlockSpec((1, 1, Wp, Cp), lambda n, i: (n, (i + 1) * TH, 0, 0)),
        pl.BlockSpec((Cp, Pp), const2),
        pl.BlockSpec((3, 3, Pp, Pp), lambda n, i: (0, 0, 0, 0)),
        pl.BlockSpec((Pp, Cp), const2),
        pl.BlockSpec((1, Pp), const2),
        pl.BlockSpec((1, Pp), const2),
        pl.BlockSpec((1, Cp), const2),
    ]
    out_spec = pl.BlockSpec((1, TH, Wp, Cp), lambda n, i: (n, i, 0, 0))

    kernel = functools.partial(_bottleneck_kernel, w_img=W,
                               use_xlu_roll=use_xlu_roll)
    out_nhwc = pl.pallas_call(
        kernel,
        out_shape=jax.ShapeDtypeStruct((N, H, Wp, Cp), jnp.bfloat16),
        grid=(N, HB),
        in_specs=in_specs,
        out_specs=out_spec,
        scratch_shapes=[pltpu.VMEM((TH + 2, Wp, Pp), jnp.float32)],
        compiler_params=pltpu.CompilerParams(
            dimension_semantics=("parallel", "parallel"),
            vmem_limit_bytes=_vmem_limit_bytes()),
    )(x_pad, x_pad, x_pad, w1, w2, w3, b1p, b2p, b3p)

    out = out_nhwc[:, :, :W, :Cout].astype(jnp.float32)
    return jnp.transpose(out, (0, 3, 1, 2))


def reference_forward(x, p):
    """Pure-JAX NCHW reference mirroring the PyTorch module (eval-mode BN)."""
    def conv(x, w, pad=0):
        return jax.lax.conv_general_dilated(
            x, w, window_strides=(1, 1), padding=[(pad, pad), (pad, pad)],
            dimension_numbers=("NCHW", "OIHW", "NCHW"), precision=HIGH)

    def bn(x, g, b, m, v):
        s = g / jnp.sqrt(v + BN_EPS)
        return x * s[None, :, None, None] + (b - m * s)[None, :, None, None]

    out = jax.nn.relu(bn(conv(x, p["w1"]), p["g1"], p["b1"], p["m1"], p["v1"]))
    out = jax.nn.relu(bn(conv(out, p["w2"], pad=1), p["g2"], p["b2"], p["m2"], p["v2"]))
    out = bn(conv(out, p["w3"]), p["g3"], p["b3"], p["m3"], p["v3"])
    return jax.nn.relu(out + x)


def make_params(key, inplanes, planes, expansion=4):
    ks = jax.random.split(key, 15)
    cexp = planes * expansion
    f32 = jnp.float32
    # TODO(synk): BN is folded in eval mode (running stats); train-mode batch
    # statistics / momentum update are not implemented.
    return {
        "w1": jax.random.normal(ks[0], (planes, inplanes, 1, 1), f32) * 0.1,
        "w2": jax.random.normal(ks[1], (planes, planes, 3, 3), f32) * 0.1,
        "w3": jax.random.normal(ks[2], (cexp, planes, 1, 1), f32) * 0.1,
        "g1": 1.0 + 0.2 * jax.random.normal(ks[3], (planes,), f32),
        "b1": 0.1 * jax.random.normal(ks[4], (planes,), f32),
        "m1": 0.1 * jax.random.normal(ks[5], (planes,), f32),
        "v1": 1.0 + 0.5 * jax.random.uniform(ks[6], (planes,), f32),
        "g2": 1.0 + 0.2 * jax.random.normal(ks[7], (planes,), f32),
        "b2": 0.1 * jax.random.normal(ks[8], (planes,), f32),
        "m2": 0.1 * jax.random.normal(ks[9], (planes,), f32),
        "v2": 1.0 + 0.5 * jax.random.uniform(ks[10], (planes,), f32),
        "g3": 1.0 + 0.2 * jax.random.normal(ks[11], (cexp,), f32),
        "b3": 0.1 * jax.random.normal(ks[12], (cexp,), f32),
        "m3": 0.1 * jax.random.normal(ks[13], (cexp,), f32),
        "v3": 1.0 + 0.5 * jax.random.uniform(ks[14], (cexp,), f32),
    }


if __name__ == "__main__":
    key = jax.random.PRNGKey(0)
    k_x, k_p = jax.random.split(key)

    N, H, W = 2, 16, 16
    planes, expansion = 4, 4
    inplanes = planes * expansion        # 16, required since downsample=None

    x = jax.random.normal(k_x, (N, inplanes, H, W), jnp.float32)   # NCHW
    params = make_params(k_p, inplanes, planes, expansion)

    def run(use_xlu_roll):
        fn = functools.partial(bottleneck_forward, use_xlu_roll=use_xlu_roll)
        return jax.block_until_ready(jax.jit(fn)(x, params))

    try:
        out = run(True)
    except Exception:
        # Fallback path only if the XLU sublane roll fails to lower on this
        # jax/libtpu combo; identical math via jnp.roll (concat of slices).
        out = run(False)

    ref = reference_forward(x, params)
    assert out.shape == ref.shape == (N, planes * expansion, H, W)
    err = float(jnp.max(jnp.abs(out - ref)))
    # bf16 MXU matmuls, bf16 activations and bf16 output vs f32-HIGHEST ref.
    assert jnp.allclose(out, ref, rtol=5e-2, atol=7.5e-2), err

    print("KERNEL_OK")
</pallas_src>

<mosaic_0001>
module attributes {stable_mosaic.version = 11 : i64} {
  func.func @_bottleneck_kernel(%arg0: i32, %arg1: i32, %arg2: memref<1x16x24x128xbf16, #tpu.memory_space<vmem>>, %arg3: memref<1x1x24x128xbf16, #tpu.memory_space<vmem>>, %arg4: memref<1x1x24x128xbf16, #tpu.memory_space<vmem>>, %arg5: memref<128x128xbf16, #tpu.memory_space<vmem>>, %arg6: memref<3x3x128x128xbf16, #tpu.memory_space<vmem>>, %arg7: memref<128x128xbf16, #tpu.memory_space<vmem>>, %arg8: memref<1x128xf32, #tpu.memory_space<vmem>>, %arg9: memref<1x128xf32, #tpu.memory_space<vmem>>, %arg10: memref<1x128xf32, #tpu.memory_space<vmem>>, %arg11: memref<1x16x24x128xbf16, #tpu.memory_space<vmem>>, %arg12: memref<18x24x128xf32, #tpu.memory_space<vmem>>) attributes {dimension_semantics = [#tpu.dimension_semantics<parallel>, #tpu.dimension_semantics<parallel>], iteration_bounds = array<i64: 2, 1>, scalar_prefetch = 0 : i64, scratch_operands = 1 : i64, tpu.core_type = #tpu.core_type<tc>, window_params = [{transform_indices = @transform_0, window_bounds = array<i64: 1, 16, 24, 128>}, {transform_indices = @transform_1, window_bounds = array<i64: 1, 1, 24, 128>}, {transform_indices = @transform_2, window_bounds = array<i64: 1, 1, 24, 128>}, {pipeline_mode = #tpu.pipeline_mode<synchronous>, transform_indices = @transform_3, window_bounds = array<i64: 128, 128>}, {pipeline_mode = #tpu.pipeline_mode<synchronous>, transform_indices = @transform_4, window_bounds = array<i64: 3, 3, 128, 128>}, {pipeline_mode = #tpu.pipeline_mode<synchronous>, transform_indices = @transform_5, window_bounds = array<i64: 128, 128>}, {pipeline_mode = #tpu.pipeline_mode<synchronous>, transform_indices = @transform_6, window_bounds = array<i64: 1, 128>}, {pipeline_mode = #tpu.pipeline_mode<synchronous>, transform_indices = @transform_7, window_bounds = array<i64: 1, 128>}, {pipeline_mode = #tpu.pipeline_mode<synchronous>, transform_indices = @transform_8, window_bounds = array<i64: 1, 128>}, {transform_indices = @transform_9, window_bounds = array<i64: 1, 16, 24, 128>}]} {
    %0 = tpu.iota {dimensions = array<i32: 0>} : vector<24x1xi32>
    %c16_i32 = arith.constant 16 : i32
    %1 = vector.broadcast %c16_i32 : i32 to vector<24x1xi32>
    %2 = arith.cmpi slt, %0, %1 : vector<24x1xi32>
    %c0 = arith.constant 0 : index
    %c0_0 = arith.constant 0 : index
    %3 = vector.load %arg5[%c0, %c0_0] : memref<128x128xbf16, #tpu.memory_space<vmem>>, vector<128x128xbf16>
    %c0_1 = arith.constant 0 : index
    %c0_2 = arith.constant 0 : index
    %4 = vector.load %arg8[%c0_1, %c0_2] : memref<1x128xf32, #tpu.memory_space<vmem>>, vector<1x128xf32>
    %c0_3 = arith.constant 0 : index
    %c0_4 = arith.constant 0 : index
    %c0_5 = arith.constant 0 : index
    %c0_6 = arith.constant 0 : index
    %5 = vector.load %arg2[%c0_3, %c0_4, %c0_5, %c0_6] : memref<1x16x24x128xbf16, #tpu.memory_space<vmem>>, vector<1x16x24x128xbf16>
    %6 = vector.shape_cast %5 : vector<1x16x24x128xbf16> to vector<16x24x128xbf16>
    %7 = vector.shape_cast %6 : vector<16x24x128xbf16> to vector<384x128xbf16>
    %cst = arith.constant dense<0.000000e+00> : vector<384x128xf32>
    %8 = tpu.matmul %7, %3, %cst {dimension_numbers = #tpu.dot_dimension_numbers<[1], [0], [0], [1], [0, 0, 1, 1], [], []>} : vector<384x128xbf16>, vector<128x128xbf16>, vector<384x128xf32> -> vector<384x128xf32>
    %9 = vector.broadcast %4 : vector<1x128xf32> to vector<384x128xf32>
    %10 = arith.addf %8, %9 : vector<384x128xf32>
    %cst_7 = arith.constant 0.000000e+00 : f32
    %11 = vector.broadcast %cst_7 : f32 to vector<384x128xf32>
    %12 = arith.maximumf %10, %11 : vector<384x128xf32>
    %13 = vector.shape_cast %12 : vector<384x128xf32> to vector<16x24x128xf32>
    %14 = vector.shape_cast %2 : vector<24x1xi1> to vector<1x24x1xi1>
    %cst_8 = arith.constant 0.000000e+00 : f32
    %15 = vector.shape_cast %14 : vector<1x24x1xi1> to vector<1x24x1xi1>
    %16 = vector.broadcast %15 : vector<1x24x1xi1> to vector<16x24x128xi1>
    %17 = vector.broadcast %cst_8 : f32 to vector<16x24x128xf32>
    %18 = arith.select %16, %13, %17 : vector<16x24x128xi1>, vector<16x24x128xf32>
    %c1 = arith.constant 1 : index
    %c0_9 = arith.constant 0 : index
    %c0_10 = arith.constant 0 : index
    %19 = vector.load %arg12[%c1, %c0_9, %c0_10] : memref<18x24x128xf32, #tpu.memory_space<vmem>>, vector<16x24x128xf32>
    tpu.vector_store %arg12[%c1, %c0_9, %c0_10], %18 {strides = array<i32>} : memref<18x24x128xf32, #tpu.memory_space<vmem>>, vector<16x24x128xf32>,
    %c0_i32 = arith.constant 0 : i32
    %20 = arith.cmpi sgt, %arg1, %c0_i32 : i32
    %21 = vector.broadcast %20 : i1 to vector<24x1xi1>
    %22 = arith.andi %2, %21 : vector<24x1xi1>
    %c0_11 = arith.constant 0 : index
    %c0_12 = arith.constant 0 : index
    %c0_13 = arith.constant 0 : index
    %c0_14 = arith.constant 0 : index
    %23 = vector.load %arg3[%c0_11, %c0_12, %c0_13, %c0_14] : memref<1x1x24x128xbf16, #tpu.memory_space<vmem>>, vector<1x1x24x128xbf16>
    %24 = vector.shape_cast %23 : vector<1x1x24x128xbf16> to vector<24x128xbf16>
    %cst_15 = arith.constant dense<0.000000e+00> : vector<24x128xf32>
    %25 = tpu.matmul %24, %3, %cst_15 {dimension_numbers = #tpu.dot_dimension_numbers<[1], [0], [0], [1], [0, 0, 1, 1], [], []>} : vector<24x128xbf16>, vector<128x128xbf16>, vector<24x128xf32> -> vector<24x128xf32>
    %26 = vector.broadcast %4 : vector<1x128xf32> to vector<24x128xf32>
    %27 = arith.addf %25, %26 : vector<24x128xf32>
    %cst_16 = arith.constant 0.000000e+00 : f32
    %28 = vector.broadcast %cst_16 : f32 to vector<24x128xf32>
    %29 = arith.maximumf %27, %28 : vector<24x128xf32>
    %cst_17 = arith.constant 0.000000e+00 : f32
    %30 = vector.shape_cast %22 : vector<24x1xi1> to vector<24x1xi1>
    %31 = vector.broadcast %30 : vector<24x1xi1> to vector<24x128xi1>
    %32 = vector.broadcast %cst_17 : f32 to vector<24x128xf32>
    %33 = arith.select %31, %29, %32 : vector<24x128xi1>, vector<24x128xf32>
    %c0_18 = arith.constant 0 : index
    %c0_19 = arith.constant 0 : index
    %c0_20 = arith.constant 0 : index
    %34 = vector.load %arg12[%c0_18, %c0_19, %c0_20] : memref<18x24x128xf32, #tpu.memory_space<vmem>>, vector<1x24x128xf32>
    %35 = vector.shape_cast %34 : vector<1x24x128xf32> to vector<24x128xf32>
    %36 = vector.shape_cast %33 : vector<24x128xf32> to vector<1x24x128xf32>
    tpu.vector_store %arg12[%c0_18, %c0_19, %c0_20], %36 {strides = array<i32>} : memref<18x24x128xf32, #tpu.memory_space<vmem>>, vector<1x24x128xf32>,
    %c0_i32_21 = arith.constant 0 : i32
    %37 = arith.cmpi slt, %arg1, %c0_i32_21 : i32
    %38 = vector.broadcast %37 : i1 to vector<24x1xi1>
    %39 = arith.andi %2, %38 : vector<24x1xi1>
    %c0_22 = arith.constant 0 : index
    %c0_23 = arith.constant 0 : index
    %c0_24 = arith.constant 0 : index
    %c0_25 = arith.constant 0 : index
    %40 = vector.load %arg4[%c0_22, %c0_23, %c0_24, %c0_25] : memref<1x1x24x128xbf16, #tpu.memory_space<vmem>>, vector<1x1x24x128xbf16>
    %41 = vector.shape_cast %40 : vector<1x1x24x128xbf16> to vector<24x128xbf16>
    %cst_26 = arith.constant dense<0.000000e+00> : vector<24x128xf32>
    %42 = tpu.matmul %41, %3, %cst_26 {dimension_numbers = #tpu.dot_dimension_numbers<[1], [0], [0], [1], [0, 0, 1, 1], [], []>} : vector<24x128xbf16>, vector<128x128xbf16>, vector<24x128xf32> -> vector<24x128xf32>
    %43 = vector.broadcast %4 : vector<1x128xf32> to vector<24x128xf32>
    %44 = arith.addf %42, %43 : vector<24x128xf32>
    %cst_27 = arith.constant 0.000000e+00 : f32
    %45 = vector.broadcast %cst_27 : f32 to vector<24x128xf32>
    %46 = arith.maximumf %44, %45 : vector<24x128xf32>
    %cst_28 = arith.constant 0.000000e+00 : f32
    %47 = vector.shape_cast %39 : vector<24x1xi1> to vector<24x1xi1>
    %48 = vector.broadcast %47 : vector<24x1xi1> to vector<24x128xi1>
    %49 = vector.broadcast %cst_28 : f32 to vector<24x128xf32>
    %50 = arith.select %48, %46, %49 : vector<24x128xi1>, vector<24x128xf32>
    %c17 = arith.constant 17 : index
    %c0_29 = arith.constant 0 : index
    %c0_30 = arith.constant 0 : index
    %51 = vector.load %arg12[%c17, %c0_29, %c0_30] : memref<18x24x128xf32, #tpu.memory_space<vmem>>, vector<1x24x128xf32>
    %52 = vector.shape_cast %51 : vector<1x24x128xf32> to vector<24x128xf32>
    %53 = vector.shape_cast %50 : vector<24x128xf32> to vector<1x24x128xf32>
    tpu.vector_store %arg12[%c17, %c0_29, %c0_30], %53 {strides = array<i32>} : memref<18x24x128xf32, #tpu.memory_space<vmem>>, vector<1x24x128xf32>,
    %c0_31 = arith.constant 0 : index
    %c0_32 = arith.constant 0 : index
    %c0_33 = arith.constant 0 : index
    %54 = vector.load %arg12[%c0_31, %c0_32, %c0_33] : memref<18x24x128xf32, #tpu.memory_space<vmem>>, vector<18x24x128xf32>
    %cst_34 = arith.constant 0.000000e+00 : f32
    %55 = vector.broadcast %cst_34 : f32 to vector<384x128xf32>
    %c1_i32 = arith.constant 1 : i32
    %56 = tpu.dynamic_rotate %54 by %c1_i32 dim 1 : vector<18x24x128xf32>, i32 -> vector<18x24x128xf32>
    %57 = arith.truncf %56 : vector<18x24x128xf32> to vector<18x24x128xbf16>
    %58 = vector.extract_strided_slice %57 {offsets = [0, 0, 0], sizes = [16, 24, 128], strides = [1, 1, 1]} : vector<18x24x128xbf16> to vector<16x24x128xbf16>
    %59 = vector.shape_cast %58 : vector<16x24x128xbf16> to vector<384x128xbf16>
    %c0_35 = arith.constant 0 : index
    %c0_36 = arith.constant 0 : index
    %c0_37 = arith.constant 0 : index
    %c0_38 = arith.constant 0 : index
    %60 = vector.load %arg6[%c0_35, %c0_36, %c0_37, %c0_38] : memref<3x3x128x128xbf16, #tpu.memory_space<vmem>>, vector<1x1x128x128xbf16>
    %61 = vector.shape_cast %60 : vector<1x1x128x128xbf16> to vector<128x128xbf16>
    %cst_39 = arith.constant dense<0.000000e+00> : vector<384x128xf32>
    %62 = tpu.matmul %59, %61, %cst_39 {dimension_numbers = #tpu.dot_dimension_numbers<[1], [0], [0], [1], [0, 0, 1, 1], [], []>} : vector<384x128xbf16>, vector<128x128xbf16>, vector<384x128xf32> -> vector<384x128xf32>
    %63 = arith.addf %55, %62 : vector<384x128xf32>
    %64 = vector.extract_strided_slice %57 {offsets = [1, 0, 0], sizes = [16, 24, 128], strides = [1, 1, 1]} : vector<18x24x128xbf16> to vector<16x24x128xbf16>
    %65 = vector.shape_cast %64 : vector<16x24x128xbf16> to vector<384x128xbf16>
    %c1_40 = arith.constant 1 : index
    %c0_41 = arith.constant 0 : index
    %c0_42 = arith.constant 0 : index
    %c0_43 = arith.constant 0 : index
    %66 = vector.load %arg6[%c1_40, %c0_41, %c0_42, %c0_43] : memref<3x3x128x128xbf16, #tpu.memory_space<vmem>>, vector<1x1x128x128xbf16>
    %67 = vector.shape_cast %66 : vector<1x1x128x128xbf16> to vector<128x128xbf16>
    %cst_44 = arith.constant dense<0.000000e+00> : vector<384x128xf32>
    %68 = tpu.matmul %65, %67, %cst_44 {dimension_numbers = #tpu.dot_dimension_numbers<[1], [0], [0], [1], [0, 0, 1, 1], [], []>} : vector<384x128xbf16>, vector<128x128xbf16>, vector<384x128xf32> -> vector<384x128xf32>
    %69 = arith.addf %63, %68 : vector<384x128xf32>
    %70 = vector.extract_strided_slice %57 {offsets = [2, 0, 0], sizes = [16, 24, 128], strides = [1, 1, 1]} : vector<18x24x128xbf16> to vector<16x24x128xbf16>
    %71 = vector.shape_cast %70 : vector<16x24x128xbf16> to vector<384x128xbf16>
    %c2 = arith.constant 2 : index
    %c0_45 = arith.constant 0 : index
    %c0_46 = arith.constant 0 : index
    %c0_47 = arith.constant 0 : index
    %72 = vector.load %arg6[%c2, %c0_45, %c0_46, %c0_47] : memref<3x3x128x128xbf16, #tpu.memory_space<vmem>>, vector<1x1x128x128xbf16>
    %73 = vector.shape_cast %72 : vector<1x1x128x128xbf16> to vector<128x128xbf16>
    %cst_48 = arith.constant dense<0.000000e+00> : vector<384x128xf32>
    %74 = tpu.matmul %71, %73, %cst_48 {dimension_numbers = #tpu.dot_dimension_numbers<[1], [0], [0], [1], [0, 0, 1, 1], [], []>} : vector<384x128xbf16>, vector<128x128xbf16>, vector<384x128xf32> -> vector<384x128xf32>
    %75 = arith.addf %69, %74 : vector<384x128xf32>
    %76 = arith.truncf %54 : vector<18x24x128xf32> to vector<18x24x128xbf16>
    %77 = vector.extract_strided_slice %76 {offsets = [0, 0, 0], sizes = [16, 24, 128], strides = [1, 1, 1]} : vector<18x24x128xbf16> to vector<16x24x128xbf16>
    %78 = vector.shape_cast %77 : vector<16x24x128xbf16> to vector<384x128xbf16>
    %c0_49 = arith.constant 0 : index
    %c1_50 = arith.constant 1 : index
    %c0_51 = arith.constant 0 : index
    %c0_52 = arith.constant 0 : index
    %79 = vector.load %arg6[%c0_49, %c1_50, %c0_51, %c0_52] : memref<3x3x128x128xbf16, #tpu.memory_space<vmem>>, vector<1x1x128x128xbf16>
    %80 = vector.shape_cast %79 : vector<1x1x128x128xbf16> to vector<128x128xbf16>
    %cst_53 = arith.constant dense<0.000000e+00> : vector<384x128xf32>
    %81 = tpu.matmul %78, %80, %cst_53 {dimension_numbers = #tpu.dot_dimension_numbers<[1], [0], [0], [1], [0, 0, 1, 1], [], []>} : vector<384x128xbf16>, vector<128x128xbf16>, vector<384x128xf32> -> vector<384x128xf32>
    %82 = arith.addf %75, %81 : vector<384x128xf32>
    %83 = vector.extract_strided_slice %76 {offsets = [1, 0, 0], sizes = [16, 24, 128], strides = [1, 1, 1]} : vector<18x24x128xbf16> to vector<16x24x128xbf16>
    %84 = vector.shape_cast %83 : vector<16x24x128xbf16> to vector<384x128xbf16>
    %c1_54 = arith.constant 1 : index
    %c1_55 = arith.constant 1 : index
    %c0_56 = arith.constant 0 : index
    %c0_57 = arith.constant 0 : index
    %85 = vector.load %arg6[%c1_54, %c1_55, %c0_56, %c0_57] : memref<3x3x128x128xbf16, #tpu.memory_space<vmem>>, vector<1x1x128x128xbf16>
    %86 = vector.shape_cast %85 : vector<1x1x128x128xbf16> to vector<128x128xbf16>
    %cst_58 = arith.constant dense<0.000000e+00> : vector<384x128xf32>
    %87 = tpu.matmul %84, %86, %cst_58 {dimension_numbers = #tpu.dot_dimension_numbers<[1], [0], [0], [1], [0, 0, 1, 1], [], []>} : vector<384x128xbf16>, vector<128x128xbf16>, vector<384x128xf32> -> vector<384x128xf32>
    %88 = arith.addf %82, %87 : vector<384x128xf32>
    %89 = vector.extract_strided_slice %76 {offsets = [2, 0, 0], sizes = [16, 24, 128], strides = [1, 1, 1]} : vector<18x24x128xbf16> to vector<16x24x128xbf16>
    %90 = vector.shape_cast %89 : vector<16x24x128xbf16> to vector<384x128xbf16>
    %c2_59 = arith.constant 2 : index
    %c1_60 = arith.constant 1 : index
    %c0_61 = arith.constant 0 : index
    %c0_62 = arith.constant 0 : index
    %91 = vector.load %arg6[%c2_59, %c1_60, %c0_61, %c0_62] : memref<3x3x128x128xbf16, #tpu.memory_space<vmem>>, vector<1x1x128x128xbf16>
    %92 = vector.shape_cast %91 : vector<1x1x128x128xbf16> to vector<128x128xbf16>
    %cst_63 = arith.constant dense<0.000000e+00> : vector<384x128xf32>
    %93 = tpu.matmul %90, %92, %cst_63 {dimension_numbers = #tpu.dot_dimension_numbers<[1], [0], [0], [1], [0, 0, 1, 1], [], []>} : vector<384x128xbf16>, vector<128x128xbf16>, vector<384x128xf32> -> vector<384x128xf32>
    %94 = arith.addf %88, %93 : vector<384x128xf32>
    %c23_i32 = arith.constant 23 : i32
    %95 = tpu.dynamic_rotate %54 by %c23_i32 dim 1 : vector<18x24x128xf32>, i32 -> vector<18x24x128xf32>
    %96 = arith.truncf %95 : vector<18x24x128xf32> to vector<18x24x128xbf16>
    %97 = vector.extract_strided_slice %96 {offsets = [0, 0, 0], sizes = [16, 24, 128], strides = [1, 1, 1]} : vector<18x24x128xbf16> to vector<16x24x128xbf16>
    %98 = vector.shape_cast %97 : vector<16x24x128xbf16> to vector<384x128xbf16>
    %c0_64 = arith.constant 0 : index
    %c2_65 = arith.constant 2 : index
    %c0_66 = arith.constant 0 : index
    %c0_67 = arith.constant 0 : index
    %99 = vector.load %arg6[%c0_64, %c2_65, %c0_66, %c0_67] : memref<3x3x128x128xbf16, #tpu.memory_space<vmem>>, vector<1x1x128x128xbf16>
    %100 = vector.shape_cast %99 : vector<1x1x128x128xbf16> to vector<128x128xbf16>
    %cst_68 = arith.constant dense<0.000000e+00> : vector<384x128xf32>
    %101 = tpu.matmul %98, %100, %cst_68 {dimension_numbers = #tpu.dot_dimension_numbers<[1], [0], [0], [1], [0, 0, 1, 1], [], []>} : vector<384x128xbf16>, vector<128x128xbf16>, vector<384x128xf32> -> vector<384x128xf32>
    %102 = arith.addf %94, %101 : vector<384x128xf32>
    %103 = vector.extract_strided_slice %96 {offsets = [1, 0, 0], sizes = [16, 24, 128], strides = [1, 1, 1]} : vector<18x24x128xbf16> to vector<16x24x128xbf16>
    %104 = vector.shape_cast %103 : vector<16x24x128xbf16> to vector<384x128xbf16>
    %c1_69 = arith.constant 1 : index
    %c2_70 = arith.constant 2 : index
    %c0_71 = arith.constant 0 : index
    %c0_72 = arith.constant 0 : index
    %105 = vector.load %arg6[%c1_69, %c2_70, %c0_71, %c0_72] : memref<3x3x128x128xbf16, #tpu.memory_space<vmem>>, vector<1x1x128x128xbf16>
    %106 = vector.shape_cast %105 : vector<1x1x128x128xbf16> to vector<128x128xbf16>
    %cst_73 = arith.constant dense<0.000000e+00> : vector<384x128xf32>
    %107 = tpu.matmul %104, %106, %cst_73 {dimension_numbers = #tpu.dot_dimension_numbers<[1], [0], [0], [1], [0, 0, 1, 1], [], []>} : vector<384x128xbf16>, vector<128x128xbf16>, vector<384x128xf32> -> vector<384x128xf32>
    %108 = arith.addf %102, %107 : vector<384x128xf32>
    %109 = vector.extract_strided_slice %96 {offsets = [2, 0, 0], sizes = [16, 24, 128], strides = [1, 1, 1]} : vector<18x24x128xbf16> to vector<16x24x128xbf16>
    %110 = vector.shape_cast %109 : vector<16x24x128xbf16> to vector<384x128xbf16>
    %c2_74 = arith.constant 2 : index
    %c2_75 = arith.constant 2 : index
    %c0_76 = arith.constant 0 : index
    %c0_77 = arith.constant 0 : index
    %111 = vector.load %arg6[%c2_74, %c2_75, %c0_76, %c0_77] : memref<3x3x128x128xbf16, #tpu.memory_space<vmem>>, vector<1x1x128x128xbf16>
    %112 = vector.shape_cast %111 : vector<1x1x128x128xbf16> to vector<128x128xbf16>
    %cst_78 = arith.constant dense<0.000000e+00> : vector<384x128xf32>
    %113 = tpu.matmul %110, %112, %cst_78 {dimension_numbers = #tpu.dot_dimension_numbers<[1], [0], [0], [1], [0, 0, 1, 1], [], []>} : vector<384x128xbf16>, vector<128x128xbf16>, vector<384x128xf32> -> vector<384x128xf32>
    %114 = arith.addf %108, %113 : vector<384x128xf32>
    %c0_79 = arith.constant 0 : index
    %c0_80 = arith.constant 0 : index
    %115 = vector.load %arg9[%c0_79, %c0_80] : memref<1x128xf32, #tpu.memory_space<vmem>>, vector<1x128xf32>
    %116 = vector.broadcast %115 : vector<1x128xf32> to vector<384x128xf32>
    %117 = arith.addf %114, %116 : vector<384x128xf32>
    %cst_81 = arith.constant 0.000000e+00 : f32
    %118 = vector.broadcast %cst_81 : f32 to vector<384x128xf32>
    %119 = arith.maximumf %117, %118 : vector<384x128xf32>
    %120 = arith.truncf %119 : vector<384x128xf32> to vector<384x128xbf16>
    %c0_82 = arith.constant 0 : index
    %c0_83 = arith.constant 0 : index
    %121 = vector.load %arg7[%c0_82, %c0_83] : memref<128x128xbf16, #tpu.memory_space<vmem>>, vector<128x128xbf16>
    %cst_84 = arith.constant dense<0.000000e+00> : vector<384x128xf32>
    %122 = tpu.matmul %120, %121, %cst_84 {dimension_numbers = #tpu.dot_dimension_numbers<[1], [0], [0], [1], [0, 0, 1, 1], [], []>} : vector<384x128xbf16>, vector<128x128xbf16>, vector<384x128xf32> -> vector<384x128xf32>
    %c0_85 = arith.constant 0 : index
    %c0_86 = arith.constant 0 : index
    %123 = vector.load %arg10[%c0_85, %c0_86] : memref<1x128xf32, #tpu.memory_space<vmem>>, vector<1x128xf32>
    %124 = vector.broadcast %123 : vector<1x128xf32> to vector<384x128xf32>
    %125 = arith.addf %122, %124 : vector<384x128xf32>
    %c0_87 = arith.constant 0 : index
    %c0_88 = arith.constant 0 : index
    %c0_89 = arith.constant 0 : index
    %c0_90 = arith.constant 0 : index
    %126 = vector.load %arg2[%c0_87, %c0_88, %c0_89, %c0_90] : memref<1x16x24x128xbf16, #tpu.memory_space<vmem>>, vector<1x16x24x128xbf16>
    %127 = vector.shape_cast %126 : vector<1x16x24x128xbf16> to vector<16x24x128xbf16>
    %128 = arith.extf %127 : vector<16x24x128xbf16> to vector<16x24x128xf32>
    %129 = vector.shape_cast %128 : vector<16x24x128xf32> to vector<384x128xf32>
    %130 = arith.addf %125, %129 : vector<384x128xf32>
    %cst_91 = arith.constant 0.000000e+00 : f32
    %131 = vector.broadcast %cst_91 : f32 to vector<384x128xf32>
    %132 = arith.maximumf %130, %131 : vector<384x128xf32>
    %133 = vector.shape_cast %132 : vector<384x128xf32> to vector<16x24x128xf32>
    %134 = arith.truncf %133 : vector<16x24x128xf32> to vector<16x24x128xbf16>
    %c0_92 = arith.constant 0 : index
    %c0_93 = arith.constant 0 : index
    %c0_94 = arith.constant 0 : index
    %c0_95 = arith.constant 0 : index
    %135 = vector.load %arg11[%c0_92, %c0_93, %c0_94, %c0_95] : memref<1x16x24x128xbf16, #tpu.memory_space<vmem>>, vector<1x16x24x128xbf16>
    %136 = vector.shape_cast %135 : vector<1x16x24x128xbf16> to vector<16x24x128xbf16>
    %137 = vector.shape_cast %134 : vector<16x24x128xbf16> to vector<1x16x24x128xbf16>
    tpu.vector_store %arg11[%c0_92, %c0_93, %c0_94, %c0_95], %137 {strides = array<i32>} : memref<1x16x24x128xbf16, #tpu.memory_space<vmem>>, vector<1x16x24x128xbf16>,
    return
  }
  func.func @transform_0(%arg0: i32, %arg1: i32) -> (i32, i32, i32, i32) {
    %c0_i32 = arith.constant 0 : i32
    %c0_i32_0 = arith.constant 0 : i32
    %c0_i32_1 = arith.constant 0 : i32
    return %arg0, %arg1, %c0_i32, %c0_i32_0 : i32, i32, i32, i32
  }
  func.func @transform_1(%arg0: i32, %arg1: i32) -> (i32, i32, i32, i32) {
    %c16_i32 = arith.constant 16 : i32
    %0 = arith.muli %arg1, %c16_i32 : i32
    %c1_i32 = arith.constant 1 : i32
    %1 = arith.subi %0, %c1_i32 : i32
    %c0_i32 = arith.constant 0 : i32
    %2 = arith.maxsi %1, %c0_i32 : i32
    %c0_i32_0 = arith.constant 0 : i32
    %c0_i32_1 = arith.constant 0 : i32
    %c0_i32_2 = arith.constant 0 : i32
    return %arg0, %2, %c0_i32_0, %c0_i32_1 : i32, i32, i32, i32
  }
  func.func @transform_2(%arg0: i32, %arg1: i32) -> (i32, i32, i32, i32) {
    %c1_i32 = arith.constant 1 : i32
    %0 = arith.addi %arg1, %c1_i32 : i32
    %c16_i32 = arith.constant 16 : i32
    %1 = arith.muli %0, %c16_i32 : i32
    %c0_i32 = arith.constant 0 : i32
    %c0_i32_0 = arith.constant 0 : i32
    %c0_i32_1 = arith.constant 0 : i32
    return %arg0, %1, %c0_i32, %c0_i32_0 : i32, i32, i32, i32
  }
  func.func @transform_3(%arg0: i32, %arg1: i32) -> (i32, i32) {
    %c0_i32 = arith.constant 0 : i32
    %c0_i32_0 = arith.constant 0 : i32
    %c0_i32_1 = arith.constant 0 : i32
    return %c0_i32, %c0_i32_0 : i32, i32
  }
  func.func @transform_4(%arg0: i32, %arg1: i32) -> (i32, i32, i32, i32) {
    %c0_i32 = arith.constant 0 : i32
    %c0_i32_0 = arith.constant 0 : i32
    %c0_i32_1 = arith.constant 0 : i32
    %c0_i32_2 = arith.constant 0 : i32
    %c0_i32_3 = arith.constant 0 : i32
    return %c0_i32, %c0_i32_0, %c0_i32_1, %c0_i32_2 : i32, i32, i32, i32
  }
  func.func @transform_5(%arg0: i32, %arg1: i32) -> (i32, i32) {
    %c0_i32 = arith.constant 0 : i32
    %c0_i32_0 = arith.constant 0 : i32
    %c0_i32_1 = arith.constant 0 : i32
    return %c0_i32, %c0_i32_0 : i32, i32
  }
  func.func @transform_6(%arg0: i32, %arg1: i32) -> (i32, i32) {
    %c0_i32 = arith.constant 0 : i32
    %c0_i32_0 = arith.constant 0 : i32
    %c0_i32_1 = arith.constant 0 : i32
    return %c0_i32, %c0_i32_0 : i32, i32
  }
  func.func @transform_7(%arg0: i32, %arg1: i32) -> (i32, i32) {
    %c0_i32 = arith.constant 0 : i32
    %c0_i32_0 = arith.constant 0 : i32
    %c0_i32_1 = arith.constant 0 : i32
    return %c0_i32, %c0_i32_0 : i32, i32
  }
  func.func @transform_8(%arg0: i32, %arg1: i32) -> (i32, i32) {
    %c0_i32 = arith.constant 0 : i32
    %c0_i32_0 = arith.constant 0 : i32
    %c0_i32_1 = arith.constant 0 : i32
    return %c0_i32, %c0_i32_0 : i32, i32
  }
  func.func @transform_9(%arg0: i32, %arg1: i32) -> (i32, i32, i32, i32) {
    %c0_i32 = arith.constant 0 : i32
    %c0_i32_0 = arith.constant 0 : i32
    %c0_i32_1 = arith.constant 0 : i32
    return %arg0, %arg1, %c0_i32, %c0_i32_0 : i32, i32, i32, i32
  }
}

module attributes {stable_mosaic.version = 11 : i64} {
  func.func @_bottleneck_kernel(%arg0: i32, %arg1: i32, %arg2: memref<1x16x24x128xbf16, #tpu.memory_space<vmem>>, %arg3: memref<1x1x24x128xbf16, #tpu.memory_space<vmem>>, %arg4: memref<1x1x24x128xbf16, #tpu.memory_space<vmem>>, %arg5: memref<128x128xbf16, #tpu.memory_space<vmem>>, %arg6: memref<3x3x128x128xbf16, #tpu.memory_space<vmem>>, %arg7: memref<128x128xbf16, #tpu.memory_space<vmem>>, %arg8: memref<1x128xf32, #tpu.memory_space<vmem>>, %arg9: memref<1x128xf32, #tpu.memory_space<vmem>>, %arg10: memref<1x128xf32, #tpu.memory_space<vmem>>, %arg11: memref<1x16x24x128xbf16, #tpu.memory_space<vmem>>, %arg12: memref<18x24x128xf32, #tpu.memory_space<vmem>>) attributes {dimension_semantics = [#tpu.dimension_semantics<parallel>, #tpu.dimension_semantics<parallel>], iteration_bounds = array<i64: 2, 1>, scalar_prefetch = 0 : i64, scratch_operands = 1 : i64, tpu.core_type = #tpu.core_type<tc>, window_params = [{transform_indices = @transform_0, window_bounds = array<i64: 1, 16, 24, 128>}, {transform_indices = @transform_1, window_bounds = array<i64: 1, 1, 24, 128>}, {transform_indices = @transform_2, window_bounds = array<i64: 1, 1, 24, 128>}, {pipeline_mode = #tpu.pipeline_mode<synchronous>, transform_indices = @transform_3, window_bounds = array<i64: 128, 128>}, {pipeline_mode = #tpu.pipeline_mode<synchronous>, transform_indices = @transform_4, window_bounds = array<i64: 3, 3, 128, 128>}, {pipeline_mode = #tpu.pipeline_mode<synchronous>, transform_indices = @transform_5, window_bounds = array<i64: 128, 128>}, {pipeline_mode = #tpu.pipeline_mode<synchronous>, transform_indices = @transform_6, window_bounds = array<i64: 1, 128>}, {pipeline_mode = #tpu.pipeline_mode<synchronous>, transform_indices = @transform_7, window_bounds = array<i64: 1, 128>}, {pipeline_mode = #tpu.pipeline_mode<synchronous>, transform_indices = @transform_8, window_bounds = array<i64: 1, 128>}, {transform_indices = @transform_9, window_bounds = array<i64: 1, 16, 24, 128>}]} {
    %0 = tpu.iota {dimensions = array<i32: 0>} : vector<24x1xi32>
    %c16_i32 = arith.constant 16 : i32
    %1 = vector.broadcast %c16_i32 : i32 to vector<24x1xi32>
    %2 = arith.cmpi slt, %0, %1 : vector<24x1xi32>
    %c0 = arith.constant 0 : index
    %c0_0 = arith.constant 0 : index
    %3 = vector.load %arg5[%c0, %c0_0] : memref<128x128xbf16, #tpu.memory_space<vmem>>, vector<128x128xbf16>
    %c0_1 = arith.constant 0 : index
    %c0_2 = arith.constant 0 : index
    %4 = vector.load %arg8[%c0_1, %c0_2] : memref<1x128xf32, #tpu.memory_space<vmem>>, vector<1x128xf32>
    %c0_3 = arith.constant 0 : index
    %c0_4 = arith.constant 0 : index
    %c0_5 = arith.constant 0 : index
    %c0_6 = arith.constant 0 : index
    %5 = vector.load %arg2[%c0_3, %c0_4, %c0_5, %c0_6] : memref<1x16x24x128xbf16, #tpu.memory_space<vmem>>, vector<1x16x24x128xbf16>
    %6 = vector.shape_cast %5 : vector<1x16x24x128xbf16> to vector<16x24x128xbf16>
    %7 = vector.shape_cast %6 : vector<16x24x128xbf16> to vector<384x128xbf16>
    %cst = arith.constant dense<0.000000e+00> : vector<384x128xf32>
    %8 = tpu.matmul %7, %3, %cst {dimension_numbers = #tpu.dot_dimension_numbers<[1], [0], [0], [1], [0, 0, 1, 1], [], []>} : vector<384x128xbf16>, vector<128x128xbf16>, vector<384x128xf32> -> vector<384x128xf32>
    %9 = vector.broadcast %4 : vector<1x128xf32> to vector<384x128xf32>
    %10 = arith.addf %8, %9 : vector<384x128xf32>
    %cst_7 = arith.constant 0.000000e+00 : f32
    %11 = vector.broadcast %cst_7 : f32 to vector<384x128xf32>
    %12 = arith.maximumf %10, %11 : vector<384x128xf32>
    %13 = vector.shape_cast %12 : vector<384x128xf32> to vector<16x24x128xf32>
    %14 = vector.shape_cast %2 : vector<24x1xi1> to vector<1x24x1xi1>
    %cst_8 = arith.constant 0.000000e+00 : f32
    %15 = vector.shape_cast %14 : vector<1x24x1xi1> to vector<1x24x1xi1>
    %16 = vector.broadcast %15 : vector<1x24x1xi1> to vector<16x24x128xi1>
    %17 = vector.broadcast %cst_8 : f32 to vector<16x24x128xf32>
    %18 = arith.select %16, %13, %17 : vector<16x24x128xi1>, vector<16x24x128xf32>
    %c1 = arith.constant 1 : index
    %c0_9 = arith.constant 0 : index
    %c0_10 = arith.constant 0 : index
    %19 = vector.load %arg12[%c1, %c0_9, %c0_10] : memref<18x24x128xf32, #tpu.memory_space<vmem>>, vector<16x24x128xf32>
    tpu.vector_store %arg12[%c1, %c0_9, %c0_10], %18 {strides = array<i32>} : memref<18x24x128xf32, #tpu.memory_space<vmem>>, vector<16x24x128xf32>,
    %c0_i32 = arith.constant 0 : i32
    %20 = arith.cmpi sgt, %arg1, %c0_i32 : i32
    %21 = vector.broadcast %20 : i1 to vector<24x1xi1>
    %22 = arith.andi %2, %21 : vector<24x1xi1>
    %c0_11 = arith.constant 0 : index
    %c0_12 = arith.constant 0 : index
    %c0_13 = arith.constant 0 : index
    %c0_14 = arith.constant 0 : index
    %23 = vector.load %arg3[%c0_11, %c0_12, %c0_13, %c0_14] : memref<1x1x24x128xbf16, #tpu.memory_space<vmem>>, vector<1x1x24x128xbf16>
    %24 = vector.shape_cast %23 : vector<1x1x24x128xbf16> to vector<24x128xbf16>
    %cst_15 = arith.constant dense<0.000000e+00> : vector<24x128xf32>
    %25 = tpu.matmul %24, %3, %cst_15 {dimension_numbers = #tpu.dot_dimension_numbers<[1], [0], [0], [1], [0, 0, 1, 1], [], []>} : vector<24x128xbf16>, vector<128x128xbf16>, vector<24x128xf32> -> vector<24x128xf32>
    %26 = vector.broadcast %4 : vector<1x128xf32> to vector<24x128xf32>
    %27 = arith.addf %25, %26 : vector<24x128xf32>
    %cst_16 = arith.constant 0.000000e+00 : f32
    %28 = vector.broadcast %cst_16 : f32 to vector<24x128xf32>
    %29 = arith.maximumf %27, %28 : vector<24x128xf32>
    %cst_17 = arith.constant 0.000000e+00 : f32
    %30 = vector.shape_cast %22 : vector<24x1xi1> to vector<24x1xi1>
    %31 = vector.broadcast %30 : vector<24x1xi1> to vector<24x128xi1>
    %32 = vector.broadcast %cst_17 : f32 to vector<24x128xf32>
    %33 = arith.select %31, %29, %32 : vector<24x128xi1>, vector<24x128xf32>
    %c0_18 = arith.constant 0 : index
    %c0_19 = arith.constant 0 : index
    %c0_20 = arith.constant 0 : index
    %34 = vector.load %arg12[%c0_18, %c0_19, %c0_20] : memref<18x24x128xf32, #tpu.memory_space<vmem>>, vector<1x24x128xf32>
    %35 = vector.shape_cast %34 : vector<1x24x128xf32> to vector<24x128xf32>
    %36 = vector.shape_cast %33 : vector<24x128xf32> to vector<1x24x128xf32>
    tpu.vector_store %arg12[%c0_18, %c0_19, %c0_20], %36 {strides = array<i32>} : memref<18x24x128xf32, #tpu.memory_space<vmem>>, vector<1x24x128xf32>,
    %c0_i32_21 = arith.constant 0 : i32
    %37 = arith.cmpi slt, %arg1, %c0_i32_21 : i32
    %38 = vector.broadcast %37 : i1 to vector<24x1xi1>
    %39 = arith.andi %2, %38 : vector<24x1xi1>
    %c0_22 = arith.constant 0 : index
    %c0_23 = arith.constant 0 : index
    %c0_24 = arith.constant 0 : index
    %c0_25 = arith.constant 0 : index
    %40 = vector.load %arg4[%c0_22, %c0_23, %c0_24, %c0_25] : memref<1x1x24x128xbf16, #tpu.memory_space<vmem>>, vector<1x1x24x128xbf16>
    %41 = vector.shape_cast %40 : vector<1x1x24x128xbf16> to vector<24x128xbf16>
    %cst_26 = arith.constant dense<0.000000e+00> : vector<24x128xf32>
    %42 = tpu.matmul %41, %3, %cst_26 {dimension_numbers = #tpu.dot_dimension_numbers<[1], [0], [0], [1], [0, 0, 1, 1], [], []>} : vector<24x128xbf16>, vector<128x128xbf16>, vector<24x128xf32> -> vector<24x128xf32>
    %43 = vector.broadcast %4 : vector<1x128xf32> to vector<24x128xf32>
    %44 = arith.addf %42, %43 : vector<24x128xf32>
    %cst_27 = arith.constant 0.000000e+00 : f32
    %45 = vector.broadcast %cst_27 : f32 to vector<24x128xf32>
    %46 = arith.maximumf %44, %45 : vector<24x128xf32>
    %cst_28 = arith.constant 0.000000e+00 : f32
    %47 = vector.shape_cast %39 : vector<24x1xi1> to vector<24x1xi1>
    %48 = vector.broadcast %47 : vector<24x1xi1> to vector<24x128xi1>
    %49 = vector.broadcast %cst_28 : f32 to vector<24x128xf32>
    %50 = arith.select %48, %46, %49 : vector<24x128xi1>, vector<24x128xf32>
    %c17 = arith.constant 17 : index
    %c0_29 = arith.constant 0 : index
    %c0_30 = arith.constant 0 : index
    %51 = vector.load %arg12[%c17, %c0_29, %c0_30] : memref<18x24x128xf32, #tpu.memory_space<vmem>>, vector<1x24x128xf32>
    %52 = vector.shape_cast %51 : vector<1x24x128xf32> to vector<24x128xf32>
    %53 = vector.shape_cast %50 : vector<24x128xf32> to vector<1x24x128xf32>
    tpu.vector_store %arg12[%c17, %c0_29, %c0_30], %53 {strides = array<i32>} : memref<18x24x128xf32, #tpu.memory_space<vmem>>, vector<1x24x128xf32>,
    %c0_31 = arith.constant 0 : index
    %c0_32 = arith.constant 0 : index
    %c0_33 = arith.constant 0 : index
    %54 = vector.load %arg12[%c0_31, %c0_32, %c0_33] : memref<18x24x128xf32, #tpu.memory_space<vmem>>, vector<18x24x128xf32>
    %cst_34 = arith.constant 0.000000e+00 : f32
    %55 = vector.broadcast %cst_34 : f32 to vector<384x128xf32>
    %56 = vector.extract_strided_slice %54 {offsets = [0, 23, 0], sizes = [18, 1, 128], strides = [1, 1, 1]} : vector<18x24x128xf32> to vector<18x1x128xf32>
    %57 = vector.extract_strided_slice %54 {offsets = [0, 0, 0], sizes = [18, 23, 128], strides = [1, 1, 1]} : vector<18x24x128xf32> to vector<18x23x128xf32>
    %58 = tpu.concatenate %56, %57 in 1 : vector<18x1x128xf32>, vector<18x23x128xf32> -> vector<18x24x128xf32>
    %59 = arith.truncf %58 : vector<18x24x128xf32> to vector<18x24x128xbf16>
    %60 = vector.extract_strided_slice %59 {offsets = [0, 0, 0], sizes = [16, 24, 128], strides = [1, 1, 1]} : vector<18x24x128xbf16> to vector<16x24x128xbf16>
    %61 = vector.shape_cast %60 : vector<16x24x128xbf16> to vector<384x128xbf16>
    %c0_35 = arith.constant 0 : index
    %c0_36 = arith.constant 0 : index
    %c0_37 = arith.constant 0 : index
    %c0_38 = arith.constant 0 : index
    %62 = vector.load %arg6[%c0_35, %c0_36, %c0_37, %c0_38] : memref<3x3x128x128xbf16, #tpu.memory_space<vmem>>, vector<1x1x128x128xbf16>
    %63 = vector.shape_cast %62 : vector<1x1x128x128xbf16> to vector<128x128xbf16>
    %cst_39 = arith.constant dense<0.000000e+00> : vector<384x128xf32>
    %64 = tpu.matmul %61, %63, %cst_39 {dimension_numbers = #tpu.dot_dimension_numbers<[1], [0], [0], [1], [0, 0, 1, 1], [], []>} : vector<384x128xbf16>, vector<128x128xbf16>, vector<384x128xf32> -> vector<384x128xf32>
    %65 = arith.addf %55, %64 : vector<384x128xf32>
    %66 = vector.extract_strided_slice %59 {offsets = [1, 0, 0], sizes = [16, 24, 128], strides = [1, 1, 1]} : vector<18x24x128xbf16> to vector<16x24x128xbf16>
    %67 = vector.shape_cast %66 : vector<16x24x128xbf16> to vector<384x128xbf16>
    %c1_40 = arith.constant 1 : index
    %c0_41 = arith.constant 0 : index
    %c0_42 = arith.constant 0 : index
    %c0_43 = arith.constant 0 : index
    %68 = vector.load %arg6[%c1_40, %c0_41, %c0_42, %c0_43] : memref<3x3x128x128xbf16, #tpu.memory_space<vmem>>, vector<1x1x128x128xbf16>
    %69 = vector.shape_cast %68 : vector<1x1x128x128xbf16> to vector<128x128xbf16>
    %cst_44 = arith.constant dense<0.000000e+00> : vector<384x128xf32>
    %70 = tpu.matmul %67, %69, %cst_44 {dimension_numbers = #tpu.dot_dimension_numbers<[1], [0], [0], [1], [0, 0, 1, 1], [], []>} : vector<384x128xbf16>, vector<128x128xbf16>, vector<384x128xf32> -> vector<384x128xf32>
    %71 = arith.addf %65, %70 : vector<384x128xf32>
    %72 = vector.extract_strided_slice %59 {offsets = [2, 0, 0], sizes = [16, 24, 128], strides = [1, 1, 1]} : vector<18x24x128xbf16> to vector<16x24x128xbf16>
    %73 = vector.shape_cast %72 : vector<16x24x128xbf16> to vector<384x128xbf16>
    %c2 = arith.constant 2 : index
    %c0_45 = arith.constant 0 : index
    %c0_46 = arith.constant 0 : index
    %c0_47 = arith.constant 0 : index
    %74 = vector.load %arg6[%c2, %c0_45, %c0_46, %c0_47] : memref<3x3x128x128xbf16, #tpu.memory_space<vmem>>, vector<1x1x128x128xbf16>
    %75 = vector.shape_cast %74 : vector<1x1x128x128xbf16> to vector<128x128xbf16>
    %cst_48 = arith.constant dense<0.000000e+00> : vector<384x128xf32>
    %76 = tpu.matmul %73, %75, %cst_48 {dimension_numbers = #tpu.dot_dimension_numbers<[1], [0], [0], [1], [0, 0, 1, 1], [], []>} : vector<384x128xbf16>, vector<128x128xbf16>, vector<384x128xf32> -> vector<384x128xf32>
    %77 = arith.addf %71, %76 : vector<384x128xf32>
    %78 = arith.truncf %54 : vector<18x24x128xf32> to vector<18x24x128xbf16>
    %79 = vector.extract_strided_slice %78 {offsets = [0, 0, 0], sizes = [16, 24, 128], strides = [1, 1, 1]} : vector<18x24x128xbf16> to vector<16x24x128xbf16>
    %80 = vector.shape_cast %79 : vector<16x24x128xbf16> to vector<384x128xbf16>
    %c0_49 = arith.constant 0 : index
    %c1_50 = arith.constant 1 : index
    %c0_51 = arith.constant 0 : index
    %c0_52 = arith.constant 0 : index
    %81 = vector.load %arg6[%c0_49, %c1_50, %c0_51, %c0_52] : memref<3x3x128x128xbf16, #tpu.memory_space<vmem>>, vector<1x1x128x128xbf16>
    %82 = vector.shape_cast %81 : vector<1x1x128x128xbf16> to vector<128x128xbf16>
    %cst_53 = arith.constant dense<0.000000e+00> : vector<384x128xf32>
    %83 = tpu.matmul %80, %82, %cst_53 {dimension_numbers = #tpu.dot_dimension_numbers<[1], [0], [0], [1], [0, 0, 1, 1], [], []>} : vector<384x128xbf16>, vector<128x128xbf16>, vector<384x128xf32> -> vector<384x128xf32>
    %84 = arith.addf %77, %83 : vector<384x128xf32>
    %85 = vector.extract_strided_slice %78 {offsets = [1, 0, 0], sizes = [16, 24, 128], strides = [1, 1, 1]} : vector<18x24x128xbf16> to vector<16x24x128xbf16>
    %86 = vector.shape_cast %85 : vector<16x24x128xbf16> to vector<384x128xbf16>
    %c1_54 = arith.constant 1 : index
    %c1_55 = arith.constant 1 : index
    %c0_56 = arith.constant 0 : index
    %c0_57 = arith.constant 0 : index
    %87 = vector.load %arg6[%c1_54, %c1_55, %c0_56, %c0_57] : memref<3x3x128x128xbf16, #tpu.memory_space<vmem>>, vector<1x1x128x128xbf16>
    %88 = vector.shape_cast %87 : vector<1x1x128x128xbf16> to vector<128x128xbf16>
    %cst_58 = arith.constant dense<0.000000e+00> : vector<384x128xf32>
    %89 = tpu.matmul %86, %88, %cst_58 {dimension_numbers = #tpu.dot_dimension_numbers<[1], [0], [0], [1], [0, 0, 1, 1], [], []>} : vector<384x128xbf16>, vector<128x128xbf16>, vector<384x128xf32> -> vector<384x128xf32>
    %90 = arith.addf %84, %89 : vector<384x128xf32>
    %91 = vector.extract_strided_slice %78 {offsets = [2, 0, 0], sizes = [16, 24, 128], strides = [1, 1, 1]} : vector<18x24x128xbf16> to vector<16x24x128xbf16>
    %92 = vector.shape_cast %91 : vector<16x24x128xbf16> to vector<384x128xbf16>
    %c2_59 = arith.constant 2 : index
    %c1_60 = arith.constant 1 : index
    %c0_61 = arith.constant 0 : index
    %c0_62 = arith.constant 0 : index
    %93 = vector.load %arg6[%c2_59, %c1_60, %c0_61, %c0_62] : memref<3x3x128x128xbf16, #tpu.memory_space<vmem>>, vector<1x1x128x128xbf16>
    %94 = vector.shape_cast %93 : vector<1x1x128x128xbf16> to vector<128x128xbf16>
    %cst_63 = arith.constant dense<0.000000e+00> : vector<384x128xf32>
    %95 = tpu.matmul %92, %94, %cst_63 {dimension_numbers = #tpu.dot_dimension_numbers<[1], [0], [0], [1], [0, 0, 1, 1], [], []>} : vector<384x128xbf16>, vector<128x128xbf16>, vector<384x128xf32> -> vector<384x128xf32>
    %96 = arith.addf %90, %95 : vector<384x128xf32>
    %97 = vector.extract_strided_slice %54 {offsets = [0, 1, 0], sizes = [18, 23, 128], strides = [1, 1, 1]} : vector<18x24x128xf32> to vector<18x23x128xf32>
    %98 = vector.extract_strided_slice %54 {offsets = [0, 0, 0], sizes = [18, 1, 128], strides = [1, 1, 1]} : vector<18x24x128xf32> to vector<18x1x128xf32>
    %99 = tpu.concatenate %97, %98 in 1 : vector<18x23x128xf32>, vector<18x1x128xf32> -> vector<18x24x128xf32>
    %100 = arith.truncf %99 : vector<18x24x128xf32> to vector<18x24x128xbf16>
    %101 = vector.extract_strided_slice %100 {offsets = [0, 0, 0], sizes = [16, 24, 128], strides = [1, 1, 1]} : vector<18x24x128xbf16> to vector<16x24x128xbf16>
    %102 = vector.shape_cast %101 : vector<16x24x128xbf16> to vector<384x128xbf16>
    %c0_64 = arith.constant 0 : index
    %c2_65 = arith.constant 2 : index
    %c0_66 = arith.constant 0 : index
    %c0_67 = arith.constant 0 : index
    %103 = vector.load %arg6[%c0_64, %c2_65, %c0_66, %c0_67] : memref<3x3x128x128xbf16, #tpu.memory_space<vmem>>, vector<1x1x128x128xbf16>
    %104 = vector.shape_cast %103 : vector<1x1x128x128xbf16> to vector<128x128xbf16>
    %cst_68 = arith.constant dense<0.000000e+00> : vector<384x128xf32>
    %105 = tpu.matmul %102, %104, %cst_68 {dimension_numbers = #tpu.dot_dimension_numbers<[1], [0], [0], [1], [0, 0, 1, 1], [], []>} : vector<384x128xbf16>, vector<128x128xbf16>, vector<384x128xf32> -> vector<384x128xf32>
    %106 = arith.addf %96, %105 : vector<384x128xf32>
    %107 = vector.extract_strided_slice %100 {offsets = [1, 0, 0], sizes = [16, 24, 128], strides = [1, 1, 1]} : vector<18x24x128xbf16> to vector<16x24x128xbf16>
    %108 = vector.shape_cast %107 : vector<16x24x128xbf16> to vector<384x128xbf16>
    %c1_69 = arith.constant 1 : index
    %c2_70 = arith.constant 2 : index
    %c0_71 = arith.constant 0 : index
    %c0_72 = arith.constant 0 : index
    %109 = vector.load %arg6[%c1_69, %c2_70, %c0_71, %c0_72] : memref<3x3x128x128xbf16, #tpu.memory_space<vmem>>, vector<1x1x128x128xbf16>
    %110 = vector.shape_cast %109 : vector<1x1x128x128xbf16> to vector<128x128xbf16>
    %cst_73 = arith.constant dense<0.000000e+00> : vector<384x128xf32>
    %111 = tpu.matmul %108, %110, %cst_73 {dimension_numbers = #tpu.dot_dimension_numbers<[1], [0], [0], [1], [0, 0, 1, 1], [], []>} : vector<384x128xbf16>, vector<128x128xbf16>, vector<384x128xf32> -> vector<384x128xf32>
    %112 = arith.addf %106, %111 : vector<384x128xf32>
    %113 = vector.extract_strided_slice %100 {offsets = [2, 0, 0], sizes = [16, 24, 128], strides = [1, 1, 1]} : vector<18x24x128xbf16> to vector<16x24x128xbf16>
    %114 = vector.shape_cast %113 : vector<16x24x128xbf16> to vector<384x128xbf16>
    %c2_74 = arith.constant 2 : index
    %c2_75 = arith.constant 2 : index
    %c0_76 = arith.constant 0 : index
    %c0_77 = arith.constant 0 : index
    %115 = vector.load %arg6[%c2_74, %c2_75, %c0_76, %c0_77] : memref<3x3x128x128xbf16, #tpu.memory_space<vmem>>, vector<1x1x128x128xbf16>
    %116 = vector.shape_cast %115 : vector<1x1x128x128xbf16> to vector<128x128xbf16>
    %cst_78 = arith.constant dense<0.000000e+00> : vector<384x128xf32>
    %117 = tpu.matmul %114, %116, %cst_78 {dimension_numbers = #tpu.dot_dimension_numbers<[1], [0], [0], [1], [0, 0, 1, 1], [], []>} : vector<384x128xbf16>, vector<128x128xbf16>, vector<384x128xf32> -> vector<384x128xf32>
    %118 = arith.addf %112, %117 : vector<384x128xf32>
    %c0_79 = arith.constant 0 : index
    %c0_80 = arith.constant 0 : index
    %119 = vector.load %arg9[%c0_79, %c0_80] : memref<1x128xf32, #tpu.memory_space<vmem>>, vector<1x128xf32>
    %120 = vector.broadcast %119 : vector<1x128xf32> to vector<384x128xf32>
    %121 = arith.addf %118, %120 : vector<384x128xf32>
    %cst_81 = arith.constant 0.000000e+00 : f32
    %122 = vector.broadcast %cst_81 : f32 to vector<384x128xf32>
    %123 = arith.maximumf %121, %122 : vector<384x128xf32>
    %124 = arith.truncf %123 : vector<384x128xf32> to vector<384x128xbf16>
    %c0_82 = arith.constant 0 : index
    %c0_83 = arith.constant 0 : index
    %125 = vector.load %arg7[%c0_82, %c0_83] : memref<128x128xbf16, #tpu.memory_space<vmem>>, vector<128x128xbf16>
    %cst_84 = arith.constant dense<0.000000e+00> : vector<384x128xf32>
    %126 = tpu.matmul %124, %125, %cst_84 {dimension_numbers = #tpu.dot_dimension_numbers<[1], [0], [0], [1], [0, 0, 1, 1], [], []>} : vector<384x128xbf16>, vector<128x128xbf16>, vector<384x128xf32> -> vector<384x128xf32>
    %c0_85 = arith.constant 0 : index
    %c0_86 = arith.constant 0 : index
    %127 = vector.load %arg10[%c0_85, %c0_86] : memref<1x128xf32, #tpu.memory_space<vmem>>, vector<1x128xf32>
    %128 = vector.broadcast %127 : vector<1x128xf32> to vector<384x128xf32>
    %129 = arith.addf %126, %128 : vector<384x128xf32>
    %c0_87 = arith.constant 0 : index
    %c0_88 = arith.constant 0 : index
    %c0_89 = arith.constant 0 : index
    %c0_90 = arith.constant 0 : index
    %130 = vector.load %arg2[%c0_87, %c0_88, %c0_89, %c0_90] : memref<1x16x24x128xbf16, #tpu.memory_space<vmem>>, vector<1x16x24x128xbf16>
    %131 = vector.shape_cast %130 : vector<1x16x24x128xbf16> to vector<16x24x128xbf16>
    %132 = arith.extf %131 : vector<16x24x128xbf16> to vector<16x24x128xf32>
    %133 = vector.shape_cast %132 : vector<16x24x128xf32> to vector<384x128xf32>
    %134 = arith.addf %129, %133 : vector<384x128xf32>
    %cst_91 = arith.constant 0.000000e+00 : f32
    %135 = vector.broadcast %cst_91 : f32 to vector<384x128xf32>
    %136 = arith.maximumf %134, %135 : vector<384x128xf32>
    %137 = vector.shape_cast %136 : vector<384x128xf32> to vector<16x24x128xf32>
    %138 = arith.truncf %137 : vector<16x24x128xf32> to vector<16x24x128xbf16>
    %c0_92 = arith.constant 0 : index
    %c0_93 = arith.constant 0 : index
    %c0_94 = arith.constant 0 : index
    %c0_95 = arith.constant 0 : index
    %139 = vector.load %arg11[%c0_92, %c0_93, %c0_94, %c0_95] : memref<1x16x24x128xbf16, #tpu.memory_space<vmem>>, vector<1x16x24x128xbf16>
    %140 = vector.shape_cast %139 : vector<1x16x24x128xbf16> to vector<16x24x128xbf16>
    %141 = vector.shape_cast %138 : vector<16x24x128xbf16> to vector<1x16x24x128xbf16>
    tpu.vector_store %arg11[%c0_92, %c0_93, %c0_94, %c0_95], %141 {strides = array<i32>} : memref<1x16x24x128xbf16, #tpu.memory_space<vmem>>, vector<1x16x24x128xbf16>,
    return
  }
  func.func @transform_0(%arg0: i32, %arg1: i32) -> (i32, i32, i32, i32) {
    %c0_i32 = arith.constant 0 : i32
    %c0_i32_0 = arith.constant 0 : i32
    %c0_i32_1 = arith.constant 0 : i32
    return %arg0, %arg1, %c0_i32, %c0_i32_0 : i32, i32, i32, i32
  }
  func.func @transform_1(%arg0: i32, %arg1: i32) -> (i32, i32, i32, i32) {
    %c16_i32 = arith.constant 16 : i32
    %0 = arith.muli %arg1, %c16_i32 : i32
    %c1_i32 = arith.constant 1 : i32
    %1 = arith.subi %0, %c1_i32 : i32
    %c0_i32 = arith.constant 0 : i32
    %2 = arith.maxsi %1, %c0_i32 : i32
    %c0_i32_0 = arith.constant 0 : i32
    %c0_i32_1 = arith.constant 0 : i32
    %c0_i32_2 = arith.constant 0 : i32
    return %arg0, %2, %c0_i32_0, %c0_i32_1 : i32, i32, i32, i32
  }
  func.func @transform_2(%arg0: i32, %arg1: i32) -> (i32, i32, i32, i32) {
    %c1_i32 = arith.constant 1 : i32
    %0 = arith.addi %arg1, %c1_i32 : i32
    %c16_i32 = arith.constant 16 : i32
    %1 = arith.muli %0, %c16_i32 : i32
    %c0_i32 = arith.constant 0 : i32
    %c0_i32_0 = arith.constant 0 : i32
    %c0_i32_1 = arith.constant 0 : i32
    return %arg0, %1, %c0_i32, %c0_i32_0 : i32, i32, i32, i32
  }
  func.func @transform_3(%arg0: i32, %arg1: i32) -> (i32, i32) {
    %c0_i32 = arith.constant 0 : i32
    %c0_i32_0 = arith.constant 0 : i32
    %c0_i32_1 = arith.constant 0 : i32
    return %c0_i32, %c0_i32_0 : i32, i32
  }
  func.func @transform_4(%arg0: i32, %arg1: i32) -> (i32, i32, i32, i32) {
    %c0_i32 = arith.constant 0 : i32
    %c0_i32_0 = arith.constant 0 : i32
    %c0_i32_1 = arith.constant 0 : i32
    %c0_i32_2 = arith.constant 0 : i32
    %c0_i32_3 = arith.constant 0 : i32
    return %c0_i32, %c0_i32_0, %c0_i32_1, %c0_i32_2 : i32, i32, i32, i32
  }
  func.func @transform_5(%arg0: i32, %arg1: i32) -> (i32, i32) {
    %c0_i32 = arith.constant 0 : i32
    %c0_i32_0 = arith.constant 0 : i32
    %c0_i32_1 = arith.constant 0 : i32
    return %c0_i32, %c0_i32_0 : i32, i32
  }
  func.func @transform_6(%arg0: i32, %arg1: i32) -> (i32, i32) {
    %c0_i32 = arith.constant 0 : i32
    %c0_i32_0 = arith.constant 0 : i32
    %c0_i32_1 = arith.constant 0 : i32
    return %c0_i32, %c0_i32_0 : i32, i32
  }
  func.func @transform_7(%arg0: i32, %arg1: i32) -> (i32, i32) {
    %c0_i32 = arith.constant 0 : i32
    %c0_i32_0 = arith.constant 0 : i32
    %c0_i32_1 = arith.constant 0 : i32
    return %c0_i32, %c0_i32_0 : i32, i32
  }
  func.func @transform_8(%arg0: i32, %arg1: i32) -> (i32, i32) {
    %c0_i32 = arith.constant 0 : i32
    %c0_i32_0 = arith.constant 0 : i32
    %c0_i32_1 = arith.constant 0 : i32
    return %c0_i32, %c0_i32_0 : i32, i32
  }
  func.func @transform_9(%arg0: i32, %arg1: i32) -> (i32, i32, i32, i32) {
    %c0_i32 = arith.constant 0 : i32
    %c0_i32_0 = arith.constant 0 : i32
    %c0_i32_1 = arith.constant 0 : i32
    return %arg0, %arg1, %c0_i32, %c0_i32_0 : i32, i32, i32, i32
  }
}

</mosaic_0001>

<bundles_post_ra>
// kernel: bottleneck_forward.1
= control target key start
LH: loop header
LB: loop body
LE: loop exit
PB: predicated region body
PF: predicated region fallthrough
CT: control target
= control target key end

     0   :  { %s6167_s30 = smov 0   ;;  %s6169_s10 = smov 0   ;;  %s8549_s0 = inlined_call_operand.vmem [shape: bf16[2,17,24,128], index: 0, kind: input, shape index: {}, may-alias: {0,1,2}]   ;;  %s8550_s1 = inlined_call_operand.vmem [shape: bf16[2,17,24,128], index: 1, kind: input, shape index: {}, may-alias: {0,1,2}]   ;;  %s8551_s2 = inlined_call_operand.vmem [shape: bf16[2,17,24,128], index: 2, kind: input, shape index: {}, may-alias: {0,1,2}]   ;;  %s8552_s3 = inlined_call_operand.vmem [shape: bf16[128,128], index: 3, kind: input, shape index: {}]   ;;  %s8553_s4 = inlined_call_operand.vmem [shape: bf16[3,3,128,128], index: 4, kind: input, shape index: {}]   ;;  %s8554_s5 = inlined_call_operand.vmem [shape: bf16[128,128], index: 5, kind: input, shape index: {}]   ;;  %s8555_s6 = inlined_call_operand.vmem [shape: f32[1,128], index: 6, kind: input, shape index: {}]   ;;  %s8556_s7 = inlined_call_operand.vmem [shape: f32[1,128], index: 7, kind: input, shape index: {}]   ;;  %s8557_s8 = inlined_call_operand.vmem [shape: f32[1,128], index: 8, kind: input, shape index: {}]   ;;  %s8558_s9 = inlined_call_operand.vmem [shape: bf16[2,16,24,128], index: 9, kind: output, shape index: {}]  }
   0x1   :  { %s6171_s11 = smov 0  }
   0x2 LB: > { %s31_s12 = sadd.s32 1, %s6109_s10  ;;  %p5062_p0 = scmp.ge.s32.totalorder %s6113_s11, 1  ;;  %s6113_s11 = sphi %s6171_s11, %s19_s11   ;;  %s6109_s10 = sphi %s6169_s10, %s9201_s10   ;;  %s6105_s30 = sphi %s6167_s30, %s9200_s30  }
   0x3   : > { %p33_p1 = scmp.ge.s32.totalorder %s31_s12, 2  ;;  %p375_p2 = scmp.lt.s32.totalorder %s6113_s11, 3 }
   0x5   : > { %s9203_s12 = smov (%p33_p1, %s31_s12), 0  ;;  %p376_p3 = pnand %p5062_p0, %p375_p2 }
   0x7   : > { %379 = sbr.rel (%p376_p3) target bundleno = 1618 (0x652), region = 56 }
   0xc   : > { %v5662_v0 = vld [vmem:[%s8552_s3 + $0x38] sm:$0xff]  ;;  %p456_p4 = scmp.lt.s32.totalorder %s6105_s30, 1  ;;  %v5661_v1 = vld [vmem:[%s8552_s3 + $0x30] sm:$0xff]  ;;  %v5660_v2 = vld [vmem:[%s8552_s3 + $0x28] sm:$0xff]  ;;  %v6115_v32 = vmov 0.0   ;;  %v512_v50 = vlaneseq }
   0xd   : > { %779 = vmatpush.bf16.msra.mxu0 %v5662_v0  ;;  %6031 = vmatpush.bf16.msra.mxu2 %v5662_v0  ;;  %v5659_v3 = vld [vmem:[%s8552_s3 + $0x20] sm:$0xff]  ;;  %v5658_v4 = vld [vmem:[%s8552_s3 + $0x18] sm:$0xff]  ;;  %v5657_v5 = vld [vmem:[%s8552_s3 + $0x10] sm:$0xff]  ;;  %v6283_v33 = vrot.slane %v6115_v32, 7  ;;  %v6342_v59 = vrot.slane %v6115_v32, 1 }
   0xe   : > { %s9205_s30 = smov (!%p456_p4, %s6105_s30), 1  ;;  %1079 = vmatpush.bf16.msra.mxu1 %v5662_v0  ;;  %v5656_v6 = vld [vmem:[%s8552_s3 + $0x8] sm:$0xff]  ;;  %v5655_v7 = vld [vmem:[%s8552_s3] sm:$0xff]  ;;  %v6235_v17 = vld [vmem:[%s8553_s4 + $0x38] sm:$0xff]  ;;  %v6333_v54 = vshrl.u32 %v512_v50, 7 }
   0xf   : > { %s6209_s27 = smul.u32 204, %s9205_s30  ;;  %v6242_v19 = vld [vmem:[%s8553_s4 + $0x30] sm:$0xff]  ;;  %v6249_v21 = vld [vmem:[%s8553_s4 + $0x28] sm:$0xff]  ;;  %v6255_v24 = vld [vmem:[%s8553_s4 + $0x20] sm:$0xff]  ;;  %v1329_v35 = vpack.c.bf16 %v6283_v33, %v6283_v33  ;;  %8679 = vst [vmem:[#allocation6_spill] sm:$0xff] %v6342_v59 }
  0x10   : > { %v6261_v26 = vld [vmem:[%s8553_s4 + $0x18] sm:$0xff]  ;;  %v6272_v28 = vld [vmem:[%s8553_s4 + $0x10] sm:$0xff]  ;;  %v6281_v31 = vld [vmem:[%s8553_s4 + $0x8] sm:$0xff]  ;;  %8678 = vst [vmem:[#allocation5_spill] sm:$0xff] %v6333_v54  ;;  %vm1274_vm0 = vcmp.lt.s32.totalorder %v6333_v54, 1  ;;  %vm3266_vm1 = vcmp.lt.s32.totalorder %v6333_v54, 7 }
  0x11   : > { %780 = vmatpush.bf16.msra.mxu0 %v5661_v1  ;;  %6032 = vmatpush.bf16.msra.mxu2 %v5661_v1  ;;  %s6218_s15 = scalar_lea.vmem %s8549_s0, %s6209_s27  ;;  %s483_s18 = scalar_lea.vmem %s8550_s1, %s6209_s27  ;;  %v5704_v30 = vld [vmem:[%s8553_s4 + $0xf8] sm:$0xff]  ;;  %v5703_v34 = vld [vmem:[%s8553_s4 + $0xf0] sm:$0xff]  ;;  %v6294_v36 = vld [vmem:[%s8553_s4] sm:$0xff]  ;;  %v6296_v37 = vunpack.c.l.b16 %v1329_v35 }
  0x12   : > { %1080 = vmatpush.bf16.msra.mxu1 %v5661_v1  ;;  %v5663_v8 = vld [vmem:[%s6218_s15] sm:$0xff]  ;;  %v5682_v9 = vld [vmem:[%s6218_s15 + $0x98] sm:$0xff]  ;;  %v5664_v10 = vld [vmem:[%s6218_s15 + $0x8] sm:$0xff]  ;;  %s5654_s13 = sadd.s32 192, %s6209_s27  ;;  %6039 = vmatpush.bf16.msra.mxu3 %v5704_v30  ;;  %s6057_s16 = smul.u32 192, %s9205_s30 }
  0x13   : > { %v5683_v11 = vld [vmem:[%s6218_s15 + $0xa0] sm:$0xff]  ;;  %v5665_v12 = vld [vmem:[%s6218_s15 + $0x10] sm:$0xff]  ;;  %v5684_v13 = vld [vmem:[%s6218_s15 + $0xa8] sm:$0xff]  ;;  %s498_s17 = scalar_lea.vmem %s8551_s2, %s5654_s13  ;;  %8676 = vst [vmem:[#allocation3_spill] sm:$0xff] %v6296_v37  ;;  %v6300_v38 = vpack.c.b16 %v6296_v37, %v6296_v37 }
  0x14   : > { %v5666_v14 = vld [vmem:[%s6218_s15 + $0x18] sm:$0xff]  ;;  %v5685_v15 = vld [vmem:[%s6218_s15 + $0xb0] sm:$0xff]  ;;  %v5687_v16 = vld [vmem:[%s483_s18] sm:$0xff]  ;;  %s8309_s30 = scalar_lea.vmem %s8558_s9, %s6057_s16 }
  0x15   : > { %781 = vmatpush.bf16.msra.mxu0 %v5660_v2  ;;  %6033 = vmatpush.bf16.msra.mxu2 %v5660_v2  ;;  %v5667_v18 = vld [vmem:[%s6218_s15 + $0x20] sm:$0xff]  ;;  %v5686_v20 = vld [vmem:[%s6218_s15 + $0xb8] sm:$0xff]  ;;  %v1068_v22 = vld [vmem:[%s483_s18 + $0x8] sm:$0xf]  ;;  %8677 = vst [vmem:[#allocation4_spill] sm:$0xff] %v6300_v38 }
  0x16   : > { %1081 = vmatpush.bf16.msra.mxu1 %v5660_v2  ;;  %v1074_v23 = vunpack.c.l.b16 %v1068_v22  ;;  %v5668_v27 = vld [vmem:[%s6218_s15 + $0x28] sm:$0xff]  ;;  %v5688_v29 = vld [vmem:[%s498_s17] sm:$0xff]  ;;  %6040 = vmatpush.bf16.msra.mxu3 %v5703_v34  ;;  %v5669_v40 = vld [vmem:[%s6218_s15 + $0x30] sm:$0xff] }
  0x17   : > { %v5702_v39 = vld [vmem:[%s8553_s4 + $0xe8] sm:$0xff]  ;;  %v5701_v41 = vld [vmem:[%s8553_s4 + $0xe0] sm:$0xff]  ;;  %v5700_v45 = vld [vmem:[%s8553_s4 + $0xd8] sm:$0xff] }
  0x18   : > { %v1076_v25 = vpack.c.b16 %v1074_v23, %v1074_v23  ;;  %v1121_v42 = vld [vmem:[%s498_s17 + $0x8] sm:$0xf]  ;;  %v5699_v46 = vld [vmem:[%s8553_s4 + $0xd0] sm:$0xff]  ;;  %v5670_v48 = vld [vmem:[%s6218_s15 + $0x38] sm:$0xff] }
  0x19   : > { %782 = vmatpush.bf16.msra.mxu0 %v5659_v3  ;;  %6034 = vmatpush.bf16.msra.mxu2 %v5659_v3  ;;  %v1127_v43 = vunpack.c.l.b16 %v1121_v42  ;;  %v5698_v47 = vld [vmem:[%s8553_s4 + $0xc8] sm:$0xff]  ;;  %v5697_v49 = vld [vmem:[%s8553_s4 + $0xc0] sm:$0xff] }
  0x1a   : > { %1082 = vmatpush.bf16.msra.mxu1 %v5659_v3  ;;  %6041 = vmatpush.bf16.msra.mxu3 %v5702_v39  ;;  %v6330_v51 = vld [vmem:[%s8555_s6] ss:$0 sm:$0xff] }
  0x1b   : > { %v1129_v44 = vpack.c.b16 %v1127_v43, %v1127_v43  ;;  %v5671_v52 = vld [vmem:[%s6218_s15 + $0x40] sm:$0xff] }
  0x1d   : > { %783 = vmatpush.bf16.msra.mxu0 %v5658_v4  ;;  %6035 = vmatpush.bf16.msra.mxu2 %v5658_v4 }
  0x1e   : > { %1083 = vmatpush.bf16.msra.mxu1 %v5658_v4  ;;  %6042 = vmatpush.bf16.msra.mxu3 %v5701_v41 }
  0x21   : > { %784 = vmatpush.bf16.msra.mxu0 %v5657_v5  ;;  %6036 = vmatpush.bf16.msra.mxu2 %v5657_v5 }
  0x22   : > { %1084 = vmatpush.bf16.msra.mxu1 %v5657_v5  ;;  %6043 = vmatpush.bf16.msra.mxu3 %v5700_v45 }
  0x25   : > { %785 = vmatpush.bf16.msra.mxu0 %v5656_v6  ;;  %6037 = vmatpush.bf16.msra.mxu2 %v5656_v6 }
  0x26   : > { %1085 = vmatpush.bf16.msra.mxu1 %v5656_v6  ;;  %6044 = vmatpush.bf16.msra.mxu3 %v5699_v46 }
  0x29   : > { %786 = vmatpush.bf16.msra.mxu0 %v5655_v7  ;;  %6038 = vmatpush.bf16.msra.mxu2 %v5655_v7 }
  0x2a   : > { %1086 = vmatpush.bf16.msra.mxu1 %v5655_v7  ;;  %6045 = vmatpush.bf16.msra.mxu3 %v5698_v47 }
  0x2c   : > { %787 = vmatmul.bf16.vlgmr.msra.gmra.mxu0 %v5663_v8  ;;  %882 = vmatmul.bf16.vlgmr.msra.gmra.mxu2 %v5682_v9 }
  0x2d   : > { %1132 = vmatpush.bf16.msrb.mxu2 %v5662_v0  ;;  %1087 = vmatmul.bf16.vlgmr.msra.gmra.mxu1 %v5687_v16 }
  0x2e   : > { %1839 = vmatpush.bf16.msrb.mxu1 %v6235_v17  ;;  %6046 = vmatpush.bf16.msra.mxu3 %v5697_v49 }
  0x31   : > { %1133 = vmatpush.bf16.msrb.mxu2 %v5661_v1 }
  0x32   : > { %1840 = vmatpush.bf16.msrb.mxu1 %v6242_v19 }
  0x35   : > { %1134 = vmatpush.bf16.msrb.mxu2 %v5660_v2 }
  0x36   : > { %1841 = vmatpush.bf16.msrb.mxu1 %v6249_v21 }
  0x39   : > { %1135 = vmatpush.bf16.msrb.mxu2 %v5659_v3 }
  0x3a   : > { %1842 = vmatpush.bf16.msrb.mxu1 %v6255_v24 }
  0x3c   : > { %792 = vmatmul.bf16.gmra.mxu0 %v5664_v10  ;;  %887 = vmatmul.bf16.gmra.mxu2 %v5683_v11 }
  0x3d   : > { %1136 = vmatpush.bf16.msrb.mxu2 %v5658_v4  ;;  %1092 = vmatmul.bf16.gmra.mxu1 %v1076_v25 }
  0x3e   : > { %1843 = vmatpush.bf16.msrb.mxu1 %v6261_v26 }
  0x41   : > { %1137 = vmatpush.bf16.msrb.mxu2 %v5657_v5 }
  0x42   : > { %1844 = vmatpush.bf16.msrb.mxu1 %v6272_v28 }
  0x45   : > { %1138 = vmatpush.bf16.msrb.mxu2 %v5656_v6 }
  0x46   : > { %1845 = vmatpush.bf16.msrb.mxu1 %v6281_v31 }
  0x49   : > { %1139 = vmatpush.bf16.msrb.mxu2 %v5655_v7 }
  0x4a   : > { %1846 = vmatpush.bf16.msrb.mxu1 %v6294_v36 }
  0x4c   : > { %797 = vmatmul.bf16.gmra.mxu0 %v5665_v12  ;;  %892 = vmatmul.bf16.gmra.mxu2 %v5684_v13  ;;  %v5672_v12 = vld [vmem:[%s6218_s15 + $0x48] sm:$0xff] }
  0x4d   : > { %1608 = vmatpush.bf16.msra.mxu2 %v5704_v30  ;;  %1847 = vmatmul.bf16.vlgmr.msrb.gmra.mxu1 %v6300_v38 }
  0x51   : > { %1609 = vmatpush.bf16.msra.mxu2 %v5703_v34 }
  0x55   : > { %1610 = vmatpush.bf16.msra.mxu2 %v5702_v39 }
  0x59   : > { %1611 = vmatpush.bf16.msra.mxu2 %v5701_v41  ;;  %v5673_v41 = vld [vmem:[%s6218_s15 + $0x50] sm:$0xff] }
  0x5c   : > { %802 = vmatmul.bf16.gmra.mxu0 %v5666_v14  ;;  %897 = vmatmul.bf16.gmra.mxu2 %v5685_v15 }
  0x5d   : > { %1612 = vmatpush.bf16.msra.mxu2 %v5700_v45 }
  0x61   : > { %1613 = vmatpush.bf16.msra.mxu2 %v5699_v46 }
  0x65   : > { %1614 = vmatpush.bf16.msra.mxu2 %v5698_v47 }
  0x69   : > { %1615 = vmatpush.bf16.msra.mxu2 %v5697_v49 }
  0x6c   : > { %807 = vmatmul.bf16.gmra.mxu0 %v5667_v18  ;;  %902 = vmatmul.bf16.gmra.mxu2 %v5686_v20 }
  0x7c   : > { %812 = vmatmul.bf16.gmra.mxu0 %v5668_v27  ;;  %1140 = vmatmul.bf16.vlgmr.msrb.gmra.mxu2 %v5688_v29 }
  0x7d   : > { %6047 = vmatpush.bf16.msrb.mxu2 %v6235_v17 }
  0x81   : > { %6048 = vmatpush.bf16.msrb.mxu2 %v6242_v19 }
  0x85   : > { %6049 = vmatpush.bf16.msrb.mxu2 %v6249_v21 }
  0x89   : > { %6050 = vmatpush.bf16.msrb.mxu2 %v6255_v24 }
  0x8c   : > { %817 = vmatmul.bf16.gmra.mxu0 %v5669_v40  ;;  %1145 = vmatmul.bf16.gmra.mxu2 %v1129_v44 }
  0x8d   : > { %6051 = vmatpush.bf16.msrb.mxu2 %v6261_v26 }
  0x91   : > { %6052 = vmatpush.bf16.msrb.mxu2 %v6272_v28 }
  0x95   : > { %6053 = vmatpush.bf16.msrb.mxu2 %v6281_v31 }
  0x99   : > { %6054 = vmatpush.bf16.msrb.mxu2 %v6294_v36 }
  0x9c   : > { %822 = vmatmul.bf16.gmra.mxu0 %v5670_v48 }
  0xa9   : > { %v788_v53 = vpop.f32.mrf.mxu0 }
  0xaa   : > { %v789_v55 = vadd.f32 %v6330_v51, %v788_v53 }
  0xac   : > { %v908_v56 = vmax.f32 %v789_v55, 0.0  ;;  %827 = vmatmul.bf16.gmra.mxu0 %v5671_v52 }
  0xae   : > { %v1221_v57 = vrot.slane %v908_v56, 7  ;;  %v3213_v60 = vrot.slane %v908_v56, 1  ;;  %v2225_v5 = vpack.c.bf16 %v908_v56, %v908_v56 }
  0xaf   : > { %v883_v63 = vpop.f32.mrf.mxu2 }
  0xb0   : > { %v1312_v58 = vsel %vm1274_vm0, %v6283_v33, %v1221_v57  ;;  %v3304_v4 = vsel %vm3266_vm1, %v6342_v59, %v3213_v60  ;;  %v6366_v20 = vunpack.c.l.b16 %v2225_v5 }
  0xb1   : > { %v790_v61 = vpop.f32.mrf.mxu0  ;;  %v1332_v62 = vpack.c.bf16 %v1312_v58, %v1312_v58  ;;  %v3326_v13 = vpack.c.bf16 %v3304_v4, %v3304_v4 }
  0xb2   : > { %v791_v0 = vadd.f32 %v6330_v51, %v790_v61 }
  0xb3   : > { %v1464_v1 = vunpack.c.l.b16 %v1332_v62  ;;  %v6376_v26 = vunpack.c.l.b16 %v3326_v13 }
  0xb4   : > { %v909_v2 = vmax.f32 %v791_v0, 0.0 }
  0xb5   : > { %v1744_v3 = vpack.c.b16 %v1464_v1, %v6296_v37  ;;  %8682 = vst [vmem:[#allocation9_spill] sm:$0xff] %v6376_v26 }
  0xb6   : > { %v1239_v6 = vrot.slane %v909_v2, 7  ;;  %v3231_v7 = vrot.slane %v909_v2, 1  ;;  %v2226_v8 = vpack.c.bf16 %v909_v2, %v909_v2 }
  0xb7   : > { %1852 = vmatmul.bf16.gmra.mxu1 %v1744_v3  ;;  %v6364_v19 = vpop.f32.mrf.mxu2 }
  0xb8   : > { %v3268_v9 = vsel %vm3266_vm1, %v3231_v7, %v6342_v59  ;;  %v3286_v10 = vsel %vm3266_vm1, %v3213_v60, %v3231_v7  ;;  %v1294_v11 = vsel %vm1274_vm0, %v1221_v57, %v1239_v6  ;;  %v1276_v18 = vsel %vm1274_vm0, %v1239_v6, %v6283_v33 }
  0xb9   : > { %v3324_v14 = vpack.c.bf16 %v3286_v10, %v3286_v10  ;;  %v3325_v15 = vpack.c.bf16 %v3268_v9, %v3268_v9  ;;  %v1333_v16 = vpack.c.bf16 %v1294_v11, %v1294_v11  ;;  %v793_v17 = vpop.f32.mrf.mxu0  ;;  %v6368_v21 = vunpack.c.l.b16 %v2226_v8 }
  0xba   : > { %v1334_v28 = vpack.c.bf16 %v1276_v18, %v1276_v18  ;;  %v5674_v17 = vld [vmem:[%s6218_s15 + $0x58] sm:$0xff] }
  0xbb   : > { %v6370_v22 = vunpack.c.l.b16 %v3324_v14  ;;  %v6372_v23 = vunpack.c.l.b16 %v3325_v15  ;;  %v1465_v24 = vunpack.c.l.b16 %v1333_v16 }
  0xbc   : > { %832 = vmatmul.bf16.gmra.mxu0 %v5672_v12  ;;  %v1466_v32 = vunpack.c.l.b16 %v1334_v28 }
  0xbd   : > { %8680 = vst [vmem:[#allocation7_spill] sm:$0xff] %v6370_v22  ;;  %v1512_v27 = vpack.c.b16 %v1465_v24, %v1464_v1 }
  0xbe   : > { %8681 = vst [vmem:[#allocation8_spill] sm:$0xff] %v6372_v23  ;;  %v1745_v39 = vpack.c.b16 %v1466_v32, %v1465_v24 }
  0xbf   : > { %1616 = vmatmul.bf16.vlgmr.msra.gmra.mxu2 %v1512_v27  ;;  %v6383_v35 = vpop.f32.mrf.mxu2 }
  0xc1   : > { %v795_v31 = vpop.f32.mrf.mxu0 }
  0xc2   : > { %v796_v34 = vadd.f32 %v6330_v51, %v795_v31  ;;  %v1088_v31 = vpop.f32.mrf.mxu1 }
  0xc4   : > { %v911_v36 = vmax.f32 %v796_v34, 0.0 }
  0xc6   : > { %v1222_v40 = vrot.slane %v911_v36, 7  ;;  %v3214_v43 = vrot.slane %v911_v36, 1  ;;  %v2228_v49 = vpack.c.bf16 %v911_v36, %v911_v36 }
  0xc7   : > { %1857 = vmatmul.bf16.gmra.mxu1 %v1745_v39  ;;  %v890_v47 = vpop.f32.mrf.mxu2 }
  0xc8   : > { %v1313_v42 = vsel %vm1274_vm0, %v6283_v33, %v1222_v40  ;;  %v3305_v53 = vsel %vm3266_vm1, %v6342_v59, %v3214_v43  ;;  %v6393_v58 = vunpack.c.l.b16 %v2228_v49 }
  0xc9   : > { %v798_v44 = vpop.f32.mrf.mxu0  ;;  %v1335_v45 = vpack.c.bf16 %v1313_v42, %v1313_v42  ;;  %v3329_v63 = vpack.c.bf16 %v3305_v53, %v3305_v53 }
  0xca   : > { %v799_v46 = vadd.f32 %v6330_v51, %v798_v44 }
  0xcb   : > { %v1467_v48 = vunpack.c.l.b16 %v1335_v45  ;;  %v6417_v11 = vunpack.c.l.b16 %v3329_v63 }
  0xcc   : > { %v912_v50 = vmax.f32 %v799_v46, 0.0  ;;  %837 = vmatmul.bf16.gmra.mxu0 %v5673_v41  ;;  %v1090_v46 = vpop.f32.mrf.mxu1 }
  0xcd   : > { %v1513_v52 = vpack.c.b16 %v1467_v48, %v1466_v32  ;;  %8685 = vst [vmem:[#allocation12_spill] sm:$0xff] %v6417_v11 }
  0xce   : > { %v1240_v55 = vrot.slane %v912_v50, 7  ;;  %v2229_v56 = vpack.c.bf16 %v912_v50, %v912_v50  ;;  %v3232_v57 = vrot.slane %v912_v50, 1 }
  0xcf   : > { %1621 = vmatmul.bf16.gmra.mxu2 %v1513_v52  ;;  %v6407_v5 = vpop.f32.mrf.mxu2 }
  0xd0   : > { %v1295_v60 = vsel %vm1274_vm0, %v1222_v40, %v1240_v55  ;;  %v6397_v61 = vunpack.c.l.b16 %v2229_v56  ;;  %v3287_v62 = vsel %vm3266_vm1, %v3214_v43, %v3232_v57  ;;  %v3269_v3 = vsel %vm3266_vm1, %v3232_v57, %v6342_v59  ;;  %v5675_v57 = vld [vmem:[%s6218_s15 + $0x60] sm:$0xff] }
  0xd1   : > { %v800_v0 = vpop.f32.mrf.mxu0  ;;  %v1336_v1 = vpack.c.bf16 %v1295_v60, %v1295_v60  ;;  %v3327_v2 = vpack.c.bf16 %v3287_v62, %v3287_v62  ;;  %v1277_v4 = vsel %vm1274_vm0, %v1240_v55, %v6283_v33  ;;  %v3328_v7 = vpack.c.bf16 %v3269_v3, %v3269_v3 }
  0xd2   : > { %v6411_v6 = vpack.c.b16 %v6397_v61, %v6393_v58  ;;  %v1337_v13 = vpack.c.bf16 %v1277_v4, %v1277_v4 }
  0xd3   : > { %v1468_v8 = vunpack.c.l.b16 %v1336_v1  ;;  %v6413_v9 = vunpack.c.l.b16 %v3327_v2  ;;  %v6415_v10 = vunpack.c.l.b16 %v3328_v7 }
  0xd4   : > { %v1469_v24 = vunpack.c.l.b16 %v1337_v13 }
  0xd5   : > { %8683 = vst [vmem:[#allocation10_spill] sm:$0xff] %v6413_v9  ;;  %v6419_v12 = vpack.c.b16 %v1468_v8, %v1467_v48  ;;  %v6425_v15 = vpack.c.b16 %v6415_v10, %v6413_v9 }
  0xd6   : > { %8684 = vst [vmem:[#allocation11_spill] sm:$0xff] %v6415_v10  ;;  %v1514_v34 = vpack.c.b16 %v1469_v24, %v1468_v8 }
  0xd7   : > { %8686 = vst [vmem:[#allocation13_spill] sm:$0xff] %v6425_v15  ;;  %1862 = vmatmul.bf16.gmra.mxu1 %v6419_v12  ;;  %v6432_v28 = vpop.f32.mrf.mxu2 }
  0xd9   : > { %v803_v18 = vpop.f32.mrf.mxu0 }
  0xda   : > { %v804_v27 = vadd.f32 %v6330_v51, %v803_v18 }
  0xdc   : > { %v914_v32 = vmax.f32 %v804_v27, 0.0  ;;  %842 = vmatmul.bf16.gmra.mxu0 %v5674_v17 }
  0xde   : > { %v1223_v36 = vrot.slane %v914_v32, 7  ;;  %v3215_v39 = vrot.slane %v914_v32, 1  ;;  %v2231_v47 = vpack.c.bf16 %v914_v32, %v914_v32 }
  0xdf   : > { %1626 = vmatmul.bf16.gmra.mxu2 %v1514_v34  ;;  %v898_v44 = vpop.f32.mrf.mxu2 }
  0xe0   : > { %v1314_v40 = vsel %vm1274_vm0, %v6283_v33, %v1223_v36  ;;  %v3306_v49 = vsel %vm3266_vm1, %v6342_v59, %v3215_v39  ;;  %v6447_v62 = vunpack.c.l.b16 %v2231_v47 }
  0xe1   : > { %v805_v41 = vpop.f32.mrf.mxu0  ;;  %v1338_v42 = vpack.c.bf16 %v1314_v40, %v1314_v40  ;;  %v3332_v56 = vpack.c.bf16 %v3306_v49, %v3306_v49 }
  0xe2   : > { %v806_v43 = vadd.f32 %v6330_v51, %v805_v41  ;;  %8687 = vst [vmem:[#allocation14_spill] sm:$0xff] %v6447_v62 }
  0xe3   : > { %v1470_v45 = vunpack.c.l.b16 %v1338_v42  ;;  %v6465_v27 = vunpack.c.l.b16 %v3332_v56  ;;  %v1093_v42 = vpop.f32.mrf.mxu1  ;;  %v5676_v56 = vld [vmem:[%s6218_s15 + $0x68] sm:$0xff] }
  0xe4   : > { %v915_v48 = vmax.f32 %v806_v43, 0.0 }
  0xe5   : > { %v6441_v50 = vpack.c.b16 %v1470_v45, %v1469_v24  ;;  %8690 = vst [vmem:[#allocation17_spill] sm:$0xff] %v6465_v27 }
  0xe6   : > { %v1241_v52 = vrot.slane %v915_v48, 7  ;;  %v3233_v53 = vrot.slane %v915_v48, 1  ;;  %v2232_v55 = vpack.c.bf16 %v915_v48, %v915_v48 }
  0xe7   : > { %1867 = vmatmul.bf16.gmra.mxu1 %v6441_v50  ;;  %v6459_v8 = vpop.f32.mrf.mxu2 }
  0xe8   : > { %v1296_v60 = vsel %vm1274_vm0, %v1223_v36, %v1241_v52  ;;  %v6449_v63 = vunpack.c.l.b16 %v2232_v55  ;;  %v3270_v0 = vsel %vm3266_vm1, %v3233_v53, %v6342_v59  ;;  %v3288_v3 = vsel %vm3266_vm1, %v3215_v39, %v3233_v53  ;;  %v5728_v39 = vld [vmem:[%s8553_s4 + $0x138] sm:$0xff] }
  0xe9   : > { %v808_v1 = vpop.f32.mrf.mxu0  ;;  %v1339_v2 = vpack.c.bf16 %v1296_v60, %v1296_v60  ;;  %v3331_v4 = vpack.c.bf16 %v3270_v0, %v3270_v0  ;;  %v1278_v7 = vsel %vm1274_vm0, %v1241_v52, %v6283_v33  ;;  %v3330_v17 = vpack.c.bf16 %v3288_v3, %v3288_v3  ;;  %2781 = vmatpush.bf16.msrb.mxu3 %v5728_v39  ;;  %v5720_v52 = vld [vmem:[%s8553_s4 + $0x78] sm:$0xff] }
  0xea   : > { %8688 = vst [vmem:[#allocation15_spill] sm:$0xff] %v6449_v63  ;;  %v1340_v34 = vpack.c.bf16 %v1278_v7, %v1278_v7  ;;  %2485 = vmatpush.bf16.msrb.mxu0 %v5720_v52 }
  0xeb   : > { %v1471_v18 = vunpack.c.l.b16 %v1339_v2  ;;  %v6463_v24 = vunpack.c.l.b16 %v3331_v4  ;;  %v6467_v31 = vunpack.c.l.b16 %v3330_v17  ;;  %v1095_v53 = vpop.f32.mrf.mxu1 }
  0xec   : > { %847 = vmatmul.bf16.gmra.mxu0 %v5675_v57  ;;  %v1472_v44 = vunpack.c.l.b16 %v1340_v34 }
  0xed   : > { %8689 = vst [vmem:[#allocation16_spill] sm:$0xff] %v6463_v24  ;;  %v1515_v32 = vpack.c.b16 %v1471_v18, %v1470_v45  ;;  %v6471_v36 = vpack.c.b16 %v6465_v27, %v6463_v24  ;;  %v6480_v41 = vpack.c.b16 %v6467_v31, %v6417_v11 }
  0xee   : > { %8691 = vst [vmem:[#allocation18_spill] sm:$0xff] %v6467_v31  ;;  %v6485_v48 = vpack.c.b16 %v1472_v44, %v1471_v18 }
  0xef   : > { %8692 = vst [vmem:[#allocation19_spill] sm:$0xff] %v6471_v36  ;;  %1631 = vmatmul.bf16.gmra.mxu2 %v1515_v32  ;;  %v6483_v46 = vpop.f32.mrf.mxu2 }
  0xf0   : > { %8693 = vst [vmem:[#allocation20_spill] sm:$0xff] %v6480_v41 }
  0xf1   : > { %v810_v43 = vpop.f32.mrf.mxu0 }
  0xf2   : > { %v811_v45 = vadd.f32 %v6330_v51, %v810_v43 }
  0xf4   : > { %v917_v47 = vmax.f32 %v811_v45, 0.0 }
  0xf6   : > { %v1224_v49 = vrot.slane %v917_v47, 7  ;;  %v3216_v55 = vrot.slane %v917_v47, 1  ;;  %v2234_v4 = vpack.c.bf16 %v917_v47, %v917_v47 }
  0xf7   : > { %1872 = vmatmul.bf16.gmra.mxu1 %v6485_v48  ;;  %v905_v2 = vpop.f32.mrf.mxu2 }
  0xf8   : > { %v1315_v57 = vsel %vm1274_vm0, %v6283_v33, %v1224_v49  ;;  %v3307_v17 = vsel %vm3266_vm1, %v6342_v59, %v3216_v55  ;;  %v6499_v42 = vunpack.c.l.b16 %v2234_v4 }
  0xf9   : > { %v813_v60 = vpop.f32.mrf.mxu0  ;;  %v1341_v0 = vpack.c.bf16 %v1315_v57, %v1315_v57  ;;  %v3335_v43 = vpack.c.bf16 %v3307_v17, %v3307_v17 }
  0xfa   : > { %v814_v1 = vadd.f32 %v6330_v51, %v813_v60  ;;  %8694 = vst [vmem:[#allocation21_spill] sm:$0xff] %v6499_v42 }
  0xfb   : > { %v1473_v3 = vunpack.c.l.b16 %v1341_v0 }
  0xfc   : > { %v918_v7 = vmax.f32 %v814_v1, 0.0  ;;  %852 = vmatmul.bf16.gmra.mxu0 %v5676_v56 }
  0xfd   : > { %v1516_v18 = vpack.c.b16 %v1473_v3, %v1472_v44 }
  0xfe   : > { %v1242_v32 = vrot.slane %v918_v7, 7  ;;  %v2235_v34 = vpack.c.bf16 %v918_v7, %v918_v7  ;;  %v3234_v39 = vrot.slane %v918_v7, 1 }
  0xff   : > { %1636 = vmatmul.bf16.gmra.mxu2 %v1516_v18  ;;  %v1141_v1 = vpop.f32.mrf.mxu2  ;;  %v6521_v18 = vunpack.c.l.b16 %v3335_v43 }
 0x100   : > { %v1279_v45 = vsel %vm1274_vm0, %v1242_v32, %v6283_v33  ;;  %v1297_v47 = vsel %vm1274_vm0, %v1224_v49, %v1242_v32  ;;  %v6506_v52 = vunpack.c.l.b16 %v2235_v34  ;;  %v3289_v53 = vsel %vm3266_vm1, %v3216_v55, %v3234_v39 }
 0x101   : > { %v815_v44 = vpop.f32.mrf.mxu0  ;;  %v1342_v56 = vpack.c.bf16 %v1297_v47, %v1297_v47  ;;  %v1343_v57 = vpack.c.bf16 %v1279_v45, %v1279_v45  ;;  %v3333_v60 = vpack.c.bf16 %v3289_v53, %v3289_v53  ;;  %v3271_v0 = vsel %vm3266_vm1, %v3234_v39, %v6342_v59  ;;  %8698 = vst [vmem:[#allocation25_spill] sm:$0xff] %v6521_v18  ;;  %v5677_v53 = vld [vmem:[%s6218_s15 + $0x70] sm:$0xff] }
 0x102   : > { %8695 = vst [vmem:[#allocation22_spill] sm:$0xff] %v6506_v52  ;;  %v6515_v2 = vpack.c.b16 %v6506_v52, %v6499_v42  ;;  %v3334_v49 = vpack.c.bf16 %v3271_v0, %v3271_v0 }
 0x103   : > { %v1474_v4 = vunpack.c.l.b16 %v1342_v56  ;;  %v1475_v7 = vunpack.c.l.b16 %v1343_v57  ;;  %v6517_v17 = vunpack.c.l.b16 %v3333_v60 }
 0x104   : > { %v6519_v55 = vunpack.c.l.b16 %v3334_v49 }
 0x105   : > { %8696 = vst [vmem:[#allocation23_spill] sm:$0xff] %v6517_v17  ;;  %v1517_v32 = vpack.c.b16 %v1475_v7, %v1474_v4  ;;  %v6523_v34 = vpack.c.b16 %v1474_v4, %v1473_v3 }
 0x106   : > { %8697 = vst [vmem:[#allocation24_spill] sm:$0xff] %v6519_v55  ;;  %v6531_v47 = vpack.c.b16 %v6519_v55, %v6517_v17  ;;  %v5681_v17 = vld [vmem:[%s6218_s15 + $0x90] sm:$0xff] }
 0x107   : > { %1641 = vmatmul.bf16.vlgmr.msra.gmra.mxu3 %v1517_v32  ;;  %1877 = vmatmul.bf16.gmra.mxu1 %v6523_v34  ;;  %v1143_v56 = vpop.f32.mrf.mxu2 }
 0x108   : > { %8699 = vst [vmem:[#allocation26_spill] sm:$0xff] %v6531_v47 }
 0x109   : > { %v818_v44 = vpop.f32.mrf.mxu0 }
 0x10a   : > { %v819_v43 = vadd.f32 %v6330_v51, %v818_v44  ;;  %v5727_v44 = vld [vmem:[%s8553_s4 + $0x130] sm:$0xff] }
 0x10b   : > { %2782 = vmatpush.bf16.msrb.mxu3 %v5727_v44 }
 0x10c   : > { %v920_v3 = vmax.f32 %v819_v43, 0.0  ;;  %857 = vmatmul.bf16.gmra.mxu0 %v5677_v53 }
 0x10e   : > { %v1225_v57 = vrot.slane %v920_v3, 7  ;;  %v3217_v60 = vrot.slane %v920_v3, 1  ;;  %v2237_v45 = vpack.c.bf16 %v920_v3, %v920_v3 }
 0x10f   : > { %v1146_v32 = vpop.f32.mrf.mxu2 }
 0x110   : > { %v1316_v0 = vsel %vm1274_vm0, %v6283_v33, %v1225_v57  ;;  %v3308_v53 = vsel %vm3266_vm1, %v6342_v59, %v3217_v60 }
 0x111   : > { %v820_v1 = vpop.f32.mrf.mxu0  ;;  %v1344_v49 = vpack.c.bf16 %v1316_v0, %v1316_v0 }
 0x112   : > { %v821_v4 = vadd.f32 %v6330_v51, %v820_v1  ;;  %v3338_v1 = vpack.c.bf16 %v3308_v53, %v3308_v53 }
 0x113   : > { %v1476_v30 = vunpack.c.l.b16 %v1344_v49  ;;  %v5678_v49 = vld [vmem:[%s6218_s15 + $0x78] sm:$0xff] }
 0x114   : > { %v921_v39 = vmax.f32 %v821_v4, 0.0  ;;  %v6552_v4 = vunpack.c.l.b16 %v2237_v45  ;;  %v6568_v25 = vunpack.c.l.b16 %v3338_v1  ;;  %v6585_v1 = vpop.f32.mrf.mxu1 }
 0x115   : > { %v6546_v43 = vpack.c.b16 %v1476_v30, %v1475_v7 }
 0x116   : > { %v1243_v56 = vrot.slane %v921_v39, 7  ;;  %v3235_v40 = vrot.slane %v921_v39, 1  ;;  %v2238_v0 = vpack.c.bf16 %v921_v39, %v921_v39  ;;  %8701 = vst [vmem:[#allocation28_spill] sm:$0xff] %v6568_v25 }
 0x117   : > { %1882 = vmatmul.bf16.gmra.mxu1 %v6546_v43  ;;  %v1148_v29 = vpop.f32.mrf.mxu2 }
 0x118   : > { %v1298_v3 = vsel %vm1274_vm0, %v1225_v57, %v1243_v56  ;;  %v6554_v32 = vunpack.c.l.b16 %v2238_v0  ;;  %v3272_v7 = vsel %vm3266_vm1, %v3235_v40, %v6342_v59  ;;  %v3290_v39 = vsel %vm3266_vm1, %v3217_v60, %v3235_v40  ;;  %v5719_v29 = vld [vmem:[%s8553_s4 + $0x70] sm:$0xff] }
 0x119   : > { %v823_v16 = vpop.f32.mrf.mxu0  ;;  %v1345_v14 = vpack.c.bf16 %v1298_v3, %v1298_v3  ;;  %v3337_v44 = vpack.c.bf16 %v3272_v7, %v3272_v7  ;;  %v1280_v53 = vsel %vm1274_vm0, %v1243_v56, %v6283_v33  ;;  %v3336_v57 = vpack.c.bf16 %v3290_v39, %v3290_v39  ;;  %2486 = vmatpush.bf16.msrb.mxu0 %v5719_v29  ;;  %v5718_v39 = vld [vmem:[%s8553_s4 + $0x68] sm:$0xff]  ;;  %v5679_v29 = vld [vmem:[%s6218_s15 + $0x80] sm:$0xff] }
 0x11a   : > { %v1346_v40 = vpack.c.bf16 %v1280_v53, %v1280_v53 }
 0x11b   : > { %v1477_v0 = vunpack.c.l.b16 %v1345_v14  ;;  %v6566_v13 = vunpack.c.l.b16 %v3337_v44  ;;  %v6570_v16 = vunpack.c.l.b16 %v3336_v57 }
 0x11c   : > { %862 = vmatmul.bf16.gmra.mxu0 %v5678_v49  ;;  %v1478_v49 = vunpack.c.l.b16 %v1346_v40 }
 0x11d   : > { %8700 = vst [vmem:[#allocation27_spill] sm:$0xff] %v6566_v13  ;;  %v1518_v3 = vpack.c.b16 %v1477_v0, %v1476_v30  ;;  %v6574_v60 = vpack.c.b16 %v6568_v25, %v6566_v13  ;;  %v6583_v56 = vpack.c.b16 %v6570_v16, %v6521_v18  ;;  %2487 = vmatpush.bf16.msrb.mxu0 %v5718_v39 }
 0x11e   : > { %8702 = vst [vmem:[#allocation29_spill] sm:$0xff] %v6570_v16  ;;  %v6591_v53 = vpack.c.b16 %v1478_v49, %v1477_v0 }
 0x11f   : > { %8703 = vst [vmem:[#allocation30_spill] sm:$0xff] %v6574_v60  ;;  %1646 = vmatmul.bf16.gmra.mxu3 %v1518_v3  ;;  %v5717_v3 = vld [vmem:[%s8553_s4 + $0x60] sm:$0xff]  ;;  %v5716_v60 = vld [vmem:[%s8553_s4 + $0x58] sm:$0xff] }
 0x120   : > { %8704 = vst [vmem:[#allocation31_spill] sm:$0xff] %v6583_v56 }
 0x121   : > { %v825_v30 = vpop.f32.mrf.mxu0  ;;  %8705 = vst [vmem:[#allocation32_spill] sm:$0xff] %v6591_v53  ;;  %2488 = vmatpush.bf16.msrb.mxu0 %v5717_v3 }
 0x122   : > { %v826_v7 = vadd.f32 %v6330_v51, %v825_v30 }
 0x124   : > { %v923_v44 = vmax.f32 %v826_v7, 0.0  ;;  %v6602_v7 = vpop.f32.mrf.mxu1 }
 0x125   : > { %8706 = vst [vmem:[#allocation33_spill] sm:$0xff] %v6602_v7  ;;  %2489 = vmatpush.bf16.msrb.mxu0 %v5716_v60 }
 0x126   : > { %v1226_v57 = vrot.slane %v923_v44, 7  ;;  %v3218_v30 = vrot.slane %v923_v44, 1  ;;  %v2240_v56 = vpack.c.bf16 %v923_v44, %v923_v44 }
 0x127   : > { %1887 = vmatmul.bf16.gmra.mxu1 %v6591_v53 }
 0x128   : > { %v1317_v40 = vsel %vm1274_vm0, %v6283_v33, %v1226_v57  ;;  %v3309_v41 = vsel %vm3266_vm1, %v6342_v59, %v3218_v30 }
 0x129   : > { %v828_v14 = vpop.f32.mrf.mxu0  ;;  %v1347_v45 = vpack.c.bf16 %v1317_v40, %v1317_v40 }
 0x12a   : > { %v829_v0 = vadd.f32 %v6330_v51, %v828_v14  ;;  %v6613_v14 = vunpack.c.l.b16 %v2240_v56 }
 0x12b   : > { %v1479_v39 = vunpack.c.l.b16 %v1347_v45  ;;  %v5715_v45 = vld [vmem:[%s8553_s4 + $0x50] sm:$0xff] }
 0x12c   : > { %v924_v47 = vmax.f32 %v829_v0, 0.0  ;;  %867 = vmatmul.bf16.gmra.mxu0 %v5679_v29  ;;  %8707 = vst [vmem:[#allocation34_spill] sm:$0xff] %v6613_v14 }
 0x12d   : > { %v1519_v36 = vpack.c.b16 %v1479_v39, %v1478_v49  ;;  %v3341_v49 = vpack.c.bf16 %v3309_v41, %v3309_v41  ;;  %2490 = vmatpush.bf16.msrb.mxu0 %v5715_v45  ;;  %v5714_v41 = vld [vmem:[%s8553_s4 + $0x48] sm:$0xff] }
 0x12e   : > { %v1244_v40 = vrot.slane %v924_v47, 7  ;;  %v2241_v3 = vpack.c.bf16 %v924_v47, %v924_v47  ;;  %v3236_v15 = vrot.slane %v924_v47, 1 }
 0x12f   : > { %1651 = vmatmul.bf16.gmra.mxu3 %v1519_v36 }
 0x130   : > { %v1299_v44 = vsel %vm1274_vm0, %v1226_v57, %v1244_v40  ;;  %v6617_v29 = vunpack.c.l.b16 %v2241_v3  ;;  %v3291_v60 = vsel %vm3266_vm1, %v3218_v30, %v3236_v15  ;;  %v3273_v36 = vsel %vm3266_vm1, %v3236_v15, %v6342_v59 }
 0x131   : > { %v830_v0 = vpop.f32.mrf.mxu0  ;;  %v1348_v38 = vpack.c.bf16 %v1299_v44, %v1299_v44  ;;  %v3339_v47 = vpack.c.bf16 %v3291_v60, %v3291_v60  ;;  %v1281_v56 = vsel %vm1274_vm0, %v1244_v40, %v6283_v33  ;;  %v3340_v3 = vpack.c.bf16 %v3273_v36, %v3273_v36  ;;  %2491 = vmatpush.bf16.msrb.mxu0 %v5714_v41 }
 0x132   : > { %8708 = vst [vmem:[#allocation35_spill] sm:$0xff] %v6617_v29  ;;  %v6629_v57 = vpack.c.b16 %v6617_v29, %v6613_v14  ;;  %v6640_v60 = vunpack.c.l.b16 %v3341_v49  ;;  %v1349_v0 = vpack.c.bf16 %v1281_v56, %v1281_v56  ;;  %v5713_v49 = vld [vmem:[%s8553_s4 + $0x40] sm:$0xff] }
 0x133   : > { %v1480_v30 = vunpack.c.l.b16 %v1348_v38  ;;  %v6634_v45 = vunpack.c.l.b16 %v3339_v47  ;;  %v6638_v15 = vunpack.c.l.b16 %v3340_v3 }
 0x134   : > { %v6636_v44 = vpop.f32.mrf.mxu1  ;;  %8711 = vst [vmem:[#allocation38_spill] sm:$0xff] %v6640_v60  ;;  %v1481_v56 = vunpack.c.l.b16 %v1349_v0 }
 0x135   : > { %8709 = vst [vmem:[#allocation36_spill] sm:$0xff] %v6634_v45  ;;  %v6642_v40 = vpack.c.b16 %v1480_v30, %v1479_v39  ;;  %v6650_v47 = vpack.c.b16 %v6638_v15, %v6634_v45  ;;  %v5680_v39 = vld [vmem:[%s6218_s15 + $0x88] sm:$0xff]  ;;  %2492 = vmatpush.bf16.msrb.mxu0 %v5713_v49 }
 0x136   : > { %8710 = vst [vmem:[#allocation37_spill] sm:$0xff] %v6638_v15  ;;  %v1520_v38 = vpack.c.b16 %v1481_v56, %v1480_v30 }
 0x137   : > { %8712 = vst [vmem:[#allocation39_spill] sm:$0xff] %v6642_v40  ;;  %1892 = vmatmul.bf16.gmra.mxu1 %v6642_v40 }
 0x138   : > { %8713 = vst [vmem:[#allocation40_spill] sm:$0xff] %v6650_v47  ;;  %v5726_v47 = vld [vmem:[%s8553_s4 + $0x128] sm:$0xff] }
 0x139   : > { %v833_v3 = vpop.f32.mrf.mxu0  ;;  %2783 = vmatpush.bf16.msrb.mxu3 %v5726_v47 }
 0x13a   : > { %v834_v41 = vadd.f32 %v6330_v51, %v833_v3 }
 0x13c   : > { %v926_v36 = vmax.f32 %v834_v41, 0.0  ;;  %872 = vmatmul.bf16.gmra.mxu0 %v5680_v39  ;;  %v6658_v37 = vpop.f32.mrf.mxu1 }
 0x13d   : > { %8714 = vst [vmem:[#allocation41_spill] sm:$0xff] %v6658_v37 }
 0x13e   : > { %v1227_v25 = vrot.slane %v926_v36, 7  ;;  %v3219_v15 = vrot.slane %v926_v36, 1  ;;  %v2243_v16 = vpack.c.bf16 %v926_v36, %v926_v36 }
 0x13f   : > { %1656 = vmatmul.bf16.gmra.mxu3 %v1520_v38 }
 0x140   : > { %v1318_v45 = vsel %vm1274_vm0, %v6283_v33, %v1227_v25  ;;  %v3310_v38 = vsel %vm3266_vm1, %v6342_v59, %v3219_v15  ;;  %v6681_v36 = vunpack.c.l.b16 %v2243_v16 }
 0x141   : > { %v835_v0 = vpop.f32.mrf.mxu0  ;;  %v1350_v49 = vpack.c.bf16 %v1318_v45, %v1318_v45 }
 0x142   : > { %v836_v39 = vadd.f32 %v6330_v51, %v835_v0  ;;  %v1617_v3 = vpop.f32.mrf.mxu2  ;;  %v3344_v0 = vpack.c.bf16 %v3310_v38, %v3310_v38 }
 0x143   : > { %v6668_v30 = vadd.f32 %v6585_v1, %v1617_v3  ;;  %v1482_v41 = vunpack.c.l.b16 %v1350_v49 }
 0x144   : > { %v927_v13 = vmax.f32 %v836_v39, 0.0  ;;  %v6670_v55 = vpop.f32.mrf.mxu1  ;;  %v6699_v11 = vunpack.c.l.b16 %v3344_v0 }
 0x145   : > { %8715 = vst [vmem:[#allocation42_spill] sm:$0xff] %v6668_v30  ;;  %v6675_v18 = vpack.c.b16 %v1482_v41, %v1481_v56 }
 0x146   : > { %v1245_v47 = vrot.slane %v927_v13, 7  ;;  %v3237_v27 = vrot.slane %v927_v13, 1  ;;  %v2244_v45 = vpack.c.bf16 %v927_v13, %v927_v13  ;;  %8719 = vst [vmem:[#allocation46_spill] sm:$0xff] %v6699_v11 }
 0x147   : > { %8716 = vst [vmem:[#allocation43_spill] sm:$0xff] %v6675_v18  ;;  %1897 = vmatmul.bf16.gmra.mxu1 %v6675_v18 }
 0x148   : > { %v1300_v1 = vsel %vm1274_vm0, %v1227_v25, %v1245_v47  ;;  %v6683_v49 = vunpack.c.l.b16 %v2244_v45  ;;  %v3274_v39 = vsel %vm3266_vm1, %v3237_v27, %v6342_v59  ;;  %v3292_v13 = vsel %vm3266_vm1, %v3219_v15, %v3237_v27 }
 0x149   : > { %v838_v56 = vpop.f32.mrf.mxu0  ;;  %v1351_v3 = vpack.c.bf16 %v1300_v1, %v1300_v1  ;;  %v3343_v31 = vpack.c.bf16 %v3274_v39, %v3274_v39  ;;  %v1282_v25 = vsel %vm1274_vm0, %v1245_v47, %v6283_v33  ;;  %v3342_v38 = vpack.c.bf16 %v3292_v13, %v3292_v13 }
 0x14a   : > { %v6690_v24 = vpop.f32.mrf.mxu2  ;;  %v1352_v39 = vpack.c.bf16 %v1282_v25, %v1282_v25  ;;  %v6116_v47 = vmov 0.0|0.0  }
 0x14b   : > { %8717 = vst [vmem:[#allocation44_spill] sm:$0xff] %v6690_v24  ;;  %v1483_v45 = vunpack.c.l.b16 %v1351_v3  ;;  %v6697_v10 = vunpack.c.l.b16 %v3343_v31  ;;  %v6703_v27 = vunpack.c.l.b16 %v3342_v38 }
 0x14c   : > { %877 = vmatmul.bf16.gmra.mxu0 %v5681_v17  ;;  %v6701_v1 = vpop.f32.mrf.mxu1  ;;  %v1484_v17 = vunpack.c.l.b16 %v1352_v39 }
 0x14d   : > { %8718 = vst [vmem:[#allocation45_spill] sm:$0xff] %v6697_v10  ;;  %v1521_v15 = vpack.c.b16 %v1483_v45, %v1482_v41  ;;  %v6707_v56 = vpack.c.b16 %v6699_v11, %v6697_v10  ;;  %v6713_v31 = vpack.c.b16 %v6703_v27, %v6640_v60  ;;  %v6723_v10 = vunpack.c.l.b16 %v6116_v47 }
 0x14e   : > { %8720 = vst [vmem:[#allocation47_spill] sm:$0xff] %v6701_v1  ;;  %v6721_v16 = vpack.c.b16 %v1484_v17, %v1483_v45 }
 0x14f   : > { %8721 = vst [vmem:[#allocation48_spill] sm:$0xff] %v6703_v27  ;;  %1661 = vmatmul.bf16.gmra.mxu3 %v1521_v15  ;;  %v6728_v15 = vpack.c.b16 %v6723_v10, %v6723_v10 }
 0x150   : > { %8722 = vst [vmem:[#allocation49_spill] sm:$0xff] %v6707_v56 }
 0x151   : > { %8723 = vst [vmem:[#allocation50_spill] sm:$0xff] %v6713_v31  ;;  %v840_v0 = vpop.f32.mrf.mxu0 }
 0x152   : > { %v841_v3 = vadd.f32 %v6330_v51, %v840_v0  ;;  %v1622_v13 = vpop.f32.mrf.mxu2  ;;  %8725 = vst [vmem:[#allocation52_spill] sm:$0xff] %v6721_v16 }
 0x153   : > { %v6717_v41 = vadd.f32 %v6636_v44, %v1622_v13  ;;  %8726 = vst [vmem:[#allocation53_spill] sm:$0xff] %v6728_v15 }
 0x154   : > { %v929_v25 = vmax.f32 %v841_v3, 0.0  ;;  %v6719_v38 = vpop.f32.mrf.mxu1 }
 0x155   : > { %8724 = vst [vmem:[#allocation51_spill] sm:$0xff] %v6717_v41 }
 0x156   : > { %v1228_v56 = vrot.slane %v929_v25, 7  ;;  %v3220_v39 = vrot.slane %v929_v25, 1  ;;  %v2246_v47 = vpack.c.bf16 %v929_v25, %v929_v25 }
 0x157   : > { %1902 = vmatmul.bf16.gmra.mxu1 %v6721_v16 }
 0x158   : > { %v1319_v44 = vsel %vm1274_vm0, %v6283_v33, %v1228_v56  ;;  %v3311_v9 = vsel %vm3266_vm1, %v6342_v59, %v3220_v39 }
 0x159   : > { %v843_v0 = vpop.f32.mrf.mxu0  ;;  %v1353_v3 = vpack.c.bf16 %v1319_v44, %v1319_v44  ;;  %v6742_v44 = vunpack.c.l.b16 %v2246_v47 }
 0x15a   : > { %v844_v45 = vadd.f32 %v6330_v51, %v843_v0  ;;  %v6734_v13 = vpop.f32.mrf.mxu2 }
 0x15b   : > { %8727 = vst [vmem:[#allocation54_spill] sm:$0xff] %v6734_v13  ;;  %v1485_v31 = vunpack.c.l.b16 %v1353_v3 }
 0x15c   : > { %v930_v27 = vmax.f32 %v844_v45, 0.0  ;;  %v6736_v60 = vpop.f32.mrf.mxu1  ;;  %2493 = vmatmul.bf16.vlgmr.msrb.gmra.mxu0 %v6728_v15  ;;  %8729 = vst [vmem:[#allocation56_spill] sm:$0xff] %v6742_v44  ;;  %v3347_v45 = vpack.c.bf16 %v3311_v9, %v3311_v9 }
 0x15d   : > { %8728 = vst [vmem:[#allocation55_spill] sm:$0xff] %v6736_v60  ;;  %v1522_v26 = vpack.c.b16 %v1485_v31, %v1484_v17 }
 0x15e   : > { %v1246_v22 = vrot.slane %v930_v27, 7  ;;  %v2247_v23 = vpack.c.bf16 %v930_v27, %v930_v27  ;;  %v3238_v1 = vrot.slane %v930_v27, 1 }
 0x15f   : > { %1666 = vmatmul.bf16.gmra.mxu3 %v1522_v26 }
 0x160   : > { %v1301_v0 = vsel %vm1274_vm0, %v1228_v56, %v1246_v22  ;;  %v6746_v25 = vunpack.c.l.b16 %v2247_v23  ;;  %v3293_v3 = vsel %vm3266_vm1, %v3220_v39, %v3238_v1  ;;  %v3275_v37 = vsel %vm3266_vm1, %v3238_v1, %v6342_v59 }
 0x161   : > { %v845_v17 = vpop.f32.mrf.mxu0  ;;  %v1354_v15 = vpack.c.bf16 %v1301_v0, %v1301_v0  ;;  %v3345_v60 = vpack.c.bf16 %v3293_v3, %v3293_v3  ;;  %v1283_v26 = vsel %vm1274_vm0, %v1246_v22, %v6283_v33  ;;  %v3346_v56 = vpack.c.bf16 %v3275_v37, %v3275_v37  ;;  %v5725_v37 = vld [vmem:[%s8553_s4 + $0x120] sm:$0xff] }
 0x162   : > { %8730 = vst [vmem:[#allocation57_spill] sm:$0xff] %v6746_v25  ;;  %v1627_v27 = vpop.f32.mrf.mxu2  ;;  %v6758_v23 = vpack.c.b16 %v6746_v25, %v6742_v44  ;;  %v6769_v1 = vunpack.c.l.b16 %v3347_v45  ;;  %v1355_v22 = vpack.c.bf16 %v1283_v26, %v1283_v26  ;;  %2784 = vmatpush.bf16.msrb.mxu3 %v5725_v37  ;;  %v2390_v26 = vpack.c.b16 %v6366_v20, %v6723_v10 }
 0x163   : > { %v6761_v39 = vadd.f32 %v6670_v55, %v1627_v27  ;;  %v1486_v9 = vunpack.c.l.b16 %v1354_v15  ;;  %v6763_v47 = vunpack.c.l.b16 %v3345_v60  ;;  %v6767_v3 = vunpack.c.l.b16 %v3346_v56 }
 0x164   : > { %v6765_v0 = vpop.f32.mrf.mxu1  ;;  %8734 = vst [vmem:[#allocation61_spill] sm:$0xff] %v6769_v1  ;;  %v1487_v15 = vunpack.c.l.b16 %v1355_v22 }
 0x165   : > { %8731 = vst [vmem:[#allocation58_spill] sm:$0xff] %v6761_v39  ;;  %v6771_v17 = vpack.c.b16 %v1486_v9, %v1485_v31  ;;  %v6782_v60 = vpack.c.b16 %v6767_v3, %v6763_v47 }
 0x166   : > { %8732 = vst [vmem:[#allocation59_spill] sm:$0xff] %v6763_v47  ;;  %v1523_v55 = vpack.c.b16 %v1487_v15, %v1486_v9  ;;  %v886_v47 = vadd.f32 %v6330_v51, %v6364_v19  ;;  %v894_v9 = vadd.f32 %v6330_v51, %v6407_v5  ;;  %v5736_v5 = vld [vmem:[%s8553_s4 + $0x1f8] sm:$0xff] }
 0x167   : > { %8733 = vst [vmem:[#allocation60_spill] sm:$0xff] %v6767_v3  ;;  %1907 = vmatmul.bf16.gmra.mxu1 %v6771_v17 }
 0x168   : > { %8735 = vst [vmem:[#allocation62_spill] sm:$0xff] %v6771_v17  ;;  %3035 = vmatpush.bf16.msra.mxu1 %v5736_v5 }
 0x169   : > { %8736 = vst [vmem:[#allocation63_spill] sm:$0xff] %v6782_v60  ;;  %v848_v31 = vpop.f32.mrf.mxu0 }
 0x16a   : > { %v849_v45 = vadd.f32 %v6330_v51, %v848_v31  ;;  %v6786_v27 = vpop.f32.mrf.mxu2 }
 0x16b   : > { %8737 = vst [vmem:[#allocation64_spill] sm:$0xff] %v6786_v27 }
 0x16c   : > { %v932_v56 = vmax.f32 %v849_v45, 0.0  ;;  %v6790_v25 = vpop.f32.mrf.mxu1  ;;  %2498 = vmatmul.bf16.gmra.mxu0 %v2390_v26 }
 0x16d   : > { %8738 = vst [vmem:[#allocation65_spill] sm:$0xff] %v6790_v25 }
 0x16e   : > { %v1229_v11 = vrot.slane %v932_v56, 7  ;;  %v2249_v19 = vpack.c.bf16 %v932_v56, %v932_v56 }
 0x16f   : > { %1671 = vmatmul.bf16.gmra.mxu3 %v1523_v55  ;;  %v896_v55 = vadd.f32 %v6330_v51, %v6432_v28  ;;  %v6817_v28 = vmax.f32 %v894_v9, 0.0  ;;  %v2391_v9 = vpack.c.b16 %v6723_v10, %v6368_v21 }
 0x170   : > { %v1320_v37 = vsel %vm1274_vm0, %v6283_v33, %v1229_v11 }
 0x171   : > { %v850_v60 = vpop.f32.mrf.mxu0  ;;  %v1356_v22 = vpack.c.bf16 %v1320_v37, %v1320_v37  ;;  %v3221_v37 = vrot.slane %v932_v56, 1 }
 0x172   : > { %v851_v31 = vadd.f32 %v6330_v51, %v850_v60  ;;  %v1632_v3 = vpop.f32.mrf.mxu2  ;;  %v889_v60 = vadd.f32 %v6330_v51, %v6383_v35 }
 0x173   : > { %v6799_v45 = vadd.f32 %v6719_v38, %v1632_v3  ;;  %v1488_v25 = vunpack.c.l.b16 %v1356_v22  ;;  %v6811_v3 = vmax.f32 %v886_v47, 0.0  ;;  %v6819_v22 = vmax.f32 %v896_v55, 0.0 }
 0x174   : > { %v933_v26 = vmax.f32 %v851_v31, 0.0  ;;  %v6805_v44 = vpop.f32.mrf.mxu1  ;;  %v3312_v47 = vsel %vm3266_vm1, %v6342_v59, %v3221_v37  ;;  %v6837_v55 = vunpack.c.l.b16 %v2249_v19 }
 0x175   : > { %8739 = vst [vmem:[#allocation66_spill] sm:$0xff] %v6799_v45  ;;  %v6807_v27 = vpack.c.b16 %v1488_v25, %v1487_v15 }
 0x176   : > { %v1247_v39 = vrot.slane %v933_v26, 7  ;;  %v2250_v38 = vpack.c.bf16 %v933_v26, %v933_v26  ;;  %8741 = vst [vmem:[#allocation68_spill] sm:$0xff] %v6811_v3  ;;  %v3239_v31 = vrot.slane %v933_v26, 1  ;;  %v5734_v26 = vld [vmem:[%s8553_s4 + $0x1e8] sm:$0xff] }
 0x177   : > { %8740 = vst [vmem:[#allocation67_spill] sm:$0xff] %v6807_v27  ;;  %1912 = vmatmul.bf16.gmra.mxu1 %v6807_v27  ;;  %v6828_v27 = vmax.f32 %v889_v60, 0.0 }
 0x178   : > { %v1302_v15 = vsel %vm1274_vm0, %v1229_v11, %v1247_v39  ;;  %v6823_v45 = vunpack.c.l.b16 %v2250_v38  ;;  %v1284_v11 = vsel %vm1274_vm0, %v1247_v39, %v6283_v33  ;;  %v3350_v39 = vpack.c.bf16 %v3312_v47, %v3312_v47 }
 0x179   : > { %v853_v35 = vpop.f32.mrf.mxu0  ;;  %v1357_v56 = vpack.c.bf16 %v1302_v15, %v1302_v15  ;;  %8742 = vst [vmem:[#allocation69_spill] sm:$0xff] %v6828_v27  ;;  %v1358_v29 = vpack.c.bf16 %v1284_v11, %v1284_v11 }
 0x17a   : > { %v6830_v13 = vpop.f32.mrf.mxu2  ;;  %v5735_v35 = vld [vmem:[%s8553_s4 + $0x1f0] sm:$0xff]  ;;  %v6865_v5 = vunpack.c.l.b16 %v3350_v39  ;;  %v8750_v39 = vrot.slane %v6828_v27, 7 }
 0x17b   : > { %8743 = vst [vmem:[#allocation70_spill] sm:$0xff] %v6830_v13  ;;  %v1489_v38 = vunpack.c.l.b16 %v1357_v56  ;;  %v3276_v56 = vsel %vm3266_vm1, %v3239_v31, %v6342_v59  ;;  %3036 = vmatpush.bf16.msra.mxu1 %v5735_v35  ;;  %v1490_v41 = vunpack.c.l.b16 %v1358_v29 }
 0x17c   : > { %v6842_v60 = vpop.f32.mrf.mxu1  ;;  %2503 = vmatmul.bf16.gmra.mxu0 %v2391_v9  ;;  %v3294_v9 = vsel %vm3266_vm1, %v3221_v37, %v3239_v31  ;;  %v3349_v15 = vpack.c.bf16 %v3276_v56, %v3276_v56  ;;  %8746 = vst [vmem:[#allocation72_spill] sm:$0xff] %v6865_v5  ;;  %v8747_v37 = vrot.slane %v6819_v22, 1  ;;  %v8748_v31 = vrot.slane %v6817_v28, 1 }
 0x17d   : > { %v1524_v19 = vpack.c.b16 %v1489_v38, %v1488_v25  ;;  %v3348_v13 = vpack.c.bf16 %v3294_v9, %v3294_v9  ;;  %v8744_v25 = vrot.slane %v6811_v3, 1  ;;  %v8610_v56 = vrot.slane %v6817_v28, 7 }
 0x17e   : > { %v6863_v11 = vunpack.c.l.b16 %v3349_v15 }
 0x17f   : > { %1676 = vmatmul.bf16.gmra.mxu3 %v1524_v19  ;;  %v3317_v47 = vsel %vm3266_vm1, %v6342_v59, %v8744_v25  ;;  %v3300_v19 = vsel %vm3266_vm1, %v8748_v31, %v8747_v37  ;;  %v6874_v17 = vunpack.c.l.b16 %v3348_v13  ;;  %3037 = vmatpush.bf16.msra.mxu1 %v5734_v26 }
 0x180   : > { %8745 = vst [vmem:[#allocation71_spill] sm:$0xff] %v6863_v11  ;;  %v3365_v35 = vpack.c.bf16 %v3317_v47, %v3317_v47  ;;  %v3366_v7 = vpack.c.bf16 %v3300_v19, %v3300_v19  ;;  %v1289_v47 = vsel %vm1274_vm0, %v8750_v39, %v6283_v33  ;;  %v6886_v37 = vpack.c.b16 %v6865_v5, %v6863_v11  ;;  %v5732_v39 = vld [vmem:[%s8553_s4 + $0x1d8] sm:$0xff] }
 0x181   : > { %v855_v9 = vpop.f32.mrf.mxu0  ;;  %8749 = vst [vmem:[#allocation73_spill] sm:$0xff] %v6874_v17  ;;  %v6897_v26 = vpack.c.b16 %v6874_v17, %v6769_v1 }
 0x182   : > { %v856_v15 = vadd.f32 %v6330_v51, %v855_v9  ;;  %v1637_v25 = vpop.f32.mrf.mxu2  ;;  %v6882_v24 = vunpack.c.l.b16 %v3365_v35  ;;  %8752 = vst [vmem:[#allocation75_spill] sm:$0xff] %v6886_v37  ;;  %v6893_v13 = vunpack.c.l.b16 %v3366_v7  ;;  %v5733_v35 = vld [vmem:[%s8553_s4 + $0x1e0] sm:$0xff]  ;;  %v6904_v9 = vpack.c.b16 %v1490_v41, %v1489_v38 }
 0x183   : > { %v6889_v29 = vadd.f32 %v6765_v0, %v1637_v25  ;;  %8755 = vst [vmem:[#allocation78_spill] sm:$0xff] %v6897_v26  ;;  %3038 = vmatpush.bf16.msra.mxu1 %v5733_v35  ;;  %v1373_v7 = vpack.c.bf16 %v1289_v47, %v1289_v47  ;;  %v1326_v38 = vsel %vm1274_vm0, %v6283_v33, %v8610_v56  ;;  %v6928_v26 = vld [vmem:[%s8555_s6] ss:$0 sm:$0xff] }
 0x184   : > { %8751 = vst [vmem:[#allocation74_spill] sm:$0xff] %v6882_v24  ;;  %v935_v31 = vmax.f32 %v856_v15, 0.0  ;;  %v6899_v19 = vpop.f32.mrf.mxu1  ;;  %v6908_v0 = vpack.c.b16 %v6893_v13, %v6882_v24  ;;  %v5724_v15 = vld [vmem:[%s8553_s4 + $0x118] sm:$0xff]  ;;  %v1374_v35 = vpack.c.bf16 %v1326_v38, %v1326_v38 }
 0x185   : > { %8753 = vst [vmem:[#allocation76_spill] sm:$0xff] %v6889_v29  ;;  %2785 = vmatpush.bf16.msrb.mxu3 %v5724_v15  ;;  %v6931_v17 = vunpack.c.l.b16 %v1373_v7 }
 0x186   : > { %8754 = vst [vmem:[#allocation77_spill] sm:$0xff] %v6893_v13  ;;  %v1230_v25 = vrot.slane %v935_v31, 7  ;;  %v3222_v51 = vrot.slane %v935_v31, 1  ;;  %v6933_v56 = vunpack.c.l.b16 %v1374_v35  ;;  %v2252_v1 = vpack.c.bf16 %v935_v31, %v935_v31 }
 0x187   : > { %8756 = vst [vmem:[#allocation79_spill] sm:$0xff] %v6904_v9  ;;  %1917 = vmatmul.bf16.gmra.mxu1 %v6904_v9  ;;  %v904_v35 = vadd.f32 %v6928_v26, %v6483_v46 }
 0x188   : > { %8757 = vst [vmem:[#allocation80_spill] sm:$0xff] %v6908_v0  ;;  %v1321_v47 = vsel %vm1274_vm0, %v6283_v33, %v1230_v25  ;;  %3039 = vmatpush.bf16.msra.mxu1 %v5732_v39  ;;  %v6946_v7 = vpack.c.b16 %v6933_v56, %v6931_v17 }
 0x189   : > { %v858_v0 = vpop.f32.mrf.mxu0  ;;  %v1359_v37 = vpack.c.bf16 %v1321_v47, %v1321_v47 }
 0x18a   : > { %v859_v13 = vadd.f32 %v6928_v26, %v858_v0  ;;  %v1642_v24 = vpop.f32.mrf.mxu3  ;;  %v5731_v0 = vld [vmem:[%s8553_s4 + $0x1d0] sm:$0xff]  ;;  %8759 = vst [vmem:[#allocation82_spill] sm:$0xff] %v6946_v7 }
 0x18b   : > { %v6936_v11 = vadd.f32 %v6805_v44, %v1642_v24  ;;  %v1491_v38 = vunpack.c.l.b16 %v1359_v37  ;;  %v3313_v24 = vsel %vm3266_vm1, %v6342_v59, %v3222_v51  ;;  %v901_v44 = vadd.f32 %v6928_v26, %v6459_v8 }
 0x18c   : > { %v936_v47 = vmax.f32 %v859_v13, 0.0  ;;  %v6938_v15 = vpop.f32.mrf.mxu1  ;;  %2508 = vmatmul.bf16.gmra.mxu0 %v6411_v6  ;;  %3040 = vmatpush.bf16.msra.mxu1 %v5731_v0  ;;  %v2267_v0 = vpack.c.bf16 %v6817_v28, %v6817_v28 }
 0x18d   : > { %8758 = vst [vmem:[#allocation81_spill] sm:$0xff] %v6936_v11  ;;  %v1525_v39 = vpack.c.b16 %v1491_v38, %v1490_v41  ;;  %v5730_v11 = vld [vmem:[%s8553_s4 + $0x1c8] sm:$0xff]  ;;  %v6958_v41 = vunpack.c.l.b16 %v2252_v1  ;;  %v6971_v30 = vmax.f32 %v901_v44, 0.0 }
 0x18e   : > { %v1248_v37 = vrot.slane %v936_v47, 7  ;;  %v2253_v13 = vpack.c.bf16 %v936_v47, %v936_v47  ;;  %v3240_v31 = vrot.slane %v936_v47, 1  ;;  %v3353_v47 = vpack.c.bf16 %v3313_v24, %v3313_v24 }
 0x18f   : > { %1681 = vmatmul.bf16.gmra.mxu3 %v1525_v39  ;;  %8760 = vst [vmem:[#allocation83_spill] sm:$0xff] %v6958_v41 }
 0x190   : > { %v1303_v29 = vsel %vm1274_vm0, %v1230_v25, %v1248_v37  ;;  %v6962_v9 = vunpack.c.l.b16 %v2253_v13  ;;  %v3295_v8 = vsel %vm3266_vm1, %v3222_v51, %v3240_v31  ;;  %v3277_v1 = vsel %vm3266_vm1, %v3240_v31, %v6342_v59  ;;  %8762 = vst [vmem:[#allocation85_spill] sm:$0xff] %v6971_v30  ;;  %3041 = vmatpush.bf16.msra.mxu1 %v5730_v11 }
 0x191   : > { %v860_v46 = vpop.f32.mrf.mxu0  ;;  %v1360_v39 = vpack.c.bf16 %v1303_v29, %v1303_v29  ;;  %v3351_v14 = vpack.c.bf16 %v3295_v8, %v3295_v8  ;;  %v1285_v25 = vsel %vm1274_vm0, %v1248_v37, %v6283_v33  ;;  %v3352_v24 = vpack.c.bf16 %v3277_v1, %v3277_v1  ;;  %v5729_v37 = vld [vmem:[%s8553_s4 + $0x1c0] sm:$0xff] }
 0x192   : > { %8761 = vst [vmem:[#allocation84_spill] sm:$0xff] %v6962_v9  ;;  %v1644_v16 = vpop.f32.mrf.mxu3  ;;  %v6978_v51 = vpack.c.b16 %v6962_v9, %v6958_v41  ;;  %v6980_v13 = vmax.f32 %v904_v35, 0.0  ;;  %v6994_v46 = vunpack.c.l.b16 %v3353_v47  ;;  %v1361_v35 = vpack.c.bf16 %v1285_v25, %v1285_v25 }
 0x193   : > { %v6983_v29 = vadd.f32 %v6842_v60, %v1644_v16  ;;  %v1492_v8 = vunpack.c.l.b16 %v1360_v39  ;;  %v6985_v31 = vunpack.c.l.b16 %v3351_v14  ;;  %v6992_v11 = vunpack.c.l.b16 %v3352_v24 }
 0x194   : > { %v6987_v44 = vpop.f32.mrf.mxu1  ;;  %8766 = vst [vmem:[#allocation89_spill] sm:$0xff] %v6994_v46  ;;  %v2268_v16 = vpack.c.bf16 %v6819_v22, %v6819_v22  ;;  %3042 = vmatpush.bf16.msra.mxu1 %v5729_v37  ;;  %v7011_v1 = vunpack.c.l.b16 %v2267_v0  ;;  %v1493_v14 = vunpack.c.l.b16 %v1361_v35  ;;  %v7018_v60 = vpack.c.b16 %v6447_v62, %v6723_v10 }
 0x195   : > { %8763 = vst [vmem:[#allocation86_spill] sm:$0xff] %v6983_v29  ;;  %v6996_v9 = vpack.c.b16 %v1492_v8, %v1491_v38  ;;  %v7006_v39 = vpack.c.b16 %v6992_v11, %v6985_v31  ;;  %v8625_v38 = vrot.slane %v6980_v13, 1  ;;  %v8771_v47 = vrot.slane %v6819_v22, 1 }
 0x196   : > { %8764 = vst [vmem:[#allocation87_spill] sm:$0xff] %v6985_v31  ;;  %v7013_v25 = vunpack.c.l.b16 %v2268_v16  ;;  %v8772_v16 = vrot.slane %v6971_v30, 1  ;;  %v1526_v5 = vpack.c.b16 %v1493_v14, %v1492_v8  ;;  %v8773_v31 = vrot.slane %v6817_v28, 1 }
 0x197   : > { %8765 = vst [vmem:[#allocation88_spill] sm:$0xff] %v6992_v11  ;;  %1922 = vmatmul.bf16.gmra.mxu1 %v6996_v9  ;;  %v3282_v0 = vsel %vm3266_vm1, %v8771_v47, %v6342_v59  ;;  %v1236_v29 = vrot.slane %v6971_v30, 7 }
 0x198   : > { %8767 = vst [vmem:[#allocation90_spill] sm:$0xff] %v6996_v9  ;;  %v3301_v35 = vsel %vm3266_vm1, %v8772_v16, %v8625_v38  ;;  %v3318_v47 = vsel %vm3266_vm1, %v6342_v59, %v8773_v31 }
 0x199   : > { %8768 = vst [vmem:[#allocation91_spill] sm:$0xff] %v7006_v39  ;;  %v863_v24 = vpop.f32.mrf.mxu0  ;;  %v3367_v39 = vpack.c.bf16 %v3282_v0, %v3282_v0  ;;  %v3369_v41 = vpack.c.bf16 %v3301_v35, %v3301_v35 }
 0x19a   : > { %8769 = vst [vmem:[#allocation92_spill] sm:$0xff] %v7011_v1  ;;  %v864_v37 = vadd.f32 %v6928_v26, %v863_v24 }
 0x19b   : > { %8770 = vst [vmem:[#allocation93_spill] sm:$0xff] %v7013_v25  ;;  %v3368_v25 = vpack.c.bf16 %v3318_v47, %v3318_v47  ;;  %v7042_v16 = vunpack.c.l.b16 %v3367_v39  ;;  %v1327_v47 = vsel %vm1274_vm0, %v6283_v33, %v1236_v29  ;;  %v7072_v39 = vpack.c.b16 %v6723_v10, %v6449_v63 }
 0x19c   : > { %v938_v24 = vmax.f32 %v864_v37, 0.0  ;;  %v7033_v11 = vpop.f32.mrf.mxu1  ;;  %2513 = vmatmul.bf16.gmra.mxu0 %v7018_v60  ;;  %v7044_v37 = vunpack.c.l.b16 %v3369_v41  ;;  %v1377_v40 = vpack.c.bf16 %v1327_v47, %v1327_v47 }
 0x19d   : > { %8774 = vst [vmem:[#allocation94_spill] sm:$0xff] %v7042_v16  ;;  %v7049_v0 = vunpack.c.l.b16 %v3368_v25 }
 0x19e   : > { %v1231_v9 = vrot.slane %v938_v24, 7  ;;  %8775 = vst [vmem:[#allocation95_spill] sm:$0xff] %v7044_v37  ;;  %v3223_v30 = vrot.slane %v938_v24, 1  ;;  %v2255_v42 = vpack.c.bf16 %v938_v24, %v938_v24 }
 0x19f   : > { %1686 = vmatmul.bf16.gmra.mxu3 %v1526_v5  ;;  %8776 = vst [vmem:[#allocation96_spill] sm:$0xff] %v7049_v0  ;;  %v7059_v41 = vpack.c.b16 %v7049_v0, %v7042_v16  ;;  %v7086_v0 = vunpack.c.l.b16 %v1377_v40 }
 0x1a0   : > { %v1322_v8 = vsel %vm1274_vm0, %v6283_v33, %v1231_v9 }
 0x1a1   : > { %v865_v38 = vpop.f32.mrf.mxu0  ;;  %v1362_v1 = vpack.c.bf16 %v1322_v8, %v1322_v8  ;;  %8777 = vst [vmem:[#allocation97_spill] sm:$0xff] %v7059_v41 }
 0x1a2   : > { %v866_v31 = vadd.f32 %v6928_v26, %v865_v38  ;;  %v1647_v35 = vpop.f32.mrf.mxu3  ;;  %8781 = vst [vmem:[#allocation100_spill] sm:$0xff] %v7086_v0 }
 0x1a3   : > { %v7063_v25 = vadd.f32 %v6899_v19, %v1647_v35  ;;  %v1494_v8 = vunpack.c.l.b16 %v1362_v1  ;;  %v8780_v19 = vrot.slane %v6980_v13, 7  ;;  %v3314_v35 = vsel %vm3266_vm1, %v6342_v59, %v3223_v30 }
 0x1a4   : > { %v939_v38 = vmax.f32 %v866_v31, 0.0  ;;  %v7065_v18 = vpop.f32.mrf.mxu1 }
 0x1a5   : > { %8778 = vst [vmem:[#allocation98_spill] sm:$0xff] %v7063_v25  ;;  %v7067_v52 = vpack.c.b16 %v1494_v8, %v1493_v14  ;;  %v1309_v1 = vsel %vm1274_vm0, %v1236_v29, %v8780_v19  ;;  %v7092_v25 = vunpack.c.l.b16 %v2255_v42 }
 0x1a6   : > { %v1249_v53 = vrot.slane %v939_v38, 7  ;;  %v3241_v5 = vrot.slane %v939_v38, 1  ;;  %v2256_v62 = vpack.c.bf16 %v939_v38, %v939_v38  ;;  %v1378_v31 = vpack.c.bf16 %v1309_v1, %v1309_v1 }
 0x1a7   : > { %8779 = vst [vmem:[#allocation99_spill] sm:$0xff] %v7067_v52  ;;  %1927 = vmatmul.bf16.gmra.mxu1 %v7067_v52 }
 0x1a8   : > { %v1286_v14 = vsel %vm1274_vm0, %v1249_v53, %v6283_v33  ;;  %v1304_v24 = vsel %vm1274_vm0, %v1231_v9, %v1249_v53  ;;  %v7088_v16 = vunpack.c.l.b16 %v2256_v62  ;;  %v7090_v19 = vunpack.c.l.b16 %v1378_v31 }
 0x1a9   : > { %v868_v47 = vpop.f32.mrf.mxu0  ;;  %v1363_v38 = vpack.c.bf16 %v1304_v24, %v1304_v24  ;;  %v1364_v41 = vpack.c.bf16 %v1286_v14, %v1286_v14  ;;  %v3278_v53 = vsel %vm3266_vm1, %v3241_v5, %v6342_v59  ;;  %v3296_v9 = vsel %vm3266_vm1, %v3223_v30, %v3241_v5  ;;  %v5723_v5 = vld [vmem:[%s8553_s4 + $0x110] sm:$0xff] }
 0x1aa   : > { %v1649_v29 = vpop.f32.mrf.mxu3  ;;  %8782 = vst [vmem:[#allocation101_spill] sm:$0xff] %v7090_v19  ;;  %v3356_v24 = vpack.c.bf16 %v3314_v35, %v3314_v35  ;;  %v3354_v47 = vpack.c.bf16 %v3296_v9, %v3296_v9  ;;  %v3355_v30 = vpack.c.bf16 %v3278_v53, %v3278_v53  ;;  %v8785_v35 = vrot.slane %v6980_v13, 1  ;;  %2786 = vmatpush.bf16.msrb.mxu3 %v5723_v5 }
 0x1ab   : > { %v7100_v1 = vadd.f32 %v6938_v15, %v1649_v29  ;;  %v1495_v14 = vunpack.c.l.b16 %v1363_v38  ;;  %v1496_v40 = vunpack.c.l.b16 %v1364_v41  ;;  %v5712_v15 = vld [vmem:[%s8553_s4 + $0x1b8] sm:$0xff] }
 0x1ac   : > { %v7102_v62 = vpop.f32.mrf.mxu1  ;;  %2518 = vmatmul.bf16.gmra.mxu0 %v7072_v39  ;;  %v7117_v41 = vunpack.c.l.b16 %v3354_v47  ;;  %v3283_v38 = vsel %vm3266_vm1, %v8785_v35, %v6342_v59  ;;  %v7127_v29 = vunpack.c.l.b16 %v3356_v24  ;;  %2045 = vmatpush.bf16.msra.mxu2 %v5712_v15 }
 0x1ad   : > { %8783 = vst [vmem:[#allocation102_spill] sm:$0xff] %v7100_v1  ;;  %v1527_v52 = vpack.c.b16 %v1495_v14, %v1494_v8  ;;  %v7109_v63 = vpack.c.b16 %v1496_v40, %v1495_v14  ;;  %v7125_v8 = vunpack.c.l.b16 %v3355_v30  ;;  %v3370_v53 = vpack.c.bf16 %v3283_v38, %v3283_v38 }
 0x1ae   : > { %8784 = vst [vmem:[#allocation103_spill] sm:$0xff] %v7117_v41  ;;  %v7131_v9 = vpack.c.b16 %v7117_v41, %v6994_v46 }
 0x1af   : > { %1691 = vmatmul.bf16.gmra.mxu3 %v1527_v52  ;;  %1932 = vmatmul.bf16.vlgmr.msrb.gmra.mxu2 %v7109_v63  ;;  %8786 = vst [vmem:[#allocation104_spill] sm:$0xff] %v7125_v8  ;;  %v7135_v31 = vunpack.c.l.b16 %v3370_v53  ;;  %v7139_v52 = vpack.c.b16 %v7127_v29, %v7125_v8  ;;  %v5711_v53 = vld [vmem:[%s8553_s4 + $0x1b0] sm:$0xff] }
 0x1b0   : > { %8787 = vst [vmem:[#allocation105_spill] sm:$0xff] %v7127_v29  ;;  %2046 = vmatpush.bf16.msra.mxu2 %v5711_v53 }
 0x1b1   : > { %8788 = vst [vmem:[#allocation106_spill] sm:$0xff] %v7131_v9  ;;  %v870_v14 = vpop.f32.mrf.mxu0 }
 0x1b2   : > { %8789 = vst [vmem:[#allocation107_spill] sm:$0xff] %v7135_v31  ;;  %v871_v24 = vadd.f32 %v6928_v26, %v870_v14  ;;  %v1652_v30 = vpop.f32.mrf.mxu3 }
 0x1b3   : > { %8790 = vst [vmem:[#allocation108_spill] sm:$0xff] %v7139_v52  ;;  %v7143_v15 = vadd.f32 %v6987_v44, %v1652_v30 }
 0x1b4   : > { %v941_v35 = vmax.f32 %v871_v24, 0.0  ;;  %v7147_v38 = vpop.f32.mrf.mxu1 }
 0x1b5   : > { %8791 = vst [vmem:[#allocation109_spill] sm:$0xff] %v7143_v15 }
 0x1b6   : > { %v1232_v42 = vrot.slane %v941_v35, 7  ;;  %v3224_v47 = vrot.slane %v941_v35, 1 }
 0x1b7   : > { %3043 = vmatmul.bf16.vlgmr.msra.gmra.mxu1 %v6411_v6  ;;  %v2258_v6 = vpack.c.bf16 %v941_v35, %v941_v35 }
 0x1b8   : > { %v1323_v14 = vsel %vm1274_vm0, %v6283_v33, %v1232_v42  ;;  %v3315_v8 = vsel %vm3266_vm1, %v6342_v59, %v3224_v47 }
 0x1b9   : > { %v873_v44 = vpop.f32.mrf.mxu0  ;;  %v1365_v30 = vpack.c.bf16 %v1323_v14, %v1323_v14 }
 0x1ba   : > { %v874_v5 = vadd.f32 %v6928_v26, %v873_v44  ;;  %v1654_v24 = vpop.f32.mrf.mxu3  ;;  %v7166_v44 = vunpack.c.l.b16 %v2258_v6 }
 0x1bb   : > { %v7158_v52 = vadd.f32 %v7033_v11, %v1654_v24  ;;  %v1497_v9 = vunpack.c.l.b16 %v1365_v30  ;;  %v3359_v30 = vpack.c.bf16 %v3315_v8, %v3315_v8 }
 0x1bc   : > { %v942_v31 = vmax.f32 %v874_v5, 0.0  ;;  %v7160_v37 = vpop.f32.mrf.mxu1  ;;  %2523 = vmatmul.bf16.gmra.mxu0 %v6515_v2  ;;  %8793 = vst [vmem:[#allocation111_spill] sm:$0xff] %v7166_v44 }
 0x1bd   : > { %8792 = vst [vmem:[#allocation110_spill] sm:$0xff] %v7158_v52  ;;  %v1528_v41 = vpack.c.b16 %v1497_v9, %v1496_v40 }
 0x1be   : > { %v1250_v14 = vrot.slane %v942_v31, 7  ;;  %v2259_v53 = vpack.c.bf16 %v942_v31, %v942_v31  ;;  %v3242_v46 = vrot.slane %v942_v31, 1 }
 0x1bf   : > { %1696 = vmatmul.bf16.gmra.mxu3 %v1528_v41 }
 0x1c0   : > { %v1305_v11 = vsel %vm1274_vm0, %v1232_v42, %v1250_v14  ;;  %v7170_v35 = vunpack.c.l.b16 %v2259_v53  ;;  %v3297_v5 = vsel %vm3266_vm1, %v3224_v47, %v3242_v46  ;;  %v3279_v15 = vsel %vm3266_vm1, %v3242_v46, %v6342_v59 }
 0x1c1   : > { %v875_v40 = vpop.f32.mrf.mxu0  ;;  %v1366_v24 = vpack.c.bf16 %v1305_v11, %v1305_v11  ;;  %v3357_v52 = vpack.c.bf16 %v3297_v5, %v3297_v5  ;;  %v1287_v41 = vsel %vm1274_vm0, %v1250_v14, %v6283_v33  ;;  %v3358_v6 = vpack.c.bf16 %v3279_v15, %v3279_v15 }
 0x1c2   : > { %8794 = vst [vmem:[#allocation112_spill] sm:$0xff] %v7170_v35  ;;  %v1657_v31 = vpop.f32.mrf.mxu3  ;;  %v7182_v42 = vpack.c.b16 %v7170_v35, %v7166_v44  ;;  %v7193_v46 = vunpack.c.l.b16 %v3359_v30  ;;  %v1367_v14 = vpack.c.bf16 %v1287_v41, %v1287_v41  ;;  %v7213_v41 = vpack.c.b16 %v6552_v4, %v6723_v10 }
 0x1c3   : > { %v7185_v47 = vadd.f32 %v7065_v18, %v1657_v31  ;;  %v1498_v8 = vunpack.c.l.b16 %v1366_v24  ;;  %v7187_v53 = vunpack.c.l.b16 %v3357_v52  ;;  %v7191_v5 = vunpack.c.l.b16 %v3358_v6 }
 0x1c4   : > { %v7189_v11 = vpop.f32.mrf.mxu1  ;;  %8798 = vst [vmem:[#allocation116_spill] sm:$0xff] %v7193_v46  ;;  %v1499_v30 = vunpack.c.l.b16 %v1367_v14 }
 0x1c5   : > { %8795 = vst [vmem:[#allocation113_spill] sm:$0xff] %v7185_v47  ;;  %v7195_v40 = vpack.c.b16 %v1498_v8, %v1497_v9  ;;  %v7203_v18 = vpack.c.b16 %v7191_v5, %v7187_v53  ;;  %v5710_v9 = vld [vmem:[%s8553_s4 + $0x1a8] sm:$0xff] }
 0x1c6   : > { %8796 = vst [vmem:[#allocation114_spill] sm:$0xff] %v7187_v53  ;;  %2047 = vmatpush.bf16.msra.mxu2 %v5710_v9 }
 0x1c7   : > { %8797 = vst [vmem:[#allocation115_spill] sm:$0xff] %v7191_v5  ;;  %1937 = vmatmul.bf16.gmra.mxu2 %v7195_v40  ;;  %3048 = vmatmul.bf16.gmra.mxu1 %v7018_v60  ;;  %v1529_v60 = vpack.c.b16 %v1499_v30, %v1498_v8  ;;  %v5722_v8 = vld [vmem:[%s8553_s4 + $0x108] sm:$0xff] }
 0x1c8   : > { %8799 = vst [vmem:[#allocation117_spill] sm:$0xff] %v7195_v40  ;;  %2787 = vmatpush.bf16.msrb.mxu3 %v5722_v8 }
 0x1c9   : > { %8800 = vst [vmem:[#allocation118_spill] sm:$0xff] %v7203_v18  ;;  %v878_v52 = vpop.f32.mrf.mxu0 }
 0x1ca   : > { %v879_v24 = vadd.f32 %v6928_v26, %v878_v52  ;;  %v1659_v31 = vpop.f32.mrf.mxu3 }
 0x1cb   : > { %v7216_v6 = vadd.f32 %v7102_v62, %v1659_v31 }
 0x1cc   : > { %v944_v15 = vmax.f32 %v879_v24, 0.0  ;;  %v7218_v35 = vpop.f32.mrf.mxu1  ;;  %2528 = vmatmul.bf16.gmra.mxu0 %v7213_v41 }
 0x1cd   : > { %8801 = vst [vmem:[#allocation119_spill] sm:$0xff] %v7216_v6  ;;  %v5709_v6 = vld [vmem:[%s8553_s4 + $0x1a0] sm:$0xff] }
 0x1ce   : > { %v1233_v18 = vrot.slane %v944_v15, 7  ;;  %v3225_v14 = vrot.slane %v944_v15, 1  ;;  %v2261_v31 = vpack.c.bf16 %v944_v15, %v944_v15  ;;  %2048 = vmatpush.bf16.msra.mxu2 %v5709_v6 }
 0x1cf   : > { %1701 = vmatmul.bf16.gmra.mxu3 %v1529_v60 }
 0x1d0   : > { %v1324_v9 = vsel %vm1274_vm0, %v6283_v33, %v1233_v18 }
 0x1d1   : > { %v880_v52 = vpop.f32.mrf.mxu0  ;;  %v1368_v5 = vpack.c.bf16 %v1324_v9, %v1324_v9 }
 0x1d2   : > { %v881_v29 = vadd.f32 %v6928_v26, %v880_v52  ;;  %v1662_v53 = vpop.f32.mrf.mxu3  ;;  %v3316_v26 = vsel %vm3266_vm1, %v6342_v59, %v3225_v14  ;;  %v7245_v52 = vunpack.c.l.b16 %v2261_v31 }
 0x1d3   : > { %v7226_v62 = vadd.f32 %v7147_v38, %v1662_v53  ;;  %v1500_v24 = vunpack.c.l.b16 %v1368_v5 }
 0x1d4   : > { %v945_v60 = vmax.f32 %v881_v29, 0.0  ;;  %v7231_v44 = vpop.f32.mrf.mxu1  ;;  %v3362_v29 = vpack.c.bf16 %v3316_v26, %v3316_v26  ;;  %v7258_v26 = vpack.c.b16 %v6723_v10, %v6554_v32 }
 0x1d5   : > { %8802 = vst [vmem:[#allocation120_spill] sm:$0xff] %v7226_v62  ;;  %v7239_v9 = vpack.c.b16 %v1500_v24, %v1499_v30 }
 0x1d6   : > { %v1251_v38 = vrot.slane %v945_v60, 7  ;;  %v3243_v53 = vrot.slane %v945_v60, 1  ;;  %v2262_v5 = vpack.c.bf16 %v945_v60, %v945_v60 }
 0x1d7   : > { %8803 = vst [vmem:[#allocation121_spill] sm:$0xff] %v7239_v9  ;;  %1942 = vmatmul.bf16.gmra.mxu2 %v7239_v9  ;;  %3053 = vmatmul.bf16.gmra.mxu1 %v7072_v39 }
 0x1d8   : > { %v1306_v15 = vsel %vm1274_vm0, %v1233_v18, %v1251_v38  ;;  %v7247_v62 = vunpack.c.l.b16 %v2262_v5  ;;  %v3280_v30 = vsel %vm3266_vm1, %v3243_v53, %v6342_v59  ;;  %v3298_v60 = vsel %vm3266_vm1, %v3225_v14, %v3243_v53 }
 0x1d9   : > { %v7252_v8 = vpop.f32.mrf.mxu0  ;;  %v1369_v6 = vpack.c.bf16 %v1306_v15, %v1306_v15  ;;  %v3361_v47 = vpack.c.bf16 %v3280_v30, %v3280_v30  ;;  %v1288_v18 = vsel %vm1274_vm0, %v1251_v38, %v6283_v33  ;;  %v3360_v5 = vpack.c.bf16 %v3298_v60, %v3298_v60 }
 0x1da   : > { %v1664_v39 = vpop.f32.mrf.mxu3  ;;  %v7270_v14 = vunpack.c.l.b16 %v3362_v29  ;;  %v1370_v1 = vpack.c.bf16 %v1288_v18, %v1288_v18  ;;  %v1234_v29 = vrot.slane %v6811_v3, 7  ;;  %v5708_v18 = vld [vmem:[%s8553_s4 + $0x198] sm:$0xff] }
 0x1db   : > { %v7266_v59 = vadd.f32 %v7160_v37, %v1664_v39  ;;  %v1501_v15 = vunpack.c.l.b16 %v1369_v6  ;;  %v7268_v9 = vunpack.c.l.b16 %v3361_v47  ;;  %v7273_v30 = vunpack.c.l.b16 %v3360_v5  ;;  %2049 = vmatpush.bf16.msra.mxu2 %v5708_v18 }
 0x1dc   : > { %8805 = vst [vmem:[#allocation123_spill] sm:$0xff] %v7270_v14  ;;  %v1905_v53 = vpop.f32.mrf.mxu1  ;;  %2533 = vmatmul.bf16.gmra.mxu0 %v7258_v26  ;;  %v1502_v60 = vunpack.c.l.b16 %v1370_v1  ;;  %v1325_v37 = vsel %vm1274_vm0, %v6283_v33, %v1234_v29 }
 0x1dd   : > { %8804 = vst [vmem:[#allocation122_spill] sm:$0xff] %v7268_v9  ;;  %v1530_v40 = vpack.c.b16 %v1501_v15, %v1500_v24  ;;  %v7277_v38 = vpack.c.b16 %v7270_v14, %v7268_v9  ;;  %v7283_v47 = vpack.c.b16 %v7273_v30, %v7193_v46  ;;  %v1371_v1 = vpack.c.bf16 %v1325_v37, %v1325_v37 }
 0x1de   : > { %8806 = vst [vmem:[#allocation124_spill] sm:$0xff] %v7273_v30  ;;  %v7297_v31 = vpack.c.b16 %v1502_v60, %v1501_v15 }
 0x1df   : > { %8807 = vst [vmem:[#allocation125_spill] sm:$0xff] %v7277_v38  ;;  %1706 = vmatmul.bf16.gmra.mxu3 %v1530_v40  ;;  %v1503_v14 = vunpack.c.l.b16 %v1371_v1 }
 0x1e0   : > { %8808 = vst [vmem:[#allocation126_spill] sm:$0xff] %v7283_v47 }
 0x1e1   : > { %v7286_v6 = vpop.f32.mrf.mxu0  ;;  %v1531_v18 = vpack.c.b16 %v1503_v14, %v1502_v60  ;;  %v5721_v60 = vld [vmem:[%s8553_s4 + $0x100] sm:$0xff] }
 0x1e2   : > { %v1667_v39 = vpop.f32.mrf.mxu3  ;;  %2788 = vmatpush.bf16.msrb.mxu3 %v5721_v60 }
 0x1e3   : > { %v7289_v24 = vadd.f32 %v7189_v11, %v1667_v39  ;;  %v8809_v39 = vrot.slane %v6828_v27, 7 }
 0x1e4   : > { %v1908_v5 = vpop.f32.mrf.mxu1 }
 0x1e5   : > { %v1307_v38 = vsel %vm1274_vm0, %v1234_v29, %v8809_v39 }
 0x1e6   : > { %v1372_v30 = vpack.c.bf16 %v1307_v38, %v1307_v38 }
 0x1e7   : > { %1947 = vmatmul.bf16.gmra.mxu2 %v7297_v31  ;;  %3058 = vmatmul.bf16.gmra.mxu1 %v6515_v2  ;;  %v5707_v2 = vld [vmem:[%s8553_s4 + $0x190] sm:$0xff] }
 0x1e8   : > { %v1504_v9 = vunpack.c.l.b16 %v1372_v30  ;;  %2050 = vmatpush.bf16.msra.mxu2 %v5707_v2  ;;  %v2399_v30 = vpack.c.b16 %v6681_v36, %v6723_v10 }
 0x1e9   : > { %v7301_v40 = vpop.f32.mrf.mxu0 }
 0x1ea   : > { %v1669_v11 = vpop.f32.mrf.mxu3  ;;  %v7319_v1 = vpack.c.b16 %v1504_v9, %v1503_v14  ;;  %v1253_v14 = vrot.slane %v6819_v22, 7 }
 0x1eb   : > { %v7308_v47 = vadd.f32 %v7218_v35, %v1669_v11 }
 0x1ec   : > { %v1910_v15 = vpop.f32.mrf.mxu1  ;;  %2538 = vmatmul.bf16.gmra.mxu0 %v6629_v57 }
 0x1ef   : > { %1711 = vmatmul.bf16.gmra.mxu3 %v1531_v18 }
 0x1f1   : > { %v7314_v37 = vpop.f32.mrf.mxu0 }
 0x1f2   : > { %v1672_v46 = vpop.f32.mrf.mxu3 }
 0x1f3   : > { %v7317_v29 = vadd.f32 %v7231_v44, %v1672_v46  ;;  %v1532_v46 = vpack.c.b16 %v6931_v17, %v1504_v9  ;;  %v5705_v17 = vld [vmem:[%s8553_s4 + $0x180] sm:$0xff] }
 0x1f4   : > { %v1913_v35 = vpop.f32.mrf.mxu1 }
 0x1f5   : > { %8810 = vst [vmem:[#allocation127_spill] sm:$0xff] %v7317_v29  ;;  %v8812_v29 = vrot.slane %v6817_v28, 7 }
 0x1f7   : > { %1952 = vmatmul.bf16.gmra.mxu2 %v7319_v1  ;;  %3063 = vmatmul.bf16.gmra.mxu1 %v7213_v41  ;;  %v5706_v41 = vld [vmem:[%s8553_s4 + $0x188] sm:$0xff] }
 0x1f8   : > { %2051 = vmatpush.bf16.msra.mxu2 %v5706_v41 }
 0x1f9   : > { %v7323_v38 = vpop.f32.mrf.mxu0 }
 0x1fa   : > { %v1674_v11 = vpop.f32.mrf.mxu3 }
 0x1fb   : > { %v7330_v39 = vadd.f32 %v1905_v53, %v1674_v11  ;;  %v1308_v53 = vsel %vm1274_vm0, %v8812_v29, %v1253_v14  ;;  %v2400_v29 = vpack.c.b16 %v6723_v10, %v6683_v49 }
 0x1fc   : > { %v1915_v44 = vpop.f32.mrf.mxu1  ;;  %2543 = vmatmul.bf16.gmra.mxu0 %v2399_v30  ;;  %v1375_v9 = vpack.c.bf16 %v1308_v53, %v1308_v53  ;;  %2052 = vmatpush.bf16.msra.mxu2 %v5705_v17 }
 0x1fd   : > { %8811 = vst [vmem:[#allocation128_spill] sm:$0xff] %v7330_v39 }
 0x1ff   : > { %1716 = vmatmul.bf16.gmra.mxu3 %v1532_v46  ;;  %v1507_v46 = vunpack.c.l.b16 %v1375_v9 }
 0x201   : > { %v7337_v18 = vpop.f32.mrf.mxu0 }
 0x202   : > { %v1677_v2 = vpop.f32.mrf.mxu3 }
 0x203   : > { %v7343_v60 = vadd.f32 %v1908_v5, %v1677_v2  ;;  %v1290_v5 = vsel %vm1274_vm0, %v1253_v14, %v6283_v33  ;;  %v1533_v2 = vpack.c.b16 %v1507_v46, %v6933_v56 }
 0x204   : > { %v1918_v22 = vpop.f32.mrf.mxu1  ;;  %v1376_v53 = vpack.c.bf16 %v1290_v5, %v1290_v5  ;;  %v5744_v5 = vld [vmem:[%s8553_s4 + $0xb8] sm:$0xff] }
 0x205   : > { %8813 = vst [vmem:[#allocation129_spill] sm:$0xff] %v7343_v60  ;;  %3584 = vmatpush.bf16.msrb.mxu2 %v5744_v5 }
 0x206   : > { %v1508_v60 = vunpack.c.l.b16 %v1376_v53 }
 0x207   : > { %1957 = vmatmul.bf16.gmra.mxu2 %v6946_v7  ;;  %3068 = vmatmul.bf16.gmra.mxu1 %v7258_v26 }
 0x208   : > { %v7364_v7 = vpack.c.b16 %v1508_v60, %v1507_v46 }
 0x209   : > { %v7350_v11 = vpop.f32.mrf.mxu0 }
 0x20a   : > { %v1679_v28 = vpop.f32.mrf.mxu3 }
 0x20b   : > { %v7357_v41 = vadd.f32 %v1910_v15, %v1679_v28 }
 0x20c   : > { %2548 = vmatmul.bf16.gmra.mxu0 %v2400_v29  ;;  %v1920_v17 = vpop.f32.mrf.mxu1 }
 0x20d   : > { %8814 = vst [vmem:[#allocation130_spill] sm:$0xff] %v7357_v41 }
 0x20f   : > { %1721 = vmatmul.bf16.gmra.mxu3 %v1533_v2 }
 0x211   : > { %v7360_v26 = vpop.f32.mrf.mxu0 }
 0x212   : > { %v1682_v9 = vpop.f32.mrf.mxu3 }
 0x213   : > { %v7362_v39 = vadd.f32 %v1913_v35, %v1682_v9  ;;  %v1534_v35 = vpack.c.b16 %v7086_v0, %v1508_v60  ;;  %v5752_v60 = vld [vmem:[%s8553_s4 + $0x178] sm:$0xff]  ;;  %v8852_v0 = vld [vmem:[#allocation43_spill] sm:$0xff] }
 0x214   : > { %v1923_v15 = vpop.f32.mrf.mxu1  ;;  %3880 = vmatpush.bf16.msra.mxu0 %v5752_v60 }
 0x215   : > { %8815 = vst [vmem:[#allocation131_spill] sm:$0xff] %v7362_v39 }
 0x217   : > { %1962 = vmatmul.bf16.gmra.mxu2 %v7364_v7  ;;  %3073 = vmatmul.bf16.gmra.mxu1 %v6629_v57  ;;  %v5760_v57 = vld [vmem:[%s8553_s4 + $0x238] sm:$0xff] }
 0x218   : > { %4134 = vmatpush.bf16.msra.mxu3 %v5760_v57 }
 0x219   : > { %v7368_v14 = vpop.f32.mrf.mxu0 }
 0x21a   : > { %v1684_v28 = vpop.f32.mrf.mxu3 }
 0x21b   : > { %v7370_v56 = vadd.f32 %v1915_v44, %v1684_v28  ;;  %v8817_v44 = vrot.slane %v6980_v13, 7 }
 0x21c   : > { %2553 = vmatmul.bf16.gmra.mxu0 %v6758_v23  ;;  %v1925_v9 = vpop.f32.mrf.mxu1 }
 0x21d   : > { %8816 = vst [vmem:[#allocation132_spill] sm:$0xff] %v7370_v56  ;;  %v1291_v53 = vsel %vm1274_vm0, %v8817_v44, %v6283_v33  ;;  %v2402_v33 = vpack.c.b16 %v6837_v55, %v6723_v10 }
 0x21e   : > { %v1379_v5 = vpack.c.bf16 %v1291_v53, %v1291_v53  ;;  %v7403_v53 = vpop.f32.mrf.mxu2 }
 0x21f   : > { %1726 = vmatmul.bf16.gmra.mxu3 %v1534_v35 }
 0x220   : > { %v7395_v57 = vunpack.c.l.b16 %v1379_v5 }
 0x221   : > { %v7380_v46 = vpop.f32.mrf.mxu0 }
 0x222   : > { %v1687_v2 = vpop.f32.mrf.mxu3  ;;  %8819 = vst [vmem:[#allocation134_spill] sm:$0xff] %v7395_v57 }
 0x223   : > { %v7387_v28 = vadd.f32 %v1918_v22, %v1687_v2  ;;  %v1535_v2 = vpack.c.b16 %v7395_v57, %v7090_v19 }
 0x224   : > { %v1928_v22 = vpop.f32.mrf.mxu1 }
 0x225   : > { %8818 = vst [vmem:[#allocation133_spill] sm:$0xff] %v7387_v28 }
 0x227   : > { %2053 = vmatmul.bf16.vlgmr.msra.gmra.mxu2 %v6419_v12  ;;  %3078 = vmatmul.bf16.gmra.mxu1 %v2399_v30 }
 0x229   : > { %v7393_v35 = vpop.f32.mrf.mxu0 }
 0x22a   : > { %v1689_v56 = vpop.f32.mrf.mxu3 }
 0x22b   : > { %v7399_v44 = vadd.f32 %v1920_v17, %v1689_v56 }
 0x22c   : > { %2558 = vmatmul.bf16.gmra.mxu0 %v2402_v33  ;;  %v1930_v5 = vpop.f32.mrf.mxu1 }
 0x22d   : > { %8820 = vst [vmem:[#allocation135_spill] sm:$0xff] %v7399_v44  ;;  %v2403_v44 = vpack.c.b16 %v6723_v10, %v6823_v45 }
 0x22f   : > { %1731 = vmatmul.bf16.gmra.mxu3 %v1535_v2  ;;  %v8823_v2 = vpack.c.b16 %v6368_v21, %v6366_v20  ;;  %v5743_v21 = vld [vmem:[%s8553_s4 + $0xb0] sm:$0xff] }
 0x230   : > { %3585 = vmatpush.bf16.msrb.mxu2 %v5743_v21 }
 0x231   : > { %v7405_v12 = vpop.f32.mrf.mxu0 }
 0x232   : > { %v1692_v30 = vpop.f32.mrf.mxu3  ;;  %v1933_v54 = vpop.f32.mrf.mxu2 }
 0x233   : > { %v7407_v60 = vadd.f32 %v1923_v15, %v1692_v30 }
 0x234   : > { %v7419_v15 = vpop.f32.mrf.mxu1 }
 0x235   : > { %8821 = vst [vmem:[#allocation136_spill] sm:$0xff] %v7407_v60 }
 0x236   : > { %8824 = vst [vmem:[#allocation138_spill] sm:$0xff] %v7419_v15 }
 0x237   : > { %2058 = vmatmul.bf16.gmra.mxu2 %v6441_v50  ;;  %3083 = vmatmul.bf16.gmra.mxu1 %v2400_v29 }
 0x239   : > { %v7410_v17 = vpop.f32.mrf.mxu0 }
 0x23a   : > { %v1694_v56 = vpop.f32.mrf.mxu3  ;;  %v1935_v50 = vpop.f32.mrf.mxu2 }
 0x23b   : > { %v7414_v28 = vadd.f32 %v1925_v9, %v1694_v56 }
 0x23c   : > { %2563 = vmatmul.bf16.gmra.mxu0 %v2403_v44 }
 0x23d   : > { %8822 = vst [vmem:[#allocation137_spill] sm:$0xff] %v7414_v28  ;;  %v7429_v28 = vpop.f32.mrf.mxu1 }
 0x23e   : > { %8826 = vst [vmem:[#allocation140_spill] sm:$0xff] %v7429_v28 }
 0x23f   : > { %2789 = vmatmul.bf16.vlgmr.msrb.gmra.mxu3 %v8823_v2 }
 0x241   : > { %v7421_v30 = vpop.f32.mrf.mxu0 }
 0x242   : > { %v1697_v29 = vpop.f32.mrf.mxu3 }
 0x243   : > { %v7423_v60 = vadd.f32 %v1928_v22, %v1697_v29  ;;  %v2686_v22 = vpack.c.b16 %v6393_v58, %v6723_v10 }
 0x245   : > { %8825 = vst [vmem:[#allocation139_spill] sm:$0xff] %v7423_v60  ;;  %v7449_v28 = vpop.f32.mrf.mxu1 }
 0x246   : > { %8829 = vst [vmem:[#allocation143_spill] sm:$0xff] %v7449_v28 }
 0x247   : > { %2063 = vmatmul.bf16.gmra.mxu2 %v6485_v48  ;;  %3088 = vmatmul.bf16.gmra.mxu1 %v6758_v23  ;;  %v5759_v48 = vld [vmem:[%s8553_s4 + $0x230] sm:$0xff] }
 0x248   : > { %4135 = vmatpush.bf16.msra.mxu3 %v5759_v48  ;;  %v2405_v48 = vpack.c.b16 %v7092_v25, %v6723_v10 }
 0x249   : > { %v7427_v57 = vpop.f32.mrf.mxu0 }
 0x24a   : > { %v1699_v9 = vpop.f32.mrf.mxu3  ;;  %v1938_v56 = vpop.f32.mrf.mxu2 }
 0x24b   : > { %v7431_v20 = vadd.f32 %v1930_v5, %v1699_v9  ;;  %v5751_v9 = vld [vmem:[%s8553_s4 + $0x170] sm:$0xff] }
 0x24c   : > { %2568 = vmatmul.bf16.gmra.mxu0 %v6978_v51 }
 0x24d   : > { %8827 = vst [vmem:[#allocation141_spill] sm:$0xff] %v7431_v20  ;;  %3881 = vmatpush.bf16.msra.mxu0 %v5751_v9  ;;  %v8836_v20 = vld [vmem:[#allocation14_spill] sm:$0xff] }
 0x24f   : > { %2794 = vmatmul.bf16.gmra.mxu3 %v2686_v22 }
 0x251   : > { %v7442_v23 = vpop.f32.mrf.mxu0 }
 0x252   : > { %v1702_v5 = vpop.f32.mrf.mxu3  ;;  %v1940_v2 = vpop.f32.mrf.mxu2 }
 0x253   : > { %v7444_v29 = vadd.f32 %v1933_v54, %v1702_v5  ;;  %v2687_v54 = vpack.c.b16 %v6723_v10, %v6397_v61  ;;  %v7460_v5 = vpop.f32.mrf.mxu1  ;;  %v2406_v61 = vpack.c.b16 %v6723_v10, %v7088_v16 }
 0x254   : > { %8831 = vst [vmem:[#allocation145_spill] sm:$0xff] %v7460_v5 }
 0x255   : > { %8828 = vst [vmem:[#allocation142_spill] sm:$0xff] %v7444_v29 }
 0x257   : > { %2068 = vmatmul.bf16.gmra.mxu2 %v6523_v34  ;;  %3093 = vmatmul.bf16.gmra.mxu1 %v2402_v33 }
 0x259   : > { %v7452_v58 = vpop.f32.mrf.mxu0 }
 0x25a   : > { %v1704_v21 = vpop.f32.mrf.mxu3  ;;  %v1943_v22 = vpop.f32.mrf.mxu2 }
 0x25b   : > { %v7456_v15 = vadd.f32 %v1935_v50, %v1704_v21  ;;  %v7467_v29 = vpop.f32.mrf.mxu1 }
 0x25c   : > { %2573 = vmatmul.bf16.gmra.mxu0 %v2405_v48  ;;  %8833 = vst [vmem:[#allocation147_spill] sm:$0xff] %v7467_v29 }
 0x25d   : > { %8830 = vst [vmem:[#allocation144_spill] sm:$0xff] %v7456_v15 }
 0x25f   : > { %2799 = vmatmul.bf16.gmra.mxu3 %v2687_v54  ;;  %v8835_v54 = vld [vmem:[#allocation15_spill] sm:$0xff] }
 0x260   : > { %v8837_v60 = vpack.c.b16 %v8835_v54, %v8836_v20 }
 0x261   : > { %v7462_v9 = vpop.f32.mrf.mxu0 }
 0x262   : > { %v1707_v34 = vpop.f32.mrf.mxu3  ;;  %v1945_v33 = vpop.f32.mrf.mxu2 }
 0x263   : > { %v7464_v28 = vadd.f32 %v1938_v56, %v1707_v34  ;;  %v7480_v34 = vpop.f32.mrf.mxu1 }
 0x264   : > { %8838 = vst [vmem:[#allocation15_spill] sm:$0xff] %v7480_v34 }
 0x265   : > { %8832 = vst [vmem:[#allocation146_spill] sm:$0xff] %v7464_v28  ;;  %v8840_v28 = vld [vmem:[#allocation32_spill] sm:$0xff] }
 0x267   : > { %2073 = vmatmul.bf16.gmra.mxu2 %v6546_v43  ;;  %3098 = vmatmul.bf16.gmra.mxu1 %v2403_v44 }
 0x269   : > { %v7469_v50 = vpop.f32.mrf.mxu0 }
 0x26a   : > { %v1709_v21 = vpop.f32.mrf.mxu3  ;;  %v1948_v15 = vpop.f32.mrf.mxu2 }
 0x26b   : > { %v7473_v5 = vadd.f32 %v1940_v2, %v1709_v21  ;;  %v7494_v20 = vpop.f32.mrf.mxu1 }
 0x26c   : > { %2578 = vmatmul.bf16.gmra.mxu0 %v2406_v61  ;;  %8842 = vst [vmem:[#allocation149_spill] sm:$0xff] %v7494_v20  ;;  %v5750_v20 = vld [vmem:[%s8553_s4 + $0x168] sm:$0xff] }
 0x26d   : > { %8834 = vst [vmem:[#allocation148_spill] sm:$0xff] %v7473_v5  ;;  %3882 = vmatpush.bf16.msra.mxu0 %v5750_v20 }
 0x26f   : > { %2804 = vmatmul.bf16.gmra.mxu3 %v8837_v60  ;;  %v5742_v60 = vld [vmem:[%s8553_s4 + $0xa8] sm:$0xff] }
 0x270   : > { %3586 = vmatpush.bf16.msrb.mxu2 %v5742_v60  ;;  %v8846_v60 = vld [vmem:[#allocation39_spill] sm:$0xff] }
 0x271   : > { %v7478_v56 = vpop.f32.mrf.mxu0 }
 0x272   : > { %v1712_v43 = vpop.f32.mrf.mxu3  ;;  %v1950_v44 = vpop.f32.mrf.mxu2 }
 0x273   : > { %v7482_v29 = vadd.f32 %v1943_v22, %v1712_v43  ;;  %v8843_v22 = vld [vmem:[#allocation21_spill] sm:$0xff]  ;;  %v7508_v34 = vpop.f32.mrf.mxu1 }
 0x274   : > { %v2689_v54 = vpack.c.b16 %v8843_v22, %v6723_v10  ;;  %8845 = vst [vmem:[#allocation150_spill] sm:$0xff] %v7508_v34 }
 0x275   : > { %8839 = vst [vmem:[#allocation14_spill] sm:$0xff] %v7482_v29 }
 0x277   : > { %2078 = vmatmul.bf16.gmra.mxu2 %v8840_v28  ;;  %3103 = vmatmul.bf16.gmra.mxu1 %v6978_v51  ;;  %v5758_v51 = vld [vmem:[%s8553_s4 + $0x228] sm:$0xff] }
 0x278   : > { %4136 = vmatpush.bf16.msra.mxu3 %v5758_v51  ;;  %v2408_v51 = vpack.c.b16 %v7245_v52, %v6723_v10 }
 0x279   : > { %v7486_v39 = vpop.f32.mrf.mxu0 }
 0x27a   : > { %v1714_v2 = vpop.f32.mrf.mxu3  ;;  %v1953_v21 = vpop.f32.mrf.mxu2 }
 0x27b   : > { %v7488_v5 = vadd.f32 %v1945_v33, %v1714_v2  ;;  %v7519_v20 = vpop.f32.mrf.mxu1 }
 0x27c   : > { %2583 = vmatmul.bf16.gmra.mxu0 %v7182_v42 }
 0x27d   : > { %8841 = vst [vmem:[#allocation32_spill] sm:$0xff] %v7488_v5 }
 0x27f   : > { %2809 = vmatmul.bf16.gmra.mxu3 %v2689_v54 }
 0x281   : > { %v7501_v28 = vpop.f32.mrf.mxu0 }
 0x282   : > { %v1717_v33 = vpop.f32.mrf.mxu3  ;;  %v1955_v43 = vpop.f32.mrf.mxu2 }
 0x283   : > { %v7503_v2 = vadd.f32 %v1948_v15, %v1717_v33  ;;  %v8848_v15 = vld [vmem:[#allocation22_spill] sm:$0xff] }
 0x284   : > { %v2690_v33 = vpack.c.b16 %v6723_v10, %v8848_v15  ;;  %8849 = vst [vmem:[#allocation22_spill] sm:$0xff] %v7519_v20  ;;  %v7532_v15 = vpop.f32.mrf.mxu1 }
 0x285   : > { %8844 = vst [vmem:[#allocation21_spill] sm:$0xff] %v7503_v2 }
 0x286   : > { %8854 = vst [vmem:[#allocation153_spill] sm:$0xff] %v7532_v15 }
 0x287   : > { %2083 = vmatmul.bf16.gmra.mxu2 %v8846_v60  ;;  %3108 = vmatmul.bf16.gmra.mxu1 %v2405_v48 }
 0x289   : > { %v7511_v22 = vpop.f32.mrf.mxu0 }
 0x28a   : > { %v1719_v54 = vpop.f32.mrf.mxu3  ;;  %v1958_v5 = vpop.f32.mrf.mxu2 }
 0x28b   : > { %v7515_v29 = vadd.f32 %v1950_v44, %v1719_v54 }
 0x28c   : > { %2588 = vmatmul.bf16.gmra.mxu0 %v2408_v51 }
 0x28d   : > { %8847 = vst [vmem:[#allocation39_spill] sm:$0xff] %v7515_v29  ;;  %v7530_v29 = vpack.c.b16 %v6723_v10, %v7247_v62 }
 0x28f   : > { %2814 = vmatmul.bf16.gmra.mxu3 %v2690_v33 }
 0x291   : > { %v7521_v34 = vpop.f32.mrf.mxu0 }
 0x292   : > { %8850 = vst [vmem:[#allocation151_spill] sm:$0xff] %v7521_v34  ;;  %v1722_v60 = vpop.f32.mrf.mxu3  ;;  %v1960_v48 = vpop.f32.mrf.mxu2 }
 0x293   : > { %v7523_v2 = vadd.f32 %v1953_v21, %v1722_v60  ;;  %v8856_v21 = vpack.c.b16 %v6554_v32, %v6552_v4  ;;  %v8861_v4 = vld [vmem:[#allocation52_spill] sm:$0xff] }
 0x295   : > { %8851 = vst [vmem:[#allocation152_spill] sm:$0xff] %v7523_v2  ;;  %v2264_v2 = vpack.c.bf16 %v6811_v3, %v6811_v3 }
 0x297   : > { %2088 = vmatmul.bf16.gmra.mxu2 %v8852_v0  ;;  %3113 = vmatmul.bf16.gmra.mxu1 %v2406_v61  ;;  %v2265_v61 = vpack.c.bf16 %v6828_v27, %v6828_v27 }
 0x299   : > { %v7526_v19 = vpop.f32.mrf.mxu0  ;;  %v7552_v15 = vunpack.c.l.b16 %v2265_v61  ;;  %v8864_v61 = vld [vmem:[#allocation42_spill] sm:$0xff] }
 0x29a   : > { %8853 = vst [vmem:[#allocation43_spill] sm:$0xff] %v7526_v19  ;;  %v1724_v44 = vpop.f32.mrf.mxu3  ;;  %v1963_v54 = vpop.f32.mrf.mxu2 }
 0x29b   : > { %v7534_v33 = vadd.f32 %v1955_v43, %v1724_v44  ;;  %v7548_v43 = vpop.f32.mrf.mxu1  ;;  %v7550_v44 = vunpack.c.l.b16 %v2264_v2  ;;  %8860 = vst [vmem:[#allocation158_spill] sm:$0xff] %v7552_v15 }
 0x29c   : > { %2593 = vmatmul.bf16.gmra.mxu0 %v7530_v29  ;;  %8859 = vst [vmem:[#allocation157_spill] sm:$0xff] %v7548_v43  ;;  %v8865_v43 = vld [vmem:[#allocation34_spill] sm:$0xff] }
 0x29d   : > { %8855 = vst [vmem:[#allocation154_spill] sm:$0xff] %v7534_v33 }
 0x29f   : > { %2819 = vmatmul.bf16.gmra.mxu3 %v8856_v21  ;;  %v5749_v21 = vld [vmem:[%s8553_s4 + $0x160] sm:$0xff] }
 0x2a0   : > { %3883 = vmatpush.bf16.msra.mxu0 %v5749_v21 }
 0x2a1   : > { %v7540_v0 = vpop.f32.mrf.mxu0 }
 0x2a2   : > { %8857 = vst [vmem:[#allocation155_spill] sm:$0xff] %v7540_v0  ;;  %v1727_v60 = vpop.f32.mrf.mxu3  ;;  %v1965_v20 = vpop.f32.mrf.mxu2 }
 0x2a3   : > { %v7546_v19 = vadd.f32 %v1958_v5, %v1727_v60  ;;  %v7563_v5 = vpack.c.b16 %v7552_v15, %v7550_v44  ;;  %v7577_v27 = vpop.f32.mrf.mxu1 }
 0x2a4   : > { %8866 = vst [vmem:[#allocation42_spill] sm:$0xff] %v7577_v27 }
 0x2a5   : > { %8858 = vst [vmem:[#allocation156_spill] sm:$0xff] %v7546_v19  ;;  %v2692_v19 = vpack.c.b16 %v8865_v43, %v6723_v10 }
 0x2a7   : > { %2093 = vmatmul.bf16.gmra.mxu2 %v8861_v4  ;;  %3118 = vmatmul.bf16.gmra.mxu1 %v7182_v42  ;;  %v5741_v42 = vld [vmem:[%s8553_s4 + $0xa0] sm:$0xff]  ;;  %v5748_v4 = vld [vmem:[%s8553_s4 + $0x158] sm:$0xff] }
 0x2a8   : > { %3587 = vmatpush.bf16.msrb.mxu2 %v5741_v42  ;;  %3884 = vmatpush.bf16.msra.mxu0 %v5748_v4  ;;  %v5768_v4 = vld [vmem:[%s8554_s5 + $0x38] sm:$0xff] }
 0x2a9   : > { %v7556_v32 = vpop.f32.mrf.mxu0  ;;  %4503 = vmatpush.bf16.msrb.mxu1 %v5768_v4  ;;  %v8876_v4 = vld [vmem:[#allocation51_spill] sm:$0xff] }
 0x2aa   : > { %8862 = vst [vmem:[#allocation52_spill] sm:$0xff] %v7556_v32  ;;  %v1729_v33 = vpop.f32.mrf.mxu3  ;;  %v2054_v3 = vpop.f32.mrf.mxu2 }
 0x2ab   : > { %v7565_v2 = vadd.f32 %v1960_v48, %v1729_v33  ;;  %v2174_v60 = vadd.f32 %v2054_v3, %v8864_v61  ;;  %v5757_v3 = vld [vmem:[%s8553_s4 + $0x220] sm:$0xff]  ;;  %v8867_v48 = vld [vmem:[#allocation44_spill] sm:$0xff]  ;;  %v8868_v33 = vld [vmem:[#allocation33_spill] sm:$0xff] }
 0x2ac   : > { %2598 = vmatmul.bf16.gmra.mxu0 %v7563_v5  ;;  %v1851_v21 = vadd.f32 %v8868_v33, %v8867_v48  ;;  %4137 = vmatpush.bf16.msra.mxu3 %v5757_v3  ;;  %v5746_v48 = vld [vmem:[%s8553_s4 + $0x148] sm:$0xff]  ;;  %v8871_v3 = vld [vmem:[#allocation62_spill] sm:$0xff]  ;;  %v7598_v33 = vpop.f32.mrf.mxu1 }
 0x2ad   : > { %8863 = vst [vmem:[#allocation159_spill] sm:$0xff] %v7565_v2  ;;  %v5747_v2 = vld [vmem:[%s8553_s4 + $0x150] sm:$0xff]  ;;  %v2614_v15 = vadd.f32 %v7252_v8, %v2174_v60  ;;  %v8884_v60 = vld [vmem:[#allocation58_spill] sm:$0xff] }
 0x2ae   : > { %3885 = vmatpush.bf16.msra.mxu0 %v5747_v2  ;;  %8872 = vst [vmem:[#allocation33_spill] sm:$0xff] %v7598_v33  ;;  %v8879_v33 = vld [vmem:[#allocation41_spill] sm:$0xff] }
 0x2af   : > { %2824 = vmatmul.bf16.gmra.mxu3 %v2692_v19 }
 0x2b1   : > { %v7584_v61 = vpop.f32.mrf.mxu0 }
 0x2b2   : > { %8869 = vst [vmem:[#allocation34_spill] sm:$0xff] %v7584_v61  ;;  %v1732_v43 = vpop.f32.mrf.mxu3  ;;  %v2056_v42 = vpop.f32.mrf.mxu2  ;;  %3886 = vmatpush.bf16.msra.mxu0 %v5746_v48 }
 0x2b3   : > { %v7589_v32 = vadd.f32 %v1963_v54, %v1732_v43  ;;  %v2175_v19 = vadd.f32 %v2056_v42, %v1851_v21  ;;  %v5745_v54 = vld [vmem:[%s8553_s4 + $0x140] sm:$0xff]  ;;  %v8874_v43 = vld [vmem:[#allocation92_spill] sm:$0xff] }
 0x2b4   : > { %v2411_v42 = vpack.c.b16 %v8874_v43, %v6723_v10  ;;  %v7617_v43 = vpop.f32.mrf.mxu1 }
 0x2b5   : > { %8870 = vst [vmem:[#allocation44_spill] sm:$0xff] %v7589_v32 }
 0x2b6   : > { %3887 = vmatpush.bf16.msra.mxu0 %v5745_v54  ;;  %8880 = vst [vmem:[#allocation51_spill] sm:$0xff] %v7617_v43 }
 0x2b7   : > { %2098 = vmatmul.bf16.gmra.mxu2 %v8871_v3  ;;  %3123 = vmatmul.bf16.gmra.mxu1 %v2408_v51  ;;  %v8877_v51 = vld [vmem:[#allocation35_spill] sm:$0xff]  ;;  %v8878_v3 = vld [vmem:[#allocation54_spill] sm:$0xff] }
 0x2b8   : > { %v2693_v48 = vpack.c.b16 %v6723_v10, %v8877_v51 }
 0x2b9   : > { %v7600_v27 = vpop.f32.mrf.mxu0 }
 0x2ba   : > { %8873 = vst [vmem:[#allocation62_spill] sm:$0xff] %v7600_v27  ;;  %v1734_v2 = vpop.f32.mrf.mxu3  ;;  %v2059_v21 = vpop.f32.mrf.mxu2  ;;  %v1856_v27 = vadd.f32 %v8879_v33, %v8878_v3 }
 0x2bb   : > { %v7607_v32 = vadd.f32 %v1965_v20, %v1734_v2  ;;  %v2176_v61 = vadd.f32 %v2059_v21, %v8876_v4  ;;  %v8882_v21 = vld [vmem:[#allocation67_spill] sm:$0xff]  ;;  %v2615_v4 = vadd.f32 %v7286_v6, %v2175_v19 }
 0x2bc   : > { %2603 = vmatmul.bf16.gmra.mxu0 %v2411_v42 }
 0x2bd   : > { %8875 = vst [vmem:[#allocation160_spill] sm:$0xff] %v7607_v32  ;;  %v2616_v19 = vadd.f32 %v7301_v40, %v2176_v61  ;;  %v5740_v61 = vld [vmem:[%s8553_s4 + $0x98] sm:$0xff] }
 0x2be   : > { %3588 = vmatpush.bf16.msrb.mxu2 %v5740_v61  ;;  %v5767_v61 = vld [vmem:[%s8554_s5 + $0x30] sm:$0xff] }
 0x2bf   : > { %2829 = vmatmul.bf16.gmra.mxu3 %v2693_v48  ;;  %v8883_v48 = vld [vmem:[#allocation93_spill] sm:$0xff]  ;;  %4504 = vmatpush.bf16.msrb.mxu1 %v5767_v61 }
 0x2c0   : > { %v2412_v8 = vpack.c.b16 %v6723_v10, %v8883_v48  ;;  %v8909_v61 = vld [vmem:[#allocation57_spill] sm:$0xff] }
 0x2c1   : > { %v7614_v0 = vpop.f32.mrf.mxu0 }
 0x2c2   : > { %v2061_v34 = vpop.f32.mrf.mxu2  ;;  %v2790_v41 = vpop.f32.mrf.mxu3 }
 0x2c3   : > { %v2177_v20 = vadd.f32 %v2061_v34, %v1856_v27  ;;  %v7619_v2 = vadd.f32 %v2790_v41, %v2614_v15  ;;  %v7631_v27 = vpop.f32.mrf.mxu1  ;;  %v8886_v41 = vpack.c.b16 %v6683_v49, %v6681_v36  ;;  %v8888_v34 = vld [vmem:[#allocation47_spill] sm:$0xff] }
 0x2c4   : > { %8885 = vst [vmem:[#allocation54_spill] sm:$0xff] %v7631_v27 }
 0x2c5   : > { %8881 = vst [vmem:[#allocation35_spill] sm:$0xff] %v7619_v2  ;;  %v2617_v49 = vadd.f32 %v7314_v37, %v2177_v20  ;;  %v5756_v37 = vld [vmem:[%s8553_s4 + $0x218] sm:$0xff] }
 0x2c6   : > { %v8898_v20 = vld [vmem:[#allocation70_spill] sm:$0xff]  ;;  %4138 = vmatpush.bf16.msra.mxu3 %v5756_v37  ;;  %v8904_v37 = vld [vmem:[#allocation76_spill] sm:$0xff] }
 0x2c7   : > { %2103 = vmatmul.bf16.gmra.mxu2 %v8882_v21  ;;  %3128 = vmatmul.bf16.gmra.mxu1 %v7530_v29  ;;  %v8887_v29 = vld [vmem:[#allocation64_spill] sm:$0xff] }
 0x2c8   : > { %v1861_v15 = vadd.f32 %v8888_v34, %v8887_v29  ;;  %v8892_v29 = vld [vmem:[#allocation66_spill] sm:$0xff] }
 0x2c9   : > { %v7623_v54 = vpop.f32.mrf.mxu0 }
 0x2ca   : > { %v2064_v33 = vpop.f32.mrf.mxu2  ;;  %v2792_v51 = vpop.f32.mrf.mxu3 }
 0x2cb   : > { %v2178_v3 = vadd.f32 %v2064_v33, %v8884_v60  ;;  %v7629_v32 = vadd.f32 %v2792_v51, %v2615_v4  ;;  %v7643_v4 = vpop.f32.mrf.mxu1  ;;  %v8891_v51 = vld [vmem:[#allocation79_spill] sm:$0xff] }
 0x2cc   : > { %2608 = vmatmul.bf16.gmra.mxu0 %v2412_v8  ;;  %8890 = vst [vmem:[#allocation67_spill] sm:$0xff] %v7643_v4 }
 0x2cf   : > { %2834 = vmatmul.bf16.gmra.mxu3 %v8886_v41 }
 0x2d1   : > { %v7638_v6 = vpop.f32.mrf.mxu0 }
 0x2d2   : > { %v2066_v21 = vpop.f32.mrf.mxu2  ;;  %v2795_v43 = vpop.f32.mrf.mxu3 }
 0x2d3   : > { %v2179_v2 = vadd.f32 %v2066_v21, %v1861_v15  ;;  %v7641_v33 = vadd.f32 %v2795_v43, %v2616_v19  ;;  %v8894_v43 = vld [vmem:[#allocation8_spill] sm:$0xff]  ;;  %v8895_v15 = vld [vmem:[#allocation7_spill] sm:$0xff] }
 0x2d4   : > { %v8896_v19 = vpack.c.b16 %v8894_v43, %v8895_v15 }
 0x2d5   : > { %8889 = vst [vmem:[#allocation41_spill] sm:$0xff] %v7641_v33 }
 0x2d7   : > { %2108 = vmatmul.bf16.gmra.mxu2 %v8891_v51  ;;  %3133 = vmatmul.bf16.gmra.mxu1 %v7563_v5  ;;  %v8897_v5 = vld [vmem:[#allocation56_spill] sm:$0xff]  ;;  %v8899_v51 = vld [vmem:[#allocation55_spill] sm:$0xff] }
 0x2d8   : > { %v2695_v21 = vpack.c.b16 %v8897_v5, %v6723_v10 }
 0x2d9   : > { %v7647_v36 = vpop.f32.mrf.mxu0 }
 0x2da   : > { %v2069_v60 = vpop.f32.mrf.mxu2  ;;  %v2797_v41 = vpop.f32.mrf.mxu3 }
 0x2db   : > { %v2180_v34 = vadd.f32 %v2069_v60, %v8892_v29  ;;  %v7651_v40 = vadd.f32 %v2797_v41, %v2617_v49  ;;  %v1866_v49 = vadd.f32 %v8899_v51, %v8898_v20  ;;  %v7666_v60 = vpop.f32.mrf.mxu1  ;;  %v2618_v29 = vadd.f32 %v7323_v38, %v2178_v3 }
 0x2dc   : > { %3888 = vmatmul.bf16.vlgmr.msra.gmra.mxu0 %v8896_v19  ;;  %8900 = vst [vmem:[#allocation58_spill] sm:$0xff] %v7666_v60  ;;  %v2619_v51 = vadd.f32 %v7337_v18, %v2179_v2 }
 0x2dd   : > { %8893 = vst [vmem:[#allocation93_spill] sm:$0xff] %v7651_v40  ;;  %v2620_v2 = vadd.f32 %v7350_v11, %v2180_v34  ;;  %v8915_v11 = vld [vmem:[#allocation12_spill] sm:$0xff]  ;;  %v8916_v34 = vld [vmem:[#allocation11_spill] sm:$0xff] }
 0x2df   : > { %2839 = vmatmul.bf16.gmra.mxu3 %v2695_v21  ;;  %v8902_v21 = vld [vmem:[#allocation90_spill] sm:$0xff] }
 0x2e1   : > { %v7668_v41 = vpop.f32.mrf.mxu0 }
 0x2e2   : > { %v2071_v19 = vpop.f32.mrf.mxu2  ;;  %v2800_v4 = vpop.f32.mrf.mxu3 }
 0x2e3   : > { %v2181_v27 = vadd.f32 %v2071_v19, %v1866_v49  ;;  %v7671_v5 = vadd.f32 %v2800_v4, %v2618_v29  ;;  %v7680_v3 = vpop.f32.mrf.mxu1  ;;  %v8906_v29 = vld [vmem:[#allocation10_spill] sm:$0xff]  ;;  %v8907_v19 = vld [vmem:[#allocation9_spill] sm:$0xff] }
 0x2e4   : > { %8903 = vst [vmem:[#allocation47_spill] sm:$0xff] %v7680_v3 }
 0x2e5   : > { %8901 = vst [vmem:[#allocation64_spill] sm:$0xff] %v7671_v5  ;;  %v8908_v5 = vpack.c.b16 %v8906_v29, %v8907_v19  ;;  %v2621_v29 = vadd.f32 %v7360_v26, %v2181_v27  ;;  %v8920_v26 = vpack.c.b16 %v6823_v45, %v6837_v55 }
 0x2e7   : > { %2113 = vmatmul.bf16.gmra.mxu2 %v8902_v21  ;;  %3138 = vmatmul.bf16.gmra.mxu1 %v2411_v42  ;;  %v2696_v21 = vpack.c.b16 %v6723_v10, %v8909_v61  ;;  %v8910_v42 = vld [vmem:[#allocation65_spill] sm:$0xff] }
 0x2e8   : > { %v1871_v40 = vadd.f32 %v8910_v42, %v7403_v53 }
 0x2e9   : > { %v7677_v20 = vpop.f32.mrf.mxu0 }
 0x2ea   : > { %v2074_v60 = vpop.f32.mrf.mxu2  ;;  %v2802_v38 = vpop.f32.mrf.mxu3 }
 0x2eb   : > { %v2182_v49 = vadd.f32 %v2074_v60, %v8904_v37  ;;  %v7683_v4 = vadd.f32 %v2802_v38, %v2619_v51  ;;  %v7697_v38 = vpop.f32.mrf.mxu1  ;;  %v8912_v37 = vld [vmem:[#allocation99_spill] sm:$0xff] }
 0x2ec   : > { %3893 = vmatmul.bf16.gmra.mxu0 %v8908_v5  ;;  %8911 = vst [vmem:[#allocation66_spill] sm:$0xff] %v7697_v38 }
 0x2ed   : > { %8905 = vst [vmem:[#allocation79_spill] sm:$0xff] %v7683_v4 }
 0x2ef   : > { %2844 = vmatmul.bf16.gmra.mxu3 %v2696_v21  ;;  %v8913_v21 = vld [vmem:[#allocation81_spill] sm:$0xff] }
 0x2f1   : > { %v7692_v18 = vpop.f32.mrf.mxu0 }
 0x2f2   : > { %v2076_v3 = vpop.f32.mrf.mxu2  ;;  %v2805_v33 = vpop.f32.mrf.mxu3 }
 0x2f3   : > { %v2183_v60 = vadd.f32 %v2076_v3, %v1871_v40  ;;  %v7695_v51 = vadd.f32 %v2805_v33, %v2620_v2  ;;  %v8917_v40 = vpack.c.b16 %v8915_v11, %v8916_v34  ;;  %v2271_v33 = vpack.c.bf16 %v6980_v13, %v6980_v13  ;;  %v8918_v3 = vld [vmem:[#allocation85_spill] sm:$0xff]  ;;  %v7713_v2 = vpop.f32.mrf.mxu1  ;;  %v8921_v13 = vld [vmem:[#allocation86_spill] sm:$0xff] }
 0x2f4   : > { %8919 = vst [vmem:[#allocation7_spill] sm:$0xff] %v7713_v2 }
 0x2f7   : > { %2118 = vmatmul.bf16.gmra.mxu2 %v8912_v37  ;;  %3143 = vmatmul.bf16.gmra.mxu1 %v2412_v8  ;;  %v2270_v8 = vpack.c.bf16 %v8918_v3, %v8918_v3  ;;  %v2622_v37 = vadd.f32 %v7368_v14, %v2182_v49  ;;  %v2623_v14 = vadd.f32 %v7380_v46, %v2183_v60  ;;  %v5755_v46 = vld [vmem:[%s8553_s4 + $0x210] sm:$0xff] }
 0x2f8   : > { %4139 = vmatpush.bf16.msra.mxu3 %v5755_v46 }
 0x2f9   : > { %v7700_v5 = vpop.f32.mrf.mxu0 }
 0x2fa   : > { %v2079_v61 = vpop.f32.mrf.mxu2  ;;  %v2807_v53 = vpop.f32.mrf.mxu3 }
 0x2fb   : > { %v2184_v42 = vadd.f32 %v2079_v61, %v8913_v21  ;;  %v7704_v4 = vadd.f32 %v2807_v53, %v2621_v29  ;;  %v7721_v29 = vunpack.c.l.b16 %v2270_v8  ;;  %v7723_v61 = vunpack.c.l.b16 %v2271_v33  ;;  %v7731_v45 = vpop.f32.mrf.mxu1  ;;  %v8924_v8 = vld [vmem:[#allocation98_spill] sm:$0xff] }
 0x2fc   : > { %3898 = vmatmul.bf16.gmra.mxu0 %v8917_v40  ;;  %8923 = vst [vmem:[#allocation70_spill] sm:$0xff] %v7731_v45 }
 0x2fd   : > { %8914 = vst [vmem:[#allocation8_spill] sm:$0xff] %v7704_v4  ;;  %v2981_v40 = vpack.c.b16 %v7723_v61, %v7721_v29  ;;  %v8941_v4 = vld [vmem:[#allocation110_spill] sm:$0xff] }
 0x2ff   : > { %2849 = vmatmul.bf16.gmra.mxu3 %v8920_v26 }
 0x301   : > { %v7718_v27 = vpop.f32.mrf.mxu0 }
 0x302   : > { %v2081_v53 = vpop.f32.mrf.mxu2  ;;  %v2810_v21 = vpop.f32.mrf.mxu3 }
 0x303   : > { %v2185_v11 = vadd.f32 %v2081_v53, %v8921_v13  ;;  %v7726_v34 = vadd.f32 %v2810_v21, %v2622_v37  ;;  %v5739_v37 = vld [vmem:[%s8553_s4 + $0x90] sm:$0xff]  ;;  %v8926_v53 = vld [vmem:[#allocation16_spill] sm:$0xff]  ;;  %v8927_v21 = vld [vmem:[#allocation18_spill] sm:$0xff] }
 0x304   : > { %v8929_v13 = vld [vmem:[#allocation83_spill] sm:$0xff]  ;;  %3589 = vmatpush.bf16.msrb.mxu2 %v5739_v37  ;;  %v5766_v37 = vld [vmem:[%s8554_s5 + $0x28] sm:$0xff] }
 0x305   : > { %8922 = vst [vmem:[#allocation56_spill] sm:$0xff] %v7726_v34  ;;  %4505 = vmatpush.bf16.msrb.mxu1 %v5766_v37  ;;  %v8940_v37 = vld [vmem:[#allocation84_spill] sm:$0xff] }
 0x307   : > { %2123 = vmatmul.bf16.gmra.mxu2 %v7109_v63  ;;  %3148 = vmatmul.bf16.gmra.mxu1 %v2981_v40  ;;  %v8928_v63 = vpack.c.b16 %v8926_v53, %v8927_v21  ;;  %v2698_v40 = vpack.c.b16 %v8929_v13, %v6723_v10  ;;  %v8931_v53 = vld [vmem:[#allocation102_spill] sm:$0xff]  ;;  %v8933_v13 = vld [vmem:[#allocation117_spill] sm:$0xff] }
 0x309   : > { %v7733_v55 = vpop.f32.mrf.mxu0 }
 0x30a   : > { %v2084_v49 = vpop.f32.mrf.mxu2  ;;  %v2812_v33 = vpop.f32.mrf.mxu3 }
 0x30b   : > { %v2186_v26 = vadd.f32 %v2084_v49, %v8924_v8  ;;  %v7737_v2 = vadd.f32 %v2812_v33, %v2623_v14  ;;  %v2624_v14 = vadd.f32 %v7393_v35, %v2184_v42  ;;  %v7753_v8 = vpop.f32.mrf.mxu1  ;;  %v2625_v35 = vadd.f32 %v7405_v12, %v2185_v11 }
 0x30c   : > { %3903 = vmatmul.bf16.gmra.mxu0 %v8928_v63  ;;  %8930 = vst [vmem:[#allocation90_spill] sm:$0xff] %v7753_v8  ;;  %v8935_v8 = vld [vmem:[#allocation109_spill] sm:$0xff] }
 0x30d   : > { %8925 = vst [vmem:[#allocation55_spill] sm:$0xff] %v7737_v2  ;;  %v2626_v12 = vadd.f32 %v7410_v17, %v2186_v26 }
 0x30f   : > { %2854 = vmatmul.bf16.gmra.mxu3 %v2698_v40  ;;  %v8934_v40 = vld [vmem:[#allocation53_spill] sm:$0xff] }
 0x311   : > { %v7750_v60 = vpop.f32.mrf.mxu0 }
 0x312   : > { %v2086_v49 = vpop.f32.mrf.mxu2  ;;  %v2815_v33 = vpop.f32.mrf.mxu3 }
 0x313   : > { %v2187_v21 = vadd.f32 %v2086_v49, %v8931_v53  ;;  %v7756_v63 = vadd.f32 %v2815_v33, %v2624_v14  ;;  %v8936_v14 = vld [vmem:[#allocation23_spill] sm:$0xff]  ;;  %v8937_v33 = vld [vmem:[#allocation17_spill] sm:$0xff] }
 0x314   : > { %v8938_v53 = vpack.c.b16 %v8936_v14, %v8937_v33 }
 0x315   : > { %8932 = vst [vmem:[#allocation76_spill] sm:$0xff] %v7756_v63  ;;  %v7772_v63 = vpop.f32.mrf.mxu1  ;;  %v2627_v33 = vadd.f32 %v7421_v30, %v2187_v21  ;;  %v8950_v30 = vld [vmem:[#allocation119_spill] sm:$0xff] }
 0x316   : > { %8939 = vst [vmem:[#allocation10_spill] sm:$0xff] %v7772_v63  ;;  %v8946_v63 = vld [vmem:[#allocation25_spill] sm:$0xff] }
 0x317   : > { %2128 = vmatmul.bf16.gmra.mxu2 %v8933_v13  ;;  %3153 = vmatmul.bf16.gmra.mxu1 %v8934_v40  ;;  %v2699_v13 = vpack.c.b16 %v6723_v10, %v8940_v37 }
 0x319   : > { %v7763_v45 = vpop.f32.mrf.mxu0 }
 0x31a   : > { %v2089_v42 = vpop.f32.mrf.mxu2  ;;  %v2817_v46 = vpop.f32.mrf.mxu3 }
 0x31b   : > { %v2188_v38 = vadd.f32 %v2089_v42, %v8935_v8  ;;  %v7767_v49 = vadd.f32 %v2817_v46, %v2625_v35  ;;  %v8944_v46 = vld [vmem:[#allocation121_spill] sm:$0xff] }
 0x31c   : > { %3908 = vmatmul.bf16.gmra.mxu0 %v8938_v53 }
 0x31d   : > { %v7782_v42 = vpop.f32.mrf.mxu1 }
 0x31e   : > { %8943 = vst [vmem:[#allocation57_spill] sm:$0xff] %v7782_v42 }
 0x31f   : > { %2859 = vmatmul.bf16.gmra.mxu3 %v2699_v13  ;;  %v8945_v13 = vld [vmem:[#allocation113_spill] sm:$0xff] }
 0x321   : > { %v7776_v2 = vpop.f32.mrf.mxu0 }
 0x322   : > { %v2091_v11 = vpop.f32.mrf.mxu2  ;;  %v2820_v34 = vpop.f32.mrf.mxu3 }
 0x323   : > { %v2189_v8 = vadd.f32 %v2091_v11, %v8941_v4  ;;  %v7780_v35 = vadd.f32 %v2820_v34, %v2626_v12  ;;  %v8947_v4 = vld [vmem:[#allocation24_spill] sm:$0xff]  ;;  %v8949_v12 = vpack.c.b16 %v7088_v16, %v7092_v25 }
 0x324   : > { %v8948_v34 = vpack.c.b16 %v8946_v63, %v8947_v4  ;;  %v5738_v25 = vld [vmem:[%s8553_s4 + $0x88] sm:$0xff] }
 0x325   : > { %8942 = vst [vmem:[#allocation9_spill] sm:$0xff] %v7780_v35  ;;  %3590 = vmatpush.bf16.msrb.mxu2 %v5738_v25 }
 0x327   : > { %2133 = vmatmul.bf16.gmra.mxu2 %v8944_v46  ;;  %3158 = vmatmul.bf16.gmra.mxu1 %v8934_v40  ;;  %v2628_v40 = vadd.f32 %v7427_v57, %v2188_v38  ;;  %v8952_v57 = vld [vmem:[#allocation27_spill] sm:$0xff]  ;;  %v8953_v38 = vld [vmem:[#allocation29_spill] sm:$0xff] }
 0x328   : > { %v8954_v4 = vpack.c.b16 %v8952_v57, %v8953_v38  ;;  %v8957_v57 = vld [vmem:[#allocation28_spill] sm:$0xff] }
 0x329   : > { %v7786_v14 = vpop.f32.mrf.mxu0 }
 0x32a   : > { %v2094_v53 = vpop.f32.mrf.mxu2  ;;  %v2822_v37 = vpop.f32.mrf.mxu3 }
 0x32b   : > { %v2190_v17 = vadd.f32 %v2094_v53, %v8945_v13  ;;  %v7790_v26 = vadd.f32 %v2822_v37, %v2627_v33  ;;  %v2629_v33 = vadd.f32 %v7442_v23, %v2189_v8  ;;  %v8951_v37 = vld [vmem:[#allocation120_spill] sm:$0xff] }
 0x32c   : > { %3913 = vmatmul.bf16.gmra.mxu0 %v8948_v34  ;;  %v5754_v23 = vld [vmem:[%s8553_s4 + $0x208] sm:$0xff] }
 0x32d   : > { %v2630_v8 = vadd.f32 %v7452_v58, %v2190_v17  ;;  %4140 = vmatpush.bf16.msra.mxu3 %v5754_v23 }
 0x32f   : > { %2864 = vmatmul.bf16.gmra.mxu3 %v8949_v12 }
 0x331   : > { %v7799_v42 = vpop.f32.mrf.mxu0 }
 0x332   : > { %v2096_v11 = vpop.f32.mrf.mxu2  ;;  %v2825_v46 = vpop.f32.mrf.mxu3 }
 0x333   : > { %v2191_v21 = vadd.f32 %v2096_v11, %v8950_v30  ;;  %v7802_v35 = vadd.f32 %v2825_v46, %v2628_v40 }
 0x337   : > { %2138 = vmatmul.bf16.gmra.mxu2 %v7297_v31  ;;  %v8955_v31 = vld [vmem:[#allocation111_spill] sm:$0xff] }
 0x338   : > { %v2701_v12 = vpack.c.b16 %v8955_v31, %v6723_v10 }
 0x339   : > { %v7815_v34 = vpop.f32.mrf.mxu0 }
 0x33a   : > { %v2099_v63 = vpop.f32.mrf.mxu2  ;;  %v2827_v53 = vpop.f32.mrf.mxu3 }
 0x33b   : > { %v2192_v13 = vadd.f32 %v2099_v63, %v8951_v37  ;;  %v7807_v16 = vadd.f32 %v2827_v53, %v2629_v33  ;;  %v5765_v33 = vld [vmem:[%s8554_s5 + $0x20] sm:$0xff]  ;;  %v2631_v53 = vadd.f32 %v7462_v9, %v2191_v21 }
 0x33c   : > { %3918 = vmatmul.bf16.gmra.mxu0 %v8954_v4  ;;  %4506 = vmatpush.bf16.msrb.mxu1 %v5765_v33  ;;  %v8959_v4 = vld [vmem:[#allocation112_spill] sm:$0xff] }
 0x33d   : > { %v2702_v31 = vpack.c.b16 %v6723_v10, %v8959_v4 }
 0x33f   : > { %2869 = vmatmul.bf16.gmra.mxu3 %v2701_v12 }
 0x341   : > { %v7829_v63 = vpop.f32.mrf.mxu0 }
 0x342   : > { %v2101_v40 = vpop.f32.mrf.mxu2  ;;  %v2830_v11 = vpop.f32.mrf.mxu3 }
 0x343   : > { %v2193_v46 = vadd.f32 %v2101_v40, %v7266_v59  ;;  %v7824_v30 = vadd.f32 %v2830_v11, %v2630_v8  ;;  %v8956_v59 = vld [vmem:[#allocation36_spill] sm:$0xff]  ;;  %v8961_v40 = vld [vmem:[#allocation82_spill] sm:$0xff] }
 0x344   : > { %v8958_v38 = vpack.c.b16 %v8956_v59, %v8957_v57 }
 0x345   : > { %v2633_v11 = vadd.f32 %v7478_v56, %v2193_v46 }
 0x347   : > { %2143 = vmatmul.bf16.gmra.mxu2 %v7319_v1  ;;  %v2632_v1 = vadd.f32 %v7469_v50, %v2192_v13  ;;  %v8963_v50 = vld [vmem:[#allocation38_spill] sm:$0xff]  ;;  %v8964_v13 = vld [vmem:[#allocation37_spill] sm:$0xff] }
 0x349   : > { %v7841_v12 = vpop.f32.mrf.mxu0 }
 0x34a   : > { %v2104_v37 = vpop.f32.mrf.mxu2  ;;  %v2832_v58 = vpop.f32.mrf.mxu3 }
 0x34b   : > { %v2194_v17 = vadd.f32 %v2104_v37, %v7289_v24  ;;  %v7834_v25 = vadd.f32 %v2832_v58, %v2631_v53  ;;  %v7847_v24 = vpop.f32.mrf.mxu1  ;;  %v8962_v58 = vld [vmem:[#allocation127_spill] sm:$0xff] }
 0x34c   : > { %3923 = vmatmul.bf16.gmra.mxu0 %v8958_v38  ;;  %8960 = vst [vmem:[#allocation65_spill] sm:$0xff] %v7847_v24  ;;  %v8965_v38 = vpack.c.b16 %v8963_v50, %v8964_v13  ;;  %v8973_v13 = vld [vmem:[#allocation48_spill] sm:$0xff]  ;;  %v8996_v24 = vld [vmem:[#allocation133_spill] sm:$0xff] }
 0x34d   : > { %v2634_v56 = vadd.f32 %v7486_v39, %v2194_v17  ;;  %v5737_v39 = vld [vmem:[%s8553_s4 + $0x80] sm:$0xff]  ;;  %v8972_v17 = vld [vmem:[#allocation45_spill] sm:$0xff] }
 0x34e   : > { %3591 = vmatpush.bf16.msrb.mxu2 %v5737_v39 }
 0x34f   : > { %2874 = vmatmul.bf16.gmra.mxu3 %v2702_v31 }
 0x351   : > { %v7851_v37 = vpop.f32.mrf.mxu0 }
 0x352   : > { %v2106_v23 = vpop.f32.mrf.mxu2  ;;  %v2835_v9 = vpop.f32.mrf.mxu3 }
 0x353   : > { %v2195_v21 = vadd.f32 %v2106_v23, %v7308_v47  ;;  %v7845_v8 = vadd.f32 %v2835_v9, %v2632_v1  ;;  %v8966_v47 = vpack.c.b16 %v7247_v62, %v7245_v52  ;;  %v7862_v4 = vpop.f32.mrf.mxu1  ;;  %v8968_v1 = vld [vmem:[#allocation128_spill] sm:$0xff]  ;;  %v8970_v52 = vld [vmem:[#allocation129_spill] sm:$0xff] }
 0x354   : > { %8967 = vst [vmem:[#allocation99_spill] sm:$0xff] %v7862_v4  ;;  %v8990_v4 = vld [vmem:[#allocation132_spill] sm:$0xff] }
 0x357   : > { %2148 = vmatmul.bf16.gmra.mxu2 %v8961_v40 }
 0x359   : > { %v7868_v40 = vpop.f32.mrf.mxu0 }
 0x35a   : > { %v2109_v33 = vpop.f32.mrf.mxu2  ;;  %v2837_v53 = vpop.f32.mrf.mxu3 }
 0x35b   : > { %v2196_v59 = vadd.f32 %v2109_v33, %v8962_v58  ;;  %v7854_v57 = vadd.f32 %v2837_v53, %v2633_v11  ;;  %v2635_v11 = vadd.f32 %v7501_v28, %v2195_v21  ;;  %v7872_v62 = vpop.f32.mrf.mxu1  ;;  %v5753_v21 = vld [vmem:[%s8553_s4 + $0x200] sm:$0xff] }
 0x35c   : > { %3928 = vmatmul.bf16.gmra.mxu0 %v8965_v38  ;;  %8969 = vst [vmem:[#allocation81_spill] sm:$0xff] %v7872_v62  ;;  %v8974_v38 = vpack.c.b16 %v8972_v17, %v8973_v13  ;;  %4141 = vmatpush.bf16.msra.mxu3 %v5753_v21 }
 0x35f   : > { %2879 = vmatmul.bf16.gmra.mxu3 %v8966_v47  ;;  %v2636_v47 = vadd.f32 %v7511_v22, %v2196_v59  ;;  %v8981_v22 = vld [vmem:[#allocation151_spill] sm:$0xff] }
 0x361   : > { %v7885_v28 = vpop.f32.mrf.mxu0 }
 0x362   : > { %v2111_v46 = vpop.f32.mrf.mxu2  ;;  %v2840_v31 = vpop.f32.mrf.mxu3 }
 0x363   : > { %v2197_v23 = vadd.f32 %v2111_v46, %v8968_v1  ;;  %v7866_v9 = vadd.f32 %v2840_v31, %v2634_v56  ;;  %v8975_v31 = vld [vmem:[#allocation130_spill] sm:$0xff] }
 0x365   : > { %v2637_v59 = vadd.f32 %v8981_v22, %v2197_v23 }
 0x367   : > { %2153 = vmatmul.bf16.gmra.mxu2 %v7364_v7  ;;  %v2704_v7 = vpack.c.b16 %v7550_v44, %v6723_v10  ;;  %v5764_v44 = vld [vmem:[%s8554_s5 + $0x18] sm:$0xff] }
 0x368   : > { %4507 = vmatpush.bf16.msrb.mxu1 %v5764_v44 }
 0x369   : > { %v7902_v17 = vpop.f32.mrf.mxu0 }
 0x36a   : > { %v2114_v33 = vpop.f32.mrf.mxu2  ;;  %v2842_v53 = vpop.f32.mrf.mxu3 }
 0x36b   : > { %v2198_v58 = vadd.f32 %v2114_v33, %v8970_v52  ;;  %v7875_v50 = vadd.f32 %v2842_v53, %v2635_v11  ;;  %v7897_v33 = vpop.f32.mrf.mxu1  ;;  %v8978_v53 = vld [vmem:[#allocation101_spill] sm:$0xff]  ;;  %v8979_v52 = vld [vmem:[#allocation100_spill] sm:$0xff] }
 0x36c   : > { %3933 = vmatmul.bf16.gmra.mxu0 %v8974_v38  ;;  %8977 = vst [vmem:[#allocation85_spill] sm:$0xff] %v7897_v33  ;;  %v8980_v39 = vpack.c.b16 %v8978_v53, %v8979_v52  ;;  %v8987_v33 = vld [vmem:[#allocation158_spill] sm:$0xff]  ;;  %v8989_v53 = vld [vmem:[#allocation43_spill] sm:$0xff] }
 0x36d   : > { %8971 = vst [vmem:[#allocation12_spill] sm:$0xff] %v7875_v50  ;;  %v2705_v44 = vpack.c.b16 %v6723_v10, %v8987_v33  ;;  %v2638_v52 = vadd.f32 %v8989_v53, %v2198_v58  ;;  %v8995_v33 = vld [vmem:[#allocation155_spill] sm:$0xff] }
 0x36f   : > { %2884 = vmatmul.bf16.gmra.mxu3 %v2704_v7  ;;  %v8982_v7 = vld [vmem:[#allocation131_spill] sm:$0xff] }
 0x371   : > { %v7916_v22 = vpop.f32.mrf.mxu0 }
 0x372   : > { %v2116_v56 = vpop.f32.mrf.mxu2  ;;  %v2845_v46 = vpop.f32.mrf.mxu3 }
 0x373   : > { %v2199_v1 = vadd.f32 %v2116_v56, %v8975_v31  ;;  %v7892_v11 = vadd.f32 %v2845_v46, %v2636_v47  ;;  %v8984_v56 = vld [vmem:[#allocation59_spill] sm:$0xff]  ;;  %v8985_v46 = vld [vmem:[#allocation46_spill] sm:$0xff]  ;;  %v7913_v62 = vpop.f32.mrf.mxu1 }
 0x374   : > { %v8986_v31 = vpack.c.b16 %v8984_v56, %v8985_v46  ;;  %8988 = vst [vmem:[#allocation98_spill] sm:$0xff] %v7913_v62 }
 0x375   : > { %8976 = vst [vmem:[#allocation11_spill] sm:$0xff] %v7892_v11  ;;  %v8999_v11 = vld [vmem:[#allocation60_spill] sm:$0xff] }
 0x377   : > { %2158 = vmatmul.bf16.gmra.mxu2 %v8980_v39 }
 0x37a   : > { %v2119_v13 = vpop.f32.mrf.mxu2  ;;  %v2847_v38 = vpop.f32.mrf.mxu3 }
 0x37b   : > { %v2200_v21 = vadd.f32 %v2119_v13, %v8982_v7  ;;  %v7906_v47 = vadd.f32 %v2847_v38, %v2637_v59  ;;  %v8992_v38 = vld [vmem:[#allocation134_spill] sm:$0xff]  ;;  %v8993_v7 = vld [vmem:[#allocation3_spill] sm:$0xff]  ;;  %v7923_v46 = vpop.f32.mrf.mxu1 }
 0x37c   : > { %3938 = vmatmul.bf16.gmra.mxu0 %v8986_v31  ;;  %v1992_v56 = vpack.c.b16 %v8993_v7, %v8992_v38  ;;  %8994 = vst [vmem:[#allocation18_spill] sm:$0xff] %v7923_v46  ;;  %v2639_v31 = vadd.f32 %v8995_v33, %v2199_v1  ;;  %v9005_v33 = vld [vmem:[#allocation135_spill] sm:$0xff] }
 0x37d   : > { %8983 = vst [vmem:[#allocation86_spill] sm:$0xff] %v7906_v47  ;;  %v8998_v47 = vld [vmem:[#allocation61_spill] sm:$0xff] }
 0x37e   : > { %v9000_v50 = vpack.c.b16 %v8998_v47, %v8999_v11  ;;  %v9007_v11 = vld [vmem:[#allocation4_spill] sm:$0xff] }
 0x37f   : > { %2889 = vmatmul.bf16.gmra.mxu3 %v2705_v44 }
 0x382   : > { %v2121_v39 = vpop.f32.mrf.mxu2  ;;  %v2850_v23 = vpop.f32.mrf.mxu3 }
 0x383   : > { %v2201_v13 = vadd.f32 %v2121_v39, %v8990_v4  ;;  %v7919_v59 = vadd.f32 %v2850_v23, %v2638_v52  ;;  %v7932_v4 = vpop.f32.mrf.mxu0  ;;  %v9001_v52 = vld [vmem:[#allocation92_spill] sm:$0xff] }
 0x384   : > { %v9002_v39 = vpack.c.b16 %v8883_v48, %v9001_v52  ;;  %v9003_v23 = vld [vmem:[#allocation52_spill] sm:$0xff] }
 0x385   : > { %8991 = vst [vmem:[#allocation16_spill] sm:$0xff] %v7919_v59  ;;  %v2640_v38 = vadd.f32 %v9003_v23, %v2200_v21  ;;  %v9009_v48 = vld [vmem:[#allocation136_spill] sm:$0xff]  ;;  %v9011_v21 = vld [vmem:[#allocation71_spill] sm:$0xff]  ;;  %v9012_v23 = vld [vmem:[#allocation73_spill] sm:$0xff] }
 0x387   : > { %2163 = vmatmul.bf16.gmra.mxu2 %v1992_v56  ;;  %v7938_v56 = vpop.f32.mrf.mxu1 }
 0x388   : > { %9004 = vst [vmem:[#allocation102_spill] sm:$0xff] %v7938_v56 }
 0x38a   : > { %v2124_v62 = vpop.f32.mrf.mxu2  ;;  %v2852_v44 = vpop.f32.mrf.mxu3 }
 0x38b   : > { %v2202_v58 = vadd.f32 %v2124_v62, %v8996_v24  ;;  %v7927_v53 = vadd.f32 %v2852_v44, %v2639_v31  ;;  %v7943_v31 = vpop.f32.mrf.mxu0 }
 0x38c   : > { %3943 = vmatmul.bf16.gmra.mxu0 %v9000_v50  ;;  %v9008_v50 = vld [vmem:[#allocation34_spill] sm:$0xff] }
 0x38d   : > { %8997 = vst [vmem:[#allocation83_spill] sm:$0xff] %v7927_v53  ;;  %v2641_v47 = vadd.f32 %v9008_v50, %v2201_v13  ;;  %v9013_v53 = vpack.c.b16 %v9011_v21, %v9012_v23 }
 0x38f   : > { %2894 = vmatmul.bf16.gmra.mxu3 %v9002_v39  ;;  %v7953_v56 = vpop.f32.mrf.mxu1 }
 0x390   : > { %9014 = vst [vmem:[#allocation109_spill] sm:$0xff] %v7953_v56  ;;  %v9023_v56 = vld [vmem:[#allocation72_spill] sm:$0xff] }
 0x392   : > { %v2126_v7 = vpop.f32.mrf.mxu2  ;;  %v2855_v1 = vpop.f32.mrf.mxu3 }
 0x393   : > { %v2203_v24 = vadd.f32 %v2126_v7, %v9005_v33  ;;  %v7941_v62 = vadd.f32 %v2855_v1, %v2640_v38  ;;  %v2707_v38 = vpack.c.b16 %v7721_v29, %v6723_v10  ;;  %v9015_v7 = vld [vmem:[#allocation6_spill] sm:$0xff]  ;;  %v7959_v13 = vpop.f32.mrf.mxu0  ;;  %v5763_v29 = vld [vmem:[%s8554_s5 + $0x10] sm:$0xff] }
 0x394   : > { %v3321_v1 = vpack.c.bf16 %v9015_v7, %v9015_v7  ;;  %v9016_v33 = vld [vmem:[#allocation62_spill] sm:$0xff]  ;;  %4508 = vmatpush.bf16.msrb.mxu1 %v5763_v29  ;;  %v2708_v29 = vpack.c.b16 %v6723_v10, %v7723_v61 }
 0x395   : > { %9006 = vst [vmem:[#allocation117_spill] sm:$0xff] %v7941_v62 }
 0x396   : > { %v7962_v50 = vunpack.c.l.b16 %v3321_v1 }
 0x397   : > { %2168 = vmatmul.bf16.gmra.mxu2 %v9007_v11  ;;  %v2642_v11 = vadd.f32 %v9016_v33, %v2202_v58  ;;  %v7974_v23 = vpop.f32.mrf.mxu1  ;;  %v2643_v58 = vadd.f32 %v7614_v0, %v2203_v24 }
 0x398   : > { %v7969_v21 = vpack.c.b16 %v7962_v50, %v7962_v50  ;;  %9020 = vst [vmem:[#allocation84_spill] sm:$0xff] %v7974_v23 }
 0x39a   : > { %v2129_v44 = vpop.f32.mrf.mxu2  ;;  %v2857_v46 = vpop.f32.mrf.mxu3  ;;  %9019 = vst [vmem:[#allocation17_spill] sm:$0xff] %v7969_v21 }
 0x39b   : > { %v2204_v52 = vadd.f32 %v2129_v44, %v9009_v48  ;;  %v7948_v39 = vadd.f32 %v2857_v46, %v2641_v47  ;;  %v9017_v44 = vld [vmem:[#allocation137_spill] sm:$0xff]  ;;  %v7978_v33 = vpop.f32.mrf.mxu0 }
 0x39c   : > { %3948 = vmatmul.bf16.gmra.mxu0 %v9013_v53 }
 0x39d   : > { %9010 = vst [vmem:[#allocation53_spill] sm:$0xff] %v7948_v39  ;;  %v2644_v0 = vadd.f32 %v7623_v54, %v2204_v52  ;;  %v9026_v39 = vld [vmem:[#allocation141_spill] sm:$0xff] }
 0x39f   : > { %2899 = vmatmul.bf16.gmra.mxu3 %v2707_v38  ;;  %v7988_v23 = vpop.f32.mrf.mxu1 }
 0x3a0   : > { %9025 = vst [vmem:[#allocation110_spill] sm:$0xff] %v7988_v23 }
 0x3a2   : > { %v2131_v46 = vpop.f32.mrf.mxu2  ;;  %v2860_v47 = vpop.f32.mrf.mxu3 }
 0x3a3   : > { %v2205_v48 = vadd.f32 %v2131_v46, %v9017_v44  ;;  %v7965_v53 = vadd.f32 %v2860_v47, %v2642_v11  ;;  %v9021_v11 = vld [vmem:[#allocation139_spill] sm:$0xff] }
 0x3a4   : > { %v9022_v44 = vld [vmem:[#allocation87_spill] sm:$0xff] }
 0x3a5   : > { %9018 = vst [vmem:[#allocation23_spill] sm:$0xff] %v7965_v53  ;;  %v9024_v53 = vpack.c.b16 %v9022_v44, %v9023_v56  ;;  %v3489_v56 = vpack.c.b16 %v8895_v15, %v7962_v50 }
 0x3a7   : > { %3592 = vmatmul.bf16.vlgmr.msrb.gmra.mxu2 %v7969_v21 }
 0x3aa   : > { %v2134_v38 = vpop.f32.mrf.mxu2  ;;  %v2862_v1 = vpop.f32.mrf.mxu3 }
 0x3ab   : > { %v2206_v46 = vadd.f32 %v2134_v38, %v9021_v11  ;;  %v7981_v47 = vadd.f32 %v2862_v1, %v2643_v58  ;;  %v7994_v58 = vpop.f32.mrf.mxu0  ;;  %v7999_v38 = vpop.f32.mrf.mxu1  ;;  %v9028_v1 = vld [vmem:[#allocation142_spill] sm:$0xff]  ;;  %v9030_v11 = vld [vmem:[#allocation89_spill] sm:$0xff] }
 0x3ac   : > { %3953 = vmatmul.bf16.gmra.mxu0 %v9024_v53  ;;  %v2645_v53 = vadd.f32 %v7638_v6, %v2205_v48  ;;  %9027 = vst [vmem:[#allocation121_spill] sm:$0xff] %v7999_v38  ;;  %v9034_v48 = vld [vmem:[#allocation144_spill] sm:$0xff] }
 0x3ad   : > { %v2646_v15 = vadd.f32 %v7647_v36, %v2206_v46 }
 0x3af   : > { %2904 = vmatmul.bf16.gmra.mxu3 %v2708_v29  ;;  %v9033_v29 = vld [vmem:[#allocation13_spill] sm:$0xff] }
 0x3b2   : > { %v2136_v24 = vpop.f32.mrf.mxu2  ;;  %v2865_v21 = vpop.f32.mrf.mxu3 }
 0x3b3   : > { %v2207_v62 = vadd.f32 %v2136_v24, %v9026_v39  ;;  %v7992_v59 = vadd.f32 %v2865_v21, %v2644_v0  ;;  %v9031_v39 = vld [vmem:[#allocation88_spill] sm:$0xff]  ;;  %v8007_v44 = vpop.f32.mrf.mxu0  ;;  %v8014_v38 = vpop.f32.mrf.mxu1 }
 0x3b4   : > { %v9032_v21 = vpack.c.b16 %v9030_v11, %v9031_v39  ;;  %9036 = vst [vmem:[#allocation24_spill] sm:$0xff] %v8014_v38  ;;  %v9038_v39 = vld [vmem:[#allocation146_spill] sm:$0xff] }
 0x3b7   : > { %3597 = vmatmul.bf16.gmra.mxu2 %v3489_v56 }
 0x3ba   : > { %v2139_v10 = vpop.f32.mrf.mxu2  ;;  %v2867_v61 = vpop.f32.mrf.mxu3 }
 0x3bb   : > { %v2208_v54 = vadd.f32 %v2139_v10, %v9028_v1  ;;  %v8002_v52 = vadd.f32 %v2867_v61, %v2645_v53  ;;  %v9037_v53 = vpack.c.b16 %v8907_v19, %v8894_v43  ;;  %v8019_v10 = vpop.f32.mrf.mxu0  ;;  %v2647_v61 = vadd.f32 %v7668_v41, %v2207_v62  ;;  %v9045_v41 = vld [vmem:[#allocation148_spill] sm:$0xff] }
 0x3bc   : > { %3958 = vmatmul.bf16.gmra.mxu0 %v9032_v21  ;;  %v9040_v21 = vld [vmem:[#allocation104_spill] sm:$0xff] }
 0x3bd   : > { %9029 = vst [vmem:[#allocation113_spill] sm:$0xff] %v8002_v52  ;;  %v2648_v43 = vadd.f32 %v7677_v20, %v2208_v54  ;;  %v9114_v52 = vld [vmem:[#allocation145_spill] sm:$0xff] }
 0x3bf   : > { %4142 = vmatmul.bf16.vlgmr.msra.gmra.mxu3 %v9033_v29 }
 0x3c2   : > { %v2141_v0 = vpop.f32.mrf.mxu2  ;;  %v2870_v6 = vpop.f32.mrf.mxu3 }
 0x3c3   : > { %v2209_v24 = vadd.f32 %v2141_v0, %v9034_v48  ;;  %v8012_v56 = vadd.f32 %v2870_v6, %v2646_v15  ;;  %v9041_v0 = vld [vmem:[#allocation103_spill] sm:$0xff]  ;;  %v8028_v6 = vpop.f32.mrf.mxu1  ;;  %v9044_v48 = vld [vmem:[#allocation20_spill] sm:$0xff]  ;;  %v8032_v38 = vpop.f32.mrf.mxu0 }
 0x3c4   : > { %v9042_v15 = vpack.c.b16 %v9040_v21, %v9041_v0  ;;  %9043 = vst [vmem:[#allocation120_spill] sm:$0xff] %v8028_v6 }
 0x3c5   : > { %9035 = vst [vmem:[#allocation25_spill] sm:$0xff] %v8012_v56 }
 0x3c7   : > { %3602 = vmatmul.bf16.gmra.mxu2 %v9037_v53 }
 0x3ca   : > { %v2144_v1 = vpop.f32.mrf.mxu2  ;;  %v2872_v11 = vpop.f32.mrf.mxu3 }
 0x3cb   : > { %v2210_v36 = vadd.f32 %v2144_v1, %v9038_v39  ;;  %v8023_v46 = vadd.f32 %v2872_v11, %v2647_v61  ;;  %v5762_v61 = vld [vmem:[%s8554_s5 + $0x8] sm:$0xff]  ;;  %v8041_v1 = vpop.f32.mrf.mxu1  ;;  %v2649_v11 = vadd.f32 %v7692_v18, %v2209_v24  ;;  %v9048_v39 = vld [vmem:[#allocation14_spill] sm:$0xff] }
 0x3cc   : > { %3963 = vmatmul.bf16.gmra.mxu0 %v9042_v15  ;;  %4509 = vmatpush.bf16.msrb.mxu1 %v5762_v61  ;;  %9047 = vst [vmem:[#allocation29_spill] sm:$0xff] %v8041_v1  ;;  %v9050_v15 = vld [vmem:[#allocation114_spill] sm:$0xff]  ;;  %v9055_v18 = vld [vmem:[#allocation32_spill] sm:$0xff] }
 0x3cd   : > { %9039 = vst [vmem:[#allocation119_spill] sm:$0xff] %v8023_v46 }
 0x3cf   : > { %4147 = vmatmul.bf16.gmra.mxu3 %v9044_v48 }
 0x3d2   : > { %v2146_v19 = vpop.f32.mrf.mxu2  ;;  %v2875_v53 = vpop.f32.mrf.mxu3 }
 0x3d3   : > { %v2211_v62 = vadd.f32 %v2146_v19, %v9045_v41  ;;  %v8035_v23 = vadd.f32 %v2875_v53, %v2648_v43  ;;  %v9051_v43 = vld [vmem:[#allocation105_spill] sm:$0xff]  ;;  %v8050_v53 = vpop.f32.mrf.mxu0  ;;  %v9053_v41 = vld [vmem:[#allocation19_spill] sm:$0xff]  ;;  %v8054_v6 = vpop.f32.mrf.mxu1 }
 0x3d4   : > { %v9052_v19 = vpack.c.b16 %v9050_v15, %v9051_v43  ;;  %9054 = vst [vmem:[#allocation36_spill] sm:$0xff] %v8054_v6  ;;  %v9057_v15 = vld [vmem:[#allocation21_spill] sm:$0xff] }
 0x3d5   : > { %9046 = vst [vmem:[#allocation27_spill] sm:$0xff] %v8035_v23 }
 0x3d7   : > { %3607 = vmatmul.bf16.gmra.mxu2 %v9033_v29  ;;  %v2650_v29 = vadd.f32 %v7700_v5, %v2210_v36  ;;  %v9059_v5 = vld [vmem:[#allocation116_spill] sm:$0xff]  ;;  %v9060_v36 = vld [vmem:[#allocation115_spill] sm:$0xff] }
 0x3da   : > { %v2149_v20 = vpop.f32.mrf.mxu2  ;;  %v2877_v54 = vpop.f32.mrf.mxu3 }
 0x3db   : > { %v2212_v21 = vadd.f32 %v2149_v20, %v9048_v39  ;;  %v8045_v0 = vadd.f32 %v2877_v54, %v2649_v11  ;;  %v8059_v11 = vpop.f32.mrf.mxu0  ;;  %v2651_v20 = vadd.f32 %v7718_v27, %v2211_v62  ;;  %v8069_v6 = vpop.f32.mrf.mxu1  ;;  %v9064_v62 = vld [vmem:[#allocation39_spill] sm:$0xff] }
 0x3dc   : > { %3968 = vmatmul.bf16.gmra.mxu0 %v9052_v19  ;;  %9062 = vst [vmem:[#allocation82_spill] sm:$0xff] %v8069_v6 }
 0x3dd   : > { %9049 = vst [vmem:[#allocation111_spill] sm:$0xff] %v8045_v0  ;;  %v9061_v0 = vpack.c.b16 %v9059_v5, %v9060_v36  ;;  %v9067_v5 = vld [vmem:[#allocation152_spill] sm:$0xff] }
 0x3df   : > { %4152 = vmatmul.bf16.gmra.mxu3 %v9053_v41 }
 0x3e2   : > { %v2151_v61 = vpop.f32.mrf.mxu2  ;;  %v2880_v1 = vpop.f32.mrf.mxu3 }
 0x3e3   : > { %v2213_v24 = vadd.f32 %v2151_v61, %v9055_v18  ;;  %v8057_v23 = vadd.f32 %v2880_v1, %v2650_v29  ;;  %v9063_v1 = vld [vmem:[#allocation26_spill] sm:$0xff]  ;;  %v8072_v29 = vpop.f32.mrf.mxu0 }
 0x3e5   : > { %9056 = vst [vmem:[#allocation28_spill] sm:$0xff] %v8057_v23 }
 0x3e7   : > { %3612 = vmatmul.bf16.gmra.mxu2 %v9044_v48  ;;  %v2652_v48 = vadd.f32 %v7733_v55, %v2212_v21  ;;  %v9069_v55 = vld [vmem:[#allocation122_spill] sm:$0xff]  ;;  %v9070_v21 = vld [vmem:[#allocation124_spill] sm:$0xff] }
 0x3ea   : > { %v2154_v54 = vpop.f32.mrf.mxu2  ;;  %v2882_v39 = vpop.f32.mrf.mxu3 }
 0x3eb   : > { %v2214_v43 = vadd.f32 %v2154_v54, %v9057_v15  ;;  %v8064_v19 = vadd.f32 %v2882_v39, %v2651_v20  ;;  %v8078_v20 = vpop.f32.mrf.mxu1  ;;  %v8082_v15 = vpop.f32.mrf.mxu0 }
 0x3ec   : > { %3973 = vmatmul.bf16.gmra.mxu0 %v9061_v0  ;;  %9066 = vst [vmem:[#allocation38_spill] sm:$0xff] %v8078_v20  ;;  %v2653_v0 = vadd.f32 %v7750_v60, %v2213_v24 }
 0x3ed   : > { %9058 = vst [vmem:[#allocation112_spill] sm:$0xff] %v8064_v19  ;;  %v9071_v19 = vpack.c.b16 %v9069_v55, %v9070_v21  ;;  %v2654_v60 = vadd.f32 %v7763_v45, %v2214_v43 }
 0x3ef   : > { %4157 = vmatmul.bf16.gmra.mxu3 %v9063_v1 }
 0x3f2   : > { %v2156_v61 = vpop.f32.mrf.mxu2  ;;  %v2885_v27 = vpop.f32.mrf.mxu3 }
 0x3f3   : > { %v2215_v18 = vadd.f32 %v2156_v61, %v9064_v62  ;;  %v8076_v23 = vadd.f32 %v2885_v27, %v2652_v48  ;;  %v9072_v48 = vld [vmem:[#allocation69_spill] sm:$0xff]  ;;  %v9073_v27 = vld [vmem:[#allocation31_spill] sm:$0xff]  ;;  %v8092_v62 = vpop.f32.mrf.mxu1  ;;  %v8105_v21 = vpop.f32.mrf.mxu0 }
 0x3f4   : > { %v3244_v61 = vrot.slane %v9072_v48, 1  ;;  %9074 = vst [vmem:[#allocation128_spill] sm:$0xff] %v8092_v62 }
 0x3f5   : > { %9065 = vst [vmem:[#allocation127_spill] sm:$0xff] %v8076_v23  ;;  %v2655_v43 = vadd.f32 %v7776_v2, %v2215_v18 }
 0x3f6   : > { %v3281_v2 = vsel %vm3266_vm1, %v3244_v61, %v9015_v7 }
 0x3f7   : > { %3617 = vmatmul.bf16.gmra.mxu2 %v9053_v41  ;;  %v9075_v41 = vld [vmem:[#allocation68_spill] sm:$0xff] }
 0x3f8   : > { %v9076_v24 = vrot.slane %v9075_v41, 1 }
 0x3fa   : > { %v2159_v54 = vpop.f32.mrf.mxu2  ;;  %v2887_v39 = vpop.f32.mrf.mxu3  ;;  %v3299_v23 = vsel %vm3266_vm1, %v9076_v24, %v3244_v61  ;;  %v9080_v24 = vld [vmem:[#allocation123_spill] sm:$0xff] }
 0x3fb   : > { %v2216_v36 = vadd.f32 %v2159_v54, %v9067_v5  ;;  %v8085_v6 = vadd.f32 %v2887_v39, %v2653_v0  ;;  %v9078_v39 = vld [vmem:[#allocation154_spill] sm:$0xff]  ;;  %v3363_v55 = vpack.c.bf16 %v3299_v23, %v3299_v23  ;;  %v8118_v23 = vpop.f32.mrf.mxu0 }
 0x3fc   : > { %3978 = vmatmul.bf16.gmra.mxu0 %v9071_v19  ;;  %v5761_v19 = vld [vmem:[%s8554_s5] sm:$0xff] }
 0x3fd   : > { %9068 = vst [vmem:[#allocation37_spill] sm:$0xff] %v8085_v6  ;;  %4510 = vmatpush.bf16.msrb.mxu1 %v5761_v19  ;;  %v8108_v45 = vunpack.c.l.b16 %v3363_v55  ;;  %v9084_v19 = vld [vmem:[#allocation30_spill] sm:$0xff] }
 0x3ff   : > { %4162 = vmatmul.bf16.gmra.mxu3 %v9073_v27 }
 0x402   : > { %v2161_v54 = vpop.f32.mrf.mxu2  ;;  %v2890_v0 = vpop.f32.mrf.mxu3 }
 0x403   : > { %v2217_v5 = vadd.f32 %v2161_v54, %v9078_v39  ;;  %v8100_v6 = vadd.f32 %v2890_v0, %v2654_v60  ;;  %v3803_v60 = vpack.c.b16 %v8108_v45, %v9080_v24  ;;  %v8113_v54 = vpop.f32.mrf.mxu1  ;;  %v9082_v0 = vld [vmem:[#allocation156_spill] sm:$0xff]  ;;  %v3364_v24 = vpack.c.bf16 %v3281_v2, %v3281_v2 }
 0x404   : > { %9081 = vst [vmem:[#allocation45_spill] sm:$0xff] %v8113_v54  ;;  %v9089_v2 = vld [vmem:[#allocation44_spill] sm:$0xff] }
 0x405   : > { %9079 = vst [vmem:[#allocation129_spill] sm:$0xff] %v8100_v6  ;;  %v9085_v6 = vld [vmem:[#allocation159_spill] sm:$0xff] }
 0x407   : > { %3622 = vmatmul.bf16.gmra.mxu2 %v9063_v1  ;;  %v2656_v1 = vadd.f32 %v7786_v14, %v2216_v36  ;;  %v9088_v14 = vld [vmem:[#allocation74_spill] sm:$0xff] }
 0x40a   : > { %v2164_v48 = vpop.f32.mrf.mxu2  ;;  %v2892_v41 = vpop.f32.mrf.mxu3 }
 0x40b   : > { %v2218_v39 = vadd.f32 %v2164_v48, %v9082_v0  ;;  %v8116_v62 = vadd.f32 %v2892_v41, %v2655_v43  ;;  %v8128_v43 = vpop.f32.mrf.mxu1  ;;  %v8130_v48 = vunpack.c.l.b16 %v3364_v24  ;;  %v8133_v41 = vpop.f32.mrf.mxu0 }
 0x40c   : > { %3983 = vmatmul.bf16.gmra.mxu0 %v3803_v60  ;;  %9087 = vst [vmem:[#allocation101_spill] sm:$0xff] %v8128_v43  ;;  %v2657_v60 = vadd.f32 %v7799_v42, %v2217_v5  ;;  %v9092_v42 = vld [vmem:[#allocation160_spill] sm:$0xff] }
 0x40d   : > { %9083 = vst [vmem:[#allocation48_spill] sm:$0xff] %v8116_v62  ;;  %v3804_v36 = vpack.c.b16 %v9088_v14, %v8130_v48 }
 0x40f   : > { %4167 = vmatmul.bf16.gmra.mxu3 %v9084_v19 }
 0x412   : > { %v2166_v18 = vpop.f32.mrf.mxu2  ;;  %v2895_v55 = vpop.f32.mrf.mxu3 }
 0x413   : > { %v2219_v54 = vadd.f32 %v2166_v18, %v9085_v6  ;;  %v8126_v46 = vadd.f32 %v2895_v55, %v2656_v1  ;;  %v3154_v1 = vpop.f32.mrf.mxu1  ;;  %v9091_v18 = vld [vmem:[#allocation40_spill] sm:$0xff]  ;;  %v2658_v55 = vadd.f32 %v7815_v34, %v2218_v39  ;;  %v8143_v43 = vpop.f32.mrf.mxu0 }
 0x415   : > { %9086 = vst [vmem:[#allocation130_spill] sm:$0xff] %v8126_v46 }
 0x417   : > { %3627 = vmatmul.bf16.gmra.mxu2 %v9073_v27 }
 0x41a   : > { %v2169_v61 = vpop.f32.mrf.mxu2  ;;  %v2897_v0 = vpop.f32.mrf.mxu3 }
 0x41b   : > { %v2220_v62 = vadd.f32 %v2169_v61, %v9089_v2  ;;  %v8139_v6 = vadd.f32 %v2897_v0, %v2657_v60  ;;  %v8149_v61 = vpop.f32.mrf.mxu1  ;;  %v2659_v60 = vadd.f32 %v7829_v63, %v2219_v54  ;;  %v9096_v2 = vld [vmem:[#allocation94_spill] sm:$0xff] }
 0x41c   : > { %3988 = vmatmul.bf16.gmra.mxu0 %v3804_v36  ;;  %9094 = vst [vmem:[#allocation131_spill] sm:$0xff] %v8149_v61  ;;  %v9095_v36 = vld [vmem:[#allocation77_spill] sm:$0xff] }
 0x41d   : > { %9090 = vst [vmem:[#allocation100_spill] sm:$0xff] %v8139_v6  ;;  %v3805_v34 = vpack.c.b16 %v9096_v2, %v9095_v36  ;;  %v8156_v6 = vpop.f32.mrf.mxu0  ;;  %v9101_v2 = vld [vmem:[#allocation95_spill] sm:$0xff] }
 0x41f   : > { %4172 = vmatmul.bf16.gmra.mxu3 %v9091_v18 }
 0x422   : > { %v2171_v27 = vpop.f32.mrf.mxu2  ;;  %v2900_v24 = vpop.f32.mrf.mxu3 }
 0x423   : > { %v2221_v5 = vadd.f32 %v2171_v27, %v9092_v42  ;;  %v2954_v46 = vadd.f32 %v2900_v24, %v2658_v55  ;;  %v9098_v27 = vld [vmem:[#allocation50_spill] sm:$0xff] }
 0x425   : > { %v8146_v56 = vadd.f32 %v3154_v1, %v2954_v46  ;;  %v2660_v46 = vadd.f32 %v7841_v12, %v2220_v62  ;;  %v3159_v1 = vpop.f32.mrf.mxu1  ;;  %v8162_v63 = vpop.f32.mrf.mxu0  ;;  %v2661_v54 = vadd.f32 %v7851_v37, %v2221_v5  ;;  %v9104_v12 = vld [vmem:[#allocation35_spill] sm:$0xff]  ;;  %v9105_v62 = vld [vmem:[#allocation138_spill] sm:$0xff] }
 0x427   : > { %9093 = vst [vmem:[#allocation151_spill] sm:$0xff] %v8146_v56  ;;  %3632 = vmatmul.bf16.gmra.mxu2 %v9084_v19  ;;  %v9113_v56 = vld [vmem:[#allocation93_spill] sm:$0xff] }
 0x42a   : > { %v2902_v0 = vpop.f32.mrf.mxu3  ;;  %v3593_v14 = vpop.f32.mrf.mxu2 }
 0x42b   : > { %v8154_v39 = vadd.f32 %v2902_v0, %v2659_v60 }
 0x42c   : > { %3993 = vmatmul.bf16.gmra.mxu0 %v3805_v34  ;;  %v9102_v34 = vld [vmem:[#allocation96_spill] sm:$0xff] }
 0x42d   : > { %9097 = vst [vmem:[#allocation59_spill] sm:$0xff] %v8154_v39  ;;  %v9103_v61 = vpack.c.b16 %v9101_v2, %v9102_v34  ;;  %v3164_v39 = vadd.f32 %v9105_v62, %v9104_v12  ;;  %v8179_v37 = vpop.f32.mrf.mxu0 }
 0x42f   : > { %4177 = vmatmul.bf16.gmra.mxu3 %v9098_v27  ;;  %v3713_v5 = vadd.f32 %v3593_v14, %v3164_v39  ;;  %v9109_v39 = vld [vmem:[#allocation107_spill] sm:$0xff] }
 0x431   : > { %v4009_v12 = vadd.f32 %v7868_v40, %v3713_v5  ;;  %v9110_v5 = vld [vmem:[#allocation41_spill] sm:$0xff] }
 0x432   : > { %v2905_v19 = vpop.f32.mrf.mxu3  ;;  %v3595_v55 = vpop.f32.mrf.mxu2 }
 0x433   : > { %v2956_v24 = vadd.f32 %v2905_v19, %v2660_v46  ;;  %v9106_v46 = vld [vmem:[#allocation49_spill] sm:$0xff] }
 0x435   : > { %v8160_v42 = vadd.f32 %v3159_v1, %v2956_v24  ;;  %v9107_v1 = vrot.slane %v8918_v3, 1  ;;  %v8189_v3 = vld [vmem:[%s8556_s7] ss:$0 sm:$0xff] }
 0x437   : > { %9099 = vst [vmem:[#allocation46_spill] sm:$0xff] %v8160_v42  ;;  %3637 = vmatmul.bf16.gmra.mxu2 %v9091_v18  ;;  %v3319_v18 = vsel %vm3266_vm1, %v9015_v7, %v9107_v1  ;;  %v8196_v1 = vpop.f32.mrf.mxu0 }
 0x43a   : > { %v2907_v60 = vpop.f32.mrf.mxu3  ;;  %v3598_v0 = vpop.f32.mrf.mxu2 }
 0x43b   : > { %v8166_v36 = vadd.f32 %v2907_v60, %v2661_v54  ;;  %v3371_v54 = vpack.c.bf16 %v3319_v18, %v3319_v18  ;;  %v9108_v60 = vld [vmem:[#allocation140_spill] sm:$0xff] }
 0x43c   : > { %3998 = vmatmul.bf16.gmra.mxu0 %v9103_v61  ;;  %v3165_v61 = vadd.f32 %v9108_v60, %v7629_v32 }
 0x43d   : > { %9100 = vst [vmem:[#allocation158_spill] sm:$0xff] %v8166_v36  ;;  %v8184_v62 = vunpack.c.l.b16 %v3371_v54 }
 0x43e   : > { %v3714_v34 = vadd.f32 %v3595_v55, %v3165_v61  ;;  %v9112_v61 = vld [vmem:[#allocation63_spill] sm:$0xff] }
 0x43f   : > { %4182 = vmatmul.bf16.gmra.mxu3 %v9106_v46  ;;  %v3807_v32 = vpack.c.b16 %v8184_v62, %v9109_v39 }
 0x440   : > { %v4010_v7 = vadd.f32 %v7885_v28, %v3714_v34 }
 0x442   : > { %v3600_v19 = vpop.f32.mrf.mxu2  ;;  %v4143_v24 = vpop.f32.mrf.mxu3 }
 0x443   : > { %v4263_v36 = vadd.f32 %v4143_v24, %v4009_v12  ;;  %v9111_v24 = vld [vmem:[#allocation143_spill] sm:$0xff] }
 0x444   : > { %v3166_v54 = vadd.f32 %v9111_v24, %v9110_v5 }
 0x445   : > { %v4315_v55 = vadd.f32 %v8189_v3, %v4263_v36  ;;  %v3167_v36 = vadd.f32 %v9114_v52, %v9113_v56 }
 0x446   : > { %v3715_v28 = vadd.f32 %v3598_v0, %v3166_v54  ;;  %v9115_v54 = vld [vmem:[#allocation64_spill] sm:$0xff] }
 0x447   : > { %3642 = vmatmul.bf16.gmra.mxu2 %v9098_v27  ;;  %v4363_v60 = vmax.f32 %v4315_v55, 0.0 }
 0x44a   : > { %v3603_v20 = vpop.f32.mrf.mxu2  ;;  %v4145_v14 = vpop.f32.mrf.mxu3 }
 0x44b   : > { %v4264_v40 = vadd.f32 %v4145_v14, %v4010_v7  ;;  %v3716_v7 = vadd.f32 %v3600_v19, %v3167_v36  ;;  %v4011_v14 = vadd.f32 %v7902_v17, %v3715_v28  ;;  %v9117_v19 = vld [vmem:[#allocation78_spill] sm:$0xff] }
 0x44c   : > { %4003 = vmatmul.bf16.gmra.mxu0 %v3807_v32 }
 0x44d   : > { %v4316_v18 = vadd.f32 %v8189_v3, %v4264_v40  ;;  %v4012_v40 = vadd.f32 %v7916_v22, %v3716_v7  ;;  %v9119_v22 = vld [vmem:[#allocation15_spill] sm:$0xff] }
 0x44f   : > { %v4364_v27 = vmax.f32 %v4316_v18, 0.0  ;;  %4187 = vmatmul.bf16.gmra.mxu3 %v9112_v61 }
 0x451   : > { %v4411_v34 = vpack.c.bf16 %v4364_v27, %v4363_v60  ;;  %v9116_v60 = vld [vmem:[#allocation147_spill] sm:$0xff] }
 0x452   : > { %v3605_v12 = vpop.f32.mrf.mxu2  ;;  %v4148_v42 = vpop.f32.mrf.mxu3  ;;  %v3168_v27 = vadd.f32 %v9116_v60, %v9115_v54  ;;  %v9120_v54 = vld [vmem:[#allocation149_spill] sm:$0xff] }
 0x453   : > { %4511 = vmatmul.bf16.vlgmr.msrb.gmra.mxu1 %v4411_v34  ;;  %v4265_v32 = vadd.f32 %v4148_v42, %v4011_v14  ;;  %v9118_v34 = vld [vmem:[#allocation79_spill] sm:$0xff]  ;;  %v3170_v60 = vadd.f32 %v9120_v54, %v7695_v51 }
 0x454   : > { %v3717_v17 = vadd.f32 %v3603_v20, %v3168_v27  ;;  %v3169_v36 = vadd.f32 %v9119_v22, %v9118_v34 }
 0x455   : > { %v4317_v5 = vadd.f32 %v8189_v3, %v4265_v32 }
 0x456   : > { %v3718_v7 = vadd.f32 %v3605_v12, %v3169_v36  ;;  %v4013_v14 = vadd.f32 %v7932_v4, %v3717_v17  ;;  %v9121_v12 = vld [vmem:[#allocation75_spill] sm:$0xff] }
 0x457   : > { %3647 = vmatmul.bf16.gmra.mxu2 %v9106_v46  ;;  %v4365_v52 = vmax.f32 %v4317_v5, 0.0 }
 0x45a   : > { %v3608_v55 = vpop.f32.mrf.mxu2  ;;  %v4150_v18 = vpop.f32.mrf.mxu3 }
 0x45b   : > { %v4266_v0 = vadd.f32 %v4150_v18, %v4012_v40  ;;  %v4014_v40 = vadd.f32 %v7943_v31, %v3718_v7  ;;  %v3719_v4 = vadd.f32 %v3608_v55, %v3170_v60  ;;  %v9123_v31 = vld [vmem:[#allocation150_spill] sm:$0xff] }
 0x45d   : > { %v4318_v24 = vadd.f32 %v8189_v3, %v4266_v0  ;;  %v4015_v22 = vadd.f32 %v7959_v13, %v3719_v4 }
 0x45f   : > { %v4366_v56 = vmax.f32 %v4318_v24, 0.0  ;;  %4192 = vmatmul.bf16.gmra.mxu3 %v9117_v19 }
 0x461   : > { %v4412_v42 = vpack.c.bf16 %v4366_v56, %v4365_v52 }
 0x462   : > { %v3610_v28 = vpop.f32.mrf.mxu2  ;;  %v4153_v46 = vpop.f32.mrf.mxu3 }
 0x463   : > { %4516 = vmatmul.bf16.gmra.mxu1 %v4412_v42  ;;  %v4267_v32 = vadd.f32 %v4153_v46, %v4013_v14  ;;  %v9122_v42 = vld [vmem:[#allocation8_spill] sm:$0xff] }
 0x464   : > { %v3171_v46 = vadd.f32 %v9123_v31, %v9122_v42 }
 0x465   : > { %v4319_v0 = vadd.f32 %v8189_v3, %v4267_v32 }
 0x466   : > { %v3720_v34 = vadd.f32 %v3610_v28, %v3171_v46  ;;  %v9126_v28 = vld [vmem:[#allocation91_spill] sm:$0xff] }
 0x467   : > { %3652 = vmatmul.bf16.gmra.mxu2 %v9112_v61  ;;  %v4367_v27 = vmax.f32 %v4319_v0, 0.0  ;;  %v9125_v0 = vld [vmem:[#allocation22_spill] sm:$0xff] }
 0x468   : > { %v4016_v51 = vadd.f32 %v7978_v33, %v3720_v34  ;;  %v9128_v33 = vld [vmem:[#allocation153_spill] sm:$0xff] }
 0x46a   : > { %v3613_v18 = vpop.f32.mrf.mxu2  ;;  %v4155_v5 = vpop.f32.mrf.mxu3 }
 0x46b   : > { %v4268_v20 = vadd.f32 %v4155_v5, %v4014_v40  ;;  %v9124_v5 = vld [vmem:[#allocation56_spill] sm:$0xff] }
 0x46d   : > { %v4320_v24 = vadd.f32 %v8189_v3, %v4268_v20  ;;  %v3172_v20 = vadd.f32 %v9125_v0, %v9124_v5 }
 0x46f   : > { %v4368_v52 = vmax.f32 %v4320_v24, 0.0  ;;  %4197 = vmatmul.bf16.gmra.mxu3 %v9121_v12  ;;  %v3721_v13 = vadd.f32 %v3613_v18, %v3172_v20 }
 0x471   : > { %v4413_v56 = vpack.c.bf16 %v4368_v52, %v4367_v27  ;;  %v9127_v52 = vld [vmem:[#allocation55_spill] sm:$0xff] }
 0x472   : > { %v3615_v17 = vpop.f32.mrf.mxu2  ;;  %v4158_v61 = vpop.f32.mrf.mxu3  ;;  %v3173_v4 = vadd.f32 %v9128_v33, %v9127_v52 }
 0x473   : > { %4521 = vmatmul.bf16.gmra.mxu1 %v4413_v56  ;;  %v4269_v36 = vadd.f32 %v4158_v61, %v4015_v22  ;;  %v4017_v61 = vadd.f32 %v7994_v58, %v3721_v13 }
 0x474   : > { %v3722_v56 = vadd.f32 %v3615_v17, %v3173_v4  ;;  %v9131_v17 = vld [vmem:[#allocation106_spill] sm:$0xff] }
 0x475   : > { %v4321_v32 = vadd.f32 %v8189_v3, %v4269_v36 }
 0x476   : > { %v4018_v31 = vadd.f32 %v8007_v44, %v3722_v56  ;;  %v9132_v44 = vld [vmem:[#allocation42_spill] sm:$0xff]  ;;  %v9133_v56 = vld [vmem:[#allocation9_spill] sm:$0xff] }
 0x477   : > { %3657 = vmatmul.bf16.gmra.mxu2 %v9117_v19  ;;  %v4369_v24 = vmax.f32 %v4321_v32, 0.0  ;;  %v3175_v20 = vadd.f32 %v9132_v44, %v7767_v49 }
 0x47a   : > { %v3618_v7 = vpop.f32.mrf.mxu2  ;;  %v4160_v14 = vpop.f32.mrf.mxu3 }
 0x47b   : > { %v4270_v55 = vadd.f32 %v4160_v14, %v4016_v51  ;;  %v9129_v51 = vld [vmem:[#allocation76_spill] sm:$0xff]  ;;  %v9130_v14 = vld [vmem:[#allocation157_spill] sm:$0xff] }
 0x47c   : > { %v3174_v32 = vadd.f32 %v9130_v14, %v9129_v51 }
 0x47d   : > { %v4322_v40 = vadd.f32 %v8189_v3, %v4270_v55 }
 0x47e   : > { %v3723_v58 = vadd.f32 %v3618_v7, %v3174_v32 }
 0x47f   : > { %v4370_v54 = vmax.f32 %v4322_v40, 0.0  ;;  %4202 = vmatmul.bf16.gmra.mxu3 %v9126_v28 }
 0x481   : > { %v4414_v60 = vpack.c.bf16 %v4370_v54, %v4369_v24  ;;  %v4019_v54 = vadd.f32 %v8019_v10, %v3723_v58 }
 0x482   : > { %v3620_v27 = vpop.f32.mrf.mxu2  ;;  %v4163_v19 = vpop.f32.mrf.mxu3 }
 0x483   : > { %4526 = vmatmul.bf16.gmra.mxu1 %v4414_v60  ;;  %v4271_v42 = vadd.f32 %v4163_v19, %v4017_v61  ;;  %v3724_v24 = vadd.f32 %v3620_v27, %v3175_v20  ;;  %v9134_v61 = vld [vmem:[#allocation33_spill] sm:$0xff]  ;;  %v9135_v27 = vld [vmem:[#allocation108_spill] sm:$0xff] }
 0x485   : > { %v4323_v22 = vadd.f32 %v8189_v3, %v4271_v42  ;;  %v4020_v60 = vadd.f32 %v8032_v38, %v3724_v24  ;;  %v3176_v42 = vadd.f32 %v9134_v61, %v9133_v56  ;;  %v9136_v38 = vld [vmem:[#allocation51_spill] sm:$0xff] }
 0x487   : > { %3662 = vmatmul.bf16.gmra.mxu2 %v9121_v12  ;;  %v4371_v55 = vmax.f32 %v4323_v22, 0.0 }
 0x48a   : > { %v3623_v46 = vpop.f32.mrf.mxu2  ;;  %v4165_v34 = vpop.f32.mrf.mxu3 }
 0x48b   : > { %v4272_v18 = vadd.f32 %v4165_v34, %v4018_v31  ;;  %v3725_v10 = vadd.f32 %v3623_v46, %v3176_v42  ;;  %v9140_v42 = vld [vmem:[#allocation58_spill] sm:$0xff] }
 0x48d   : > { %v4324_v36 = vadd.f32 %v8189_v3, %v4272_v18  ;;  %v3177_v18 = vadd.f32 %v9136_v38, %v7790_v26  ;;  %v4021_v51 = vadd.f32 %v8050_v53, %v3725_v10  ;;  %v9141_v10 = vld [vmem:[#allocation126_spill] sm:$0xff] }
 0x48f   : > { %v4372_v40 = vmax.f32 %v4324_v36, 0.0  ;;  %4207 = vmatmul.bf16.gmra.mxu3 %v9131_v17 }
 0x491   : > { %v4415_v5 = vpack.c.bf16 %v4372_v40, %v4371_v55 }
 0x492   : > { %v3625_v0 = vpop.f32.mrf.mxu2  ;;  %v4168_v12 = vpop.f32.mrf.mxu3 }
 0x493   : > { %4531 = vmatmul.bf16.gmra.mxu1 %v4415_v5  ;;  %v4273_v13 = vadd.f32 %v4168_v12, %v4019_v54  ;;  %v3726_v36 = vadd.f32 %v3625_v0, %v3177_v18  ;;  %v9137_v12 = vld [vmem:[#allocation54_spill] sm:$0xff] }
 0x494   : > { %v3178_v44 = vadd.f32 %v9137_v12, %v7802_v35  ;;  %v9138_v0 = vld [vmem:[#allocation118_spill] sm:$0xff]  ;;  %v9144_v12 = vld [vmem:[#allocation125_spill] sm:$0xff] }
 0x495   : > { %v4325_v33 = vadd.f32 %v8189_v3, %v4273_v13  ;;  %v4022_v32 = vadd.f32 %v8059_v11, %v3726_v36  ;;  %v9139_v11 = vld [vmem:[#allocation67_spill] sm:$0xff] }
 0x496   : > { %v3179_v13 = vadd.f32 %v9139_v11, %v7807_v16 }
 0x497   : > { %3667 = vmatmul.bf16.gmra.mxu2 %v9126_v28  ;;  %v4373_v49 = vmax.f32 %v4325_v33, 0.0 }
 0x49a   : > { %v3628_v19 = vpop.f32.mrf.mxu2  ;;  %v4170_v52 = vpop.f32.mrf.mxu3 }
 0x49b   : > { %v4274_v7 = vadd.f32 %v4170_v52, %v4020_v60  ;;  %v3727_v53 = vadd.f32 %v3628_v19, %v3178_v44 }
 0x49d   : > { %v4326_v4 = vadd.f32 %v8189_v3, %v4274_v7  ;;  %v4023_v52 = vadd.f32 %v8072_v29, %v3727_v53  ;;  %v5770_v53 = vld [vmem:[%s6218_s15] sm:$0xff]  }
 0x49f   : > { %v4374_v31 = vmax.f32 %v4326_v4, 0.0  ;;  %4212 = vmatmul.bf16.gmra.mxu3 %v9135_v27 }
 0x4a1   : > { %v4416_v34 = vpack.c.bf16 %v4374_v31, %v4373_v49  ;;  %v3180_v49 = vadd.f32 %v9140_v42, %v7824_v30 }
 0x4a2   : > { %v3630_v22 = vpop.f32.mrf.mxu2  ;;  %v4173_v28 = vpop.f32.mrf.mxu3 }
 0x4a3   : > { %4536 = vmatmul.bf16.gmra.mxu1 %v4416_v34  ;;  %v4275_v14 = vadd.f32 %v4173_v28, %v4021_v51  ;;  %v3728_v60 = vadd.f32 %v3630_v22, %v3179_v13  ;;  %v8276_v51 = vpop.f32.mrf.mxu1 }
 0x4a5   : > { %v4327_v58 = vadd.f32 %v8189_v3, %v4275_v14  ;;  %v4024_v35 = vadd.f32 %v8082_v15, %v3728_v60  ;;  %v9142_v15 = vld [vmem:[#allocation47_spill] sm:$0xff]  ;;  %v5771_v60 = vunpack.c.l.bf16 %v5770_v53 }
 0x4a6   : > { %v3181_v28 = vadd.f32 %v9142_v15, %v7834_v25  ;;  %v9143_v25 = vld [vmem:[#allocation66_spill] sm:$0xff] }
 0x4a7   : > { %3672 = vmatmul.bf16.gmra.mxu2 %v9131_v17  ;;  %v4375_v26 = vmax.f32 %v4327_v58, 0.0 }
 0x4aa   : > { %v3633_v55 = vpop.f32.mrf.mxu2  ;;  %v4175_v40 = vpop.f32.mrf.mxu3 }
 0x4ab   : > { %v4276_v46 = vadd.f32 %v4175_v40, %v4022_v32  ;;  %v3729_v29 = vadd.f32 %v3633_v55, %v3180_v49 }
 0x4ad   : > { %v4328_v5 = vadd.f32 %v8189_v3, %v4276_v46  ;;  %v4025_v18 = vadd.f32 %v8105_v21, %v3729_v29  ;;  %v3182_v46 = vadd.f32 %v9143_v25, %v7845_v8  ;;  %v9145_v8 = vld [vmem:[#allocation7_spill] sm:$0xff] }
 0x4af   : > { %v4376_v20 = vmax.f32 %v4328_v5, 0.0  ;;  %4217 = vmatmul.bf16.gmra.mxu3 %v9138_v0 }
 0x4b1   : > { %v4417_v24 = vpack.c.bf16 %v4376_v20, %v4375_v26  ;;  %v8284_v26 = vpop.f32.mrf.mxu0 }
 0x4b2   : > { %v3635_v54 = vpop.f32.mrf.mxu2  ;;  %v4178_v17 = vpop.f32.mrf.mxu3 }
 0x4b3   : > { %4541 = vmatmul.bf16.gmra.mxu1 %v4417_v24  ;;  %v4277_v33 = vadd.f32 %v4178_v17, %v4023_v52  ;;  %v3730_v38 = vadd.f32 %v3635_v54, %v3181_v28  ;;  %v3183_v17 = vadd.f32 %v9145_v8, %v7854_v57 }
 0x4b5   : > { %v4329_v56 = vadd.f32 %v8189_v3, %v4277_v33  ;;  %v4026_v30 = vadd.f32 %v8118_v23, %v3730_v38  ;;  %v8289_v23 = vld [vmem:[%s8557_s8] ss:$0 sm:$0xff] }
 0x4b7   : > { %3677 = vmatmul.bf16.gmra.mxu2 %v9135_v27  ;;  %v4377_v16 = vmax.f32 %v4329_v56, 0.0 }
 0x4b9   : > { %v8300_v42 = vpop.f32.mrf.mxu0 }
 0x4ba   : > { %v3638_v7 = vpop.f32.mrf.mxu2  ;;  %v4180_v4 = vpop.f32.mrf.mxu3 }
 0x4bb   : > { %v4278_v19 = vadd.f32 %v4180_v4, %v4024_v35  ;;  %v3731_v20 = vadd.f32 %v3638_v7, %v3182_v46  ;;  %v5772_v35 = vunpack.c.h.bf16 %v5770_v53 }
 0x4bd   : > { %v4330_v61 = vadd.f32 %v8189_v3, %v4278_v19  ;;  %v4027_v52 = vadd.f32 %v8133_v41, %v3731_v20 }
 0x4bf   : > { %v4378_v31 = vmax.f32 %v4330_v61, 0.0  ;;  %4222 = vmatmul.bf16.gmra.mxu3 %v9141_v10 }
 0x4c1   : > { %v4418_v34 = vpack.c.bf16 %v4378_v31, %v4377_v16 }
 0x4c2   : > { %v3640_v22 = vpop.f32.mrf.mxu2  ;;  %v4183_v27 = vpop.f32.mrf.mxu3 }
 0x4c3   : > { %4546 = vmatmul.bf16.gmra.mxu1 %v4418_v34  ;;  %v4279_v36 = vadd.f32 %v4183_v27, %v4025_v18  ;;  %v3732_v11 = vadd.f32 %v3640_v22, %v3183_v17  ;;  %v3509_v34 = vpack.c.b16 %v8130_v48, %v8108_v45  ;;  %v9147_v48 = vld [vmem:[#allocation12_spill] sm:$0xff] }
 0x4c5   : > { %v4331_v55 = vadd.f32 %v8189_v3, %v4279_v36  ;;  %v4028_v19 = vadd.f32 %v8143_v43, %v3732_v11  ;;  %v9146_v43 = vld [vmem:[#allocation70_spill] sm:$0xff] }
 0x4c6   : > { %v3184_v22 = vadd.f32 %v9146_v43, %v7866_v9 }
 0x4c7   : > { %3682 = vmatmul.bf16.gmra.mxu2 %v9138_v0  ;;  %v4379_v5 = vmax.f32 %v4331_v55, 0.0  ;;  %v9148_v55 = vld [vmem:[#allocation90_spill] sm:$0xff] }
 0x4ca   : > { %v3643_v14 = vpop.f32.mrf.mxu2  ;;  %v4185_v32 = vpop.f32.mrf.mxu3 }
 0x4cb   : > { %v4280_v40 = vadd.f32 %v4185_v32, %v4026_v30  ;;  %v3733_v18 = vadd.f32 %v3643_v14, %v3184_v22  ;;  %v5985_v30 = vld [vmem:[%s6218_s15 + $0x8] sm:$0xff]  }
 0x4cc   : > { %v5775_v46 = vunpack.c.l.bf16 %v5985_v30  ;;  %v5776_v14 = vunpack.c.h.bf16 %v5985_v30 }
 0x4cd   : > { %v4332_v58 = vadd.f32 %v8189_v3, %v4280_v40  ;;  %v3185_v40 = vadd.f32 %v9148_v55, %v9147_v48 }
 0x4cf   : > { %v4380_v21 = vmax.f32 %v4332_v58, 0.0  ;;  %4227 = vmatmul.bf16.gmra.mxu3 %v9144_v12  ;;  %v8317_v58 = vpop.f32.mrf.mxu0 }
 0x4d0   : > { %v4512_v44 = vpop.f32.mrf.mxu1 }
 0x4d1   : > { %v4419_v0 = vpack.c.bf16 %v4380_v21, %v4379_v5  ;;  %v4513_v13 = vadd.f32 %v8289_v23, %v4512_v44  ;;  %v4029_v5 = vadd.f32 %v8156_v6, %v3733_v18 }
 0x4d2   : > { %v3645_v24 = vpop.f32.mrf.mxu2  ;;  %v4188_v54 = vpop.f32.mrf.mxu3 }
 0x4d3   : > { %4551 = vmatmul.bf16.gmra.mxu1 %v4419_v0  ;;  %v4281_v33 = vadd.f32 %v4188_v54, %v4027_v52  ;;  %v4728_v4 = vadd.f32 %v5771_v60, %v4513_v13  ;;  %v3734_v25 = vadd.f32 %v3645_v24, %v3185_v40  ;;  %v9149_v52 = vld [vmem:[#allocation11_spill] sm:$0xff] }
 0x4d5   : > { %v4333_v49 = vadd.f32 %v8189_v3, %v4281_v33  ;;  %v4776_v31 = vmax.f32 %v4728_v4, 0.0  ;;  %v4030_v53 = vadd.f32 %v8162_v63, %v3734_v25  ;;  %v9150_v33 = vld [vmem:[#allocation10_spill] sm:$0xff] }
 0x4d7   : > { %3687 = vmatmul.bf16.gmra.mxu2 %v9141_v10  ;;  %v4381_v27 = vmax.f32 %v4333_v49, 0.0 }
 0x4d8   : > { %v4514_v7 = vpop.f32.mrf.mxu1 }
 0x4d9   : > { %v4515_v56 = vadd.f32 %v8289_v23, %v4514_v7 }
 0x4da   : > { %v3648_v61 = vpop.f32.mrf.mxu2  ;;  %v4190_v57 = vpop.f32.mrf.mxu3 }
 0x4db   : > { %v4729_v16 = vadd.f32 %v5772_v35, %v4515_v56  ;;  %v4282_v41 = vadd.f32 %v4190_v57, %v4028_v19  ;;  %v3186_v35 = vadd.f32 %v9150_v33, %v9149_v52  ;;  %v9151_v56 = vld [vmem:[#allocation80_spill] sm:$0xff]  ;;  %v9158_v52 = vld [vmem:[#allocation99_spill] sm:$0xff] }
 0x4dd   : > { %v4777_v29 = vmax.f32 %v4729_v16, 0.0  ;;  %v4334_v10 = vadd.f32 %v8189_v3, %v4282_v41  ;;  %v3735_v57 = vadd.f32 %v3648_v61, %v3186_v35  ;;  %v5986_v16 = vld [vmem:[%s6218_s15 + $0x10] sm:$0xff]  }
 0x4de   : > { %v5780_v18 = vunpack.c.h.bf16 %v5986_v16 }
 0x4df   : > { %v5868_v15 = vpack.c.bf16 %v4777_v29, %v4776_v31  ;;  %v4382_v28 = vmax.f32 %v4334_v10, 0.0  ;;  %4232 = vmatmul.bf16.gmra.mxu3 %v3509_v34  ;;  %v9152_v29 = vld [vmem:[#allocation86_spill] sm:$0xff]  ;;  %v9153_v10 = vld [vmem:[#allocation57_spill] sm:$0xff] }
 0x4e0   : > { %v4517_v38 = vpop.f32.mrf.mxu1  ;;  %v3187_v43 = vadd.f32 %v9153_v10, %v9152_v29 }
 0x4e1   : > { %5869 = vst [vmem:[%s8309_s30] sm:$0xff] %v5868_v15   ;;  %v4420_v36 = vpack.c.bf16 %v4382_v28, %v4381_v27  ;;  %v4518_v9 = vadd.f32 %v8289_v23, %v4517_v38  ;;  %v5779_v15 = vunpack.c.l.bf16 %v5986_v16  ;;  %v4031_v28 = vadd.f32 %v8179_v37, %v3735_v57 }
 0x4e2   : > { %v3650_v32 = vpop.f32.mrf.mxu2  ;;  %v4193_v45 = vpop.f32.mrf.mxu3 }
 0x4e3   : > { %4556 = vmatmul.bf16.gmra.mxu1 %v4420_v36  ;;  %v4283_v21 = vadd.f32 %v4193_v45, %v4029_v5  ;;  %v4730_v20 = vadd.f32 %v5775_v46, %v4518_v9  ;;  %v3736_v22 = vadd.f32 %v3650_v32, %v3187_v43  ;;  %v9154_v5 = vld [vmem:[#allocation16_spill] sm:$0xff] }
 0x4e5   : > { %v4335_v24 = vadd.f32 %v8189_v3, %v4283_v21  ;;  %v4778_v13 = vmax.f32 %v4730_v20, 0.0  ;;  %v4032_v48 = vadd.f32 %v8196_v1, %v3736_v22  ;;  %v9155_v21 = vld [vmem:[#allocation65_spill] sm:$0xff] }
 0x4e7   : > { %3692 = vmatmul.bf16.gmra.mxu2 %v9144_v12  ;;  %v8326_v12 = vpop.f32.mrf.mxu0  ;;  %v4383_v7 = vmax.f32 %v4335_v24, 0.0 }
 0x4e8   : > { %v4519_v44 = vpop.f32.mrf.mxu1 }
 0x4e9   : > { %v4520_v0 = vadd.f32 %v8289_v23, %v4519_v44 }
 0x4ea   : > { %v3653_v54 = vpop.f32.mrf.mxu2  ;;  %v4195_v8 = vpop.f32.mrf.mxu3 }
 0x4eb   : > { %v4731_v17 = vadd.f32 %v5776_v14, %v4520_v0  ;;  %v4284_v11 = vadd.f32 %v4195_v8, %v4030_v53  ;;  %v3188_v14 = vadd.f32 %v9155_v21, %v9154_v5  ;;  %v9156_v53 = vld [vmem:[#allocation97_spill] sm:$0xff] }
 0x4ed   : > { %v4779_v6 = vmax.f32 %v4731_v17, 0.0  ;;  %v4336_v60 = vadd.f32 %v8189_v3, %v4284_v11  ;;  %v3737_v8 = vadd.f32 %v3653_v54, %v3188_v14  ;;  %v5987_v17 = vld [vmem:[%s6218_s15 + $0x18] sm:$0xff]  }
 0x4ee   : > { %v5784_v54 = vunpack.c.h.bf16 %v5987_v17 }
 0x4ef   : > { %v5873_v4 = vpack.c.bf16 %v4779_v6, %v4778_v13  ;;  %v4384_v63 = vmax.f32 %v4336_v60, 0.0  ;;  %4237 = vmatmul.bf16.gmra.mxu3 %v9151_v56  ;;  %v8337_v61 = vpop.f32.mrf.mxu0  ;;  %v9157_v60 = vld [vmem:[#allocation83_spill] sm:$0xff] }
 0x4f0   : > { %v4522_v19 = vpop.f32.mrf.mxu1  ;;  %v3189_v33 = vadd.f32 %v9158_v52, %v9157_v60 }
 0x4f1   : > { %6008 = vst [vmem:[%s8309_s30 + $0x8] sm:$0xff] %v5873_v4   ;;  %v4421_v49 = vpack.c.bf16 %v4384_v63, %v4383_v7  ;;  %v4523_v27 = vadd.f32 %v8289_v23, %v4522_v19  ;;  %v5783_v4 = vunpack.c.l.bf16 %v5987_v17  ;;  %v4033_v63 = vadd.f32 %v8284_v26, %v3737_v8 }
 0x4f2   : > { %v3655_v41 = vpop.f32.mrf.mxu2  ;;  %v4198_v31 = vpop.f32.mrf.mxu3 }
 0x4f3   : > { %4561 = vmatmul.bf16.gmra.mxu1 %v4421_v49  ;;  %v4285_v38 = vadd.f32 %v4198_v31, %v4031_v28  ;;  %v4732_v30 = vadd.f32 %v5779_v15, %v4523_v27  ;;  %v3738_v35 = vadd.f32 %v3655_v41, %v3189_v33  ;;  %v9159_v28 = vld [vmem:[#allocation117_spill] sm:$0xff] }
 0x4f5   : > { %v4337_v32 = vadd.f32 %v8189_v3, %v4285_v38  ;;  %v4780_v37 = vmax.f32 %v4732_v30, 0.0  ;;  %v4034_v31 = vadd.f32 %v8300_v42, %v3738_v35  ;;  %v9160_v38 = vld [vmem:[#allocation81_spill] sm:$0xff] }
 0x4f7   : > { %3697 = vmatmul.bf16.gmra.mxu2 %v3509_v34  ;;  %v4385_v44 = vmax.f32 %v4337_v32, 0.0  ;;  %v8348_v6 = vpop.f32.mrf.mxu0 }
 0x4f8   : > { %v4524_v36 = vpop.f32.mrf.mxu1 }
 0x4f9   : > { %v4525_v45 = vadd.f32 %v8289_v23, %v4524_v36 }
 0x4fa   : > { %v3658_v55 = vpop.f32.mrf.mxu2  ;;  %v4200_v40 = vpop.f32.mrf.mxu3 }
 0x4fb   : > { %v4733_v25 = vadd.f32 %v5780_v18, %v4525_v45  ;;  %v4286_v9 = vadd.f32 %v4200_v40, %v4032_v48  ;;  %v3190_v18 = vadd.f32 %v9160_v38, %v9159_v28  ;;  %v9161_v45 = vpack.c.b16 %v9109_v39, %v9101_v2 }
 0x4fd   : > { %v4781_v46 = vmax.f32 %v4733_v25, 0.0  ;;  %v4338_v34 = vadd.f32 %v8189_v3, %v4286_v9  ;;  %v3739_v40 = vadd.f32 %v3658_v55, %v3190_v18  ;;  %v5988_v25 = vld [vmem:[%s6218_s15 + $0x20] sm:$0xff]  }
 0x4fe   : > { %v5788_v39 = vunpack.c.h.bf16 %v5988_v25 }
 0x4ff   : > { %v5878_v20 = vpack.c.bf16 %v4781_v46, %v4780_v37  ;;  %v4386_v0 = vmax.f32 %v4338_v34, 0.0  ;;  %4242 = vmatmul.bf16.gmra.mxu3 %v9156_v53  ;;  %v8358_v27 = vpop.f32.mrf.mxu0  ;;  %v9162_v46 = vld [vmem:[#allocation53_spill] sm:$0xff] }
 0x500   : > { %v4527_v1 = vpop.f32.mrf.mxu1  ;;  %v9163_v34 = vld [vmem:[#allocation85_spill] sm:$0xff] }
 0x501   : > { %6009 = vst [vmem:[%s8309_s30 + $0x10] sm:$0xff] %v5878_v20   ;;  %v4422_v24 = vpack.c.bf16 %v4386_v0, %v4385_v44  ;;  %v4528_v7 = vadd.f32 %v8289_v23, %v4527_v1  ;;  %v3191_v5 = vadd.f32 %v9163_v34, %v9162_v46  ;;  %v5787_v44 = vunpack.c.l.bf16 %v5988_v25 }
 0x502   : > { %v3660_v11 = vpop.f32.mrf.mxu2  ;;  %v4203_v13 = vpop.f32.mrf.mxu3  ;;  %v4035_v20 = vadd.f32 %v8317_v58, %v3739_v40 }
 0x503   : > { %4566 = vmatmul.bf16.gmra.mxu1 %v4422_v24  ;;  %v4287_v19 = vadd.f32 %v4203_v13, %v4033_v63  ;;  %v4734_v49 = vadd.f32 %v5783_v4, %v4528_v7  ;;  %v3740_v21 = vadd.f32 %v3660_v11, %v3191_v5  ;;  %v9164_v7 = vld [vmem:[#allocation23_spill] sm:$0xff]  ;;  %v9165_v4 = vld [vmem:[#allocation98_spill] sm:$0xff] }
 0x504   : > { %v3192_v63 = vadd.f32 %v9165_v4, %v9164_v7 }
 0x505   : > { %v4339_v41 = vadd.f32 %v8189_v3, %v4287_v19  ;;  %v4782_v26 = vmax.f32 %v4734_v49, 0.0  ;;  %v4036_v24 = vadd.f32 %v8326_v12, %v3740_v21  ;;  %v9168_v21 = vld [vmem:[#allocation17_spill] sm:$0xff] }
 0x507   : > { %3702 = vmatmul.bf16.gmra.mxu2 %v9151_v56  ;;  %v4387_v36 = vmax.f32 %v4339_v41, 0.0  ;;  %v8372_v0 = vpop.f32.mrf.mxu0 }
 0x508   : > { %v4529_v57 = vpop.f32.mrf.mxu1 }
 0x509   : > { %v4530_v16 = vadd.f32 %v8289_v23, %v4529_v57 }
 0x50a   : > { %v3663_v29 = vpop.f32.mrf.mxu2  ;;  %v4205_v10 = vpop.f32.mrf.mxu3 }
 0x50b   : > { %v4735_v43 = vadd.f32 %v5784_v54, %v4530_v16  ;;  %v4288_v22 = vadd.f32 %v4205_v10, %v4034_v31  ;;  %v3741_v16 = vadd.f32 %v3663_v29, %v3192_v63  ;;  %v5989_v10 = vld [vmem:[%s6218_s15 + $0x28] sm:$0xff]  }
 0x50c   : > { %v5792_v38 = vunpack.c.h.bf16 %v5989_v10 }
 0x50d   : > { %v4783_v15 = vmax.f32 %v4735_v43, 0.0  ;;  %v4340_v56 = vadd.f32 %v8189_v3, %v4288_v22  ;;  %v9166_v22 = vld [vmem:[#allocation18_spill] sm:$0xff] }
 0x50f   : > { %v5883_v30 = vpack.c.bf16 %v4783_v15, %v4782_v26  ;;  %v4388_v42 = vmax.f32 %v4340_v56, 0.0  ;;  %4247 = vmatmul.bf16.gmra.mxu3 %v9161_v45  ;;  %v8383_v49 = vpop.f32.mrf.mxu0  ;;  %v3193_v26 = vadd.f32 %v9166_v22, %v7981_v47  ;;  %v5791_v15 = vunpack.c.l.bf16 %v5989_v10  ;;  %v9171_v10 = vld [vmem:[#allocation25_spill] sm:$0xff] }
 0x510   : > { %v4532_v48 = vpop.f32.mrf.mxu1  ;;  %v4037_v56 = vadd.f32 %v8337_v61, %v3741_v16 }
 0x511   : > { %6010 = vst [vmem:[%s8309_s30 + $0x18] sm:$0xff] %v5883_v30   ;;  %v4423_v32 = vpack.c.bf16 %v4388_v42, %v4387_v36  ;;  %v4533_v14 = vadd.f32 %v8289_v23, %v4532_v48 }
 0x512   : > { %v3665_v9 = vpop.f32.mrf.mxu2  ;;  %v4208_v37 = vpop.f32.mrf.mxu3 }
 0x513   : > { %4571 = vmatmul.bf16.gmra.mxu1 %v4423_v32  ;;  %v4289_v2 = vadd.f32 %v4208_v37, %v4035_v20  ;;  %v4736_v1 = vadd.f32 %v5787_v44, %v4533_v14  ;;  %v9167_v37 = vld [vmem:[#allocation102_spill] sm:$0xff] }
 0x514   : > { %v3194_v46 = vadd.f32 %v9167_v37, %v7992_v59 }
 0x515   : > { %v4341_v11 = vadd.f32 %v8189_v3, %v4289_v2  ;;  %v4784_v52 = vmax.f32 %v4736_v1, 0.0  ;;  %v5990_v2 = vld [vmem:[%s6218_s15 + $0x30] sm:$0xff]  }
 0x516   : > { %v9169_v1 = vld [vmem:[#allocation113_spill] sm:$0xff] }
 0x517   : > { %3707 = vmatmul.bf16.gmra.mxu2 %v9156_v53  ;;  %v4081_v53 = vpack.c.b16 %v7962_v50, %v8184_v62  ;;  %v4389_v19 = vmax.f32 %v4341_v11, 0.0  ;;  %v3742_v50 = vadd.f32 %v3665_v9, %v3193_v26  ;;  %v8393_v48 = vpop.f32.mrf.mxu0 }
 0x518   : > { %v4534_v55 = vpop.f32.mrf.mxu1 }
 0x519   : > { %v4535_v8 = vadd.f32 %v8289_v23, %v4534_v55  ;;  %v4038_v30 = vadd.f32 %v8348_v6, %v3742_v50 }
 0x51a   : > { %v3668_v17 = vpop.f32.mrf.mxu2  ;;  %v4210_v13 = vpop.f32.mrf.mxu3 }
 0x51b   : > { %v4737_v60 = vadd.f32 %v5788_v39, %v4535_v8  ;;  %v4290_v58 = vadd.f32 %v4210_v13, %v4036_v24  ;;  %v3743_v44 = vadd.f32 %v3668_v17, %v3194_v46  ;;  %v9170_v8 = vld [vmem:[#allocation109_spill] sm:$0xff] }
 0x51c   : > { %v3195_v24 = vadd.f32 %v9170_v8, %v9169_v1 }
 0x51d   : > { %v4785_v33 = vmax.f32 %v4737_v60, 0.0  ;;  %v4342_v35 = vadd.f32 %v8189_v3, %v4290_v58  ;;  %v5795_v60 = vunpack.c.l.bf16 %v5990_v2  ;;  %v4039_v58 = vadd.f32 %v8358_v27, %v3743_v44 }
 0x51f   : > { %v5888_v12 = vpack.c.bf16 %v4785_v33, %v4784_v52  ;;  %v4390_v54 = vmax.f32 %v4342_v35, 0.0  ;;  %4252 = vmatmul.bf16.gmra.mxu3 %v4081_v53  ;;  %v8404_v13 = vpop.f32.mrf.mxu0  ;;  %v5796_v33 = vunpack.c.h.bf16 %v5990_v2  ;;  %v9175_v2 = vld [vmem:[#allocation27_spill] sm:$0xff] }
 0x520   : > { %v4537_v57 = vpop.f32.mrf.mxu1 }
 0x521   : > { %6011 = vst [vmem:[%s8309_s30 + $0x20] sm:$0xff] %v5888_v12   ;;  %v4424_v31 = vpack.c.bf16 %v4390_v54, %v4389_v19  ;;  %v4538_v62 = vadd.f32 %v8289_v23, %v4537_v57 }
 0x522   : > { %v3670_v41 = vpop.f32.mrf.mxu2  ;;  %v4213_v43 = vpop.f32.mrf.mxu3 }
 0x523   : > { %4576 = vmatmul.bf16.gmra.mxu1 %v4424_v31  ;;  %v4291_v28 = vadd.f32 %v4213_v43, %v4037_v56  ;;  %v4738_v36 = vadd.f32 %v5791_v15, %v4538_v62  ;;  %v3744_v11 = vadd.f32 %v3670_v41, %v3195_v24  ;;  %v9172_v41 = vld [vmem:[#allocation84_spill] sm:$0xff]  ;;  %v5991_v56 = vld [vmem:[%s6218_s15 + $0x38] sm:$0xff]  }
 0x524   : > { %v3196_v43 = vadd.f32 %v9172_v41, %v9171_v10 }
 0x525   : > { %v4343_v47 = vadd.f32 %v8189_v3, %v4291_v28  ;;  %v4786_v25 = vmax.f32 %v4738_v36, 0.0  ;;  %v4040_v7 = vadd.f32 %v8372_v0, %v3744_v11  ;;  %v9174_v36 = vld [vmem:[#allocation110_spill] sm:$0xff] }
 0x527   : > { %v4391_v34 = vmax.f32 %v4343_v47, 0.0  ;;  %v3976_v31 = vpop.f32.mrf.mxu0  ;;  %v5799_v47 = vunpack.c.l.bf16 %v5991_v56 }
 0x528   : > { %v4539_v18 = vpop.f32.mrf.mxu1 }
 0x529   : > { %v4540_v29 = vadd.f32 %v8289_v23, %v4539_v18  ;;  %v9173_v18 = vld [vmem:[#allocation119_spill] sm:$0xff] }
 0x52a   : > { %v3673_v42 = vpop.f32.mrf.mxu2  ;;  %v4215_v45 = vpop.f32.mrf.mxu3 }
 0x52b   : > { %v4739_v40 = vadd.f32 %v5792_v38, %v4540_v29  ;;  %v4292_v32 = vadd.f32 %v4215_v45, %v4038_v30  ;;  %v3745_v62 = vadd.f32 %v3673_v42, %v3196_v43  ;;  %v3197_v29 = vadd.f32 %v9174_v36, %v9173_v18 }
 0x52d   : > { %v4787_v61 = vmax.f32 %v4739_v40, 0.0  ;;  %v4344_v9 = vadd.f32 %v8189_v3, %v4292_v32  ;;  %v4041_v40 = vadd.f32 %v8383_v49, %v3745_v62 }
 0x52f   : > { %v5893_v5 = vpack.c.bf16 %v4787_v61, %v4786_v25  ;;  %v4392_v6 = vmax.f32 %v4344_v9, 0.0  ;;  %4257 = vmatmul.bf16.gmra.mxu3 %v9168_v21  ;;  %v5800_v25 = vunpack.c.h.bf16 %v5991_v56  ;;  %v3979_v9 = vpop.f32.mrf.mxu0  ;;  %v9179_v56 = vld [vmem:[#allocation28_spill] sm:$0xff] }
 0x530   : > { %v4542_v14 = vpop.f32.mrf.mxu1 }
 0x531   : > { %6012 = vst [vmem:[%s8309_s30 + $0x28] sm:$0xff] %v5893_v5   ;;  %v4425_v20 = vpack.c.bf16 %v4392_v6, %v4391_v34  ;;  %v4543_v59 = vadd.f32 %v8289_v23, %v4542_v14 }
 0x532   : > { %v3675_v39 = vpop.f32.mrf.mxu2  ;;  %v4218_v55 = vpop.f32.mrf.mxu3 }
 0x533   : > { %4581 = vmatmul.bf16.gmra.mxu1 %v4425_v20  ;;  %v4293_v52 = vadd.f32 %v4218_v55, %v4039_v58  ;;  %v4740_v35 = vadd.f32 %v5795_v60, %v4543_v59  ;;  %v3746_v30 = vadd.f32 %v3675_v39, %v3197_v29  ;;  %v9176_v39 = vld [vmem:[#allocation121_spill] sm:$0xff]  ;;  %v5992_v60 = vld [vmem:[%s6218_s15 + $0x40] sm:$0xff]  }
 0x534   : > { %v3198_v55 = vadd.f32 %v9176_v39, %v9175_v2 }
 0x535   : > { %v4345_v19 = vadd.f32 %v8189_v3, %v4293_v52  ;;  %v4788_v57 = vmax.f32 %v4740_v35, 0.0  ;;  %v4042_v46 = vadd.f32 %v8393_v48, %v3746_v30 }
 0x537   : > { %v4393_v22 = vmax.f32 %v4345_v19, 0.0  ;;  %v5803_v19 = vunpack.c.l.bf16 %v5992_v60 }
 0x538   : > { %v4544_v17 = vpop.f32.mrf.mxu1 }
 0x539   : > { %v4545_v53 = vadd.f32 %v8289_v23, %v4544_v17  ;;  %v9178_v17 = vld [vmem:[#allocation24_spill] sm:$0xff] }
 0x53a   : > { %v3678_v4 = vpop.f32.mrf.mxu2  ;;  %v4220_v63 = vpop.f32.mrf.mxu3 }
 0x53b   : > { %v4741_v12 = vadd.f32 %v5796_v33, %v4545_v53  ;;  %v4294_v54 = vadd.f32 %v4220_v63, %v4040_v7  ;;  %v3747_v59 = vadd.f32 %v3678_v4, %v3198_v55  ;;  %v9177_v33 = vld [vmem:[#allocation111_spill] sm:$0xff]  ;;  %v3981_v53 = vpop.f32.mrf.mxu0 }
 0x53c   : > { %v3199_v35 = vadd.f32 %v9178_v17, %v9177_v33 }
 0x53d   : > { %v4789_v16 = vmax.f32 %v4741_v12, 0.0  ;;  %v4346_v27 = vadd.f32 %v8189_v3, %v4294_v54  ;;  %v4043_v12 = vadd.f32 %v8404_v13, %v3747_v59 }
 0x53f   : > { %v5898_v26 = vpack.c.bf16 %v4789_v16, %v4788_v57  ;;  %v4394_v50 = vmax.f32 %v4346_v27, 0.0  ;;  %v5804_v57 = vunpack.c.h.bf16 %v5992_v60  ;;  %v9183_v60 = vld [vmem:[#allocation127_spill] sm:$0xff] }
 0x540   : > { %v4547_v0 = vpop.f32.mrf.mxu1 }
 0x541   : > { %6013 = vst [vmem:[%s8309_s30 + $0x30] sm:$0xff] %v5898_v26   ;;  %v4426_v15 = vpack.c.bf16 %v4394_v50, %v4393_v22  ;;  %v4548_v45 = vadd.f32 %v8289_v23, %v4547_v0 }
 0x542   : > { %v3680_v28 = vpop.f32.mrf.mxu2  ;;  %v4223_v38 = vpop.f32.mrf.mxu3 }
 0x543   : > { %4586 = vmatmul.bf16.gmra.mxu1 %v4426_v15  ;;  %v4295_v32 = vadd.f32 %v4223_v38, %v4041_v40  ;;  %v4742_v42 = vadd.f32 %v5799_v47, %v4548_v45  ;;  %v3748_v7 = vadd.f32 %v3680_v28, %v3199_v35  ;;  %v3984_v13 = vpop.f32.mrf.mxu0  ;;  %v9180_v28 = vld [vmem:[#allocation120_spill] sm:$0xff] }
 0x544   : > { %v3200_v38 = vadd.f32 %v9180_v28, %v9179_v56  ;;  %v5993_v47 = vld [vmem:[%s6218_s15 + $0x48] sm:$0xff]  }
 0x545   : > { %v4347_v6 = vadd.f32 %v8189_v3, %v4295_v32  ;;  %v4790_v44 = vmax.f32 %v4742_v42, 0.0  ;;  %v4044_v10 = vadd.f32 %v3976_v31, %v3748_v7 }
 0x547   : > { %v4395_v1 = vmax.f32 %v4347_v6, 0.0 }
 0x548   : > { %v4549_v61 = vpop.f32.mrf.mxu1 }
 0x549   : > { %v4550_v37 = vadd.f32 %v8289_v23, %v4549_v61  ;;  %v9182_v61 = vld [vmem:[#allocation29_spill] sm:$0xff] }
 0x54a   : > { %v3683_v34 = vpop.f32.mrf.mxu2  ;;  %v4225_v5 = vpop.f32.mrf.mxu3 }
 0x54b   : > { %v4743_v21 = vadd.f32 %v5800_v25, %v4550_v37  ;;  %v4296_v14 = vadd.f32 %v4225_v5, %v4042_v46  ;;  %v3749_v30 = vadd.f32 %v3683_v34, %v3200_v38  ;;  %v9181_v25 = vld [vmem:[#allocation112_spill] sm:$0xff]  ;;  %v5807_v5 = vunpack.c.l.bf16 %v5993_v47 }
 0x54c   : > { %v3201_v42 = vadd.f32 %v9182_v61, %v9181_v25 }
 0x54d   : > { %v4791_v20 = vmax.f32 %v4743_v21, 0.0  ;;  %v4348_v49 = vadd.f32 %v8189_v3, %v4296_v14  ;;  %v4045_v6 = vadd.f32 %v3979_v9, %v3749_v30  ;;  %v5808_v14 = vunpack.c.h.bf16 %v5993_v47  ;;  %v8447_v9 = vld [vmem:[%s8556_s7] ss:$0 sm:$0xff]  ;;  %v9187_v30 = vld [vmem:[#allocation129_spill] sm:$0xff] }
 0x54f   : > { %v5903_v8 = vpack.c.bf16 %v4791_v20, %v4790_v44  ;;  %v4396_v24 = vmax.f32 %v4348_v49, 0.0  ;;  %v3986_v44 = vpop.f32.mrf.mxu0 }
 0x550   : > { %v4552_v11 = vpop.f32.mrf.mxu1 }
 0x551   : > { %6014 = vst [vmem:[%s8309_s30 + $0x38] sm:$0xff] %v5903_v8   ;;  %v4427_v48 = vpack.c.bf16 %v4396_v24, %v4395_v1  ;;  %v4553_v63 = vadd.f32 %v8289_v23, %v4552_v11 }
 0x552   : > { %v3685_v58 = vpop.f32.mrf.mxu2  ;;  %v4228_v52 = vpop.f32.mrf.mxu3 }
 0x553   : > { %4591 = vmatmul.bf16.gmra.mxu1 %v4427_v48  ;;  %v4297_v54 = vadd.f32 %v4228_v52, %v4043_v12  ;;  %v4744_v4 = vadd.f32 %v5803_v19, %v4553_v63  ;;  %v3750_v37 = vadd.f32 %v3685_v58, %v3201_v42  ;;  %v9184_v58 = vld [vmem:[#allocation36_spill] sm:$0xff]  ;;  %v5994_v19 = vld [vmem:[%s6218_s15 + $0x50] sm:$0xff]  }
 0x554   : > { %v3202_v52 = vadd.f32 %v9184_v58, %v9183_v60 }
 0x555   : > { %v4349_v22 = vadd.f32 %v8189_v3, %v4297_v54  ;;  %v4792_v0 = vmax.f32 %v4744_v4, 0.0  ;;  %v4046_v2 = vadd.f32 %v3981_v53, %v3750_v37  ;;  %v9185_v54 = vld [vmem:[#allocation37_spill] sm:$0xff] }
 0x557   : > { %v4397_v18 = vmax.f32 %v4349_v22, 0.0  ;;  %v3989_v63 = vpop.f32.mrf.mxu0 }
 0x558   : > { %v4554_v16 = vpop.f32.mrf.mxu1 }
 0x559   : > { %v4555_v27 = vadd.f32 %v8289_v23, %v4554_v16 }
 0x55a   : > { %v3688_v41 = vpop.f32.mrf.mxu2  ;;  %v4230_v43 = vpop.f32.mrf.mxu3 }
 0x55b   : > { %v4745_v26 = vadd.f32 %v5804_v57, %v4555_v27  ;;  %v4298_v50 = vadd.f32 %v4230_v43, %v4044_v10  ;;  %v3751_v53 = vadd.f32 %v3688_v41, %v3202_v52  ;;  %v9186_v57 = vld [vmem:[#allocation82_spill] sm:$0xff]  ;;  %v5811_v10 = vunpack.c.l.bf16 %v5994_v19 }
 0x55c   : > { %v3203_v16 = vadd.f32 %v9186_v57, %v9185_v54 }
 0x55d   : > { %v4793_v62 = vmax.f32 %v4745_v26, 0.0  ;;  %v4350_v15 = vadd.f32 %v8189_v3, %v4298_v50  ;;  %v4047_v43 = vadd.f32 %v3984_v13, %v3751_v53  ;;  %v5812_v50 = vunpack.c.h.bf16 %v5994_v19  ;;  %v9191_v53 = vld [vmem:[#allocation130_spill] sm:$0xff] }
 0x55f   : > { %v5908_v36 = vpack.c.bf16 %v4793_v62, %v4792_v0  ;;  %v4398_v29 = vmax.f32 %v4350_v15, 0.0 }
 0x560   : > { %v4557_v31 = vpop.f32.mrf.mxu1 }
 0x561   : > { %6015 = vst [vmem:[%s8309_s30 + $0x40] sm:$0xff] %v5908_v36   ;;  %v4428_v45 = vpack.c.bf16 %v4398_v29, %v4397_v18  ;;  %v4558_v46 = vadd.f32 %v8289_v23, %v4557_v31  ;;  %v3991_v36 = vpop.f32.mrf.mxu0 }
 0x562   : > { %v3690_v40 = vpop.f32.mrf.mxu2  ;;  %v4233_v32 = vpop.f32.mrf.mxu3 }
 0x563   : > { %4596 = vmatmul.bf16.gmra.mxu1 %v4428_v45  ;;  %v4299_v21 = vadd.f32 %v4233_v32, %v4045_v6  ;;  %v4746_v49 = vadd.f32 %v5807_v5, %v4558_v46  ;;  %v3752_v4 = vadd.f32 %v3690_v40, %v3203_v16  ;;  %v9188_v45 = vld [vmem:[#allocation38_spill] sm:$0xff] }
 0x564   : > { %v3204_v47 = vadd.f32 %v9188_v45, %v9187_v30  ;;  %v5995_v5 = vld [vmem:[%s6218_s15 + $0x58] sm:$0xff]  }
 0x565   : > { %v4351_v55 = vadd.f32 %v8189_v3, %v4299_v21  ;;  %v4794_v11 = vmax.f32 %v4746_v49, 0.0  ;;  %v4048_v15 = vadd.f32 %v3986_v44, %v3752_v4  ;;  %v9189_v21 = vld [vmem:[#allocation48_spill] sm:$0xff] }
 0x567   : > { %v4399_v33 = vmax.f32 %v4351_v55, 0.0 }
 0x568   : > { %v4559_v20 = vpop.f32.mrf.mxu1 }
 0x569   : > { %v4560_v34 = vadd.f32 %v8289_v23, %v4559_v20 }
 0x56a   : > { %v4235_v39 = vpop.f32.mrf.mxu3  ;;  %v3693_v24 = vpop.f32.mrf.mxu2 }
 0x56b   : > { %v4747_v1 = vadd.f32 %v5808_v14, %v4560_v34  ;;  %v4300_v8 = vadd.f32 %v4235_v39, %v4046_v2  ;;  %v3753_v37 = vadd.f32 %v3693_v24, %v3204_v47  ;;  %v9190_v14 = vld [vmem:[#allocation128_spill] sm:$0xff]  ;;  %v5815_v34 = vunpack.c.l.bf16 %v5995_v5  ;;  %v3994_v39 = vpop.f32.mrf.mxu0 }
 0x56c   : > { %v3205_v44 = vadd.f32 %v9190_v14, %v9189_v21  ;;  %v9195_v21 = vld [vmem:[#allocation151_spill] sm:$0xff] }
 0x56d   : > { %v4795_v59 = vmax.f32 %v4747_v1, 0.0  ;;  %v4352_v48 = vadd.f32 %v8447_v9, %v4300_v8  ;;  %v4049_v2 = vadd.f32 %v3989_v63, %v3753_v37  ;;  %v5816_v1 = vunpack.c.h.bf16 %v5995_v5 }
 0x56f   : > { %v5913_v17 = vpack.c.bf16 %v4795_v59, %v4794_v11  ;;  %v4400_v35 = vmax.f32 %v4352_v48, 0.0 }
 0x570   : > { %v4562_v3 = vpop.f32.mrf.mxu1 }
 0x571   : > { %6016 = vst [vmem:[%s8309_s30 + $0x48] sm:$0xff] %v5913_v17   ;;  %v4429_v7 = vpack.c.bf16 %v4400_v35, %v4399_v33  ;;  %v4563_v27 = vadd.f32 %v8289_v23, %v4562_v3 }
 0x572   : > { %v4238_v12 = vpop.f32.mrf.mxu3  ;;  %v3695_v22 = vpop.f32.mrf.mxu2 }
 0x573   : > { %4601 = vmatmul.bf16.gmra.mxu1 %v4429_v7  ;;  %v4301_v26 = vadd.f32 %v4238_v12, %v4047_v43  ;;  %v4748_v62 = vadd.f32 %v5811_v10, %v4563_v27  ;;  %v3754_v20 = vadd.f32 %v3695_v22, %v3205_v44  ;;  %v9192_v7 = vld [vmem:[#allocation45_spill] sm:$0xff]  ;;  %v3996_v57 = vpop.f32.mrf.mxu0  ;;  %v5996_v10 = vld [vmem:[%s6218_s15 + $0x60] sm:$0xff]   ;;  %v9193_v22 = vld [vmem:[#allocation100_spill] sm:$0xff] }
 0x574   : > { %v3206_v63 = vadd.f32 %v9192_v7, %v9191_v53 }
 0x575   : > { %v4353_v28 = vadd.f32 %v8447_v9, %v4301_v26  ;;  %v4796_v29 = vmax.f32 %v4748_v62, 0.0  ;;  %v4050_v59 = vadd.f32 %v3991_v36, %v3754_v20  ;;  %v9194_v26 = vld [vmem:[#allocation101_spill] sm:$0xff]  ;;  %v5997_v20 = vld [vmem:[%s6218_s15 + $0x68] sm:$0xff]  }
 0x577   : > { %v4401_v40 = vmax.f32 %v4353_v28, 0.0 }
 0x578   : > { %v4564_v0 = vpop.f32.mrf.mxu1 }
 0x579   : > { %v4565_v41 = vadd.f32 %v8289_v23, %v4564_v0 }
 0x57a   : > { %v4240_v56 = vpop.f32.mrf.mxu3  ;;  %v3698_v61 = vpop.f32.mrf.mxu2 }
 0x57b   : > { %v4749_v38 = vadd.f32 %v5812_v50, %v4565_v41  ;;  %v4302_v18 = vadd.f32 %v4240_v56, %v4048_v15  ;;  %v3755_v4 = vadd.f32 %v3698_v61, %v3206_v63  ;;  %v3207_v50 = vadd.f32 %v9194_v26, %v9193_v22 }
 0x57c   : > { %v5819_v15 = vunpack.c.l.bf16 %v5996_v10 }
 0x57d   : > { %v4797_v31 = vmax.f32 %v4749_v38, 0.0  ;;  %v4354_v13 = vadd.f32 %v8447_v9, %v4302_v18  ;;  %v4051_v56 = vadd.f32 %v3994_v39, %v3755_v4  ;;  %v5820_v38 = vunpack.c.h.bf16 %v5996_v10  ;;  %v9198_v10 = vld [vmem:[#allocation46_spill] sm:$0xff] }
 0x57f   : > { %v5918_v32 = vpack.c.bf16 %v4797_v31, %v4796_v29  ;;  %v4402_v25 = vmax.f32 %v4354_v13, 0.0  ;;  %v3999_v13 = vpop.f32.mrf.mxu0 }
 0x580   : > { %v4567_v42 = vpop.f32.mrf.mxu1 }
 0x581   : > { %6017 = vst [vmem:[%s8309_s30 + $0x50] sm:$0xff] %v5918_v32   ;;  %v4430_v46 = vpack.c.bf16 %v4402_v25, %v4401_v40  ;;  %v4568_v49 = vadd.f32 %v8289_v23, %v4567_v42 }
 0x582   : > { %v4243_v6 = vpop.f32.mrf.mxu3  ;;  %v3700_v48 = vpop.f32.mrf.mxu2 }
 0x583   : > { %4606 = vmatmul.bf16.gmra.mxu1 %v4430_v46  ;;  %v4303_v55 = vadd.f32 %v4243_v6, %v4049_v2  ;;  %v4750_v11 = vadd.f32 %v5815_v34, %v4568_v49  ;;  %v3756_v62 = vadd.f32 %v3700_v48, %v3207_v50  ;;  %v9196_v34 = vld [vmem:[#allocation59_spill] sm:$0xff]  ;;  %v5824_v48 = vunpack.c.h.bf16 %v5997_v20  ;;  %v5998_v50 = vld [vmem:[%s6218_s15 + $0x70] sm:$0xff]  }
 0x584   : > { %v9197_v2 = vld [vmem:[#allocation131_spill] sm:$0xff] }
 0x585   : > { %v4355_v58 = vadd.f32 %v8447_v9, %v4303_v55  ;;  %v4798_v17 = vmax.f32 %v4750_v11, 0.0  ;;  %v4052_v31 = vadd.f32 %v3996_v57, %v3756_v62  ;;  %v3209_v39 = vadd.f32 %v9197_v2, %v9196_v34  ;;  %v9199_v62 = vld [vmem:[#allocation158_spill] sm:$0xff] }
 0x586   : > { %v5823_v11 = vunpack.c.l.bf16 %v5997_v20 }
 0x587   : > { %v4403_v19 = vmax.f32 %v4355_v58, 0.0  ;;  %v4001_v55 = vpop.f32.mrf.mxu0 }
 0x588   : > { %v4569_v8 = vpop.f32.mrf.mxu1 }
 0x589   : > { %v4570_v24 = vadd.f32 %v8289_v23, %v4569_v8 }
 0x58a   : > { %v4245_v60 = vpop.f32.mrf.mxu3  ;;  %v3703_v0 = vpop.f32.mrf.mxu2 }
 0x58b   : > { %v4751_v52 = vadd.f32 %v5816_v1, %v4570_v24  ;;  %v4304_v33 = vadd.f32 %v4245_v60, %v4050_v59  ;;  %v3757_v14 = vadd.f32 %v3703_v0, %v9195_v21 }
 0x58d   : > { %v4799_v35 = vmax.f32 %v4751_v52, 0.0  ;;  %v4356_v3 = vadd.f32 %v8447_v9, %v4304_v33  ;;  %v4053_v24 = vadd.f32 %v3999_v13, %v3757_v14  ;;  %v5999_v14 = vld [vmem:[%s6218_s15 + $0x78] sm:$0xff]  }
 0x58e   : > { %v5831_v20 = vunpack.c.l.bf16 %v5999_v14 }
 0x58f   : > { %v5923_v12 = vpack.c.bf16 %v4799_v35, %v4798_v17  ;;  %v4404_v54 = vmax.f32 %v4356_v3, 0.0 }
 0x590   : > { %v4572_v16 = vpop.f32.mrf.mxu1 }
 0x591   : > { %6018 = vst [vmem:[%s8309_s30 + $0x58] sm:$0xff] %v5923_v12   ;;  %v4431_v27 = vpack.c.bf16 %v4404_v54, %v4403_v19  ;;  %v4573_v41 = vadd.f32 %v8289_v23, %v4572_v16  ;;  %v4004_v54 = vpop.f32.mrf.mxu0 }
 0x592   : > { %v4248_v43 = vpop.f32.mrf.mxu3  ;;  %v3705_v42 = vpop.f32.mrf.mxu2 }
 0x593   : > { %4611 = vmatmul.bf16.gmra.mxu1 %v4431_v27  ;;  %v4305_v28 = vadd.f32 %v4248_v43, %v4051_v56  ;;  %v4752_v36 = vadd.f32 %v5819_v15, %v4573_v41  ;;  %v3758_v1 = vadd.f32 %v3705_v42, %v3209_v39  ;;  %v3211_v41 = vadd.f32 %v8276_v51, %v9199_v62 }
 0x595   : > { %v4357_v45 = vadd.f32 %v8447_v9, %v4305_v28  ;;  %v4800_v32 = vmax.f32 %v4752_v36, 0.0  ;;  %v4054_v17 = vadd.f32 %v4001_v55, %v3758_v1  ;;  %v5827_v28 = vunpack.c.l.bf16 %v5998_v50 }
 0x596   : > { %v5828_v36 = vunpack.c.h.bf16 %v5998_v50  ;;  %v6002_v50 = vld [vmem:[%s6218_s15 + $0x90] sm:$0xff]  }
 0x597   : > { %v4405_v37 = vmax.f32 %v4357_v45, 0.0  ;;  %v5843_v62 = vunpack.c.l.bf16 %v6002_v50 }
 0x598   : > { %v4574_v18 = vpop.f32.mrf.mxu1 }
 0x599   : > { %v4575_v29 = vadd.f32 %v8289_v23, %v4574_v18 }
 0x59a   : > { %v4250_v30 = vpop.f32.mrf.mxu3  ;;  %v3708_v60 = vpop.f32.mrf.mxu2 }
 0x59b   : > { %v4753_v47 = vadd.f32 %v5820_v38, %v4575_v29  ;;  %v4306_v40 = vadd.f32 %v4250_v30, %v4052_v31  ;;  %v3759_v43 = vadd.f32 %v3708_v60, %v9198_v10  ;;  %v4006_v29 = vpop.f32.mrf.mxu0 }
 0x59d   : > { %v4801_v25 = vmax.f32 %v4753_v47, 0.0  ;;  %v4358_v61 = vadd.f32 %v8447_v9, %v4306_v40  ;;  %v4055_v38 = vadd.f32 %v4004_v54, %v3759_v43 }
 0x59f   : > { %v5928_v46 = vpack.c.bf16 %v4801_v25, %v4800_v32  ;;  %v4406_v5 = vmax.f32 %v4358_v61, 0.0 }
 0x5a0   : > { %v4577_v6 = vpop.f32.mrf.mxu1 }
 0x5a1   : > { %6019 = vst [vmem:[%s8309_s30 + $0x60] sm:$0xff] %v5928_v46   ;;  %v4432_v44 = vpack.c.bf16 %v4406_v5, %v4405_v37  ;;  %v4578_v8 = vadd.f32 %v8289_v23, %v4577_v6 }
 0x5a2   : > { %v4253_v49 = vpop.f32.mrf.mxu3  ;;  %v3710_v26 = vpop.f32.mrf.mxu2 }
 0x5a3   : > { %4616 = vmatmul.bf16.gmra.mxu1 %v4432_v44  ;;  %v4307_v59 = vadd.f32 %v4253_v49, %v4053_v24  ;;  %v4754_v52 = vadd.f32 %v5823_v11, %v4578_v8  ;;  %v3760_v15 = vadd.f32 %v3710_v26, %v3211_v41  ;;  %v5832_v49 = vunpack.c.h.bf16 %v5999_v14  ;;  %v6000_v24 = vld [vmem:[%s6218_s15 + $0x80] sm:$0xff]  }
 0x5a4   : > { %v5835_v60 = vunpack.c.l.bf16 %v6000_v24  ;;  %v5844_v41 = vunpack.c.h.bf16 %v6002_v50 }
 0x5a5   : > { %v4359_v3 = vadd.f32 %v8447_v9, %v4307_v59  ;;  %v4802_v63 = vmax.f32 %v4754_v52, 0.0  ;;  %v4056_v45 = vadd.f32 %v4006_v29, %v3760_v15  ;;  %v8507_v59 = vld [vmem:[%s8557_s8] ss:$0 sm:$0xff] }
 0x5a7   : > { %v4407_v57 = vmax.f32 %v4359_v3, 0.0 }
 0x5a8   : > { %v4579_v58 = vpop.f32.mrf.mxu1 }
 0x5a9   : > { %v4580_v33 = vadd.f32 %v8289_v23, %v4579_v58  ;;  %v5836_v58 = vunpack.c.h.bf16 %v6000_v24 }
 0x5aa   : > { %v4255_v35 = vpop.f32.mrf.mxu3 }
 0x5ab   : > { %v4755_v53 = vadd.f32 %v5824_v48, %v4580_v33  ;;  %v4308_v7 = vadd.f32 %v4255_v35, %v4054_v17 }
 0x5ad   : > { %v4803_v19 = vmax.f32 %v4755_v53, 0.0  ;;  %v4360_v12 = vadd.f32 %v8447_v9, %v4308_v7 }
 0x5af   : > { %v5933_v16 = vpack.c.bf16 %v4803_v19, %v4802_v63  ;;  %v4408_v4 = vmax.f32 %v4360_v12, 0.0  ;;  %v6001_v63 = vld [vmem:[%s6218_s15 + $0x88] sm:$0xff]  }
 0x5b0   : > { %v4582_v27 = vpop.f32.mrf.mxu1  ;;  %v5839_v12 = vunpack.c.l.bf16 %v6001_v63  ;;  %v5840_v54 = vunpack.c.h.bf16 %v6001_v63 }
 0x5b1   : > { %6020 = vst [vmem:[%s8309_s30 + $0x68] sm:$0xff] %v5933_v16   ;;  %v4433_v22 = vpack.c.bf16 %v4408_v4, %v4407_v57  ;;  %v4583_v56 = vadd.f32 %v8289_v23, %v4582_v27 }
 0x5b2   : > { %v4258_v0 = vpop.f32.mrf.mxu3 }
 0x5b3   : > { %4621 = vmatmul.bf16.gmra.mxu1 %v4433_v22  ;;  %v4309_v18 = vadd.f32 %v4258_v0, %v4055_v38  ;;  %v4756_v13 = vadd.f32 %v5827_v28, %v4583_v56 }
 0x5b5   : > { %v4361_v40 = vadd.f32 %v8447_v9, %v4309_v18  ;;  %v4804_v25 = vmax.f32 %v4756_v13, 0.0  ;;  %v6003_v13 = vld [vmem:[%s6218_s15 + $0x98] sm:$0xff]  }
 0x5b7   : > { %v4409_v37 = vmax.f32 %v4361_v40, 0.0 }
 0x5b8   : > { %v4584_v31 = vpop.f32.mrf.mxu1 }
 0x5b9   : > { %v4585_v30 = vadd.f32 %v8289_v23, %v4584_v31 }
 0x5ba   : > { %v4260_v47 = vpop.f32.mrf.mxu3 }
 0x5bb   : > { %v4757_v51 = vadd.f32 %v5828_v36, %v4585_v30  ;;  %v4310_v32 = vadd.f32 %v4260_v47, %v4056_v45  ;;  %v5847_v45 = vunpack.c.l.bf16 %v6003_v13  ;;  %v5848_v47 = vunpack.c.h.bf16 %v6003_v13 }
 0x5bd   : > { %v4805_v61 = vmax.f32 %v4757_v51, 0.0  ;;  %v4362_v42 = vadd.f32 %v8447_v9, %v4310_v32 }
 0x5bf   : > { %v5938_v46 = vpack.c.bf16 %v4805_v61, %v4804_v25  ;;  %v4410_v5 = vmax.f32 %v4362_v42, 0.0 }
 0x5c0   : > { %v4587_v6 = vpop.f32.mrf.mxu1 }
 0x5c1   : > { %6021 = vst [vmem:[%s8309_s30 + $0x70] sm:$0xff] %v5938_v46   ;;  %v4434_v21 = vpack.c.bf16 %v4410_v5, %v4409_v37  ;;  %v4588_v44 = vadd.f32 %v8289_v23, %v4587_v6  ;;  %v6004_v5 = vld [vmem:[%s6218_s15 + $0xa0] sm:$0xff]  }
 0x5c2   : > { %v5852_v14 = vunpack.c.h.bf16 %v6004_v5 }
 0x5c3   : > { %4626 = vmatmul.bf16.gmra.mxu1 %v4434_v21  ;;  %v4758_v2 = vadd.f32 %v5831_v20, %v4588_v44  ;;  %v5851_v21 = vunpack.c.l.bf16 %v6004_v5 }
 0x5c5   : > { %v4806_v9 = vmax.f32 %v4758_v2, 0.0 }
 0x5c8   : > { %v4589_v34 = vpop.f32.mrf.mxu1 }
 0x5c9   : > { %v4590_v39 = vadd.f32 %v8289_v23, %v4589_v34 }
 0x5cb   : > { %v4759_v55 = vadd.f32 %v5832_v49, %v4590_v39 }
 0x5cd   : > { %v4807_v1 = vmax.f32 %v4759_v55, 0.0 }
 0x5cf   : > { %v5943_v8 = vpack.c.bf16 %v4807_v1, %v4806_v9  ;;  %v6005_v1 = vld [vmem:[%s6218_s15 + $0xa8] sm:$0xff]  }
 0x5d0   : > { %v4592_v11 = vpop.f32.mrf.mxu1  ;;  %v5856_v24 = vunpack.c.h.bf16 %v6005_v1 }
 0x5d1   : > { %6022 = vst [vmem:[%s8309_s30 + $0x78] sm:$0xff] %v5943_v8   ;;  %v4593_v48 = vadd.f32 %v8507_v59, %v4592_v11  ;;  %v5855_v11 = vunpack.c.l.bf16 %v6005_v1 }
 0x5d3   : > { %v4760_v23 = vadd.f32 %v5835_v60, %v4593_v48 }
 0x5d5   : > { %v4808_v35 = vmax.f32 %v4760_v23, 0.0 }
 0x5d8   : > { %v4594_v52 = vpop.f32.mrf.mxu1 }
 0x5d9   : > { %v4595_v33 = vadd.f32 %v8507_v59, %v4594_v52 }
 0x5db   : > { %v4761_v17 = vadd.f32 %v5836_v58, %v4595_v33 }
 0x5dd   : > { %v4809_v3 = vmax.f32 %v4761_v17, 0.0 }
 0x5df   : > { %v5948_v53 = vpack.c.bf16 %v4809_v3, %v4808_v35  ;;  %v6006_v3 = vld [vmem:[%s6218_s15 + $0xb0] sm:$0xff]  }
 0x5e0   : > { %v4597_v7 = vpop.f32.mrf.mxu1  ;;  %v5860_v63 = vunpack.c.h.bf16 %v6006_v3 }
 0x5e1   : > { %6023 = vst [vmem:[%s8309_s30 + $0x80] sm:$0xff] %v5948_v53   ;;  %v4598_v19 = vadd.f32 %v8507_v59, %v4597_v7  ;;  %v5859_v7 = vunpack.c.l.bf16 %v6006_v3 }
 0x5e3   : > { %v4762_v16 = vadd.f32 %v5839_v12, %v4598_v19 }
 0x5e5   : > { %v4810_v10 = vmax.f32 %v4762_v16, 0.0 }
 0x5e8   : > { %v4599_v57 = vpop.f32.mrf.mxu1 }
 0x5e9   : > { %v4600_v4 = vadd.f32 %v8507_v59, %v4599_v57 }
 0x5eb   : > { %v4763_v27 = vadd.f32 %v5840_v54, %v4600_v4 }
 0x5ed   : > { %v4811_v43 = vmax.f32 %v4763_v27, 0.0 }
 0x5ef   : > { %v5953_v22 = vpack.c.bf16 %v4811_v43, %v4810_v10  ;;  %v6007_v43 = vld [vmem:[%s6218_s15 + $0xb8] sm:$0xff]  }
 0x5f0   : > { %v4602_v26 = vpop.f32.mrf.mxu1  ;;  %v5864_v50 = vunpack.c.h.bf16 %v6007_v43 }
 0x5f1   : > { %6024 = vst [vmem:[%s8309_s30 + $0x88] sm:$0xff] %v5953_v22   ;;  %v4603_v0 = vadd.f32 %v8507_v59, %v4602_v26  ;;  %v5863_v26 = vunpack.c.l.bf16 %v6007_v43 }
 0x5f3   : > { %v4764_v56 = vadd.f32 %v5843_v62, %v4603_v0 }
 0x5f5   : > { %v4812_v18 = vmax.f32 %v4764_v56, 0.0 }
 0x5f8   : > { %v4604_v15 = vpop.f32.mrf.mxu1 }
 0x5f9   : > { %v4605_v28 = vadd.f32 %v8507_v59, %v4604_v15 }
 0x5fb   : > { %v4765_v38 = vadd.f32 %v5844_v41, %v4605_v28 }
 0x5fd   : > { %v4813_v36 = vmax.f32 %v4765_v38, 0.0 }
 0x5ff   : > { %v5958_v29 = vpack.c.bf16 %v4813_v36, %v4812_v18 }
 0x600   : > { %v4607_v31 = vpop.f32.mrf.mxu1 }
 0x601   : > { %6025 = vst [vmem:[%s8309_s30 + $0x90] sm:$0xff] %v5958_v29   ;;  %v4608_v30 = vadd.f32 %v8507_v59, %v4607_v31 }
 0x603   : > { %v4766_v51 = vadd.f32 %v5847_v45, %v4608_v30 }
 0x605   : > { %v4814_v61 = vmax.f32 %v4766_v51, 0.0 }
 0x608   : > { %v4609_v40 = vpop.f32.mrf.mxu1 }
 0x609   : > { %v4610_v32 = vadd.f32 %v8507_v59, %v4609_v40 }
 0x60b   : > { %v4767_v25 = vadd.f32 %v5848_v47, %v4610_v32 }
 0x60d   : > { %v4815_v42 = vmax.f32 %v4767_v25, 0.0 }
 0x60f   : > { %v5963_v37 = vpack.c.bf16 %v4815_v42, %v4814_v61 }
 0x610   : > { %v4612_v46 = vpop.f32.mrf.mxu1 }
 0x611   : > { %6026 = vst [vmem:[%s8309_s30 + $0x98] sm:$0xff] %v5963_v37   ;;  %v4613_v6 = vadd.f32 %v8507_v59, %v4612_v46 }
 0x613   : > { %v4768_v20 = vadd.f32 %v5851_v21, %v4613_v6 }
 0x615   : > { %v4816_v2 = vmax.f32 %v4768_v20, 0.0 }
 0x618   : > { %v4614_v44 = vpop.f32.mrf.mxu1 }
 0x619   : > { %v4615_v49 = vadd.f32 %v8507_v59, %v4614_v44 }
 0x61b   : > { %v4769_v34 = vadd.f32 %v5852_v14, %v4615_v49 }
 0x61d   : > { %v4817_v39 = vmax.f32 %v4769_v34, 0.0 }
 0x61f   : > { %v5968_v55 = vpack.c.bf16 %v4817_v39, %v4816_v2 }
 0x620   : > { %v4617_v9 = vpop.f32.mrf.mxu1 }
 0x621   : > { %6027 = vst [vmem:[%s8309_s30 + $0xa0] sm:$0xff] %v5968_v55   ;;  %v4618_v8 = vadd.f32 %v8507_v59, %v4617_v9 }
 0x623   : > { %v4770_v60 = vadd.f32 %v5855_v11, %v4618_v8 }
 0x625   : > { %v4818_v23 = vmax.f32 %v4770_v60, 0.0 }
 0x628   : > { %v4619_v48 = vpop.f32.mrf.mxu1 }
 0x629   : > { %v4620_v58 = vadd.f32 %v8507_v59, %v4619_v48 }
 0x62b   : > { %v4771_v52 = vadd.f32 %v5856_v24, %v4620_v58 }
 0x62d   : > { %v4819_v33 = vmax.f32 %v4771_v52, 0.0 }
 0x62f   : > { %v5973_v17 = vpack.c.bf16 %v4819_v33, %v4818_v23 }
 0x630   : > { %v4622_v35 = vpop.f32.mrf.mxu1 }
 0x631   : > { %6028 = vst [vmem:[%s8309_s30 + $0xa8] sm:$0xff] %v5973_v17   ;;  %v4623_v53 = vadd.f32 %v8507_v59, %v4622_v35 }
 0x633   : > { %v4772_v12 = vadd.f32 %v5859_v7, %v4623_v53 }
 0x635   : > { %v4820_v16 = vmax.f32 %v4772_v12, 0.0 }
 0x638   : > { %v4624_v19 = vpop.f32.mrf.mxu1 }
 0x639   : > { %v4625_v54 = vadd.f32 %v8507_v59, %v4624_v19 }
 0x63b   : > { %v4773_v57 = vadd.f32 %v5860_v63, %v4625_v54 }
 0x63d   : > { %v4821_v4 = vmax.f32 %v4773_v57, 0.0 }
 0x63f   : > { %v5978_v27 = vpack.c.bf16 %v4821_v4, %v4820_v16 }
 0x640   : > { %v4627_v10 = vpop.f32.mrf.mxu1 }
 0x641   : > { %6029 = vst [vmem:[%s8309_s30 + $0xb0] sm:$0xff] %v5978_v27   ;;  %v4628_v22 = vadd.f32 %v8507_v59, %v4627_v10 }
 0x643   : > { %v4774_v62 = vadd.f32 %v5863_v26, %v4628_v22 }
 0x645   : > { %v4822_v56 = vmax.f32 %v4774_v62, 0.0 }
 0x648   : > { %v4629_v0 = vpop.f32.mrf.mxu1 }
 0x649   : > { %v4630_v41 = vadd.f32 %v8507_v59, %v4629_v0 }
 0x64b   : > { %v4775_v15 = vadd.f32 %v5864_v50, %v4630_v41 }
 0x64d   : > { %v4823_v28 = vmax.f32 %v4775_v15, 0.0 }
 0x64f   : > { %v5983_v38 = vpack.c.bf16 %v4823_v28, %v4822_v56 }
 0x651   : > { %6030 = vst [vmem:[%s8309_s30 + $0xb8] sm:$0xff] %v5983_v38  }
 0x652 PF: > { %s19_s11 = sadd.s32 1, %s6113_s11   ;;  %s9200_s30 = smov %s6109_s10 }
 0x653   : > { %p16_p5 = scmp.ge.s32.totalorder %s19_s11, 4   ;;  %s9201_s10 = smov %s9203_s12 }
 0x655   :  { %18 = sbr.rel (!%p16_p5) target bundleno = 2 (0x2), region = 102 }

// kernel: bottleneck_forward.1
= control target key start
LH: loop header
LB: loop body
LE: loop exit
PB: predicated region body
PF: predicated region fallthrough
CT: control target
= control target key end

     0   :  { %s6365_s30 = smov 0   ;;  %s6367_s10 = smov 0   ;;  %s8635_s0 = inlined_call_operand.vmem [shape: bf16[2,17,24,128], index: 0, kind: input, shape index: {}, may-alias: {0,1,2}]   ;;  %s8636_s1 = inlined_call_operand.vmem [shape: bf16[2,17,24,128], index: 1, kind: input, shape index: {}, may-alias: {0,1,2}]   ;;  %s8637_s2 = inlined_call_operand.vmem [shape: bf16[2,17,24,128], index: 2, kind: input, shape index: {}, may-alias: {0,1,2}]   ;;  %s8638_s3 = inlined_call_operand.vmem [shape: bf16[128,128], index: 3, kind: input, shape index: {}]   ;;  %s8639_s4 = inlined_call_operand.vmem [shape: bf16[3,3,128,128], index: 4, kind: input, shape index: {}]   ;;  %s8640_s5 = inlined_call_operand.vmem [shape: bf16[128,128], index: 5, kind: input, shape index: {}]   ;;  %s8641_s6 = inlined_call_operand.vmem [shape: f32[1,128], index: 6, kind: input, shape index: {}]   ;;  %s8642_s7 = inlined_call_operand.vmem [shape: f32[1,128], index: 7, kind: input, shape index: {}]   ;;  %s8643_s8 = inlined_call_operand.vmem [shape: f32[1,128], index: 8, kind: input, shape index: {}]   ;;  %s8644_s9 = inlined_call_operand.vmem [shape: bf16[2,16,24,128], index: 9, kind: output, shape index: {}]  }
   0x1   :  { %s6369_s11 = smov 0  }
   0x2 LB: > { %s31_s12 = sadd.s32 1, %s6307_s10  ;;  %p5260_p0 = scmp.ge.s32.totalorder %s6311_s11, 1  ;;  %s6311_s11 = sphi %s6369_s11, %s19_s11   ;;  %s6307_s10 = sphi %s6367_s10, %s9278_s10   ;;  %s6303_s30 = sphi %s6365_s30, %s9277_s30  }
   0x3   : > { %p33_p1 = scmp.ge.s32.totalorder %s31_s12, 2  ;;  %p375_p2 = scmp.lt.s32.totalorder %s6311_s11, 3 }
   0x5   : > { %s9280_s12 = smov (%p33_p1, %s31_s12), 0  ;;  %p376_p3 = pnand %p5260_p0, %p375_p2 }
   0x7   : > { %379 = sbr.rel (%p376_p3) target bundleno = 1618 (0x652), region = 56 }
   0xc   : > { %v5860_v0 = vld [vmem:[%s8638_s3 + $0x38] sm:$0xff]  ;;  %p456_p4 = scmp.lt.s32.totalorder %s6303_s30, 1  ;;  %v5859_v1 = vld [vmem:[%s8638_s3 + $0x30] sm:$0xff]  ;;  %v5858_v2 = vld [vmem:[%s8638_s3 + $0x28] sm:$0xff]  ;;  %v6313_v32 = vmov 0.0   ;;  %vm1310_vm0 = vcmask 1040384  }
   0xd   : > { %779 = vmatpush.bf16.msra.mxu0 %v5860_v0  ;;  %6229 = vmatpush.bf16.msra.mxu2 %v5860_v0  ;;  %v5857_v3 = vld [vmem:[%s8638_s3 + $0x20] sm:$0xff]  ;;  %v5856_v4 = vld [vmem:[%s8638_s3 + $0x18] sm:$0xff]  ;;  %v5855_v5 = vld [vmem:[%s8638_s3 + $0x10] sm:$0xff]  ;;  %v6472_v33 = vrot.slane %v6313_v32, 7  ;;  %v6524_v57 = vrot.slane %v6313_v32, 1  ;;  %vm3338_vm1 = vcmask 1046528  }
   0xe   : > { %s9282_s30 = smov (!%p456_p4, %s6303_s30), 1  ;;  %1079 = vmatpush.bf16.msra.mxu1 %v5860_v0  ;;  %v5854_v6 = vld [vmem:[%s8638_s3 + $0x8] sm:$0xff]  ;;  %v5853_v7 = vld [vmem:[%s8638_s3] sm:$0xff]  ;;  %v6433_v17 = vld [vmem:[%s8639_s4 + $0x38] sm:$0xff] }
   0xf   : > { %s6407_s27 = smul.u32 204, %s9282_s30  ;;  %v6440_v19 = vld [vmem:[%s8639_s4 + $0x30] sm:$0xff]  ;;  %v5892_v21 = vld [vmem:[%s8639_s4 + $0x28] sm:$0xff]  ;;  %v5891_v24 = vld [vmem:[%s8639_s4 + $0x20] sm:$0xff]  ;;  %v1455_v35 = vpack.c.bf16 %v6472_v33, %v6472_v33  ;;  %8759 = vst [vmem:[#allocation5_spill] sm:$0xff] %v6524_v57 }
  0x10   : > { %v5890_v26 = vld [vmem:[%s8639_s4 + $0x18] sm:$0xff]  ;;  %v6461_v28 = vld [vmem:[%s8639_s4 + $0x10] sm:$0xff]  ;;  %v6470_v31 = vld [vmem:[%s8639_s4 + $0x8] sm:$0xff]  ;;  %s6255_s16 = smul.u32 192, %s9282_s30 }
  0x11   : > { %780 = vmatpush.bf16.msra.mxu0 %v5859_v1  ;;  %6230 = vmatpush.bf16.msra.mxu2 %v5859_v1  ;;  %s6416_s15 = scalar_lea.vmem %s8635_s0, %s6407_s27  ;;  %s483_s18 = scalar_lea.vmem %s8636_s1, %s6407_s27  ;;  %v5902_v30 = vld [vmem:[%s8639_s4 + $0xf8] sm:$0xff]  ;;  %v5901_v34 = vld [vmem:[%s8639_s4 + $0xf0] sm:$0xff]  ;;  %v6483_v36 = vld [vmem:[%s8639_s4] sm:$0xff]  ;;  %v6485_v37 = vunpack.c.l.b16 %v1455_v35 }
  0x12   : > { %1080 = vmatpush.bf16.msra.mxu1 %v5859_v1  ;;  %v5861_v8 = vld [vmem:[%s6416_s15] sm:$0xff]  ;;  %v5880_v9 = vld [vmem:[%s6416_s15 + $0x98] sm:$0xff]  ;;  %v5862_v10 = vld [vmem:[%s6416_s15 + $0x8] sm:$0xff]  ;;  %s5852_s13 = sadd.s32 192, %s6407_s27  ;;  %6237 = vmatpush.bf16.msra.mxu3 %v5902_v30  ;;  %s8395_s30 = scalar_lea.vmem %s8644_s9, %s6255_s16 }
  0x13   : > { %v5881_v11 = vld [vmem:[%s6416_s15 + $0xa0] sm:$0xff]  ;;  %v5863_v12 = vld [vmem:[%s6416_s15 + $0x10] sm:$0xff]  ;;  %v5882_v13 = vld [vmem:[%s6416_s15 + $0xa8] sm:$0xff]  ;;  %s498_s17 = scalar_lea.vmem %s8637_s2, %s5852_s13  ;;  %8757 = vst [vmem:[#allocation3_spill] sm:$0xff] %v6485_v37  ;;  %v6489_v38 = vpack.c.b16 %v6485_v37, %v6485_v37 }
  0x14   : > { %v5864_v14 = vld [vmem:[%s6416_s15 + $0x18] sm:$0xff]  ;;  %v5883_v15 = vld [vmem:[%s6416_s15 + $0xb0] sm:$0xff]  ;;  %v5885_v16 = vld [vmem:[%s483_s18] sm:$0xff] }
  0x15   : > { %781 = vmatpush.bf16.msra.mxu0 %v5858_v2  ;;  %6231 = vmatpush.bf16.msra.mxu2 %v5858_v2  ;;  %v5865_v18 = vld [vmem:[%s6416_s15 + $0x20] sm:$0xff]  ;;  %v5884_v20 = vld [vmem:[%s6416_s15 + $0xb8] sm:$0xff]  ;;  %v1068_v22 = vld [vmem:[%s483_s18 + $0x8] sm:$0xf]  ;;  %8758 = vst [vmem:[#allocation4_spill] sm:$0xff] %v6489_v38 }
  0x16   : > { %1081 = vmatpush.bf16.msra.mxu1 %v5858_v2  ;;  %v1074_v23 = vunpack.c.l.b16 %v1068_v22  ;;  %v5866_v27 = vld [vmem:[%s6416_s15 + $0x28] sm:$0xff]  ;;  %v5886_v29 = vld [vmem:[%s498_s17] sm:$0xff]  ;;  %6238 = vmatpush.bf16.msra.mxu3 %v5901_v34  ;;  %v5867_v40 = vld [vmem:[%s6416_s15 + $0x30] sm:$0xff] }
  0x17   : > { %v5900_v39 = vld [vmem:[%s8639_s4 + $0xe8] sm:$0xff]  ;;  %v5899_v41 = vld [vmem:[%s8639_s4 + $0xe0] sm:$0xff]  ;;  %v5898_v45 = vld [vmem:[%s8639_s4 + $0xd8] sm:$0xff] }
  0x18   : > { %v1076_v25 = vpack.c.b16 %v1074_v23, %v1074_v23  ;;  %v1121_v42 = vld [vmem:[%s498_s17 + $0x8] sm:$0xf]  ;;  %v5897_v46 = vld [vmem:[%s8639_s4 + $0xd0] sm:$0xff]  ;;  %v5868_v48 = vld [vmem:[%s6416_s15 + $0x38] sm:$0xff] }
  0x19   : > { %782 = vmatpush.bf16.msra.mxu0 %v5857_v3  ;;  %6232 = vmatpush.bf16.msra.mxu2 %v5857_v3  ;;  %v1127_v43 = vunpack.c.l.b16 %v1121_v42  ;;  %v5896_v47 = vld [vmem:[%s8639_s4 + $0xc8] sm:$0xff]  ;;  %v5895_v49 = vld [vmem:[%s8639_s4 + $0xc0] sm:$0xff]  ;;  %v5914_v23 = vld [vmem:[%s8639_s4 + $0x58] sm:$0xff] }
  0x1a   : > { %1082 = vmatpush.bf16.msra.mxu1 %v5857_v3  ;;  %6239 = vmatpush.bf16.msra.mxu3 %v5900_v39  ;;  %v6518_v50 = vld [vmem:[%s8641_s6] ss:$0 sm:$0xff] }
  0x1b   : > { %v1129_v44 = vpack.c.b16 %v1127_v43, %v1127_v43  ;;  %v5869_v51 = vld [vmem:[%s6416_s15 + $0x40] sm:$0xff] }
  0x1d   : > { %783 = vmatpush.bf16.msra.mxu0 %v5856_v4  ;;  %6233 = vmatpush.bf16.msra.mxu2 %v5856_v4 }
  0x1e   : > { %1083 = vmatpush.bf16.msra.mxu1 %v5856_v4  ;;  %6240 = vmatpush.bf16.msra.mxu3 %v5899_v41 }
  0x21   : > { %784 = vmatpush.bf16.msra.mxu0 %v5855_v5  ;;  %6234 = vmatpush.bf16.msra.mxu2 %v5855_v5 }
  0x22   : > { %1084 = vmatpush.bf16.msra.mxu1 %v5855_v5  ;;  %6241 = vmatpush.bf16.msra.mxu3 %v5898_v45 }
  0x25   : > { %785 = vmatpush.bf16.msra.mxu0 %v5854_v6  ;;  %6235 = vmatpush.bf16.msra.mxu2 %v5854_v6 }
  0x26   : > { %1085 = vmatpush.bf16.msra.mxu1 %v5854_v6  ;;  %6242 = vmatpush.bf16.msra.mxu3 %v5897_v46 }
  0x29   : > { %786 = vmatpush.bf16.msra.mxu0 %v5853_v7  ;;  %6236 = vmatpush.bf16.msra.mxu2 %v5853_v7 }
  0x2a   : > { %1086 = vmatpush.bf16.msra.mxu1 %v5853_v7  ;;  %6243 = vmatpush.bf16.msra.mxu3 %v5896_v47 }
  0x2c   : > { %787 = vmatmul.bf16.vlgmr.msra.gmra.mxu0 %v5861_v8  ;;  %882 = vmatmul.bf16.vlgmr.msra.gmra.mxu2 %v5880_v9 }
  0x2d   : > { %1132 = vmatpush.bf16.msrb.mxu2 %v5860_v0  ;;  %1087 = vmatmul.bf16.vlgmr.msra.gmra.mxu1 %v5885_v16 }
  0x2e   : > { %1965 = vmatpush.bf16.msrb.mxu1 %v6433_v17  ;;  %6244 = vmatpush.bf16.msra.mxu3 %v5895_v49 }
  0x31   : > { %1133 = vmatpush.bf16.msrb.mxu2 %v5859_v1 }
  0x32   : > { %1966 = vmatpush.bf16.msrb.mxu1 %v6440_v19 }
  0x35   : > { %1134 = vmatpush.bf16.msrb.mxu2 %v5858_v2 }
  0x36   : > { %1967 = vmatpush.bf16.msrb.mxu1 %v5892_v21 }
  0x39   : > { %1135 = vmatpush.bf16.msrb.mxu2 %v5857_v3 }
  0x3a   : > { %1968 = vmatpush.bf16.msrb.mxu1 %v5891_v24 }
  0x3c   : > { %792 = vmatmul.bf16.gmra.mxu0 %v5862_v10  ;;  %887 = vmatmul.bf16.gmra.mxu2 %v5881_v11  ;;  %v5870_v10 = vld [vmem:[%s6416_s15 + $0x48] sm:$0xff] }
  0x3d   : > { %1136 = vmatpush.bf16.msrb.mxu2 %v5856_v4  ;;  %1092 = vmatmul.bf16.gmra.mxu1 %v1076_v25 }
  0x3e   : > { %1969 = vmatpush.bf16.msrb.mxu1 %v5890_v26 }
  0x41   : > { %1137 = vmatpush.bf16.msrb.mxu2 %v5855_v5 }
  0x42   : > { %1970 = vmatpush.bf16.msrb.mxu1 %v6461_v28 }
  0x45   : > { %1138 = vmatpush.bf16.msrb.mxu2 %v5854_v6 }
  0x46   : > { %1971 = vmatpush.bf16.msrb.mxu1 %v6470_v31 }
  0x49   : > { %1139 = vmatpush.bf16.msrb.mxu2 %v5853_v7 }
  0x4a   : > { %1972 = vmatpush.bf16.msrb.mxu1 %v6483_v36 }
  0x4c   : > { %797 = vmatmul.bf16.gmra.mxu0 %v5863_v12  ;;  %892 = vmatmul.bf16.gmra.mxu2 %v5882_v13 }
  0x4d   : > { %1734 = vmatpush.bf16.msra.mxu2 %v5902_v30  ;;  %1973 = vmatmul.bf16.vlgmr.msrb.gmra.mxu1 %v6489_v38 }
  0x51   : > { %1735 = vmatpush.bf16.msra.mxu2 %v5901_v34 }
  0x55   : > { %1736 = vmatpush.bf16.msra.mxu2 %v5900_v39  ;;  %v5871_v39 = vld [vmem:[%s6416_s15 + $0x50] sm:$0xff] }
  0x59   : > { %1737 = vmatpush.bf16.msra.mxu2 %v5899_v41 }
  0x5c   : > { %802 = vmatmul.bf16.gmra.mxu0 %v5864_v14  ;;  %897 = vmatmul.bf16.gmra.mxu2 %v5883_v15 }
  0x5d   : > { %1738 = vmatpush.bf16.msra.mxu2 %v5898_v45 }
  0x61   : > { %1739 = vmatpush.bf16.msra.mxu2 %v5897_v46 }
  0x65   : > { %1740 = vmatpush.bf16.msra.mxu2 %v5896_v47 }
  0x69   : > { %1741 = vmatpush.bf16.msra.mxu2 %v5895_v49 }
  0x6c   : > { %807 = vmatmul.bf16.gmra.mxu0 %v5865_v18  ;;  %902 = vmatmul.bf16.gmra.mxu2 %v5884_v20 }
  0x7c   : > { %812 = vmatmul.bf16.gmra.mxu0 %v5866_v27  ;;  %1140 = vmatmul.bf16.vlgmr.msrb.gmra.mxu2 %v5886_v29 }
  0x7d   : > { %6245 = vmatpush.bf16.msrb.mxu2 %v6433_v17 }
  0x81   : > { %6246 = vmatpush.bf16.msrb.mxu2 %v6440_v19 }
  0x85   : > { %6247 = vmatpush.bf16.msrb.mxu2 %v5892_v21 }
  0x89   : > { %6248 = vmatpush.bf16.msrb.mxu2 %v5891_v24 }
  0x8c   : > { %817 = vmatmul.bf16.gmra.mxu0 %v5867_v40  ;;  %1145 = vmatmul.bf16.gmra.mxu2 %v1129_v44 }
  0x8d   : > { %6249 = vmatpush.bf16.msrb.mxu2 %v5890_v26 }
  0x91   : > { %6250 = vmatpush.bf16.msrb.mxu2 %v6461_v28 }
  0x95   : > { %6251 = vmatpush.bf16.msrb.mxu2 %v6470_v31 }
  0x99   : > { %6252 = vmatpush.bf16.msrb.mxu2 %v6483_v36 }
  0x9c   : > { %822 = vmatmul.bf16.gmra.mxu0 %v5868_v48 }
  0xa9   : > { %v788_v52 = vpop.f32.mrf.mxu0 }
  0xaa   : > { %v789_v53 = vadd.f32 %v6518_v50, %v788_v52 }
  0xac   : > { %v908_v54 = vmax.f32 %v789_v53, 0.0  ;;  %827 = vmatmul.bf16.gmra.mxu0 %v5869_v51 }
  0xae   : > { %v1315_v55 = vrot.slane %v908_v54, 7  ;;  %v3344_v58 = vrot.slane %v908_v54, 1  ;;  %v2351_v3 = vpack.c.bf16 %v908_v54, %v908_v54 }
  0xaf   : > { %v883_v61 = vpop.f32.mrf.mxu2 }
  0xb0   : > { %v1438_v56 = vsel %vm1310_vm0, %v6472_v33, %v1315_v55  ;;  %v3502_v2 = vsel %vm3338_vm1, %v6524_v57, %v3344_v58  ;;  %v6542_v18 = vunpack.c.l.b16 %v2351_v3 }
  0xb1   : > { %v790_v59 = vpop.f32.mrf.mxu0  ;;  %v1458_v60 = vpack.c.bf16 %v1438_v56, %v1438_v56  ;;  %v3524_v11 = vpack.c.bf16 %v3502_v2, %v3502_v2 }
  0xb2   : > { %v791_v62 = vadd.f32 %v6518_v50, %v790_v59 }
  0xb3   : > { %v1590_v63 = vunpack.c.l.b16 %v1458_v60  ;;  %v6552_v24 = vunpack.c.l.b16 %v3524_v11 }
  0xb4   : > { %v909_v0 = vmax.f32 %v791_v62, 0.0 }
  0xb5   : > { %v1870_v1 = vpack.c.b16 %v1590_v63, %v6485_v37  ;;  %8762 = vst [vmem:[#allocation8_spill] sm:$0xff] %v6552_v24 }
  0xb6   : > { %v1316_v4 = vrot.slane %v909_v0, 7  ;;  %v3345_v5 = vrot.slane %v909_v0, 1  ;;  %v2352_v6 = vpack.c.bf16 %v909_v0, %v909_v0 }
  0xb7   : > { %1978 = vmatmul.bf16.gmra.mxu1 %v1870_v1  ;;  %v6540_v17 = vpop.f32.mrf.mxu2 }
  0xb8   : > { %v3346_v7 = vsel %vm3338_vm1, %v3344_v58, %v3345_v5  ;;  %v3348_v8 = vsel %vm3338_vm1, %v3345_v5, %v6524_v57  ;;  %v1317_v9 = vsel %vm1310_vm0, %v1315_v55, %v1316_v4  ;;  %v1318_v16 = vsel %vm1310_vm0, %v1316_v4, %v6472_v33 }
  0xb9   : > { %v3522_v12 = vpack.c.bf16 %v3346_v7, %v3346_v7  ;;  %v3523_v13 = vpack.c.bf16 %v3348_v8, %v3348_v8  ;;  %v1459_v14 = vpack.c.bf16 %v1317_v9, %v1317_v9  ;;  %v793_v15 = vpop.f32.mrf.mxu0  ;;  %v6544_v19 = vunpack.c.l.b16 %v2352_v6 }
  0xba   : > { %v1460_v26 = vpack.c.bf16 %v1318_v16, %v1318_v16 }
  0xbb   : > { %v6546_v20 = vunpack.c.l.b16 %v3522_v12  ;;  %v6548_v21 = vunpack.c.l.b16 %v3523_v13  ;;  %v1591_v22 = vunpack.c.l.b16 %v1459_v14  ;;  %v5872_v14 = vld [vmem:[%s6416_s15 + $0x58] sm:$0xff] }
  0xbc   : > { %832 = vmatmul.bf16.gmra.mxu0 %v5870_v10  ;;  %v1592_v30 = vunpack.c.l.b16 %v1460_v26  ;;  %v1088_v26 = vpop.f32.mrf.mxu1 }
  0xbd   : > { %8760 = vst [vmem:[#allocation6_spill] sm:$0xff] %v6546_v20  ;;  %v1638_v25 = vpack.c.b16 %v1591_v22, %v1590_v63 }
  0xbe   : > { %8761 = vst [vmem:[#allocation7_spill] sm:$0xff] %v6548_v21  ;;  %v1871_v35 = vpack.c.b16 %v1592_v30, %v1591_v22 }
  0xbf   : > { %1742 = vmatmul.bf16.vlgmr.msra.gmra.mxu2 %v1638_v25  ;;  %v6559_v32 = vpop.f32.mrf.mxu2 }
  0xc1   : > { %v795_v29 = vpop.f32.mrf.mxu0 }
  0xc2   : > { %v796_v31 = vadd.f32 %v6518_v50, %v795_v29 }
  0xc4   : > { %v911_v34 = vmax.f32 %v796_v31, 0.0 }
  0xc6   : > { %v1319_v36 = vrot.slane %v911_v34, 7  ;;  %v3349_v41 = vrot.slane %v911_v34, 1  ;;  %v2354_v47 = vpack.c.bf16 %v911_v34, %v911_v34 }
  0xc7   : > { %1983 = vmatmul.bf16.gmra.mxu1 %v1871_v35  ;;  %v890_v45 = vpop.f32.mrf.mxu2 }
  0xc8   : > { %v1439_v40 = vsel %vm1310_vm0, %v6472_v33, %v1319_v36  ;;  %v3503_v51 = vsel %vm3338_vm1, %v6524_v57, %v3349_v41  ;;  %v6567_v55 = vunpack.c.l.b16 %v2354_v47 }
  0xc9   : > { %v798_v42 = vpop.f32.mrf.mxu0  ;;  %v1461_v43 = vpack.c.bf16 %v1439_v40, %v1439_v40  ;;  %v3527_v60 = vpack.c.bf16 %v3503_v51, %v3503_v51 }
  0xca   : > { %v799_v44 = vadd.f32 %v6518_v50, %v798_v42 }
  0xcb   : > { %v1593_v46 = vunpack.c.l.b16 %v1461_v43  ;;  %v6587_v8 = vunpack.c.l.b16 %v3527_v60 }
  0xcc   : > { %v912_v48 = vmax.f32 %v799_v44, 0.0  ;;  %837 = vmatmul.bf16.gmra.mxu0 %v5871_v39  ;;  %v1090_v44 = vpop.f32.mrf.mxu1 }
  0xcd   : > { %v1639_v49 = vpack.c.b16 %v1593_v46, %v1592_v30  ;;  %8765 = vst [vmem:[#allocation11_spill] sm:$0xff] %v6587_v8 }
  0xce   : > { %v1320_v52 = vrot.slane %v912_v48, 7  ;;  %v2355_v53 = vpack.c.bf16 %v912_v48, %v912_v48  ;;  %v3350_v54 = vrot.slane %v912_v48, 1 }
  0xcf   : > { %1747 = vmatmul.bf16.gmra.mxu2 %v1639_v49  ;;  %v6577_v2 = vpop.f32.mrf.mxu2 }
  0xd0   : > { %v1321_v56 = vsel %vm1310_vm0, %v1319_v36, %v1320_v52  ;;  %v6570_v58 = vunpack.c.l.b16 %v2355_v53  ;;  %v3351_v59 = vsel %vm3338_vm1, %v3349_v41, %v3350_v54  ;;  %v3353_v0 = vsel %vm3338_vm1, %v3350_v54, %v6524_v57  ;;  %v5873_v53 = vld [vmem:[%s6416_s15 + $0x60] sm:$0xff] }
  0xd1   : > { %v800_v61 = vpop.f32.mrf.mxu0  ;;  %v1462_v62 = vpack.c.bf16 %v1321_v56, %v1321_v56  ;;  %v3525_v63 = vpack.c.bf16 %v3351_v59, %v3351_v59  ;;  %v1322_v1 = vsel %vm1310_vm0, %v1320_v52, %v6472_v33  ;;  %v3526_v4 = vpack.c.bf16 %v3353_v0, %v3353_v0 }
  0xd2   : > { %v6581_v3 = vpack.c.b16 %v6570_v58, %v6567_v55  ;;  %v1463_v10 = vpack.c.bf16 %v1322_v1, %v1322_v1 }
  0xd3   : > { %v1594_v5 = vunpack.c.l.b16 %v1462_v62  ;;  %v6583_v6 = vunpack.c.l.b16 %v3525_v63  ;;  %v6585_v7 = vunpack.c.l.b16 %v3526_v4 }
  0xd4   : > { %v1595_v16 = vunpack.c.l.b16 %v1463_v10 }
  0xd5   : > { %8763 = vst [vmem:[#allocation9_spill] sm:$0xff] %v6583_v6  ;;  %v6589_v9 = vpack.c.b16 %v1594_v5, %v1593_v46  ;;  %v6595_v12 = vpack.c.b16 %v6585_v7, %v6583_v6 }
  0xd6   : > { %8764 = vst [vmem:[#allocation10_spill] sm:$0xff] %v6585_v7  ;;  %v1640_v30 = vpack.c.b16 %v1595_v16, %v1594_v5 }
  0xd7   : > { %8766 = vst [vmem:[#allocation12_spill] sm:$0xff] %v6595_v12  ;;  %1988 = vmatmul.bf16.gmra.mxu1 %v6589_v9  ;;  %v6602_v25 = vpop.f32.mrf.mxu2 }
  0xd9   : > { %v803_v15 = vpop.f32.mrf.mxu0 }
  0xda   : > { %v804_v22 = vadd.f32 %v6518_v50, %v803_v15 }
  0xdc   : > { %v914_v29 = vmax.f32 %v804_v22, 0.0  ;;  %842 = vmatmul.bf16.gmra.mxu0 %v5872_v14 }
  0xde   : > { %v1323_v31 = vrot.slane %v914_v29, 7  ;;  %v3354_v35 = vrot.slane %v914_v29, 1  ;;  %v2357_v42 = vpack.c.bf16 %v914_v29, %v914_v29 }
  0xdf   : > { %1752 = vmatmul.bf16.gmra.mxu2 %v1640_v30  ;;  %v898_v41 = vpop.f32.mrf.mxu2 }
  0xe0   : > { %v1440_v34 = vsel %vm1310_vm0, %v6472_v33, %v1323_v31  ;;  %v3504_v47 = vsel %vm3338_vm1, %v6524_v57, %v3354_v35  ;;  %v6612_v52 = vunpack.c.l.b16 %v2357_v42 }
  0xe1   : > { %v805_v36 = vpop.f32.mrf.mxu0  ;;  %v1464_v39 = vpack.c.bf16 %v1440_v34, %v1440_v34  ;;  %v3530_v60 = vpack.c.bf16 %v3504_v47, %v3504_v47  ;;  %v5918_v47 = vld [vmem:[%s8639_s4 + $0x78] sm:$0xff] }
  0xe2   : > { %v806_v40 = vadd.f32 %v6518_v50, %v805_v36  ;;  %v1093_v36 = vpop.f32.mrf.mxu1  ;;  %2611 = vmatpush.bf16.msrb.mxu0 %v5918_v47 }
  0xe3   : > { %v1596_v43 = vunpack.c.l.b16 %v1464_v39  ;;  %v6631_v22 = vunpack.c.l.b16 %v3530_v60 }
  0xe4   : > { %v915_v45 = vmax.f32 %v806_v40, 0.0 }
  0xe5   : > { %v6607_v46 = vpack.c.b16 %v1596_v43, %v1595_v16  ;;  %8769 = vst [vmem:[#allocation15_spill] sm:$0xff] %v6631_v22 }
  0xe6   : > { %v1324_v48 = vrot.slane %v915_v45, 7  ;;  %v3355_v49 = vrot.slane %v915_v45, 1  ;;  %v2358_v51 = vpack.c.bf16 %v915_v45, %v915_v45 }
  0xe7   : > { %1993 = vmatmul.bf16.gmra.mxu1 %v6607_v46  ;;  %v6623_v4 = vpop.f32.mrf.mxu2 }
  0xe8   : > { %v1325_v54 = vsel %vm1310_vm0, %v1323_v31, %v1324_v48  ;;  %v6616_v56 = vunpack.c.l.b16 %v2358_v51  ;;  %v3356_v59 = vsel %vm3338_vm1, %v3354_v35, %v3355_v49  ;;  %v3358_v63 = vsel %vm3338_vm1, %v3355_v49, %v6524_v57  ;;  %v5926_v31 = vld [vmem:[%s8639_s4 + $0x138] sm:$0xff]  ;;  %v5874_v51 = vld [vmem:[%s6416_s15 + $0x68] sm:$0xff] }
  0xe9   : > { %v808_v61 = vpop.f32.mrf.mxu0  ;;  %v1465_v62 = vpack.c.bf16 %v1325_v54, %v1325_v54  ;;  %v3528_v0 = vpack.c.bf16 %v3356_v59, %v3356_v59  ;;  %v1326_v1 = vsel %vm1310_vm0, %v1324_v48, %v6472_v33  ;;  %v3529_v10 = vpack.c.bf16 %v3358_v63, %v3358_v63  ;;  %2907 = vmatpush.bf16.msrb.mxu3 %v5926_v31 }
  0xea   : > { %v1466_v29 = vpack.c.bf16 %v1326_v1, %v1326_v1  ;;  %v1095_v48 = vpop.f32.mrf.mxu1 }
  0xeb   : > { %v1597_v14 = vunpack.c.l.b16 %v1465_v62  ;;  %v6627_v15 = vunpack.c.l.b16 %v3528_v0  ;;  %v6629_v16 = vunpack.c.l.b16 %v3529_v10 }
  0xec   : > { %847 = vmatmul.bf16.gmra.mxu0 %v5873_v53  ;;  %v1598_v40 = vunpack.c.l.b16 %v1466_v29 }
  0xed   : > { %8767 = vst [vmem:[#allocation13_spill] sm:$0xff] %v6627_v15  ;;  %v1641_v26 = vpack.c.b16 %v1597_v14, %v1596_v43  ;;  %v6635_v30 = vpack.c.b16 %v6627_v15, %v6587_v8  ;;  %v6644_v35 = vpack.c.b16 %v6631_v22, %v6629_v16 }
  0xee   : > { %8768 = vst [vmem:[#allocation14_spill] sm:$0xff] %v6629_v16  ;;  %v6649_v44 = vpack.c.b16 %v1598_v40, %v1597_v14 }
  0xef   : > { %8770 = vst [vmem:[#allocation16_spill] sm:$0xff] %v6635_v30  ;;  %1757 = vmatmul.bf16.gmra.mxu2 %v1641_v26  ;;  %v6647_v42 = vpop.f32.mrf.mxu2 }
  0xf0   : > { %8771 = vst [vmem:[#allocation17_spill] sm:$0xff] %v6644_v35 }
  0xf1   : > { %v810_v39 = vpop.f32.mrf.mxu0 }
  0xf2   : > { %v811_v41 = vadd.f32 %v6518_v50, %v810_v39 }
  0xf4   : > { %v917_v43 = vmax.f32 %v811_v41, 0.0 }
  0xf6   : > { %v1327_v45 = vrot.slane %v917_v43, 7  ;;  %v3359_v49 = vrot.slane %v917_v43, 1  ;;  %v2360_v63 = vpack.c.bf16 %v917_v43, %v917_v43 }
  0xf7   : > { %1998 = vmatmul.bf16.gmra.mxu1 %v6649_v44  ;;  %v905_v61 = vpop.f32.mrf.mxu2 }
  0xf8   : > { %v1441_v53 = vsel %vm1310_vm0, %v6472_v33, %v1327_v45  ;;  %v3505_v1 = vsel %vm3338_vm1, %v6524_v57, %v3359_v49  ;;  %v6661_v31 = vunpack.c.l.b16 %v2360_v63 }
  0xf9   : > { %v813_v54 = vpop.f32.mrf.mxu0  ;;  %v1467_v59 = vpack.c.bf16 %v1441_v53, %v1441_v53  ;;  %v3533_v36 = vpack.c.bf16 %v3505_v1, %v3505_v1 }
  0xfa   : > { %v814_v60 = vadd.f32 %v6518_v50, %v813_v54  ;;  %8772 = vst [vmem:[#allocation18_spill] sm:$0xff] %v6661_v31 }
  0xfb   : > { %v1599_v62 = vunpack.c.l.b16 %v1467_v59 }
  0xfc   : > { %v918_v0 = vmax.f32 %v814_v60, 0.0  ;;  %852 = vmatmul.bf16.gmra.mxu0 %v5874_v51 }
  0xfd   : > { %v1642_v10 = vpack.c.b16 %v1599_v62, %v1598_v40 }
  0xfe   : > { %v1328_v14 = vrot.slane %v918_v0, 7  ;;  %v2361_v26 = vpack.c.bf16 %v918_v0, %v918_v0  ;;  %v3360_v29 = vrot.slane %v918_v0, 1 }
  0xff   : > { %1762 = vmatmul.bf16.gmra.mxu2 %v1642_v10  ;;  %v1141_v59 = vpop.f32.mrf.mxu2 }
 0x100   : > { %v1329_v39 = vsel %vm1310_vm0, %v1327_v45, %v1328_v14  ;;  %v1330_v41 = vsel %vm1310_vm0, %v1328_v14, %v6472_v33  ;;  %v6666_v47 = vunpack.c.l.b16 %v2361_v26  ;;  %v3361_v43 = vsel %vm3338_vm1, %v3359_v49, %v3360_v29 }
 0x101   : > { %v815_v48 = vpop.f32.mrf.mxu0  ;;  %v1468_v51 = vpack.c.bf16 %v1329_v39, %v1329_v39  ;;  %v1469_v53 = vpack.c.bf16 %v1330_v41, %v1330_v41  ;;  %v3531_v40 = vpack.c.bf16 %v3361_v43, %v3361_v43  ;;  %v3363_v54 = vsel %vm3338_vm1, %v3360_v29, %v6524_v57  ;;  %v5875_v41 = vld [vmem:[%s6416_s15 + $0x70] sm:$0xff] }
 0x102   : > { %8773 = vst [vmem:[#allocation19_spill] sm:$0xff] %v6666_v47  ;;  %v6673_v60 = vpack.c.b16 %v6666_v47, %v6661_v31  ;;  %v3532_v45 = vpack.c.bf16 %v3363_v54, %v3363_v54  ;;  %v6679_v49 = vunpack.c.l.b16 %v3533_v36 }
 0x103   : > { %v1600_v61 = vunpack.c.l.b16 %v1468_v51  ;;  %v1601_v63 = vunpack.c.l.b16 %v1469_v53  ;;  %v6675_v0 = vunpack.c.l.b16 %v3531_v40 }
 0x104   : > { %v6677_v1 = vunpack.c.l.b16 %v3532_v45  ;;  %8776 = vst [vmem:[#allocation22_spill] sm:$0xff] %v6679_v49 }
 0x105   : > { %8774 = vst [vmem:[#allocation20_spill] sm:$0xff] %v6675_v0  ;;  %v1643_v10 = vpack.c.b16 %v1601_v63, %v1600_v61  ;;  %v6681_v14 = vpack.c.b16 %v1600_v61, %v1599_v62 }
 0x106   : > { %8775 = vst [vmem:[#allocation21_spill] sm:$0xff] %v6677_v1  ;;  %v6689_v39 = vpack.c.b16 %v6677_v1, %v6675_v0 }
 0x107   : > { %1767 = vmatmul.bf16.vlgmr.msra.gmra.mxu3 %v1643_v10  ;;  %2003 = vmatmul.bf16.gmra.mxu1 %v6681_v14  ;;  %v1143_v48 = vpop.f32.mrf.mxu2 }
 0x108   : > { %8777 = vst [vmem:[#allocation23_spill] sm:$0xff] %v6689_v39 }
 0x109   : > { %v818_v43 = vpop.f32.mrf.mxu0 }
 0x10a   : > { %v819_v36 = vadd.f32 %v6518_v50, %v818_v43  ;;  %v5925_v43 = vld [vmem:[%s8639_s4 + $0x130] sm:$0xff] }
 0x10b   : > { %2908 = vmatpush.bf16.msrb.mxu3 %v5925_v43 }
 0x10c   : > { %v920_v62 = vmax.f32 %v819_v36, 0.0  ;;  %857 = vmatmul.bf16.gmra.mxu0 %v5875_v41 }
 0x10e   : > { %v1331_v51 = vrot.slane %v920_v62, 7  ;;  %v3364_v40 = vrot.slane %v920_v62, 1  ;;  %v2363_v10 = vpack.c.bf16 %v920_v62, %v920_v62  ;;  %v5876_v62 = vld [vmem:[%s6416_s15 + $0x78] sm:$0xff] }
 0x10f   : > { %v1146_v61 = vpop.f32.mrf.mxu2 }
 0x110   : > { %v1442_v53 = vsel %vm1310_vm0, %v6472_v33, %v1331_v51  ;;  %v3506_v41 = vsel %vm3338_vm1, %v6524_v57, %v3364_v40 }
 0x111   : > { %v820_v54 = vpop.f32.mrf.mxu0  ;;  %v1470_v59 = vpack.c.bf16 %v1442_v53, %v1442_v53  ;;  %v6705_v53 = vunpack.c.l.b16 %v2363_v10 }
 0x112   : > { %v821_v45 = vadd.f32 %v6518_v50, %v820_v54 }
 0x113   : > { %v1602_v28 = vunpack.c.l.b16 %v1470_v59 }
 0x114   : > { %v921_v29 = vmax.f32 %v821_v45, 0.0 }
 0x115   : > { %v6700_v36 = vpack.c.b16 %v1602_v28, %v1601_v63  ;;  %v3536_v63 = vpack.c.bf16 %v3506_v41, %v3506_v41 }
 0x116   : > { %v1332_v48 = vrot.slane %v921_v29, 7  ;;  %v3365_v26 = vrot.slane %v921_v29, 1  ;;  %v2364_v34 = vpack.c.bf16 %v921_v29, %v921_v29 }
 0x117   : > { %2008 = vmatmul.bf16.gmra.mxu1 %v6700_v36  ;;  %v1148_v43 = vpop.f32.mrf.mxu2  ;;  %v6722_v41 = vunpack.c.l.b16 %v3536_v63 }
 0x118   : > { %v1333_v54 = vsel %vm1310_vm0, %v1331_v51, %v1332_v48  ;;  %v6709_v59 = vunpack.c.l.b16 %v2364_v34  ;;  %v3366_v45 = vsel %vm3338_vm1, %v3364_v40, %v3365_v26  ;;  %v3368_v11 = vsel %vm3338_vm1, %v3365_v26, %v6524_v57 }
 0x119   : > { %v823_v61 = vpop.f32.mrf.mxu0  ;;  %v1471_v13 = vpack.c.bf16 %v1333_v54, %v1333_v54  ;;  %v3534_v27 = vpack.c.bf16 %v3366_v45, %v3366_v45  ;;  %v1334_v29 = vsel %vm1310_vm0, %v1332_v48, %v6472_v33  ;;  %v3535_v5 = vpack.c.bf16 %v3368_v11, %v3368_v11  ;;  %8780 = vst [vmem:[#allocation26_spill] sm:$0xff] %v6722_v41  ;;  %v5917_v48 = vld [vmem:[%s8639_s4 + $0x70] sm:$0xff]  ;;  %v5916_v45 = vld [vmem:[%s8639_s4 + $0x68] sm:$0xff] }
 0x11a   : > { %v1472_v61 = vpack.c.bf16 %v1334_v29, %v1334_v29  ;;  %2612 = vmatpush.bf16.msrb.mxu0 %v5917_v48  ;;  %v5877_v48 = vld [vmem:[%s6416_s15 + $0x80] sm:$0xff] }
 0x11b   : > { %v1603_v51 = vunpack.c.l.b16 %v1471_v13  ;;  %v6718_v34 = vunpack.c.l.b16 %v3534_v27  ;;  %v6720_v40 = vunpack.c.l.b16 %v3535_v5  ;;  %v6737_v13 = vpop.f32.mrf.mxu1 }
 0x11c   : > { %862 = vmatmul.bf16.gmra.mxu0 %v5876_v62  ;;  %v1604_v5 = vunpack.c.l.b16 %v1472_v61 }
 0x11d   : > { %8778 = vst [vmem:[#allocation24_spill] sm:$0xff] %v6718_v34  ;;  %v1644_v54 = vpack.c.b16 %v1603_v51, %v1602_v28  ;;  %v6726_v26 = vpack.c.b16 %v6718_v34, %v6679_v49  ;;  %v6735_v11 = vpack.c.b16 %v6722_v41, %v6720_v40 }
 0x11e   : > { %8779 = vst [vmem:[#allocation25_spill] sm:$0xff] %v6720_v40  ;;  %v6743_v29 = vpack.c.b16 %v1604_v5, %v1603_v51  ;;  %2613 = vmatpush.bf16.msrb.mxu0 %v5916_v45 }
 0x11f   : > { %8781 = vst [vmem:[#allocation27_spill] sm:$0xff] %v6726_v26  ;;  %1772 = vmatmul.bf16.gmra.mxu3 %v1644_v54  ;;  %v5915_v54 = vld [vmem:[%s8639_s4 + $0x60] sm:$0xff] }
 0x120   : > { %8782 = vst [vmem:[#allocation28_spill] sm:$0xff] %v6735_v11 }
 0x121   : > { %v825_v28 = vpop.f32.mrf.mxu0  ;;  %8783 = vst [vmem:[#allocation29_spill] sm:$0xff] %v6743_v29 }
 0x122   : > { %v826_v62 = vadd.f32 %v6518_v50, %v825_v28  ;;  %2614 = vmatpush.bf16.msrb.mxu0 %v5915_v54 }
 0x123   : > { %v6753_v51 = vpop.f32.mrf.mxu1 }
 0x124   : > { %v923_v63 = vmax.f32 %v826_v62, 0.0  ;;  %8784 = vst [vmem:[#allocation30_spill] sm:$0xff] %v6753_v51 }
 0x126   : > { %v1335_v43 = vrot.slane %v923_v63, 7  ;;  %v3369_v28 = vrot.slane %v923_v63, 1  ;;  %v2366_v11 = vpack.c.bf16 %v923_v63, %v923_v63  ;;  %2615 = vmatpush.bf16.msrb.mxu0 %v5914_v23 }
 0x127   : > { %2013 = vmatmul.bf16.gmra.mxu1 %v6743_v29 }
 0x128   : > { %v1443_v61 = vsel %vm1310_vm0, %v6472_v33, %v1335_v43  ;;  %v3507_v35 = vsel %vm3338_vm1, %v6524_v57, %v3369_v28 }
 0x129   : > { %v828_v27 = vpop.f32.mrf.mxu0  ;;  %v1473_v10 = vpack.c.bf16 %v1443_v61, %v1443_v61  ;;  %v3539_v23 = vpack.c.bf16 %v3507_v35, %v3507_v35  ;;  %v5912_v35 = vld [vmem:[%s8639_s4 + $0x48] sm:$0xff] }
 0x12a   : > { %v829_v62 = vadd.f32 %v6518_v50, %v828_v27  ;;  %v6763_v27 = vunpack.c.l.b16 %v2366_v11 }
 0x12b   : > { %v1605_v45 = vunpack.c.l.b16 %v1473_v10  ;;  %v5913_v10 = vld [vmem:[%s8639_s4 + $0x50] sm:$0xff] }
 0x12c   : > { %v924_v26 = vmax.f32 %v829_v62, 0.0  ;;  %867 = vmatmul.bf16.gmra.mxu0 %v5877_v48  ;;  %8785 = vst [vmem:[#allocation31_spill] sm:$0xff] %v6763_v27 }
 0x12d   : > { %v1645_v39 = vpack.c.b16 %v1605_v45, %v1604_v5  ;;  %2616 = vmatpush.bf16.msrb.mxu0 %v5913_v10 }
 0x12e   : > { %v1336_v30 = vrot.slane %v924_v26, 7  ;;  %v2367_v61 = vpack.c.bf16 %v924_v26, %v924_v26  ;;  %v3370_v54 = vrot.slane %v924_v26, 1 }
 0x12f   : > { %1777 = vmatmul.bf16.gmra.mxu3 %v1645_v39 }
 0x130   : > { %v1337_v12 = vsel %vm1310_vm0, %v1335_v43, %v1336_v30  ;;  %v6766_v63 = vunpack.c.l.b16 %v2367_v61  ;;  %v3371_v5 = vsel %vm3338_vm1, %v3369_v28, %v3370_v54  ;;  %v3373_v39 = vsel %vm3338_vm1, %v3370_v54, %v6524_v57 }
 0x131   : > { %v830_v48 = vpop.f32.mrf.mxu0  ;;  %v1474_v62 = vpack.c.bf16 %v1337_v12, %v1337_v12  ;;  %v3537_v38 = vpack.c.bf16 %v3371_v5, %v3371_v5  ;;  %v1338_v26 = vsel %vm1310_vm0, %v1336_v30, %v6472_v33  ;;  %v3538_v43 = vpack.c.bf16 %v3373_v39, %v3373_v39  ;;  %2617 = vmatpush.bf16.msrb.mxu0 %v5912_v35 }
 0x132   : > { %8786 = vst [vmem:[#allocation32_spill] sm:$0xff] %v6766_v63  ;;  %v6775_v11 = vpack.c.b16 %v6766_v63, %v6763_v27  ;;  %v6786_v54 = vunpack.c.l.b16 %v3539_v23  ;;  %v1475_v5 = vpack.c.bf16 %v1338_v26, %v1338_v26  ;;  %v5911_v23 = vld [vmem:[%s8639_s4 + $0x40] sm:$0xff] }
 0x133   : > { %v1606_v61 = vunpack.c.l.b16 %v1474_v62  ;;  %v6780_v12 = vunpack.c.l.b16 %v3537_v38  ;;  %v6784_v10 = vunpack.c.l.b16 %v3538_v43 }
 0x134   : > { %v6782_v28 = vpop.f32.mrf.mxu1  ;;  %8789 = vst [vmem:[#allocation35_spill] sm:$0xff] %v6786_v54  ;;  %v1607_v26 = vunpack.c.l.b16 %v1475_v5 }
 0x135   : > { %8787 = vst [vmem:[#allocation33_spill] sm:$0xff] %v6780_v12  ;;  %v6788_v30 = vpack.c.b16 %v1606_v61, %v1605_v45  ;;  %v6796_v38 = vpack.c.b16 %v6784_v10, %v6780_v12  ;;  %v5878_v45 = vld [vmem:[%s6416_s15 + $0x88] sm:$0xff]  ;;  %2618 = vmatpush.bf16.msrb.mxu0 %v5911_v23 }
 0x136   : > { %8788 = vst [vmem:[#allocation34_spill] sm:$0xff] %v6784_v10  ;;  %v1646_v62 = vpack.c.b16 %v1607_v26, %v1606_v61 }
 0x137   : > { %8790 = vst [vmem:[#allocation36_spill] sm:$0xff] %v6788_v30  ;;  %2018 = vmatmul.bf16.gmra.mxu1 %v6788_v30 }
 0x138   : > { %8791 = vst [vmem:[#allocation37_spill] sm:$0xff] %v6796_v38  ;;  %v5924_v38 = vld [vmem:[%s8639_s4 + $0x128] sm:$0xff] }
 0x139   : > { %v833_v39 = vpop.f32.mrf.mxu0  ;;  %2909 = vmatpush.bf16.msrb.mxu3 %v5924_v38 }
 0x13a   : > { %v834_v43 = vadd.f32 %v6518_v50, %v833_v39 }
 0x13c   : > { %v926_v35 = vmax.f32 %v834_v43, 0.0  ;;  %872 = vmatmul.bf16.gmra.mxu0 %v5878_v45  ;;  %v6804_v48 = vpop.f32.mrf.mxu1 }
 0x13d   : > { %8792 = vst [vmem:[#allocation38_spill] sm:$0xff] %v6804_v48 }
 0x13e   : > { %v1339_v37 = vrot.slane %v926_v35, 7  ;;  %v3374_v41 = vrot.slane %v926_v35, 1  ;;  %v2369_v43 = vpack.c.bf16 %v926_v35, %v926_v35  ;;  %v5879_v35 = vld [vmem:[%s6416_s15 + $0x90] sm:$0xff] }
 0x13f   : > { %1782 = vmatmul.bf16.gmra.mxu3 %v1646_v62 }
 0x140   : > { %v1444_v10 = vsel %vm1310_vm0, %v6472_v33, %v1339_v37  ;;  %v3508_v38 = vsel %vm3338_vm1, %v6524_v57, %v3374_v41 }
 0x141   : > { %v835_v5 = vpop.f32.mrf.mxu0  ;;  %v1476_v23 = vpack.c.bf16 %v1444_v10, %v1444_v10  ;;  %v6822_v10 = vunpack.c.l.b16 %v2369_v43 }
 0x142   : > { %v836_v39 = vadd.f32 %v6518_v50, %v835_v5  ;;  %v1743_v45 = vpop.f32.mrf.mxu2 }
 0x143   : > { %v6813_v61 = vadd.f32 %v6737_v13, %v1743_v45  ;;  %v1608_v12 = vunpack.c.l.b16 %v1476_v23 }
 0x144   : > { %v927_v34 = vmax.f32 %v836_v39, 0.0  ;;  %v6815_v40 = vpop.f32.mrf.mxu1  ;;  %v3542_v39 = vpack.c.bf16 %v3508_v38, %v3508_v38 }
 0x145   : > { %8793 = vst [vmem:[#allocation39_spill] sm:$0xff] %v6813_v61  ;;  %v6817_v62 = vpack.c.b16 %v1608_v12, %v1607_v26 }
 0x146   : > { %v1340_v1 = vrot.slane %v927_v34, 7  ;;  %v3375_v49 = vrot.slane %v927_v34, 1  ;;  %v2370_v22 = vpack.c.bf16 %v927_v34, %v927_v34 }
 0x147   : > { %8794 = vst [vmem:[#allocation40_spill] sm:$0xff] %v6817_v62  ;;  %2023 = vmatmul.bf16.gmra.mxu1 %v6817_v62 }
 0x148   : > { %v1341_v13 = vsel %vm1310_vm0, %v1339_v37, %v1340_v1  ;;  %v6826_v5 = vunpack.c.l.b16 %v2370_v22  ;;  %v3376_v23 = vsel %vm3338_vm1, %v3374_v41, %v3375_v49  ;;  %v3378_v0 = vsel %vm3338_vm1, %v3375_v49, %v6524_v57 }
 0x149   : > { %v838_v26 = vpop.f32.mrf.mxu0  ;;  %v1477_v45 = vpack.c.bf16 %v1341_v13, %v1341_v13  ;;  %v3540_v15 = vpack.c.bf16 %v3376_v23, %v3376_v23  ;;  %v1342_v34 = vsel %vm1310_vm0, %v1340_v1, %v6472_v33  ;;  %v3541_v37 = vpack.c.bf16 %v3378_v0, %v3378_v0 }
 0x14a   : > { %v6831_v16 = vpop.f32.mrf.mxu2  ;;  %v6843_v13 = vunpack.c.l.b16 %v3542_v39  ;;  %v1478_v23 = vpack.c.bf16 %v1342_v34, %v1342_v34  ;;  %v6314_v1 = vmov 0.0|0.0  }
 0x14b   : > { %8795 = vst [vmem:[#allocation41_spill] sm:$0xff] %v6831_v16  ;;  %v1609_v22 = vunpack.c.l.b16 %v1477_v45  ;;  %v6837_v7 = vunpack.c.l.b16 %v3540_v15  ;;  %v6841_v38 = vunpack.c.l.b16 %v3541_v37 }
 0x14c   : > { %877 = vmatmul.bf16.gmra.mxu0 %v5879_v35  ;;  %v6839_v41 = vpop.f32.mrf.mxu1  ;;  %8799 = vst [vmem:[#allocation45_spill] sm:$0xff] %v6843_v13  ;;  %v1610_v35 = vunpack.c.l.b16 %v1478_v23 }
 0x14d   : > { %8796 = vst [vmem:[#allocation42_spill] sm:$0xff] %v6837_v7  ;;  %v1647_v49 = vpack.c.b16 %v1609_v22, %v1608_v12  ;;  %v6847_v26 = vpack.c.b16 %v6837_v7, %v6786_v54  ;;  %v6853_v15 = vpack.c.b16 %v6843_v13, %v6841_v38  ;;  %v6863_v7 = vunpack.c.l.b16 %v6314_v1 }
 0x14e   : > { %8797 = vst [vmem:[#allocation43_spill] sm:$0xff] %v6839_v41  ;;  %v6861_v43 = vpack.c.b16 %v1610_v35, %v1609_v22 }
 0x14f   : > { %8798 = vst [vmem:[#allocation44_spill] sm:$0xff] %v6841_v38  ;;  %1787 = vmatmul.bf16.gmra.mxu3 %v1647_v49  ;;  %v6868_v49 = vpack.c.b16 %v6863_v7, %v6863_v7 }
 0x150   : > { %8800 = vst [vmem:[#allocation46_spill] sm:$0xff] %v6847_v26 }
 0x151   : > { %8801 = vst [vmem:[#allocation47_spill] sm:$0xff] %v6853_v15  ;;  %v840_v0 = vpop.f32.mrf.mxu0 }
 0x152   : > { %v841_v45 = vadd.f32 %v6518_v50, %v840_v0  ;;  %v1748_v39 = vpop.f32.mrf.mxu2  ;;  %8803 = vst [vmem:[#allocation49_spill] sm:$0xff] %v6861_v43 }
 0x153   : > { %v6857_v12 = vadd.f32 %v6782_v28, %v1748_v39  ;;  %8804 = vst [vmem:[#allocation50_spill] sm:$0xff] %v6868_v49 }
 0x154   : > { %v929_v34 = vmax.f32 %v841_v45, 0.0  ;;  %v6859_v37 = vpop.f32.mrf.mxu1 }
 0x155   : > { %8802 = vst [vmem:[#allocation48_spill] sm:$0xff] %v6857_v12 }
 0x156   : > { %v1343_v26 = vrot.slane %v929_v34, 7  ;;  %v3379_v28 = vrot.slane %v929_v34, 1  ;;  %v2372_v38 = vpack.c.bf16 %v929_v34, %v929_v34 }
 0x157   : > { %2028 = vmatmul.bf16.gmra.mxu1 %v6861_v43 }
 0x158   : > { %v1445_v23 = vsel %vm1310_vm0, %v6472_v33, %v1343_v26  ;;  %v3509_v24 = vsel %vm3338_vm1, %v6524_v57, %v3379_v28 }
 0x159   : > { %v843_v0 = vpop.f32.mrf.mxu0  ;;  %v1479_v45 = vpack.c.bf16 %v1445_v23, %v1445_v23  ;;  %v6880_v23 = vunpack.c.l.b16 %v2372_v38 }
 0x15a   : > { %v844_v39 = vadd.f32 %v6518_v50, %v843_v0  ;;  %v6873_v22 = vpop.f32.mrf.mxu2 }
 0x15b   : > { %8805 = vst [vmem:[#allocation51_spill] sm:$0xff] %v6873_v22  ;;  %v1611_v15 = vunpack.c.l.b16 %v1479_v45  ;;  %v3545_v45 = vpack.c.bf16 %v3509_v24, %v3509_v24 }
 0x15c   : > { %v930_v1 = vmax.f32 %v844_v39, 0.0  ;;  %v6875_v54 = vpop.f32.mrf.mxu1  ;;  %2619 = vmatmul.bf16.vlgmr.msrb.gmra.mxu0 %v6868_v49  ;;  %8807 = vst [vmem:[#allocation53_spill] sm:$0xff] %v6880_v23 }
 0x15d   : > { %8806 = vst [vmem:[#allocation52_spill] sm:$0xff] %v6875_v54  ;;  %v1648_v8 = vpack.c.b16 %v1611_v15, %v1610_v35 }
 0x15e   : > { %v1344_v6 = vrot.slane %v930_v1, 7  ;;  %v2373_v20 = vpack.c.bf16 %v930_v1, %v930_v1  ;;  %v3380_v21 = vrot.slane %v930_v1, 1 }
 0x15f   : > { %1792 = vmatmul.bf16.gmra.mxu3 %v1648_v8 }
 0x160   : > { %v1345_v0 = vsel %vm1310_vm0, %v1343_v26, %v1344_v6  ;;  %v6883_v41 = vunpack.c.l.b16 %v2373_v20  ;;  %v3381_v34 = vsel %vm3338_vm1, %v3379_v28, %v3380_v21  ;;  %v3383_v35 = vsel %vm3338_vm1, %v3380_v21, %v6524_v57 }
 0x161   : > { %v845_v39 = vpop.f32.mrf.mxu0  ;;  %v1480_v54 = vpack.c.bf16 %v1345_v0, %v1345_v0  ;;  %v3543_v49 = vpack.c.bf16 %v3381_v34, %v3381_v34  ;;  %v1346_v1 = vsel %vm1310_vm0, %v1344_v6, %v6472_v33  ;;  %v3544_v38 = vpack.c.bf16 %v3383_v35, %v3383_v35 }
 0x162   : > { %8808 = vst [vmem:[#allocation54_spill] sm:$0xff] %v6883_v41  ;;  %v1753_v48 = vpop.f32.mrf.mxu2  ;;  %v6892_v8 = vpack.c.b16 %v6883_v41, %v6880_v23  ;;  %v6903_v21 = vunpack.c.l.b16 %v3545_v45  ;;  %v1481_v6 = vpack.c.bf16 %v1346_v1, %v1346_v1  ;;  %v2516_v1 = vpack.c.b16 %v6542_v18, %v6863_v7 }
 0x163   : > { %v6895_v20 = vadd.f32 %v6815_v40, %v1753_v48  ;;  %v1612_v26 = vunpack.c.l.b16 %v1480_v54  ;;  %v6897_v24 = vunpack.c.l.b16 %v3543_v49  ;;  %v6901_v0 = vunpack.c.l.b16 %v3544_v38  ;;  %v5923_v40 = vld [vmem:[%s8639_s4 + $0x120] sm:$0xff] }
 0x164   : > { %v6899_v28 = vpop.f32.mrf.mxu1  ;;  %8812 = vst [vmem:[#allocation58_spill] sm:$0xff] %v6903_v21  ;;  %2910 = vmatpush.bf16.msrb.mxu3 %v5923_v40  ;;  %v1613_v49 = vunpack.c.l.b16 %v1481_v6 }
 0x165   : > { %8809 = vst [vmem:[#allocation55_spill] sm:$0xff] %v6895_v20  ;;  %v6905_v34 = vpack.c.b16 %v1612_v26, %v1611_v15  ;;  %v6916_v48 = vpack.c.b16 %v6901_v0, %v6897_v24 }
 0x166   : > { %8810 = vst [vmem:[#allocation56_spill] sm:$0xff] %v6897_v24  ;;  %v1649_v54 = vpack.c.b16 %v1613_v49, %v1612_v26  ;;  %v886_v24 = vadd.f32 %v6518_v50, %v6540_v17  ;;  %v894_v26 = vadd.f32 %v6518_v50, %v6577_v2  ;;  %v5934_v2 = vld [vmem:[%s8639_s4 + $0x1f8] sm:$0xff] }
 0x167   : > { %8811 = vst [vmem:[#allocation57_spill] sm:$0xff] %v6901_v0  ;;  %2033 = vmatmul.bf16.gmra.mxu1 %v6905_v34 }
 0x168   : > { %8813 = vst [vmem:[#allocation59_spill] sm:$0xff] %v6905_v34  ;;  %3161 = vmatpush.bf16.msra.mxu1 %v5934_v2 }
 0x169   : > { %8814 = vst [vmem:[#allocation60_spill] sm:$0xff] %v6916_v48  ;;  %v848_v15 = vpop.f32.mrf.mxu0 }
 0x16a   : > { %v849_v45 = vadd.f32 %v6518_v50, %v848_v15  ;;  %v6920_v35 = vpop.f32.mrf.mxu2 }
 0x16b   : > { %8815 = vst [vmem:[#allocation61_spill] sm:$0xff] %v6920_v35 }
 0x16c   : > { %v932_v38 = vmax.f32 %v849_v45, 0.0  ;;  %v6924_v39 = vpop.f32.mrf.mxu1  ;;  %2624 = vmatmul.bf16.gmra.mxu0 %v2516_v1 }
 0x16d   : > { %8816 = vst [vmem:[#allocation62_spill] sm:$0xff] %v6924_v39 }
 0x16e   : > { %v1347_v13 = vrot.slane %v932_v38, 7  ;;  %v2375_v23 = vpack.c.bf16 %v932_v38, %v932_v38  ;;  %v3384_v17 = vrot.slane %v932_v38, 1  ;;  %v2517_v38 = vpack.c.b16 %v6863_v7, %v6544_v19 }
 0x16f   : > { %1797 = vmatmul.bf16.gmra.mxu3 %v1649_v54  ;;  %v896_v54 = vadd.f32 %v6518_v50, %v6602_v25  ;;  %v6950_v25 = vmax.f32 %v894_v26, 0.0 }
 0x170   : > { %v1446_v48 = vsel %vm1310_vm0, %v6472_v33, %v1347_v13 }
 0x171   : > { %v850_v40 = vpop.f32.mrf.mxu0  ;;  %v1482_v0 = vpack.c.bf16 %v1446_v48, %v1446_v48  ;;  %v889_v48 = vadd.f32 %v6518_v50, %v6559_v32 }
 0x172   : > { %v851_v6 = vadd.f32 %v6518_v50, %v850_v40  ;;  %v1758_v15 = vpop.f32.mrf.mxu2 }
 0x173   : > { %v6932_v41 = vadd.f32 %v6859_v37, %v1758_v15  ;;  %v1614_v45 = vunpack.c.l.b16 %v1482_v0  ;;  %v6944_v15 = vmax.f32 %v886_v24, 0.0  ;;  %v6952_v0 = vmax.f32 %v896_v54, 0.0 }
 0x174   : > { %v933_v1 = vmax.f32 %v851_v6, 0.0  ;;  %v6938_v39 = vpop.f32.mrf.mxu1  ;;  %v6959_v20 = vmax.f32 %v889_v48, 0.0  ;;  %v6965_v54 = vunpack.c.l.b16 %v2375_v23  ;;  %v5933_v48 = vld [vmem:[%s8639_s4 + $0x1f0] sm:$0xff] }
 0x175   : > { %8817 = vst [vmem:[#allocation63_spill] sm:$0xff] %v6932_v41  ;;  %v6942_v40 = vpack.c.b16 %v1614_v45, %v1613_v49  ;;  %3162 = vmatpush.bf16.msra.mxu1 %v5933_v48  ;;  %v8822_v23 = vrot.slane %v6944_v15, 1  ;;  %v8824_v48 = vrot.slane %v6952_v0, 1 }
 0x176   : > { %v1348_v35 = vrot.slane %v933_v1, 7  ;;  %v2376_v37 = vpack.c.bf16 %v933_v1, %v933_v1  ;;  %8819 = vst [vmem:[#allocation65_spill] sm:$0xff] %v6944_v15  ;;  %v3385_v49 = vrot.slane %v933_v1, 1 }
 0x177   : > { %8818 = vst [vmem:[#allocation64_spill] sm:$0xff] %v6942_v40  ;;  %2038 = vmatmul.bf16.gmra.mxu1 %v6942_v40 }
 0x178   : > { %v1349_v32 = vsel %vm1310_vm0, %v1347_v13, %v1348_v35  ;;  %v6957_v24 = vunpack.c.l.b16 %v2376_v37  ;;  %8820 = vst [vmem:[#allocation66_spill] sm:$0xff] %v6959_v20  ;;  %v1350_v26 = vsel %vm1310_vm0, %v1348_v35, %v6472_v33  ;;  %v3510_v13 = vsel %vm3338_vm1, %v6524_v57, %v3384_v17 }
 0x179   : > { %v853_v6 = vpop.f32.mrf.mxu0  ;;  %v1483_v41 = vpack.c.bf16 %v1349_v32, %v1349_v32  ;;  %v3386_v22 = vsel %vm3338_vm1, %v3384_v17, %v3385_v49  ;;  %v3548_v1 = vpack.c.bf16 %v3510_v13, %v3510_v13  ;;  %v3388_v32 = vsel %vm3338_vm1, %v3385_v49, %v6524_v57 }
 0x17a   : > { %v6961_v40 = vpop.f32.mrf.mxu2  ;;  %v3546_v37 = vpack.c.bf16 %v3386_v22, %v3386_v22  ;;  %v3547_v63 = vpack.c.bf16 %v3388_v32, %v3388_v32  ;;  %v8825_v22 = vrot.slane %v6950_v25, 1 }
 0x17b   : > { %8821 = vst [vmem:[#allocation67_spill] sm:$0xff] %v6961_v40  ;;  %v1615_v6 = vunpack.c.l.b16 %v1483_v41  ;;  %v1484_v40 = vpack.c.bf16 %v1350_v26, %v1350_v26  ;;  %v7000_v32 = vunpack.c.l.b16 %v3548_v1 }
 0x17c   : > { %v6972_v2 = vpop.f32.mrf.mxu1  ;;  %2629 = vmatmul.bf16.gmra.mxu0 %v2517_v38  ;;  %v5932_v38 = vld [vmem:[%s8639_s4 + $0x1e8] sm:$0xff]  ;;  %v6991_v26 = vunpack.c.l.b16 %v3546_v37  ;;  %v3416_v49 = vsel %vm3338_vm1, %v8825_v22, %v8824_v48  ;;  %v6998_v12 = vunpack.c.l.b16 %v3547_v63  ;;  %v8828_v37 = vrot.slane %v6959_v20, 7 }
 0x17d   : > { %v1650_v35 = vpack.c.b16 %v1615_v6, %v1614_v45  ;;  %v3515_v45 = vsel %vm3338_vm1, %v6524_v57, %v8822_v23  ;;  %v1616_v41 = vunpack.c.l.b16 %v1484_v40  ;;  %8827 = vst [vmem:[#allocation70_spill] sm:$0xff] %v7000_v32  ;;  %v3564_v34 = vpack.c.bf16 %v3416_v49, %v3416_v49  ;;  %3163 = vmatpush.bf16.msra.mxu1 %v5932_v38 }
 0x17e   : > { %8823 = vst [vmem:[#allocation68_spill] sm:$0xff] %v6991_v26  ;;  %v3563_v13 = vpack.c.bf16 %v3515_v45, %v3515_v45  ;;  %v1370_v45 = vsel %vm1310_vm0, %v8828_v37, %v6472_v33  ;;  %v7011_v48 = vpack.c.b16 %v6991_v26, %v6903_v21  ;;  %v7022_v1 = vpack.c.b16 %v7000_v32, %v6998_v12 }
 0x17f   : > { %1802 = vmatmul.bf16.gmra.mxu3 %v1650_v35  ;;  %8826 = vst [vmem:[#allocation69_spill] sm:$0xff] %v6998_v12  ;;  %v7029_v49 = vpack.c.b16 %v1616_v41, %v1615_v6  ;;  %v8836_v6 = vrot.slane %v6950_v25, 7 }
 0x180   : > { %v7007_v17 = vunpack.c.l.b16 %v3563_v13  ;;  %8830 = vst [vmem:[#allocation72_spill] sm:$0xff] %v7011_v48  ;;  %v5931_v13 = vld [vmem:[%s8639_s4 + $0x1e0] sm:$0xff] }
 0x181   : > { %v855_v35 = vpop.f32.mrf.mxu0  ;;  %8833 = vst [vmem:[#allocation75_spill] sm:$0xff] %v7022_v1  ;;  %3164 = vmatpush.bf16.msra.mxu1 %v5931_v13  ;;  %v1452_v37 = vsel %vm1310_vm0, %v6472_v33, %v8836_v6  ;;  %v7051_v48 = vld [vmem:[%s8641_s6] ss:$0 sm:$0xff] }
 0x182   : > { %v856_v23 = vadd.f32 %v6518_v50, %v855_v35  ;;  %v1763_v51 = vpop.f32.mrf.mxu2  ;;  %8829 = vst [vmem:[#allocation71_spill] sm:$0xff] %v7007_v17  ;;  %v7018_v50 = vunpack.c.l.b16 %v3564_v34  ;;  %v1499_v34 = vpack.c.bf16 %v1370_v45, %v1370_v45  ;;  %v5922_v35 = vld [vmem:[%s8639_s4 + $0x118] sm:$0xff]  ;;  %v1500_v13 = vpack.c.bf16 %v1452_v37, %v1452_v37 }
 0x183   : > { %v7014_v63 = vadd.f32 %v6899_v28, %v1763_v51  ;;  %8834 = vst [vmem:[#allocation76_spill] sm:$0xff] %v7029_v49  ;;  %2911 = vmatpush.bf16.msrb.mxu3 %v5922_v35 }
 0x184   : > { %8832 = vst [vmem:[#allocation74_spill] sm:$0xff] %v7018_v50  ;;  %v935_v38 = vmax.f32 %v856_v23, 0.0  ;;  %v7024_v22 = vpop.f32.mrf.mxu1  ;;  %v7033_v51 = vpack.c.b16 %v7018_v50, %v7007_v17  ;;  %v5930_v23 = vld [vmem:[%s8639_s4 + $0x1d8] sm:$0xff]  ;;  %v7054_v26 = vunpack.c.l.b16 %v1499_v34  ;;  %v7056_v6 = vunpack.c.l.b16 %v1500_v13 }
 0x185   : > { %8831 = vst [vmem:[#allocation73_spill] sm:$0xff] %v7014_v63  ;;  %3165 = vmatpush.bf16.msra.mxu1 %v5930_v23  ;;  %v904_v13 = vadd.f32 %v7051_v48, %v6647_v42 }
 0x186   : > { %8835 = vst [vmem:[#allocation77_spill] sm:$0xff] %v7033_v51  ;;  %v1351_v28 = vrot.slane %v935_v38, 7  ;;  %v3389_v45 = vrot.slane %v935_v38, 1  ;;  %v2378_v21 = vpack.c.bf16 %v935_v38, %v935_v38  ;;  %v7069_v34 = vpack.c.b16 %v7056_v6, %v7054_v26 }
 0x187   : > { %2043 = vmatmul.bf16.gmra.mxu1 %v7029_v49 }
 0x188   : > { %v1447_v40 = vsel %vm1310_vm0, %v6472_v33, %v1351_v28  ;;  %8838 = vst [vmem:[#allocation79_spill] sm:$0xff] %v7069_v34  ;;  %v7080_v63 = vunpack.c.l.b16 %v2378_v21 }
 0x189   : > { %v858_v51 = vpop.f32.mrf.mxu0  ;;  %v1485_v1 = vpack.c.bf16 %v1447_v40, %v1447_v40 }
 0x18a   : > { %v859_v50 = vadd.f32 %v7051_v48, %v858_v51  ;;  %v1768_v17 = vpop.f32.mrf.mxu3  ;;  %v5929_v51 = vld [vmem:[%s8639_s4 + $0x1d0] sm:$0xff]  ;;  %8839 = vst [vmem:[#allocation80_spill] sm:$0xff] %v7080_v63 }
 0x18b   : > { %v7059_v12 = vadd.f32 %v6938_v39, %v1768_v17  ;;  %v1617_v37 = vunpack.c.l.b16 %v1485_v1  ;;  %v3511_v39 = vsel %vm3338_vm1, %v6524_v57, %v3389_v45  ;;  %v901_v17 = vadd.f32 %v7051_v48, %v6623_v4  ;;  %3166 = vmatpush.bf16.msra.mxu1 %v5929_v51 }
 0x18c   : > { %v936_v40 = vmax.f32 %v859_v50, 0.0  ;;  %v7061_v35 = vpop.f32.mrf.mxu1  ;;  %2634 = vmatmul.bf16.gmra.mxu0 %v6581_v3  ;;  %v3551_v16 = vpack.c.bf16 %v3511_v39, %v3511_v39 }
 0x18d   : > { %8837 = vst [vmem:[#allocation78_spill] sm:$0xff] %v7059_v12  ;;  %v1651_v23 = vpack.c.b16 %v1617_v37, %v1616_v41  ;;  %v5928_v12 = vld [vmem:[%s8639_s4 + $0x1c8] sm:$0xff]  ;;  %v7090_v61 = vmax.f32 %v901_v17, 0.0 }
 0x18e   : > { %v1352_v50 = vrot.slane %v936_v40, 7  ;;  %v2379_v1 = vpack.c.bf16 %v936_v40, %v936_v40  ;;  %v3390_v38 = vrot.slane %v936_v40, 1  ;;  %v2393_v40 = vpack.c.bf16 %v6950_v25, %v6950_v25 }
 0x18f   : > { %1807 = vmatmul.bf16.gmra.mxu3 %v1651_v23  ;;  %8841 = vst [vmem:[#allocation82_spill] sm:$0xff] %v7090_v61  ;;  %3167 = vmatpush.bf16.msra.mxu1 %v5928_v12 }
 0x190   : > { %v1353_v41 = vsel %vm1310_vm0, %v1351_v28, %v1352_v50  ;;  %v7083_v49 = vunpack.c.l.b16 %v2379_v1  ;;  %v3391_v4 = vsel %vm3338_vm1, %v3389_v45, %v3390_v38  ;;  %v3393_v23 = vsel %vm3338_vm1, %v3390_v38, %v6524_v57 }
 0x191   : > { %v860_v51 = vpop.f32.mrf.mxu0  ;;  %v1486_v27 = vpack.c.bf16 %v1353_v41, %v1353_v41  ;;  %v3549_v42 = vpack.c.bf16 %v3391_v4, %v3391_v4  ;;  %v1354_v28 = vsel %vm1310_vm0, %v1352_v50, %v6472_v33  ;;  %v3550_v39 = vpack.c.bf16 %v3393_v23, %v3393_v23  ;;  %v5927_v50 = vld [vmem:[%s8639_s4 + $0x1c0] sm:$0xff] }
 0x192   : > { %8840 = vst [vmem:[#allocation81_spill] sm:$0xff] %v7083_v49  ;;  %v1770_v21 = vpop.f32.mrf.mxu3  ;;  %v7096_v45 = vpack.c.b16 %v7083_v49, %v7080_v63  ;;  %v7098_v1 = vmax.f32 %v904_v13, 0.0  ;;  %v7112_v38 = vunpack.c.l.b16 %v3551_v16  ;;  %v1487_v13 = vpack.c.bf16 %v1354_v28, %v1354_v28 }
 0x193   : > { %v7101_v41 = vadd.f32 %v6972_v2, %v1770_v21  ;;  %v1618_v4 = vunpack.c.l.b16 %v1486_v27  ;;  %v7103_v51 = vunpack.c.l.b16 %v3549_v42  ;;  %v7110_v12 = vunpack.c.l.b16 %v3550_v39  ;;  %3168 = vmatpush.bf16.msra.mxu1 %v5927_v50 }
 0x194   : > { %v7105_v17 = vpop.f32.mrf.mxu1  ;;  %8845 = vst [vmem:[#allocation86_spill] sm:$0xff] %v7112_v38  ;;  %v2394_v2 = vpack.c.bf16 %v6952_v0, %v6952_v0  ;;  %v7129_v21 = vunpack.c.l.b16 %v2393_v40  ;;  %v1619_v27 = vunpack.c.l.b16 %v1487_v13  ;;  %v7136_v42 = vpack.c.b16 %v6612_v52, %v6863_v7 }
 0x195   : > { %8842 = vst [vmem:[#allocation83_spill] sm:$0xff] %v7101_v41  ;;  %v7114_v49 = vpack.c.b16 %v1618_v4, %v1617_v37  ;;  %v7124_v23 = vpack.c.b16 %v7110_v12, %v7103_v51  ;;  %v8850_v16 = vrot.slane %v6952_v0, 1  ;;  %v8851_v40 = vrot.slane %v7098_v1, 1 }
 0x196   : > { %8843 = vst [vmem:[#allocation84_spill] sm:$0xff] %v7103_v51  ;;  %v7131_v28 = vunpack.c.l.b16 %v2394_v2  ;;  %v8852_v2 = vrot.slane %v7090_v61, 1  ;;  %v1652_v32 = vpack.c.b16 %v1619_v27, %v1618_v4 }
 0x197   : > { %8844 = vst [vmem:[#allocation85_spill] sm:$0xff] %v7110_v12  ;;  %2048 = vmatmul.bf16.gmra.mxu1 %v7114_v49  ;;  %v3418_v37 = vsel %vm3338_vm1, %v8850_v16, %v6524_v57  ;;  %v1375_v16 = vrot.slane %v7090_v61, 7 }
 0x198   : > { %8846 = vst [vmem:[#allocation87_spill] sm:$0xff] %v7114_v49  ;;  %v3421_v13 = vsel %vm3338_vm1, %v8852_v2, %v8851_v40  ;;  %v3565_v51 = vpack.c.bf16 %v3418_v37, %v3418_v37 }
 0x199   : > { %8847 = vst [vmem:[#allocation88_spill] sm:$0xff] %v7124_v23  ;;  %v863_v39 = vpop.f32.mrf.mxu0  ;;  %v8853_v23 = vrot.slane %v6950_v25, 1  ;;  %v3567_v41 = vpack.c.bf16 %v3421_v13, %v3421_v13  ;;  %v1453_v13 = vsel %vm1310_vm0, %v6472_v33, %v1375_v16 }
 0x19a   : > { %8848 = vst [vmem:[#allocation89_spill] sm:$0xff] %v7129_v21  ;;  %v864_v50 = vadd.f32 %v7051_v48, %v863_v39  ;;  %v7157_v21 = vunpack.c.l.b16 %v3565_v51  ;;  %v1503_v47 = vpack.c.bf16 %v1453_v13, %v1453_v13 }
 0x19b   : > { %8849 = vst [vmem:[#allocation90_spill] sm:$0xff] %v7131_v28  ;;  %v3516_v63 = vsel %vm3338_vm1, %v6524_v57, %v8853_v23 }
 0x19c   : > { %v938_v12 = vmax.f32 %v864_v50, 0.0  ;;  %v7149_v39 = vpop.f32.mrf.mxu1  ;;  %2639 = vmatmul.bf16.gmra.mxu0 %v7136_v42  ;;  %v3566_v28 = vpack.c.bf16 %v3516_v63, %v3516_v63  ;;  %8854 = vst [vmem:[#allocation91_spill] sm:$0xff] %v7157_v21  ;;  %v7159_v50 = vunpack.c.l.b16 %v3567_v41  ;;  %v7185_v41 = vpack.c.b16 %v6863_v7, %v6616_v56 }
 0x19e   : > { %v1355_v49 = vrot.slane %v938_v12, 7  ;;  %8855 = vst [vmem:[#allocation92_spill] sm:$0xff] %v7159_v50  ;;  %v7163_v4 = vunpack.c.l.b16 %v3566_v28  ;;  %v2381_v30 = vpack.c.bf16 %v938_v12, %v938_v12 }
 0x19f   : > { %1812 = vmatmul.bf16.gmra.mxu3 %v1652_v32 }
 0x1a0   : > { %v1448_v40 = vsel %vm1310_vm0, %v6472_v33, %v1355_v49  ;;  %8856 = vst [vmem:[#allocation93_spill] sm:$0xff] %v7163_v4  ;;  %v7172_v63 = vpack.c.b16 %v7163_v4, %v7157_v21  ;;  %v7195_v4 = vunpack.c.l.b16 %v1503_v47 }
 0x1a1   : > { %v865_v37 = vpop.f32.mrf.mxu0  ;;  %v1488_v2 = vpack.c.bf16 %v1448_v40, %v1448_v40  ;;  %v3394_v40 = vrot.slane %v938_v12, 1 }
 0x1a2   : > { %v866_v43 = vadd.f32 %v7051_v48, %v865_v37  ;;  %v1773_v23 = vpop.f32.mrf.mxu3  ;;  %8857 = vst [vmem:[#allocation94_spill] sm:$0xff] %v7172_v63 }
 0x1a3   : > { %v7176_v51 = vadd.f32 %v7024_v22, %v1773_v23  ;;  %v1620_v28 = vunpack.c.l.b16 %v1488_v2  ;;  %v8860_v22 = vrot.slane %v7098_v1, 7  ;;  %v3512_v12 = vsel %vm3338_vm1, %v6524_v57, %v3394_v40  ;;  %8861 = vst [vmem:[#allocation97_spill] sm:$0xff] %v7195_v4 }
 0x1a4   : > { %v939_v61 = vmax.f32 %v866_v43, 0.0  ;;  %v7178_v37 = vpop.f32.mrf.mxu1 }
 0x1a5   : > { %8858 = vst [vmem:[#allocation95_spill] sm:$0xff] %v7176_v51  ;;  %v7180_v62 = vpack.c.b16 %v1620_v28, %v1619_v27  ;;  %v1377_v2 = vsel %vm1310_vm0, %v1375_v16, %v8860_v22  ;;  %v7201_v16 = vunpack.c.l.b16 %v2381_v30 }
 0x1a6   : > { %v1356_v31 = vrot.slane %v939_v61, 7  ;;  %v3395_v32 = vrot.slane %v939_v61, 1  ;;  %v2382_v29 = vpack.c.bf16 %v939_v61, %v939_v61  ;;  %v1504_v23 = vpack.c.bf16 %v1377_v2, %v1377_v2 }
 0x1a7   : > { %8859 = vst [vmem:[#allocation96_spill] sm:$0xff] %v7180_v62  ;;  %2053 = vmatmul.bf16.gmra.mxu1 %v7180_v62 }
 0x1a8   : > { %v1357_v43 = vsel %vm1310_vm0, %v1355_v49, %v1356_v31  ;;  %v1358_v27 = vsel %vm1310_vm0, %v1356_v31, %v6472_v33  ;;  %v7197_v21 = vunpack.c.l.b16 %v2382_v29  ;;  %v7199_v62 = vunpack.c.l.b16 %v1504_v23 }
 0x1a9   : > { %v868_v61 = vpop.f32.mrf.mxu0  ;;  %v1489_v13 = vpack.c.bf16 %v1357_v43, %v1357_v43  ;;  %v1490_v63 = vpack.c.bf16 %v1358_v27, %v1358_v27  ;;  %v3396_v49 = vsel %vm3338_vm1, %v3394_v40, %v3395_v32  ;;  %v3398_v31 = vsel %vm3338_vm1, %v3395_v32, %v6524_v57 }
 0x1aa   : > { %v1775_v51 = vpop.f32.mrf.mxu3  ;;  %8862 = vst [vmem:[#allocation98_spill] sm:$0xff] %v7199_v62  ;;  %v3554_v27 = vpack.c.bf16 %v3512_v12, %v3512_v12  ;;  %v3552_v40 = vpack.c.bf16 %v3396_v49, %v3396_v49  ;;  %v3553_v32 = vpack.c.bf16 %v3398_v31, %v3398_v31  ;;  %v8866_v12 = vrot.slane %v7098_v1, 1 }
 0x1ab   : > { %v7207_v22 = vadd.f32 %v7061_v35, %v1775_v51  ;;  %v1621_v2 = vunpack.c.l.b16 %v1489_v13  ;;  %v1622_v43 = vunpack.c.l.b16 %v1490_v63  ;;  %v5910_v35 = vld [vmem:[%s8639_s4 + $0x1b8] sm:$0xff]  ;;  %v5921_v63 = vld [vmem:[%s8639_s4 + $0x110] sm:$0xff] }
 0x1ac   : > { %v7209_v47 = vpop.f32.mrf.mxu1  ;;  %2644 = vmatmul.bf16.gmra.mxu0 %v7185_v41  ;;  %v7224_v51 = vunpack.c.l.b16 %v3552_v40  ;;  %v3423_v13 = vsel %vm3338_vm1, %v8866_v12, %v6524_v57  ;;  %v7233_v49 = vunpack.c.l.b16 %v3554_v27  ;;  %2171 = vmatpush.bf16.msra.mxu2 %v5910_v35 }
 0x1ad   : > { %8863 = vst [vmem:[#allocation99_spill] sm:$0xff] %v7207_v22  ;;  %v1653_v23 = vpack.c.b16 %v1621_v2, %v1620_v28  ;;  %v7216_v61 = vpack.c.b16 %v1622_v43, %v1621_v2  ;;  %v7231_v28 = vunpack.c.l.b16 %v3553_v32  ;;  %v3568_v31 = vpack.c.bf16 %v3423_v13, %v3423_v13  ;;  %2912 = vmatpush.bf16.msrb.mxu3 %v5921_v63 }
 0x1ae   : > { %8865 = vst [vmem:[#allocation101_spill] sm:$0xff] %v7224_v51  ;;  %v7237_v2 = vpack.c.b16 %v7224_v51, %v7112_v38 }
 0x1af   : > { %8864 = vst [vmem:[#allocation100_spill] sm:$0xff] %v7216_v61  ;;  %1817 = vmatmul.bf16.gmra.mxu3 %v1653_v23  ;;  %2058 = vmatmul.bf16.vlgmr.msrb.gmra.mxu2 %v7216_v61  ;;  %v7241_v29 = vunpack.c.l.b16 %v3568_v31  ;;  %v7245_v23 = vpack.c.b16 %v7233_v49, %v7231_v28  ;;  %v5909_v31 = vld [vmem:[%s8639_s4 + $0x1b0] sm:$0xff] }
 0x1b0   : > { %8867 = vst [vmem:[#allocation102_spill] sm:$0xff] %v7231_v28  ;;  %2172 = vmatpush.bf16.msra.mxu2 %v5909_v31 }
 0x1b1   : > { %8868 = vst [vmem:[#allocation103_spill] sm:$0xff] %v7233_v49  ;;  %v870_v40 = vpop.f32.mrf.mxu0 }
 0x1b2   : > { %8869 = vst [vmem:[#allocation104_spill] sm:$0xff] %v7237_v2  ;;  %v871_v27 = vadd.f32 %v7051_v48, %v870_v40  ;;  %v1778_v32 = vpop.f32.mrf.mxu3 }
 0x1b3   : > { %8870 = vst [vmem:[#allocation105_spill] sm:$0xff] %v7241_v29  ;;  %v7249_v35 = vadd.f32 %v7105_v17, %v1778_v32 }
 0x1b4   : > { %8871 = vst [vmem:[#allocation106_spill] sm:$0xff] %v7245_v23  ;;  %v941_v12 = vmax.f32 %v871_v27, 0.0  ;;  %v7253_v13 = vpop.f32.mrf.mxu1 }
 0x1b5   : > { %8872 = vst [vmem:[#allocation107_spill] sm:$0xff] %v7249_v35 }
 0x1b6   : > { %v1359_v2 = vrot.slane %v941_v12, 7  ;;  %v3399_v30 = vrot.slane %v941_v12, 1  ;;  %v2384_v50 = vpack.c.bf16 %v941_v12, %v941_v12 }
 0x1b7   : > { %3169 = vmatmul.bf16.vlgmr.msra.gmra.mxu1 %v6581_v3 }
 0x1b8   : > { %v1449_v40 = vsel %vm1310_vm0, %v6472_v33, %v1359_v2  ;;  %v3513_v38 = vsel %vm3338_vm1, %v6524_v57, %v3399_v30 }
 0x1b9   : > { %v873_v23 = vpop.f32.mrf.mxu0  ;;  %v1491_v17 = vpack.c.bf16 %v1449_v40, %v1449_v40 }
 0x1ba   : > { %v874_v32 = vadd.f32 %v7051_v48, %v873_v23  ;;  %v1780_v63 = vpop.f32.mrf.mxu3  ;;  %v7270_v23 = vunpack.c.l.b16 %v2384_v50 }
 0x1bb   : > { %v7263_v27 = vadd.f32 %v7149_v39, %v1780_v63  ;;  %v1623_v29 = vunpack.c.l.b16 %v1491_v17  ;;  %v3557_v17 = vpack.c.bf16 %v3513_v38, %v3513_v38 }
 0x1bc   : > { %v942_v3 = vmax.f32 %v874_v32, 0.0  ;;  %v7265_v51 = vpop.f32.mrf.mxu1  ;;  %2649 = vmatmul.bf16.gmra.mxu0 %v6673_v60  ;;  %8874 = vst [vmem:[#allocation109_spill] sm:$0xff] %v7270_v23 }
 0x1bd   : > { %8873 = vst [vmem:[#allocation108_spill] sm:$0xff] %v7263_v27  ;;  %v1654_v28 = vpack.c.b16 %v1623_v29, %v1622_v43 }
 0x1be   : > { %v1360_v35 = vrot.slane %v942_v3, 7  ;;  %v2385_v40 = vpack.c.bf16 %v942_v3, %v942_v3  ;;  %v3400_v31 = vrot.slane %v942_v3, 1 }
 0x1bf   : > { %1822 = vmatmul.bf16.gmra.mxu3 %v1654_v28 }
 0x1c0   : > { %v1361_v39 = vsel %vm1310_vm0, %v1359_v2, %v1360_v35  ;;  %v7273_v63 = vunpack.c.l.b16 %v2385_v40  ;;  %v3401_v12 = vsel %vm3338_vm1, %v3399_v30, %v3400_v31  ;;  %v3403_v43 = vsel %vm3338_vm1, %v3400_v31, %v6524_v57 }
 0x1c1   : > { %v875_v32 = vpop.f32.mrf.mxu0  ;;  %v1492_v27 = vpack.c.bf16 %v1361_v39, %v1361_v39  ;;  %v3555_v22 = vpack.c.bf16 %v3401_v12, %v3401_v12  ;;  %v1362_v3 = vsel %vm1310_vm0, %v1360_v35, %v6472_v33  ;;  %v3556_v28 = vpack.c.bf16 %v3403_v43, %v3403_v43 }
 0x1c2   : > { %8875 = vst [vmem:[#allocation110_spill] sm:$0xff] %v7273_v63  ;;  %v1783_v61 = vpop.f32.mrf.mxu3  ;;  %v7282_v50 = vpack.c.b16 %v7273_v63, %v7270_v23  ;;  %v7293_v31 = vunpack.c.l.b16 %v3557_v17  ;;  %v1493_v35 = vpack.c.bf16 %v1362_v3, %v1362_v3  ;;  %v7313_v3 = vpack.c.b16 %v6705_v53, %v6863_v7  ;;  %v5907_v23 = vld [vmem:[%s8639_s4 + $0x1a0] sm:$0xff] }
 0x1c3   : > { %v7285_v2 = vadd.f32 %v7178_v37, %v1783_v61  ;;  %v1624_v30 = vunpack.c.l.b16 %v1492_v27  ;;  %v7287_v38 = vunpack.c.l.b16 %v3555_v22  ;;  %v7291_v39 = vunpack.c.l.b16 %v3556_v28  ;;  %v5908_v22 = vld [vmem:[%s8639_s4 + $0x1a8] sm:$0xff] }
 0x1c4   : > { %v7289_v40 = vpop.f32.mrf.mxu1  ;;  %8879 = vst [vmem:[#allocation114_spill] sm:$0xff] %v7293_v31  ;;  %v1625_v61 = vunpack.c.l.b16 %v1493_v35  ;;  %2173 = vmatpush.bf16.msra.mxu2 %v5908_v22 }
 0x1c5   : > { %8876 = vst [vmem:[#allocation111_spill] sm:$0xff] %v7285_v2  ;;  %v7295_v12 = vpack.c.b16 %v1624_v30, %v1623_v29  ;;  %v7303_v37 = vpack.c.b16 %v7291_v39, %v7287_v38 }
 0x1c6   : > { %8877 = vst [vmem:[#allocation112_spill] sm:$0xff] %v7287_v38 }
 0x1c7   : > { %8878 = vst [vmem:[#allocation113_spill] sm:$0xff] %v7291_v39  ;;  %2063 = vmatmul.bf16.gmra.mxu2 %v7295_v12  ;;  %3174 = vmatmul.bf16.gmra.mxu1 %v7136_v42  ;;  %v1655_v42 = vpack.c.b16 %v1625_v61, %v1624_v30  ;;  %v5920_v30 = vld [vmem:[%s8639_s4 + $0x108] sm:$0xff] }
 0x1c8   : > { %8880 = vst [vmem:[#allocation115_spill] sm:$0xff] %v7295_v12  ;;  %2913 = vmatpush.bf16.msrb.mxu3 %v5920_v30  ;;  %2174 = vmatpush.bf16.msra.mxu2 %v5907_v23 }
 0x1c9   : > { %8881 = vst [vmem:[#allocation116_spill] sm:$0xff] %v7303_v37  ;;  %v878_v29 = vpop.f32.mrf.mxu0 }
 0x1ca   : > { %v879_v27 = vadd.f32 %v7051_v48, %v878_v29  ;;  %v1785_v17 = vpop.f32.mrf.mxu3 }
 0x1cb   : > { %v7316_v28 = vadd.f32 %v7209_v47, %v1785_v17 }
 0x1cc   : > { %v944_v43 = vmax.f32 %v879_v27, 0.0  ;;  %v7318_v32 = vpop.f32.mrf.mxu1  ;;  %2654 = vmatmul.bf16.gmra.mxu0 %v7313_v3 }
 0x1cd   : > { %8882 = vst [vmem:[#allocation117_spill] sm:$0xff] %v7316_v28 }
 0x1ce   : > { %v1363_v37 = vrot.slane %v944_v43, 7  ;;  %v3404_v22 = vrot.slane %v944_v43, 1  ;;  %v2387_v63 = vpack.c.bf16 %v944_v43, %v944_v43 }
 0x1cf   : > { %1827 = vmatmul.bf16.gmra.mxu3 %v1655_v42 }
 0x1d0   : > { %v1450_v35 = vsel %vm1310_vm0, %v6472_v33, %v1363_v37 }
 0x1d1   : > { %v880_v29 = vpop.f32.mrf.mxu0  ;;  %v1494_v39 = vpack.c.bf16 %v1450_v35, %v1450_v35 }
 0x1d2   : > { %v881_v49 = vadd.f32 %v7051_v48, %v880_v29  ;;  %v1788_v38 = vpop.f32.mrf.mxu3  ;;  %v3514_v48 = vsel %vm3338_vm1, %v6524_v57, %v3404_v22 }
 0x1d3   : > { %v7325_v47 = vadd.f32 %v7253_v13, %v1788_v38  ;;  %v1626_v27 = vunpack.c.l.b16 %v1494_v39  ;;  %v3560_v30 = vpack.c.bf16 %v3514_v48, %v3514_v48 }
 0x1d4   : > { %v945_v17 = vmax.f32 %v881_v49, 0.0  ;;  %v7330_v42 = vpop.f32.mrf.mxu1  ;;  %v7341_v49 = vunpack.c.l.b16 %v2387_v63 }
 0x1d5   : > { %8883 = vst [vmem:[#allocation118_spill] sm:$0xff] %v7325_v47  ;;  %v7335_v35 = vpack.c.b16 %v1626_v27, %v1625_v61 }
 0x1d6   : > { %v1364_v13 = vrot.slane %v945_v17, 7  ;;  %v3405_v38 = vrot.slane %v945_v17, 1  ;;  %v2388_v39 = vpack.c.bf16 %v945_v17, %v945_v17 }
 0x1d7   : > { %8884 = vst [vmem:[#allocation119_spill] sm:$0xff] %v7335_v35  ;;  %2068 = vmatmul.bf16.gmra.mxu2 %v7335_v35  ;;  %3179 = vmatmul.bf16.gmra.mxu1 %v7185_v41  ;;  %v7353_v41 = vpack.c.b16 %v6863_v7, %v6709_v59 }
 0x1d8   : > { %v1365_v43 = vsel %vm1310_vm0, %v1363_v37, %v1364_v13  ;;  %v7344_v29 = vunpack.c.l.b16 %v2388_v39  ;;  %v3406_v61 = vsel %vm3338_vm1, %v3404_v22, %v3405_v38  ;;  %v3408_v23 = vsel %vm3338_vm1, %v3405_v38, %v6524_v57 }
 0x1d9   : > { %v7347_v47 = vpop.f32.mrf.mxu0  ;;  %v1495_v28 = vpack.c.bf16 %v1365_v43, %v1365_v43  ;;  %v3558_v17 = vpack.c.bf16 %v3406_v61, %v3406_v61  ;;  %v1366_v63 = vsel %vm1310_vm0, %v1364_v13, %v6472_v33  ;;  %v3559_v22 = vpack.c.bf16 %v3408_v23, %v3408_v23 }
 0x1da   : > { %v1790_v2 = vpop.f32.mrf.mxu3  ;;  %v7367_v57 = vunpack.c.l.b16 %v3560_v30  ;;  %v1496_v12 = vpack.c.bf16 %v1366_v63, %v1366_v63  ;;  %v5906_v63 = vld [vmem:[%s8639_s4 + $0x198] sm:$0xff] }
 0x1db   : > { %v7360_v48 = vadd.f32 %v7265_v51, %v1790_v2  ;;  %v1627_v39 = vunpack.c.l.b16 %v1495_v28  ;;  %v7362_v43 = vunpack.c.l.b16 %v3558_v17  ;;  %v7365_v61 = vunpack.c.l.b16 %v3559_v22  ;;  %2175 = vmatpush.bf16.msra.mxu2 %v5906_v63 }
 0x1dc   : > { %v2031_v38 = vpop.f32.mrf.mxu1  ;;  %2659 = vmatmul.bf16.gmra.mxu0 %v7353_v41  ;;  %8887 = vst [vmem:[#allocation122_spill] sm:$0xff] %v7367_v57  ;;  %v1367_v28 = vrot.slane %v6944_v15, 7  ;;  %v1628_v30 = vunpack.c.l.b16 %v1496_v12 }
 0x1dd   : > { %8885 = vst [vmem:[#allocation120_spill] sm:$0xff] %v7362_v43  ;;  %v1656_v35 = vpack.c.b16 %v1627_v39, %v1626_v27  ;;  %v7371_v13 = vpack.c.b16 %v7362_v43, %v7293_v31  ;;  %v7377_v2 = vpack.c.b16 %v7367_v57, %v7365_v61 }
 0x1de   : > { %8886 = vst [vmem:[#allocation121_spill] sm:$0xff] %v7365_v61  ;;  %v1451_v51 = vsel %vm1310_vm0, %v6472_v33, %v1367_v28  ;;  %v7390_v37 = vpack.c.b16 %v1628_v30, %v1627_v39 }
 0x1df   : > { %8888 = vst [vmem:[#allocation123_spill] sm:$0xff] %v7371_v13  ;;  %1832 = vmatmul.bf16.gmra.mxu3 %v1656_v35  ;;  %v1497_v12 = vpack.c.bf16 %v1451_v51, %v1451_v51 }
 0x1e0   : > { %8889 = vst [vmem:[#allocation124_spill] sm:$0xff] %v7377_v2 }
 0x1e1   : > { %v7380_v23 = vpop.f32.mrf.mxu0  ;;  %v1629_v57 = vunpack.c.l.b16 %v1497_v12 }
 0x1e2   : > { %v1793_v17 = vpop.f32.mrf.mxu3 }
 0x1e3   : > { %v7383_v27 = vadd.f32 %v7289_v40, %v1793_v17  ;;  %v8890_v17 = vrot.slane %v6959_v20, 7  ;;  %v1657_v39 = vpack.c.b16 %v1629_v57, %v1628_v30  ;;  %v5919_v30 = vld [vmem:[%s8639_s4 + $0x100] sm:$0xff] }
 0x1e4   : > { %v2034_v22 = vpop.f32.mrf.mxu1  ;;  %2914 = vmatpush.bf16.msrb.mxu3 %v5919_v30 }
 0x1e5   : > { %v1369_v2 = vsel %vm1310_vm0, %v1367_v28, %v8890_v17  ;;  %v2525_v17 = vpack.c.b16 %v6822_v10, %v6863_v7 }
 0x1e6   : > { %v1498_v63 = vpack.c.bf16 %v1369_v2, %v1369_v2 }
 0x1e7   : > { %2073 = vmatmul.bf16.gmra.mxu2 %v7390_v37  ;;  %3184 = vmatmul.bf16.gmra.mxu1 %v6673_v60  ;;  %v5905_v60 = vld [vmem:[%s8639_s4 + $0x190] sm:$0xff] }
 0x1e8   : > { %v1630_v61 = vunpack.c.l.b16 %v1498_v63  ;;  %2176 = vmatpush.bf16.msra.mxu2 %v5905_v60 }
 0x1e9   : > { %v7394_v35 = vpop.f32.mrf.mxu0 }
 0x1ea   : > { %v1795_v40 = vpop.f32.mrf.mxu3  ;;  %v7411_v12 = vpack.c.b16 %v1630_v61, %v1629_v57  ;;  %v1658_v57 = vpack.c.b16 %v7054_v26, %v1630_v61  ;;  %v5903_v26 = vld [vmem:[%s8639_s4 + $0x180] sm:$0xff] }
 0x1eb   : > { %v7400_v13 = vadd.f32 %v7318_v32, %v1795_v40 }
 0x1ec   : > { %v2036_v43 = vpop.f32.mrf.mxu1  ;;  %2664 = vmatmul.bf16.gmra.mxu0 %v6775_v11 }
 0x1ef   : > { %1837 = vmatmul.bf16.gmra.mxu3 %v1657_v39 }
 0x1f1   : > { %v7406_v51 = vpop.f32.mrf.mxu0 }
 0x1f2   : > { %v1798_v31 = vpop.f32.mrf.mxu3 }
 0x1f3   : > { %v7409_v28 = vadd.f32 %v7330_v42, %v1798_v31  ;;  %v1372_v42 = vrot.slane %v6952_v0, 7 }
 0x1f4   : > { %v2039_v32 = vpop.f32.mrf.mxu1 }
 0x1f5   : > { %8891 = vst [vmem:[#allocation125_spill] sm:$0xff] %v7409_v28  ;;  %v8893_v28 = vrot.slane %v6950_v25, 7  ;;  %v2526_v25 = vpack.c.b16 %v6863_v7, %v6826_v5 }
 0x1f7   : > { %2078 = vmatmul.bf16.gmra.mxu2 %v7411_v12  ;;  %3189 = vmatmul.bf16.gmra.mxu1 %v7313_v3  ;;  %v5904_v3 = vld [vmem:[%s8639_s4 + $0x188] sm:$0xff] }
 0x1f8   : > { %2177 = vmatpush.bf16.msra.mxu2 %v5904_v3 }
 0x1f9   : > { %v7415_v2 = vpop.f32.mrf.mxu0 }
 0x1fa   : > { %v1800_v40 = vpop.f32.mrf.mxu3 }
 0x1fb   : > { %v7422_v39 = vadd.f32 %v2031_v38, %v1800_v40  ;;  %v1373_v38 = vsel %vm1310_vm0, %v8893_v28, %v1372_v42 }
 0x1fc   : > { %v2041_v31 = vpop.f32.mrf.mxu1  ;;  %2669 = vmatmul.bf16.gmra.mxu0 %v2525_v17  ;;  %v1501_v61 = vpack.c.bf16 %v1373_v38, %v1373_v38  ;;  %2178 = vmatpush.bf16.msra.mxu2 %v5903_v26 }
 0x1fd   : > { %8892 = vst [vmem:[#allocation126_spill] sm:$0xff] %v7422_v39 }
 0x1ff   : > { %1842 = vmatmul.bf16.gmra.mxu3 %v1658_v57  ;;  %v1633_v57 = vunpack.c.l.b16 %v1501_v61 }
 0x201   : > { %v7429_v63 = vpop.f32.mrf.mxu0 }
 0x202   : > { %v1803_v60 = vpop.f32.mrf.mxu3 }
 0x203   : > { %v7434_v30 = vadd.f32 %v2034_v22, %v1803_v60  ;;  %v1374_v22 = vsel %vm1310_vm0, %v1372_v42, %v6472_v33  ;;  %v1659_v60 = vpack.c.b16 %v1633_v57, %v7056_v6 }
 0x204   : > { %v2044_v0 = vpop.f32.mrf.mxu1  ;;  %v1502_v38 = vpack.c.bf16 %v1374_v22, %v1374_v22  ;;  %v5942_v22 = vld [vmem:[%s8639_s4 + $0xb8] sm:$0xff] }
 0x205   : > { %8894 = vst [vmem:[#allocation127_spill] sm:$0xff] %v7434_v30  ;;  %3782 = vmatpush.bf16.msrb.mxu2 %v5942_v22 }
 0x207   : > { %2083 = vmatmul.bf16.gmra.mxu2 %v7069_v34  ;;  %3194 = vmatmul.bf16.gmra.mxu1 %v7353_v41  ;;  %v1634_v41 = vunpack.c.l.b16 %v1502_v38 }
 0x209   : > { %v7441_v40 = vpop.f32.mrf.mxu0  ;;  %v7454_v34 = vpack.c.b16 %v1634_v41, %v1633_v57 }
 0x20a   : > { %v1805_v3 = vpop.f32.mrf.mxu3 }
 0x20b   : > { %v7447_v28 = vadd.f32 %v2036_v43, %v1805_v3 }
 0x20c   : > { %2674 = vmatmul.bf16.gmra.mxu0 %v2526_v25  ;;  %v2046_v26 = vpop.f32.mrf.mxu1 }
 0x20f   : > { %1847 = vmatmul.bf16.gmra.mxu3 %v1659_v60 }
 0x211   : > { %v7450_v30 = vpop.f32.mrf.mxu0 }
 0x212   : > { %v1808_v39 = vpop.f32.mrf.mxu3 }
 0x213   : > { %v7452_v61 = vadd.f32 %v2039_v32, %v1808_v39  ;;  %v1660_v32 = vpack.c.b16 %v7195_v4, %v1634_v41  ;;  %v5950_v41 = vld [vmem:[%s8639_s4 + $0x178] sm:$0xff] }
 0x214   : > { %v2049_v43 = vpop.f32.mrf.mxu1  ;;  %4078 = vmatpush.bf16.msra.mxu0 %v5950_v41 }
 0x215   : > { %8895 = vst [vmem:[#allocation128_spill] sm:$0xff] %v7452_v61 }
 0x217   : > { %2088 = vmatmul.bf16.gmra.mxu2 %v7454_v34  ;;  %3199 = vmatmul.bf16.gmra.mxu1 %v6775_v11  ;;  %v5958_v11 = vld [vmem:[%s8639_s4 + $0x238] sm:$0xff] }
 0x218   : > { %4332 = vmatpush.bf16.msra.mxu3 %v5958_v11 }
 0x219   : > { %v7458_v42 = vpop.f32.mrf.mxu0 }
 0x21a   : > { %v1810_v3 = vpop.f32.mrf.mxu3 }
 0x21b   : > { %v7460_v6 = vadd.f32 %v2041_v31, %v1810_v3  ;;  %v8897_v31 = vrot.slane %v7098_v1, 7 }
 0x21c   : > { %2679 = vmatmul.bf16.gmra.mxu0 %v6892_v8  ;;  %v2051_v38 = vpop.f32.mrf.mxu1 }
 0x21d   : > { %8896 = vst [vmem:[#allocation129_spill] sm:$0xff] %v7460_v6  ;;  %v1378_v60 = vsel %vm1310_vm0, %v8897_v31, %v6472_v33  ;;  %v2528_v33 = vpack.c.b16 %v6965_v54, %v6863_v7 }
 0x21e   : > { %v1505_v22 = vpack.c.bf16 %v1378_v60, %v1378_v60  ;;  %v7492_v60 = vpop.f32.mrf.mxu2 }
 0x21f   : > { %1852 = vmatmul.bf16.gmra.mxu3 %v1660_v32 }
 0x220   : > { %v7484_v11 = vunpack.c.l.b16 %v1505_v22 }
 0x221   : > { %v7470_v39 = vpop.f32.mrf.mxu0 }
 0x222   : > { %v1813_v57 = vpop.f32.mrf.mxu3  ;;  %8899 = vst [vmem:[#allocation131_spill] sm:$0xff] %v7484_v11 }
 0x223   : > { %v7476_v3 = vadd.f32 %v2044_v0, %v1813_v57  ;;  %v1661_v57 = vpack.c.b16 %v7484_v11, %v7199_v62 }
 0x224   : > { %v2054_v0 = vpop.f32.mrf.mxu1 }
 0x225   : > { %8898 = vst [vmem:[#allocation130_spill] sm:$0xff] %v7476_v3 }
 0x227   : > { %2179 = vmatmul.bf16.vlgmr.msra.gmra.mxu2 %v6589_v9  ;;  %3204 = vmatmul.bf16.gmra.mxu1 %v2525_v17 }
 0x229   : > { %v7482_v32 = vpop.f32.mrf.mxu0 }
 0x22a   : > { %v1815_v6 = vpop.f32.mrf.mxu3 }
 0x22b   : > { %v7488_v31 = vadd.f32 %v2046_v26, %v1815_v6 }
 0x22c   : > { %2684 = vmatmul.bf16.gmra.mxu0 %v2528_v33  ;;  %v2056_v22 = vpop.f32.mrf.mxu1 }
 0x22d   : > { %8900 = vst [vmem:[#allocation132_spill] sm:$0xff] %v7488_v31  ;;  %v2529_v31 = vpack.c.b16 %v6863_v7, %v6957_v24 }
 0x22f   : > { %1857 = vmatmul.bf16.gmra.mxu3 %v1661_v57  ;;  %v8903_v57 = vpack.c.b16 %v6544_v19, %v6542_v18  ;;  %v5941_v19 = vld [vmem:[%s8639_s4 + $0xb0] sm:$0xff] }
 0x230   : > { %3783 = vmatpush.bf16.msrb.mxu2 %v5941_v19 }
 0x231   : > { %v7494_v9 = vpop.f32.mrf.mxu0 }
 0x232   : > { %v1818_v17 = vpop.f32.mrf.mxu3  ;;  %v2059_v3 = vpop.f32.mrf.mxu2 }
 0x233   : > { %v7496_v41 = vadd.f32 %v2049_v43, %v1818_v17 }
 0x234   : > { %v7508_v43 = vpop.f32.mrf.mxu1 }
 0x235   : > { %8901 = vst [vmem:[#allocation133_spill] sm:$0xff] %v7496_v41 }
 0x236   : > { %8904 = vst [vmem:[#allocation135_spill] sm:$0xff] %v7508_v43 }
 0x237   : > { %2184 = vmatmul.bf16.gmra.mxu2 %v6607_v46  ;;  %3209 = vmatmul.bf16.gmra.mxu1 %v2526_v25 }
 0x239   : > { %v7499_v26 = vpop.f32.mrf.mxu0 }
 0x23a   : > { %v1820_v6 = vpop.f32.mrf.mxu3  ;;  %v2061_v46 = vpop.f32.mrf.mxu2 }
 0x23b   : > { %v7503_v11 = vadd.f32 %v2051_v38, %v1820_v6 }
 0x23c   : > { %2689 = vmatmul.bf16.gmra.mxu0 %v2529_v31 }
 0x23d   : > { %8902 = vst [vmem:[#allocation134_spill] sm:$0xff] %v7503_v11  ;;  %v7518_v11 = vpop.f32.mrf.mxu1 }
 0x23e   : > { %8906 = vst [vmem:[#allocation137_spill] sm:$0xff] %v7518_v11 }
 0x23f   : > { %2915 = vmatmul.bf16.vlgmr.msrb.gmra.mxu3 %v8903_v57 }
 0x241   : > { %v7510_v17 = vpop.f32.mrf.mxu0 }
 0x242   : > { %v1823_v25 = vpop.f32.mrf.mxu3 }
 0x243   : > { %v7512_v41 = vadd.f32 %v2054_v0, %v1823_v25  ;;  %v2812_v0 = vpack.c.b16 %v6567_v55, %v6863_v7 }
 0x245   : > { %8905 = vst [vmem:[#allocation136_spill] sm:$0xff] %v7512_v41  ;;  %v7538_v11 = vpop.f32.mrf.mxu1  ;;  %v8930_v41 = vld [vmem:[#allocation40_spill] sm:$0xff] }
 0x246   : > { %8909 = vst [vmem:[#allocation140_spill] sm:$0xff] %v7538_v11 }
 0x247   : > { %2189 = vmatmul.bf16.gmra.mxu2 %v6649_v44  ;;  %3214 = vmatmul.bf16.gmra.mxu1 %v6892_v8  ;;  %v5957_v44 = vld [vmem:[%s8639_s4 + $0x230] sm:$0xff] }
 0x248   : > { %4333 = vmatpush.bf16.msra.mxu3 %v5957_v44  ;;  %v2531_v44 = vpack.c.b16 %v7201_v16, %v6863_v7 }
 0x249   : > { %v7516_v61 = vpop.f32.mrf.mxu0 }
 0x24a   : > { %v1825_v38 = vpop.f32.mrf.mxu3  ;;  %v2064_v6 = vpop.f32.mrf.mxu2 }
 0x24b   : > { %v7520_v18 = vadd.f32 %v2056_v22, %v1825_v38  ;;  %v5949_v38 = vld [vmem:[%s8639_s4 + $0x170] sm:$0xff] }
 0x24c   : > { %2694 = vmatmul.bf16.gmra.mxu0 %v7096_v45 }
 0x24d   : > { %8907 = vst [vmem:[#allocation138_spill] sm:$0xff] %v7520_v18  ;;  %4079 = vmatpush.bf16.msra.mxu0 %v5949_v38 }
 0x24f   : > { %2920 = vmatmul.bf16.gmra.mxu3 %v2812_v0 }
 0x251   : > { %v7531_v8 = vpop.f32.mrf.mxu0 }
 0x252   : > { %v1828_v22 = vpop.f32.mrf.mxu3  ;;  %v2066_v57 = vpop.f32.mrf.mxu2 }
 0x253   : > { %v7533_v25 = vadd.f32 %v2059_v3, %v1828_v22  ;;  %v2813_v3 = vpack.c.b16 %v6863_v7, %v6570_v58  ;;  %v7549_v22 = vpop.f32.mrf.mxu1  ;;  %v2532_v58 = vpack.c.b16 %v6863_v7, %v7197_v21 }
 0x254   : > { %8911 = vst [vmem:[#allocation142_spill] sm:$0xff] %v7549_v22 }
 0x255   : > { %8908 = vst [vmem:[#allocation139_spill] sm:$0xff] %v7533_v25 }
 0x257   : > { %2194 = vmatmul.bf16.gmra.mxu2 %v6681_v14  ;;  %3219 = vmatmul.bf16.gmra.mxu1 %v2528_v33 }
 0x259   : > { %v7541_v55 = vpop.f32.mrf.mxu0 }
 0x25a   : > { %v1830_v19 = vpop.f32.mrf.mxu3  ;;  %v2069_v0 = vpop.f32.mrf.mxu2 }
 0x25b   : > { %v7545_v43 = vadd.f32 %v2061_v46, %v1830_v19  ;;  %v7556_v25 = vpop.f32.mrf.mxu1 }
 0x25c   : > { %2699 = vmatmul.bf16.gmra.mxu0 %v2531_v44  ;;  %8913 = vst [vmem:[#allocation144_spill] sm:$0xff] %v7556_v25 }
 0x25d   : > { %8910 = vst [vmem:[#allocation141_spill] sm:$0xff] %v7545_v43 }
 0x25f   : > { %2925 = vmatmul.bf16.gmra.mxu3 %v2813_v3  ;;  %v8915_v3 = vpack.c.b16 %v6616_v56, %v6612_v52  ;;  %v5940_v52 = vld [vmem:[%s8639_s4 + $0xa8] sm:$0xff] }
 0x260   : > { %3784 = vmatpush.bf16.msrb.mxu2 %v5940_v52  ;;  %v8924_v52 = vld [vmem:[#allocation36_spill] sm:$0xff] }
 0x261   : > { %v7551_v38 = vpop.f32.mrf.mxu0 }
 0x262   : > { %v1833_v14 = vpop.f32.mrf.mxu3  ;;  %v2071_v33 = vpop.f32.mrf.mxu2 }
 0x263   : > { %v7553_v11 = vadd.f32 %v2064_v6, %v1833_v14  ;;  %v7569_v14 = vpop.f32.mrf.mxu1 }
 0x264   : > { %8916 = vst [vmem:[#allocation146_spill] sm:$0xff] %v7569_v14 }
 0x265   : > { %8912 = vst [vmem:[#allocation143_spill] sm:$0xff] %v7553_v11  ;;  %v8918_v11 = vld [vmem:[#allocation29_spill] sm:$0xff] }
 0x267   : > { %2199 = vmatmul.bf16.gmra.mxu2 %v6700_v36  ;;  %3224 = vmatmul.bf16.gmra.mxu1 %v2529_v31 }
 0x269   : > { %v7558_v46 = vpop.f32.mrf.mxu0 }
 0x26a   : > { %v1835_v19 = vpop.f32.mrf.mxu3  ;;  %v2074_v43 = vpop.f32.mrf.mxu2 }
 0x26b   : > { %v7562_v22 = vadd.f32 %v2066_v57, %v1835_v19  ;;  %v7583_v56 = vpop.f32.mrf.mxu1 }
 0x26c   : > { %2704 = vmatmul.bf16.gmra.mxu0 %v2532_v58  ;;  %8920 = vst [vmem:[#allocation148_spill] sm:$0xff] %v7583_v56  ;;  %v5948_v56 = vld [vmem:[%s8639_s4 + $0x168] sm:$0xff] }
 0x26d   : > { %8914 = vst [vmem:[#allocation145_spill] sm:$0xff] %v7562_v22  ;;  %4080 = vmatpush.bf16.msra.mxu0 %v5948_v56 }
 0x26f   : > { %2930 = vmatmul.bf16.gmra.mxu3 %v8915_v3 }
 0x271   : > { %v7567_v6 = vpop.f32.mrf.mxu0 }
 0x272   : > { %v1838_v36 = vpop.f32.mrf.mxu3  ;;  %v2076_v31 = vpop.f32.mrf.mxu2 }
 0x273   : > { %v7571_v25 = vadd.f32 %v2069_v0, %v1838_v36  ;;  %v8921_v0 = vld [vmem:[#allocation18_spill] sm:$0xff]  ;;  %v7597_v14 = vpop.f32.mrf.mxu1 }
 0x274   : > { %v2815_v3 = vpack.c.b16 %v8921_v0, %v6863_v7  ;;  %8923 = vst [vmem:[#allocation149_spill] sm:$0xff] %v7597_v14 }
 0x275   : > { %8917 = vst [vmem:[#allocation147_spill] sm:$0xff] %v7571_v25 }
 0x277   : > { %2204 = vmatmul.bf16.gmra.mxu2 %v8918_v11  ;;  %3229 = vmatmul.bf16.gmra.mxu1 %v7096_v45  ;;  %v5956_v45 = vld [vmem:[%s8639_s4 + $0x228] sm:$0xff] }
 0x278   : > { %4334 = vmatpush.bf16.msra.mxu3 %v5956_v45  ;;  %v2534_v45 = vpack.c.b16 %v7341_v49, %v6863_v7 }
 0x279   : > { %v7575_v18 = vpop.f32.mrf.mxu0 }
 0x27a   : > { %v1840_v57 = vpop.f32.mrf.mxu3  ;;  %v2079_v19 = vpop.f32.mrf.mxu2 }
 0x27b   : > { %v7577_v22 = vadd.f32 %v2071_v33, %v1840_v57  ;;  %v7608_v56 = vpop.f32.mrf.mxu1 }
 0x27c   : > { %2709 = vmatmul.bf16.gmra.mxu0 %v7282_v50 }
 0x27d   : > { %8919 = vst [vmem:[#allocation29_spill] sm:$0xff] %v7577_v22 }
 0x27f   : > { %2935 = vmatmul.bf16.gmra.mxu3 %v2815_v3 }
 0x281   : > { %v7590_v11 = vpop.f32.mrf.mxu0 }
 0x282   : > { %v1843_v33 = vpop.f32.mrf.mxu3  ;;  %v2081_v36 = vpop.f32.mrf.mxu2 }
 0x283   : > { %v7592_v57 = vadd.f32 %v2074_v43, %v1843_v33  ;;  %v8926_v43 = vld [vmem:[#allocation19_spill] sm:$0xff] }
 0x284   : > { %v2816_v33 = vpack.c.b16 %v6863_v7, %v8926_v43  ;;  %8927 = vst [vmem:[#allocation19_spill] sm:$0xff] %v7608_v56  ;;  %v7621_v43 = vpop.f32.mrf.mxu1 }
 0x285   : > { %8922 = vst [vmem:[#allocation18_spill] sm:$0xff] %v7592_v57 }
 0x286   : > { %8932 = vst [vmem:[#allocation152_spill] sm:$0xff] %v7621_v43 }
 0x287   : > { %2209 = vmatmul.bf16.gmra.mxu2 %v8924_v52  ;;  %3234 = vmatmul.bf16.gmra.mxu1 %v2531_v44 }
 0x289   : > { %v7600_v0 = vpop.f32.mrf.mxu0 }
 0x28a   : > { %v1845_v3 = vpop.f32.mrf.mxu3  ;;  %v2084_v22 = vpop.f32.mrf.mxu2 }
 0x28b   : > { %v7604_v25 = vadd.f32 %v2076_v31, %v1845_v3 }
 0x28c   : > { %2714 = vmatmul.bf16.gmra.mxu0 %v2534_v45 }
 0x28d   : > { %8925 = vst [vmem:[#allocation36_spill] sm:$0xff] %v7604_v25  ;;  %v7619_v25 = vpack.c.b16 %v6863_v7, %v7344_v29 }
 0x28f   : > { %2940 = vmatmul.bf16.gmra.mxu3 %v2816_v33 }
 0x291   : > { %v7610_v14 = vpop.f32.mrf.mxu0 }
 0x292   : > { %8928 = vst [vmem:[#allocation150_spill] sm:$0xff] %v7610_v14  ;;  %v1848_v52 = vpop.f32.mrf.mxu3  ;;  %v2086_v44 = vpop.f32.mrf.mxu2 }
 0x293   : > { %v7612_v57 = vadd.f32 %v2079_v19, %v1848_v52  ;;  %v8934_v19 = vpack.c.b16 %v6709_v59, %v6705_v53  ;;  %v8939_v53 = vld [vmem:[#allocation49_spill] sm:$0xff] }
 0x295   : > { %8929 = vst [vmem:[#allocation151_spill] sm:$0xff] %v7612_v57  ;;  %v2390_v57 = vpack.c.bf16 %v6944_v15, %v6944_v15 }
 0x297   : > { %2214 = vmatmul.bf16.gmra.mxu2 %v8930_v41  ;;  %3239 = vmatmul.bf16.gmra.mxu1 %v2532_v58  ;;  %v2391_v58 = vpack.c.bf16 %v6959_v20, %v6959_v20 }
 0x299   : > { %v7615_v4 = vpop.f32.mrf.mxu0  ;;  %v7641_v43 = vunpack.c.l.b16 %v2391_v58  ;;  %v8942_v58 = vld [vmem:[#allocation39_spill] sm:$0xff] }
 0x29a   : > { %8931 = vst [vmem:[#allocation40_spill] sm:$0xff] %v7615_v4  ;;  %v1850_v31 = vpop.f32.mrf.mxu3  ;;  %v2089_v3 = vpop.f32.mrf.mxu2 }
 0x29b   : > { %v7623_v33 = vadd.f32 %v2081_v36, %v1850_v31  ;;  %v7637_v36 = vpop.f32.mrf.mxu1  ;;  %v7639_v31 = vunpack.c.l.b16 %v2390_v57  ;;  %8938 = vst [vmem:[#allocation157_spill] sm:$0xff] %v7641_v43 }
 0x29c   : > { %2719 = vmatmul.bf16.gmra.mxu0 %v7619_v25  ;;  %8937 = vst [vmem:[#allocation156_spill] sm:$0xff] %v7637_v36  ;;  %v8943_v36 = vld [vmem:[#allocation31_spill] sm:$0xff] }
 0x29d   : > { %8933 = vst [vmem:[#allocation153_spill] sm:$0xff] %v7623_v33 }
 0x29f   : > { %2945 = vmatmul.bf16.gmra.mxu3 %v8934_v19  ;;  %v5947_v19 = vld [vmem:[%s8639_s4 + $0x160] sm:$0xff] }
 0x2a0   : > { %4081 = vmatpush.bf16.msra.mxu0 %v5947_v19 }
 0x2a1   : > { %v7629_v41 = vpop.f32.mrf.mxu0 }
 0x2a2   : > { %8935 = vst [vmem:[#allocation154_spill] sm:$0xff] %v7629_v41  ;;  %v1853_v52 = vpop.f32.mrf.mxu3  ;;  %v2091_v56 = vpop.f32.mrf.mxu2 }
 0x2a3   : > { %v7635_v4 = vadd.f32 %v2084_v22, %v1853_v52  ;;  %v7652_v22 = vpack.c.b16 %v7641_v43, %v7639_v31  ;;  %v7666_v20 = vpop.f32.mrf.mxu1 }
 0x2a4   : > { %8944 = vst [vmem:[#allocation39_spill] sm:$0xff] %v7666_v20 }
 0x2a5   : > { %8936 = vst [vmem:[#allocation155_spill] sm:$0xff] %v7635_v4  ;;  %v2818_v4 = vpack.c.b16 %v8943_v36, %v6863_v7 }
 0x2a7   : > { %2219 = vmatmul.bf16.gmra.mxu2 %v8939_v53  ;;  %3244 = vmatmul.bf16.gmra.mxu1 %v7282_v50  ;;  %v5939_v50 = vld [vmem:[%s8639_s4 + $0xa0] sm:$0xff]  ;;  %v5946_v53 = vld [vmem:[%s8639_s4 + $0x158] sm:$0xff] }
 0x2a8   : > { %3785 = vmatpush.bf16.msrb.mxu2 %v5939_v50  ;;  %4082 = vmatpush.bf16.msra.mxu0 %v5946_v53  ;;  %v5966_v53 = vld [vmem:[%s8640_s5 + $0x38] sm:$0xff] }
 0x2a9   : > { %v7645_v59 = vpop.f32.mrf.mxu0  ;;  %4701 = vmatpush.bf16.msrb.mxu1 %v5966_v53  ;;  %v8954_v53 = vld [vmem:[#allocation48_spill] sm:$0xff] }
 0x2aa   : > { %8940 = vst [vmem:[#allocation49_spill] sm:$0xff] %v7645_v59  ;;  %v1855_v33 = vpop.f32.mrf.mxu3  ;;  %v2180_v15 = vpop.f32.mrf.mxu2 }
 0x2ab   : > { %v7654_v57 = vadd.f32 %v2086_v44, %v1855_v33  ;;  %v2300_v52 = vadd.f32 %v2180_v15, %v8942_v58  ;;  %v5955_v15 = vld [vmem:[%s8639_s4 + $0x220] sm:$0xff]  ;;  %v8945_v44 = vld [vmem:[#allocation41_spill] sm:$0xff]  ;;  %v8946_v33 = vld [vmem:[#allocation30_spill] sm:$0xff] }
 0x2ac   : > { %2724 = vmatmul.bf16.gmra.mxu0 %v7652_v22  ;;  %v1977_v19 = vadd.f32 %v8946_v33, %v8945_v44  ;;  %4335 = vmatpush.bf16.msra.mxu3 %v5955_v15  ;;  %v5944_v44 = vld [vmem:[%s8639_s4 + $0x148] sm:$0xff]  ;;  %v8949_v15 = vld [vmem:[#allocation59_spill] sm:$0xff]  ;;  %v7687_v33 = vpop.f32.mrf.mxu1 }
 0x2ad   : > { %8941 = vst [vmem:[#allocation158_spill] sm:$0xff] %v7654_v57  ;;  %v5945_v57 = vld [vmem:[%s8639_s4 + $0x150] sm:$0xff]  ;;  %v2740_v43 = vadd.f32 %v7347_v47, %v2300_v52  ;;  %v8962_v52 = vld [vmem:[#allocation55_spill] sm:$0xff] }
 0x2ae   : > { %4083 = vmatpush.bf16.msra.mxu0 %v5945_v57  ;;  %8950 = vst [vmem:[#allocation30_spill] sm:$0xff] %v7687_v33  ;;  %v8957_v33 = vld [vmem:[#allocation38_spill] sm:$0xff] }
 0x2af   : > { %2950 = vmatmul.bf16.gmra.mxu3 %v2818_v4 }
 0x2b1   : > { %v7673_v58 = vpop.f32.mrf.mxu0 }
 0x2b2   : > { %8947 = vst [vmem:[#allocation31_spill] sm:$0xff] %v7673_v58  ;;  %v1858_v36 = vpop.f32.mrf.mxu3  ;;  %v2182_v50 = vpop.f32.mrf.mxu2  ;;  %4084 = vmatpush.bf16.msra.mxu0 %v5944_v44 }
 0x2b3   : > { %v7678_v59 = vadd.f32 %v2089_v3, %v1858_v36  ;;  %v2301_v4 = vadd.f32 %v2182_v50, %v1977_v19  ;;  %v5943_v3 = vld [vmem:[%s8639_s4 + $0x140] sm:$0xff]  ;;  %v8952_v36 = vld [vmem:[#allocation89_spill] sm:$0xff] }
 0x2b4   : > { %v2537_v50 = vpack.c.b16 %v8952_v36, %v6863_v7  ;;  %v7706_v36 = vpop.f32.mrf.mxu1 }
 0x2b5   : > { %8948 = vst [vmem:[#allocation41_spill] sm:$0xff] %v7678_v59 }
 0x2b6   : > { %4085 = vmatpush.bf16.msra.mxu0 %v5943_v3  ;;  %8958 = vst [vmem:[#allocation48_spill] sm:$0xff] %v7706_v36 }
 0x2b7   : > { %2224 = vmatmul.bf16.gmra.mxu2 %v8949_v15  ;;  %3249 = vmatmul.bf16.gmra.mxu1 %v2534_v45  ;;  %v8955_v45 = vld [vmem:[#allocation32_spill] sm:$0xff]  ;;  %v8956_v15 = vld [vmem:[#allocation51_spill] sm:$0xff] }
 0x2b8   : > { %v2819_v44 = vpack.c.b16 %v6863_v7, %v8955_v45 }
 0x2b9   : > { %v7689_v20 = vpop.f32.mrf.mxu0 }
 0x2ba   : > { %8951 = vst [vmem:[#allocation59_spill] sm:$0xff] %v7689_v20  ;;  %v1860_v57 = vpop.f32.mrf.mxu3  ;;  %v2185_v19 = vpop.f32.mrf.mxu2  ;;  %v1982_v20 = vadd.f32 %v8957_v33, %v8956_v15 }
 0x2bb   : > { %v7696_v59 = vadd.f32 %v2091_v56, %v1860_v57  ;;  %v2302_v58 = vadd.f32 %v2185_v19, %v8954_v53  ;;  %v8960_v19 = vld [vmem:[#allocation64_spill] sm:$0xff]  ;;  %v2741_v53 = vadd.f32 %v7380_v23, %v2301_v4 }
 0x2bc   : > { %2729 = vmatmul.bf16.gmra.mxu0 %v2537_v50 }
 0x2bd   : > { %8953 = vst [vmem:[#allocation159_spill] sm:$0xff] %v7696_v59  ;;  %v2742_v4 = vadd.f32 %v7394_v35, %v2302_v58  ;;  %v5938_v58 = vld [vmem:[%s8639_s4 + $0x98] sm:$0xff] }
 0x2be   : > { %3786 = vmatpush.bf16.msrb.mxu2 %v5938_v58  ;;  %v5965_v58 = vld [vmem:[%s8640_s5 + $0x30] sm:$0xff] }
 0x2bf   : > { %2955 = vmatmul.bf16.gmra.mxu3 %v2819_v44  ;;  %v8961_v44 = vld [vmem:[#allocation90_spill] sm:$0xff]  ;;  %4702 = vmatpush.bf16.msrb.mxu1 %v5965_v58 }
 0x2c0   : > { %v2538_v47 = vpack.c.b16 %v6863_v7, %v8961_v44  ;;  %v8987_v58 = vld [vmem:[#allocation54_spill] sm:$0xff] }
 0x2c1   : > { %v7703_v41 = vpop.f32.mrf.mxu0 }
 0x2c2   : > { %v2187_v14 = vpop.f32.mrf.mxu2  ;;  %v2916_v62 = vpop.f32.mrf.mxu3 }
 0x2c3   : > { %v2303_v56 = vadd.f32 %v2187_v14, %v1982_v20  ;;  %v7708_v57 = vadd.f32 %v2916_v62, %v2740_v43  ;;  %v7720_v62 = vpop.f32.mrf.mxu1  ;;  %v8964_v20 = vpack.c.b16 %v6826_v5, %v6822_v10  ;;  %v8966_v14 = vld [vmem:[#allocation43_spill] sm:$0xff] }
 0x2c4   : > { %8963 = vst [vmem:[#allocation51_spill] sm:$0xff] %v7720_v62 }
 0x2c5   : > { %8959 = vst [vmem:[#allocation32_spill] sm:$0xff] %v7708_v57  ;;  %v2743_v5 = vadd.f32 %v7406_v51, %v2303_v56  ;;  %v5954_v51 = vld [vmem:[%s8639_s4 + $0x218] sm:$0xff]  ;;  %v8976_v56 = vld [vmem:[#allocation67_spill] sm:$0xff] }
 0x2c6   : > { %4336 = vmatpush.bf16.msra.mxu3 %v5954_v51  ;;  %v8982_v51 = vld [vmem:[#allocation73_spill] sm:$0xff] }
 0x2c7   : > { %2229 = vmatmul.bf16.gmra.mxu2 %v8960_v19  ;;  %3254 = vmatmul.bf16.gmra.mxu1 %v7619_v25  ;;  %v8965_v25 = vld [vmem:[#allocation61_spill] sm:$0xff] }
 0x2c8   : > { %v1987_v43 = vadd.f32 %v8966_v14, %v8965_v25  ;;  %v8970_v25 = vld [vmem:[#allocation63_spill] sm:$0xff] }
 0x2c9   : > { %v7712_v3 = vpop.f32.mrf.mxu0 }
 0x2ca   : > { %v2190_v33 = vpop.f32.mrf.mxu2  ;;  %v2918_v45 = vpop.f32.mrf.mxu3 }
 0x2cb   : > { %v2304_v15 = vadd.f32 %v2190_v33, %v8962_v52  ;;  %v7718_v59 = vadd.f32 %v2918_v45, %v2741_v53  ;;  %v7732_v53 = vpop.f32.mrf.mxu1  ;;  %v8969_v45 = vld [vmem:[#allocation76_spill] sm:$0xff] }
 0x2cc   : > { %2734 = vmatmul.bf16.gmra.mxu0 %v2538_v47  ;;  %8968 = vst [vmem:[#allocation64_spill] sm:$0xff] %v7732_v53 }
 0x2cf   : > { %2960 = vmatmul.bf16.gmra.mxu3 %v8964_v20 }
 0x2d1   : > { %v7727_v23 = vpop.f32.mrf.mxu0 }
 0x2d2   : > { %v2192_v19 = vpop.f32.mrf.mxu2  ;;  %v2921_v36 = vpop.f32.mrf.mxu3 }
 0x2d3   : > { %v2305_v57 = vadd.f32 %v2192_v19, %v1987_v43  ;;  %v7730_v33 = vadd.f32 %v2921_v36, %v2742_v4  ;;  %v8972_v36 = vld [vmem:[#allocation7_spill] sm:$0xff]  ;;  %v8973_v43 = vld [vmem:[#allocation6_spill] sm:$0xff] }
 0x2d4   : > { %v8974_v4 = vpack.c.b16 %v8972_v36, %v8973_v43 }
 0x2d5   : > { %8967 = vst [vmem:[#allocation38_spill] sm:$0xff] %v7730_v33 }
 0x2d7   : > { %2234 = vmatmul.bf16.gmra.mxu2 %v8969_v45  ;;  %3259 = vmatmul.bf16.gmra.mxu1 %v7652_v22  ;;  %v8975_v22 = vld [vmem:[#allocation53_spill] sm:$0xff]  ;;  %v8977_v45 = vld [vmem:[#allocation52_spill] sm:$0xff] }
 0x2d8   : > { %v2821_v19 = vpack.c.b16 %v8975_v22, %v6863_v7 }
 0x2d9   : > { %v7736_v10 = vpop.f32.mrf.mxu0 }
 0x2da   : > { %v2195_v52 = vpop.f32.mrf.mxu2  ;;  %v2923_v20 = vpop.f32.mrf.mxu3 }
 0x2db   : > { %v2306_v14 = vadd.f32 %v2195_v52, %v8970_v25  ;;  %v7740_v35 = vadd.f32 %v2923_v20, %v2743_v5  ;;  %v1992_v5 = vadd.f32 %v8977_v45, %v8976_v56  ;;  %v7755_v52 = vpop.f32.mrf.mxu1  ;;  %v2744_v25 = vadd.f32 %v7415_v2, %v2304_v15 }
 0x2dc   : > { %4086 = vmatmul.bf16.vlgmr.msra.gmra.mxu0 %v8974_v4  ;;  %8978 = vst [vmem:[#allocation55_spill] sm:$0xff] %v7755_v52  ;;  %v2745_v45 = vadd.f32 %v7429_v63, %v2305_v57 }
 0x2dd   : > { %8971 = vst [vmem:[#allocation90_spill] sm:$0xff] %v7740_v35  ;;  %v2746_v57 = vadd.f32 %v7441_v40, %v2306_v14  ;;  %v8994_v40 = vld [vmem:[#allocation11_spill] sm:$0xff]  ;;  %v8995_v14 = vld [vmem:[#allocation10_spill] sm:$0xff] }
 0x2df   : > { %2965 = vmatmul.bf16.gmra.mxu3 %v2821_v19  ;;  %v8980_v19 = vld [vmem:[#allocation87_spill] sm:$0xff] }
 0x2e1   : > { %v7757_v20 = vpop.f32.mrf.mxu0 }
 0x2e2   : > { %v2197_v4 = vpop.f32.mrf.mxu2  ;;  %v2926_v53 = vpop.f32.mrf.mxu3 }
 0x2e3   : > { %v2307_v62 = vadd.f32 %v2197_v4, %v1992_v5  ;;  %v7760_v22 = vadd.f32 %v2926_v53, %v2744_v25  ;;  %v7769_v15 = vpop.f32.mrf.mxu1  ;;  %v8984_v25 = vld [vmem:[#allocation9_spill] sm:$0xff]  ;;  %v8985_v4 = vld [vmem:[#allocation8_spill] sm:$0xff] }
 0x2e4   : > { %8981 = vst [vmem:[#allocation43_spill] sm:$0xff] %v7769_v15 }
 0x2e5   : > { %8979 = vst [vmem:[#allocation61_spill] sm:$0xff] %v7760_v22  ;;  %v8986_v22 = vpack.c.b16 %v8984_v25, %v8985_v4  ;;  %v2747_v25 = vadd.f32 %v7450_v30, %v2307_v62  ;;  %v8999_v30 = vpack.c.b16 %v6957_v24, %v6965_v54 }
 0x2e7   : > { %2239 = vmatmul.bf16.gmra.mxu2 %v8980_v19  ;;  %3264 = vmatmul.bf16.gmra.mxu1 %v2537_v50  ;;  %v2822_v19 = vpack.c.b16 %v6863_v7, %v8987_v58  ;;  %v8988_v50 = vld [vmem:[#allocation62_spill] sm:$0xff] }
 0x2e8   : > { %v1997_v35 = vadd.f32 %v8988_v50, %v7492_v60 }
 0x2e9   : > { %v7766_v56 = vpop.f32.mrf.mxu0 }
 0x2ea   : > { %v2200_v52 = vpop.f32.mrf.mxu2  ;;  %v2928_v2 = vpop.f32.mrf.mxu3 }
 0x2eb   : > { %v2308_v5 = vadd.f32 %v2200_v52, %v8982_v51  ;;  %v7772_v53 = vadd.f32 %v2928_v2, %v2745_v45  ;;  %v7786_v2 = vpop.f32.mrf.mxu1  ;;  %v8991_v51 = vld [vmem:[#allocation96_spill] sm:$0xff] }
 0x2ec   : > { %4091 = vmatmul.bf16.gmra.mxu0 %v8986_v22  ;;  %8990 = vst [vmem:[#allocation7_spill] sm:$0xff] %v7786_v2 }
 0x2ed   : > { %8983 = vst [vmem:[#allocation76_spill] sm:$0xff] %v7772_v53 }
 0x2ef   : > { %2970 = vmatmul.bf16.gmra.mxu3 %v2822_v19  ;;  %v8992_v19 = vld [vmem:[#allocation78_spill] sm:$0xff] }
 0x2f1   : > { %v7781_v63 = vpop.f32.mrf.mxu0 }
 0x2f2   : > { %v2202_v15 = vpop.f32.mrf.mxu2  ;;  %v2931_v33 = vpop.f32.mrf.mxu3 }
 0x2f3   : > { %v2309_v52 = vadd.f32 %v2202_v15, %v1997_v35  ;;  %v7784_v45 = vadd.f32 %v2931_v33, %v2746_v57  ;;  %v8996_v35 = vpack.c.b16 %v8994_v40, %v8995_v14  ;;  %v2397_v33 = vpack.c.bf16 %v7098_v1, %v7098_v1  ;;  %v8997_v15 = vld [vmem:[#allocation82_spill] sm:$0xff]  ;;  %v7802_v57 = vpop.f32.mrf.mxu1  ;;  %v9000_v1 = vld [vmem:[#allocation83_spill] sm:$0xff] }
 0x2f4   : > { %8998 = vst [vmem:[#allocation53_spill] sm:$0xff] %v7802_v57  ;;  %v9002_v57 = vld [vmem:[#allocation100_spill] sm:$0xff] }
 0x2f5   : > { %8989 = vst [vmem:[#allocation63_spill] sm:$0xff] %v7784_v45  ;;  %v9021_v45 = vld [vmem:[#allocation108_spill] sm:$0xff] }
 0x2f7   : > { %2244 = vmatmul.bf16.gmra.mxu2 %v8991_v51  ;;  %3269 = vmatmul.bf16.gmra.mxu1 %v2538_v47  ;;  %v2396_v47 = vpack.c.bf16 %v8997_v15, %v8997_v15  ;;  %v2748_v51 = vadd.f32 %v7458_v42, %v2308_v5  ;;  %v2749_v42 = vadd.f32 %v7470_v39, %v2309_v52  ;;  %v5953_v39 = vld [vmem:[%s8639_s4 + $0x210] sm:$0xff] }
 0x2f8   : > { %4337 = vmatpush.bf16.msra.mxu3 %v5953_v39 }
 0x2f9   : > { %v7789_v22 = vpop.f32.mrf.mxu0 }
 0x2fa   : > { %v2205_v58 = vpop.f32.mrf.mxu2  ;;  %v2933_v60 = vpop.f32.mrf.mxu3 }
 0x2fb   : > { %v2310_v50 = vadd.f32 %v2205_v58, %v8992_v19  ;;  %v7793_v53 = vadd.f32 %v2933_v60, %v2747_v25  ;;  %v7810_v25 = vunpack.c.l.b16 %v2396_v47  ;;  %v7812_v58 = vunpack.c.l.b16 %v2397_v33  ;;  %v7820_v24 = vpop.f32.mrf.mxu1  ;;  %v9004_v47 = vld [vmem:[#allocation95_spill] sm:$0xff] }
 0x2fc   : > { %4096 = vmatmul.bf16.gmra.mxu0 %v8996_v35  ;;  %9003 = vst [vmem:[#allocation52_spill] sm:$0xff] %v7820_v24 }
 0x2fd   : > { %8993 = vst [vmem:[#allocation6_spill] sm:$0xff] %v7793_v53  ;;  %v3107_v35 = vpack.c.b16 %v7812_v58, %v7810_v25 }
 0x2ff   : > { %2975 = vmatmul.bf16.gmra.mxu3 %v8999_v30 }
 0x301   : > { %v7807_v62 = vpop.f32.mrf.mxu0 }
 0x302   : > { %v2207_v60 = vpop.f32.mrf.mxu2  ;;  %v2936_v19 = vpop.f32.mrf.mxu3 }
 0x303   : > { %v2311_v40 = vadd.f32 %v2207_v60, %v9000_v1  ;;  %v7815_v14 = vadd.f32 %v2936_v19, %v2748_v51  ;;  %v5937_v51 = vld [vmem:[%s8639_s4 + $0x90] sm:$0xff]  ;;  %v9006_v60 = vld [vmem:[#allocation14_spill] sm:$0xff]  ;;  %v9009_v1 = vld [vmem:[#allocation80_spill] sm:$0xff] }
 0x304   : > { %v9007_v19 = vld [vmem:[#allocation13_spill] sm:$0xff]  ;;  %3787 = vmatpush.bf16.msrb.mxu2 %v5937_v51  ;;  %v5964_v51 = vld [vmem:[%s8640_s5 + $0x28] sm:$0xff] }
 0x305   : > { %9001 = vst [vmem:[#allocation67_spill] sm:$0xff] %v7815_v14  ;;  %4703 = vmatpush.bf16.msrb.mxu1 %v5964_v51  ;;  %v9020_v51 = vld [vmem:[#allocation81_spill] sm:$0xff] }
 0x307   : > { %2249 = vmatmul.bf16.gmra.mxu2 %v9002_v57  ;;  %3274 = vmatmul.bf16.gmra.mxu1 %v3107_v35  ;;  %v9008_v57 = vpack.c.b16 %v9006_v60, %v9007_v19  ;;  %v2824_v35 = vpack.c.b16 %v9009_v1, %v6863_v7  ;;  %v9011_v60 = vld [vmem:[#allocation99_spill] sm:$0xff] }
 0x308   : > { %v9013_v1 = vld [vmem:[#allocation115_spill] sm:$0xff] }
 0x309   : > { %v7822_v54 = vpop.f32.mrf.mxu0 }
 0x30a   : > { %v2210_v5 = vpop.f32.mrf.mxu2  ;;  %v2938_v33 = vpop.f32.mrf.mxu3 }
 0x30b   : > { %v2312_v30 = vadd.f32 %v2210_v5, %v9004_v47  ;;  %v7826_v2 = vadd.f32 %v2938_v33, %v2749_v42  ;;  %v2750_v42 = vadd.f32 %v7482_v32, %v2310_v50  ;;  %v7842_v47 = vpop.f32.mrf.mxu1  ;;  %v2751_v32 = vadd.f32 %v7494_v9, %v2311_v40 }
 0x30c   : > { %4101 = vmatmul.bf16.gmra.mxu0 %v9008_v57  ;;  %9010 = vst [vmem:[#allocation73_spill] sm:$0xff] %v7842_v47  ;;  %v9015_v47 = vld [vmem:[#allocation107_spill] sm:$0xff] }
 0x30d   : > { %9005 = vst [vmem:[#allocation87_spill] sm:$0xff] %v7826_v2  ;;  %v2752_v9 = vadd.f32 %v7499_v26, %v2312_v30 }
 0x30f   : > { %2980 = vmatmul.bf16.gmra.mxu3 %v2824_v35  ;;  %v9014_v35 = vld [vmem:[#allocation50_spill] sm:$0xff] }
 0x311   : > { %v7839_v52 = vpop.f32.mrf.mxu0 }
 0x312   : > { %v2212_v5 = vpop.f32.mrf.mxu2  ;;  %v2941_v33 = vpop.f32.mrf.mxu3 }
 0x313   : > { %v2313_v19 = vadd.f32 %v2212_v5, %v9011_v60  ;;  %v7845_v57 = vadd.f32 %v2941_v33, %v2750_v42  ;;  %v9016_v42 = vld [vmem:[#allocation20_spill] sm:$0xff]  ;;  %v9017_v33 = vld [vmem:[#allocation15_spill] sm:$0xff] }
 0x314   : > { %v9018_v60 = vpack.c.b16 %v9016_v42, %v9017_v33 }
 0x315   : > { %9012 = vst [vmem:[#allocation9_spill] sm:$0xff] %v7845_v57  ;;  %v7861_v57 = vpop.f32.mrf.mxu1  ;;  %v2753_v33 = vadd.f32 %v7510_v17, %v2313_v19  ;;  %v9030_v17 = vld [vmem:[#allocation117_spill] sm:$0xff] }
 0x316   : > { %9019 = vst [vmem:[#allocation8_spill] sm:$0xff] %v7861_v57  ;;  %v9026_v57 = vld [vmem:[#allocation22_spill] sm:$0xff] }
 0x317   : > { %2254 = vmatmul.bf16.gmra.mxu2 %v9013_v1  ;;  %3279 = vmatmul.bf16.gmra.mxu1 %v9014_v35  ;;  %v2825_v1 = vpack.c.b16 %v6863_v7, %v9020_v51 }
 0x319   : > { %v7852_v24 = vpop.f32.mrf.mxu0 }
 0x31a   : > { %v2215_v50 = vpop.f32.mrf.mxu2  ;;  %v2943_v39 = vpop.f32.mrf.mxu3 }
 0x31b   : > { %v2314_v2 = vadd.f32 %v2215_v50, %v9015_v47  ;;  %v7856_v5 = vadd.f32 %v2943_v39, %v2751_v32  ;;  %v9024_v39 = vld [vmem:[#allocation119_spill] sm:$0xff] }
 0x31c   : > { %4106 = vmatmul.bf16.gmra.mxu0 %v9018_v60 }
 0x31d   : > { %v7871_v50 = vpop.f32.mrf.mxu1 }
 0x31e   : > { %9023 = vst [vmem:[#allocation62_spill] sm:$0xff] %v7871_v50 }
 0x31f   : > { %2985 = vmatmul.bf16.gmra.mxu3 %v2825_v1  ;;  %v9025_v1 = vld [vmem:[#allocation111_spill] sm:$0xff] }
 0x321   : > { %v7865_v14 = vpop.f32.mrf.mxu0 }
 0x322   : > { %v2217_v40 = vpop.f32.mrf.mxu2  ;;  %v2946_v53 = vpop.f32.mrf.mxu3 }
 0x323   : > { %v2315_v47 = vadd.f32 %v2217_v40, %v9021_v45  ;;  %v7869_v32 = vadd.f32 %v2946_v53, %v2752_v9  ;;  %v9027_v45 = vld [vmem:[#allocation21_spill] sm:$0xff]  ;;  %v9029_v9 = vpack.c.b16 %v7197_v21, %v7201_v16  ;;  %v5936_v16 = vld [vmem:[%s8639_s4 + $0x88] sm:$0xff] }
 0x324   : > { %v9028_v53 = vpack.c.b16 %v9026_v57, %v9027_v45  ;;  %3788 = vmatpush.bf16.msrb.mxu2 %v5936_v16 }
 0x325   : > { %9022 = vst [vmem:[#allocation54_spill] sm:$0xff] %v7869_v32 }
 0x327   : > { %2259 = vmatmul.bf16.gmra.mxu2 %v9024_v39  ;;  %3284 = vmatmul.bf16.gmra.mxu1 %v9014_v35  ;;  %v2754_v35 = vadd.f32 %v7516_v61, %v2314_v2  ;;  %v9032_v61 = vld [vmem:[#allocation25_spill] sm:$0xff]  ;;  %v9033_v2 = vld [vmem:[#allocation24_spill] sm:$0xff] }
 0x328   : > { %v9034_v45 = vpack.c.b16 %v9032_v61, %v9033_v2  ;;  %v9037_v61 = vld [vmem:[#allocation26_spill] sm:$0xff] }
 0x329   : > { %v7875_v42 = vpop.f32.mrf.mxu0 }
 0x32a   : > { %v2220_v60 = vpop.f32.mrf.mxu2  ;;  %v2948_v51 = vpop.f32.mrf.mxu3 }
 0x32b   : > { %v2316_v26 = vadd.f32 %v2220_v60, %v9025_v1  ;;  %v7879_v30 = vadd.f32 %v2948_v51, %v2753_v33  ;;  %v2755_v33 = vadd.f32 %v7531_v8, %v2315_v47  ;;  %v9031_v51 = vld [vmem:[#allocation118_spill] sm:$0xff]  ;;  %v5952_v8 = vld [vmem:[%s8639_s4 + $0x208] sm:$0xff] }
 0x32c   : > { %4111 = vmatmul.bf16.gmra.mxu0 %v9028_v53  ;;  %4338 = vmatpush.bf16.msra.mxu3 %v5952_v8 }
 0x32d   : > { %v2756_v47 = vadd.f32 %v7541_v55, %v2316_v26 }
 0x32f   : > { %2990 = vmatmul.bf16.gmra.mxu3 %v9029_v9 }
 0x331   : > { %v7888_v50 = vpop.f32.mrf.mxu0 }
 0x332   : > { %v2222_v40 = vpop.f32.mrf.mxu2  ;;  %v2951_v39 = vpop.f32.mrf.mxu3 }
 0x333   : > { %v2317_v19 = vadd.f32 %v2222_v40, %v9030_v17  ;;  %v7891_v32 = vadd.f32 %v2951_v39, %v2754_v35 }
 0x337   : > { %2264 = vmatmul.bf16.gmra.mxu2 %v7390_v37  ;;  %v9035_v37 = vld [vmem:[#allocation109_spill] sm:$0xff] }
 0x338   : > { %v2827_v9 = vpack.c.b16 %v9035_v37, %v6863_v7 }
 0x339   : > { %v7904_v53 = vpop.f32.mrf.mxu0 }
 0x33a   : > { %v2225_v57 = vpop.f32.mrf.mxu2  ;;  %v2953_v60 = vpop.f32.mrf.mxu3 }
 0x33b   : > { %v2318_v1 = vadd.f32 %v2225_v57, %v9031_v51  ;;  %v7896_v21 = vadd.f32 %v2953_v60, %v2755_v33  ;;  %v5963_v33 = vld [vmem:[%s8640_s5 + $0x20] sm:$0xff]  ;;  %v2757_v60 = vadd.f32 %v7551_v38, %v2317_v19 }
 0x33c   : > { %4116 = vmatmul.bf16.gmra.mxu0 %v9034_v45  ;;  %4704 = vmatpush.bf16.msrb.mxu1 %v5963_v33  ;;  %v9039_v45 = vld [vmem:[#allocation110_spill] sm:$0xff] }
 0x33d   : > { %v2828_v37 = vpack.c.b16 %v6863_v7, %v9039_v45 }
 0x33f   : > { %2995 = vmatmul.bf16.gmra.mxu3 %v2827_v9 }
 0x341   : > { %v7918_v57 = vpop.f32.mrf.mxu0 }
 0x342   : > { %v2227_v35 = vpop.f32.mrf.mxu2  ;;  %v2956_v40 = vpop.f32.mrf.mxu3 }
 0x343   : > { %v2319_v39 = vadd.f32 %v2227_v35, %v7360_v48  ;;  %v7913_v17 = vadd.f32 %v2956_v40, %v2756_v47  ;;  %v9036_v48 = vld [vmem:[#allocation33_spill] sm:$0xff]  ;;  %v9041_v35 = vld [vmem:[#allocation79_spill] sm:$0xff] }
 0x344   : > { %v9038_v2 = vpack.c.b16 %v9036_v48, %v9037_v61 }
 0x345   : > { %v2759_v40 = vadd.f32 %v7567_v6, %v2319_v39 }
 0x347   : > { %2269 = vmatmul.bf16.gmra.mxu2 %v7411_v12  ;;  %v2758_v12 = vadd.f32 %v7558_v46, %v2318_v1  ;;  %v9043_v46 = vld [vmem:[#allocation35_spill] sm:$0xff]  ;;  %v9044_v1 = vld [vmem:[#allocation34_spill] sm:$0xff] }
 0x349   : > { %v7930_v9 = vpop.f32.mrf.mxu0 }
 0x34a   : > { %v2230_v51 = vpop.f32.mrf.mxu2  ;;  %v2958_v55 = vpop.f32.mrf.mxu3 }
 0x34b   : > { %v2320_v26 = vadd.f32 %v2230_v51, %v7383_v27  ;;  %v7923_v16 = vadd.f32 %v2958_v55, %v2757_v60  ;;  %v7936_v27 = vpop.f32.mrf.mxu1  ;;  %v9042_v55 = vld [vmem:[#allocation125_spill] sm:$0xff] }
 0x34c   : > { %4121 = vmatmul.bf16.gmra.mxu0 %v9038_v2  ;;  %9040 = vst [vmem:[#allocation96_spill] sm:$0xff] %v7936_v27  ;;  %v9045_v2 = vpack.c.b16 %v9043_v46, %v9044_v1  ;;  %v9052_v1 = vld [vmem:[#allocation42_spill] sm:$0xff] }
 0x34d   : > { %v2760_v6 = vadd.f32 %v7575_v18, %v2320_v26  ;;  %v5935_v18 = vld [vmem:[%s8639_s4 + $0x80] sm:$0xff]  ;;  %v9051_v26 = vld [vmem:[#allocation44_spill] sm:$0xff]  ;;  %v9076_v27 = vld [vmem:[#allocation58_spill] sm:$0xff] }
 0x34e   : > { %3789 = vmatpush.bf16.msrb.mxu2 %v5935_v18 }
 0x34f   : > { %3000 = vmatmul.bf16.gmra.mxu3 %v2828_v37 }
 0x351   : > { %v7940_v51 = vpop.f32.mrf.mxu0 }
 0x352   : > { %v2232_v8 = vpop.f32.mrf.mxu2  ;;  %v2961_v38 = vpop.f32.mrf.mxu3 }
 0x353   : > { %v2321_v19 = vadd.f32 %v2232_v8, %v7400_v13  ;;  %v7934_v47 = vadd.f32 %v2961_v38, %v2758_v12  ;;  %v9046_v13 = vpack.c.b16 %v7344_v29, %v7341_v49  ;;  %v7951_v45 = vpop.f32.mrf.mxu1  ;;  %v9048_v12 = vld [vmem:[#allocation126_spill] sm:$0xff]  ;;  %v9050_v29 = vld [vmem:[#allocation127_spill] sm:$0xff] }
 0x354   : > { %9047 = vst [vmem:[#allocation78_spill] sm:$0xff] %v7951_v45  ;;  %v9074_v45 = vld [vmem:[#allocation130_spill] sm:$0xff] }
 0x357   : > { %2274 = vmatmul.bf16.gmra.mxu2 %v9041_v35 }
 0x359   : > { %v7957_v35 = vpop.f32.mrf.mxu0 }
 0x35a   : > { %v2235_v33 = vpop.f32.mrf.mxu2  ;;  %v2963_v60 = vpop.f32.mrf.mxu3 }
 0x35b   : > { %v2322_v48 = vadd.f32 %v2235_v33, %v9042_v55  ;;  %v7943_v61 = vadd.f32 %v2963_v60, %v2759_v40  ;;  %v2761_v40 = vadd.f32 %v7590_v11, %v2321_v19  ;;  %v7961_v49 = vpop.f32.mrf.mxu1  ;;  %v5951_v19 = vld [vmem:[%s8639_s4 + $0x200] sm:$0xff] }
 0x35c   : > { %4126 = vmatmul.bf16.gmra.mxu0 %v9045_v2  ;;  %9049 = vst [vmem:[#allocation11_spill] sm:$0xff] %v7961_v49  ;;  %v9053_v2 = vpack.c.b16 %v9051_v26, %v9052_v1  ;;  %4339 = vmatpush.bf16.msra.mxu3 %v5951_v19  ;;  %v9062_v19 = vld [vmem:[#allocation56_spill] sm:$0xff]  ;;  %v9068_v49 = vld [vmem:[#allocation129_spill] sm:$0xff] }
 0x35f   : > { %3005 = vmatmul.bf16.gmra.mxu3 %v9046_v13  ;;  %v2762_v13 = vadd.f32 %v7600_v0, %v2322_v48  ;;  %v9059_v0 = vld [vmem:[#allocation150_spill] sm:$0xff] }
 0x361   : > { %v7974_v11 = vpop.f32.mrf.mxu0 }
 0x362   : > { %v2237_v39 = vpop.f32.mrf.mxu2  ;;  %v2966_v37 = vpop.f32.mrf.mxu3 }
 0x363   : > { %v2323_v8 = vadd.f32 %v2237_v39, %v9048_v12  ;;  %v7955_v38 = vadd.f32 %v2966_v37, %v2760_v6 }
 0x365   : > { %v2763_v48 = vadd.f32 %v9059_v0, %v2323_v8 }
 0x367   : > { %2279 = vmatmul.bf16.gmra.mxu2 %v7454_v34  ;;  %v2830_v34 = vpack.c.b16 %v7639_v31, %v6863_v7  ;;  %v5962_v31 = vld [vmem:[%s8640_s5 + $0x18] sm:$0xff] }
 0x368   : > { %4705 = vmatpush.bf16.msrb.mxu1 %v5962_v31 }
 0x369   : > { %v7991_v18 = vpop.f32.mrf.mxu0 }
 0x36a   : > { %v2240_v33 = vpop.f32.mrf.mxu2  ;;  %v2968_v60 = vpop.f32.mrf.mxu3 }
 0x36b   : > { %v2324_v55 = vadd.f32 %v2240_v33, %v9050_v29  ;;  %v7964_v46 = vadd.f32 %v2968_v60, %v2761_v40  ;;  %v7986_v40 = vpop.f32.mrf.mxu1  ;;  %v9056_v33 = vld [vmem:[#allocation98_spill] sm:$0xff]  ;;  %v9057_v60 = vld [vmem:[#allocation97_spill] sm:$0xff] }
 0x36c   : > { %4131 = vmatmul.bf16.gmra.mxu0 %v9053_v2  ;;  %9055 = vst [vmem:[#allocation82_spill] sm:$0xff] %v7986_v40  ;;  %v9058_v29 = vpack.c.b16 %v9056_v33, %v9057_v60  ;;  %v9067_v33 = vld [vmem:[#allocation40_spill] sm:$0xff] }
 0x36d   : > { %v2764_v60 = vadd.f32 %v9067_v33, %v2324_v55 }
 0x36f   : > { %3010 = vmatmul.bf16.gmra.mxu3 %v2830_v34 }
 0x371   : > { %v8005_v0 = vpop.f32.mrf.mxu0 }
 0x372   : > { %v2242_v6 = vpop.f32.mrf.mxu2  ;;  %v2971_v39 = vpop.f32.mrf.mxu3 }
 0x373   : > { %v2325_v37 = vadd.f32 %v2242_v6, %v7447_v28  ;;  %v7981_v12 = vadd.f32 %v2971_v39, %v2762_v13  ;;  %v9060_v28 = vld [vmem:[#allocation128_spill] sm:$0xff]  ;;  %v9063_v13 = vld [vmem:[#allocation45_spill] sm:$0xff]  ;;  %v8002_v40 = vpop.f32.mrf.mxu1 }
 0x374   : > { %v9064_v6 = vpack.c.b16 %v9062_v19, %v9063_v13  ;;  %v9065_v39 = vld [vmem:[#allocation157_spill] sm:$0xff]  ;;  %9066 = vst [vmem:[#allocation100_spill] sm:$0xff] %v8002_v40 }
 0x375   : > { %9054 = vst [vmem:[#allocation10_spill] sm:$0xff] %v7981_v12  ;;  %v2831_v31 = vpack.c.b16 %v6863_v7, %v9065_v39 }
 0x377   : > { %2284 = vmatmul.bf16.gmra.mxu2 %v9058_v29 }
 0x37a   : > { %v2245_v26 = vpop.f32.mrf.mxu2  ;;  %v2973_v1 = vpop.f32.mrf.mxu3 }
 0x37b   : > { %v2326_v2 = vadd.f32 %v2245_v26, %v9060_v28  ;;  %v7995_v34 = vadd.f32 %v2973_v1, %v2763_v48  ;;  %v9070_v1 = vld [vmem:[#allocation131_spill] sm:$0xff]  ;;  %v8012_v13 = vpop.f32.mrf.mxu1 }
 0x37c   : > { %4136 = vmatmul.bf16.gmra.mxu0 %v9064_v6  ;;  %v9071_v28 = vld [vmem:[#allocation3_spill] sm:$0xff]  ;;  %9072 = vst [vmem:[#allocation14_spill] sm:$0xff] %v8012_v13  ;;  %v9073_v6 = vld [vmem:[#allocation154_spill] sm:$0xff] }
 0x37d   : > { %9061 = vst [vmem:[#allocation83_spill] sm:$0xff] %v7995_v34  ;;  %v2118_v19 = vpack.c.b16 %v9071_v28, %v9070_v1  ;;  %v2765_v39 = vadd.f32 %v9073_v6, %v2325_v37  ;;  %v9077_v34 = vld [vmem:[#allocation57_spill] sm:$0xff]  ;;  %v9083_v6 = vld [vmem:[#allocation132_spill] sm:$0xff] }
 0x37e   : > { %v9078_v12 = vpack.c.b16 %v9076_v27, %v9077_v34  ;;  %v9085_v27 = vld [vmem:[#allocation4_spill] sm:$0xff] }
 0x37f   : > { %3015 = vmatmul.bf16.gmra.mxu3 %v2831_v31 }
 0x382   : > { %v2247_v29 = vpop.f32.mrf.mxu2  ;;  %v2976_v8 = vpop.f32.mrf.mxu3 }
 0x383   : > { %v2327_v26 = vadd.f32 %v2247_v29, %v9068_v49  ;;  %v8008_v48 = vadd.f32 %v2976_v8, %v2764_v60  ;;  %v8021_v49 = vpop.f32.mrf.mxu0  ;;  %v9079_v60 = vld [vmem:[#allocation89_spill] sm:$0xff] }
 0x384   : > { %v9080_v29 = vpack.c.b16 %v8961_v44, %v9079_v60  ;;  %v9081_v8 = vld [vmem:[#allocation49_spill] sm:$0xff] }
 0x385   : > { %9069 = vst [vmem:[#allocation95_spill] sm:$0xff] %v8008_v48  ;;  %v2766_v1 = vadd.f32 %v9081_v8, %v2326_v2  ;;  %v9087_v44 = vld [vmem:[#allocation133_spill] sm:$0xff]  ;;  %v9090_v8 = vld [vmem:[#allocation68_spill] sm:$0xff] }
 0x386   : > { %v9089_v2 = vld [vmem:[#allocation69_spill] sm:$0xff] }
 0x387   : > { %2289 = vmatmul.bf16.gmra.mxu2 %v2118_v19  ;;  %v8027_v19 = vpop.f32.mrf.mxu1 }
 0x388   : > { %9082 = vst [vmem:[#allocation80_spill] sm:$0xff] %v8027_v19 }
 0x38a   : > { %v2250_v40 = vpop.f32.mrf.mxu2  ;;  %v2978_v31 = vpop.f32.mrf.mxu3 }
 0x38b   : > { %v2328_v55 = vadd.f32 %v2250_v40, %v9074_v45  ;;  %v8016_v33 = vadd.f32 %v2978_v31, %v2765_v39  ;;  %v8032_v39 = vpop.f32.mrf.mxu0 }
 0x38c   : > { %4141 = vmatmul.bf16.gmra.mxu0 %v9078_v12  ;;  %v9086_v12 = vld [vmem:[#allocation31_spill] sm:$0xff] }
 0x38d   : > { %9075 = vst [vmem:[#allocation13_spill] sm:$0xff] %v8016_v33  ;;  %v2767_v34 = vadd.f32 %v9086_v12, %v2327_v26  ;;  %v9091_v33 = vpack.c.b16 %v9089_v2, %v9090_v8 }
 0x38f   : > { %3020 = vmatmul.bf16.gmra.mxu3 %v9080_v29  ;;  %v8042_v19 = vpop.f32.mrf.mxu1 }
 0x390   : > { %9092 = vst [vmem:[#allocation50_spill] sm:$0xff] %v8042_v19  ;;  %v9101_v19 = vld [vmem:[#allocation70_spill] sm:$0xff] }
 0x392   : > { %v2252_v28 = vpop.f32.mrf.mxu2  ;;  %v2981_v37 = vpop.f32.mrf.mxu3 }
 0x393   : > { %v2329_v45 = vadd.f32 %v2252_v28, %v9083_v6  ;;  %v8030_v40 = vadd.f32 %v2981_v37, %v2766_v1  ;;  %v2833_v1 = vpack.c.b16 %v7810_v25, %v6863_v7  ;;  %v9093_v28 = vld [vmem:[#allocation5_spill] sm:$0xff]  ;;  %v8048_v26 = vpop.f32.mrf.mxu0  ;;  %v9094_v6 = vld [vmem:[#allocation59_spill] sm:$0xff] }
 0x394   : > { %v3519_v37 = vpack.c.bf16 %v9093_v28, %v9093_v28  ;;  %v5961_v25 = vld [vmem:[%s8640_s5 + $0x10] sm:$0xff] }
 0x395   : > { %9084 = vst [vmem:[#allocation99_spill] sm:$0xff] %v8030_v40  ;;  %4706 = vmatpush.bf16.msrb.mxu1 %v5961_v25  ;;  %v2834_v25 = vpack.c.b16 %v6863_v7, %v7812_v58 }
 0x396   : > { %v8051_v12 = vunpack.c.l.b16 %v3519_v37 }
 0x397   : > { %2294 = vmatmul.bf16.gmra.mxu2 %v9085_v27  ;;  %v2768_v27 = vadd.f32 %v9094_v6, %v2328_v55  ;;  %v8063_v8 = vpop.f32.mrf.mxu1  ;;  %v2769_v55 = vadd.f32 %v7703_v41, %v2329_v45 }
 0x398   : > { %v8058_v2 = vpack.c.b16 %v8051_v12, %v8051_v12  ;;  %9098 = vst [vmem:[#allocation15_spill] sm:$0xff] %v8063_v8 }
 0x39a   : > { %v2255_v31 = vpop.f32.mrf.mxu2  ;;  %v2983_v13 = vpop.f32.mrf.mxu3  ;;  %9097 = vst [vmem:[#allocation20_spill] sm:$0xff] %v8058_v2 }
 0x39b   : > { %v2330_v60 = vadd.f32 %v2255_v31, %v9087_v44  ;;  %v8037_v29 = vadd.f32 %v2983_v13, %v2767_v34  ;;  %v9095_v31 = vld [vmem:[#allocation134_spill] sm:$0xff]  ;;  %v8067_v6 = vpop.f32.mrf.mxu0 }
 0x39c   : > { %4146 = vmatmul.bf16.gmra.mxu0 %v9091_v33 }
 0x39d   : > { %9088 = vst [vmem:[#allocation115_spill] sm:$0xff] %v8037_v29  ;;  %v2770_v41 = vadd.f32 %v7712_v3, %v2330_v60  ;;  %v9104_v29 = vld [vmem:[#allocation138_spill] sm:$0xff] }
 0x39f   : > { %3025 = vmatmul.bf16.gmra.mxu3 %v2833_v1  ;;  %v8077_v8 = vpop.f32.mrf.mxu1 }
 0x3a0   : > { %9103 = vst [vmem:[#allocation81_spill] sm:$0xff] %v8077_v8 }
 0x3a2   : > { %v2257_v13 = vpop.f32.mrf.mxu2  ;;  %v2986_v34 = vpop.f32.mrf.mxu3 }
 0x3a3   : > { %v2331_v44 = vadd.f32 %v2257_v13, %v9095_v31  ;;  %v8054_v33 = vadd.f32 %v2986_v34, %v2768_v27  ;;  %v9099_v27 = vld [vmem:[#allocation136_spill] sm:$0xff] }
 0x3a4   : > { %v9100_v31 = vld [vmem:[#allocation84_spill] sm:$0xff] }
 0x3a5   : > { %9096 = vst [vmem:[#allocation107_spill] sm:$0xff] %v8054_v33  ;;  %v9102_v33 = vpack.c.b16 %v9100_v31, %v9101_v19  ;;  %v3687_v19 = vpack.c.b16 %v8973_v43, %v8051_v12 }
 0x3a7   : > { %3790 = vmatmul.bf16.vlgmr.msrb.gmra.mxu2 %v8058_v2 }
 0x3aa   : > { %v2260_v1 = vpop.f32.mrf.mxu2  ;;  %v2988_v37 = vpop.f32.mrf.mxu3 }
 0x3ab   : > { %v2332_v13 = vadd.f32 %v2260_v1, %v9099_v27  ;;  %v8070_v34 = vadd.f32 %v2988_v37, %v2769_v55  ;;  %v8083_v55 = vpop.f32.mrf.mxu0  ;;  %v8088_v1 = vpop.f32.mrf.mxu1  ;;  %v9106_v37 = vld [vmem:[#allocation139_spill] sm:$0xff]  ;;  %v9108_v27 = vld [vmem:[#allocation86_spill] sm:$0xff] }
 0x3ac   : > { %4151 = vmatmul.bf16.gmra.mxu0 %v9102_v33  ;;  %v2771_v33 = vadd.f32 %v7727_v23, %v2331_v44  ;;  %9105 = vst [vmem:[#allocation108_spill] sm:$0xff] %v8088_v1  ;;  %v9112_v44 = vld [vmem:[#allocation141_spill] sm:$0xff] }
 0x3ad   : > { %v2772_v43 = vadd.f32 %v7736_v10, %v2332_v13 }
 0x3af   : > { %3030 = vmatmul.bf16.gmra.mxu3 %v2834_v25  ;;  %v9111_v25 = vld [vmem:[#allocation12_spill] sm:$0xff] }
 0x3b2   : > { %v2262_v45 = vpop.f32.mrf.mxu2  ;;  %v2991_v2 = vpop.f32.mrf.mxu3 }
 0x3b3   : > { %v2333_v40 = vadd.f32 %v2262_v45, %v9104_v29  ;;  %v8081_v48 = vadd.f32 %v2991_v2, %v2770_v41  ;;  %v9109_v29 = vld [vmem:[#allocation85_spill] sm:$0xff]  ;;  %v8096_v31 = vpop.f32.mrf.mxu0  ;;  %v8103_v1 = vpop.f32.mrf.mxu1 }
 0x3b4   : > { %v9110_v2 = vpack.c.b16 %v9108_v27, %v9109_v29  ;;  %9114 = vst [vmem:[#allocation22_spill] sm:$0xff] %v8103_v1  ;;  %v9116_v29 = vld [vmem:[#allocation143_spill] sm:$0xff] }
 0x3b7   : > { %3795 = vmatmul.bf16.gmra.mxu2 %v3687_v19 }
 0x3ba   : > { %v2265_v7 = vpop.f32.mrf.mxu2  ;;  %v2993_v58 = vpop.f32.mrf.mxu3 }
 0x3bb   : > { %v2334_v3 = vadd.f32 %v2265_v7, %v9106_v37  ;;  %v8091_v60 = vadd.f32 %v2993_v58, %v2771_v33  ;;  %v9115_v33 = vpack.c.b16 %v8985_v4, %v8972_v36  ;;  %v8108_v7 = vpop.f32.mrf.mxu0  ;;  %v2773_v58 = vadd.f32 %v7757_v20, %v2333_v40  ;;  %v9123_v20 = vld [vmem:[#allocation145_spill] sm:$0xff] }
 0x3bc   : > { %4156 = vmatmul.bf16.gmra.mxu0 %v9110_v2  ;;  %v9118_v2 = vld [vmem:[#allocation102_spill] sm:$0xff] }
 0x3bd   : > { %9107 = vst [vmem:[#allocation119_spill] sm:$0xff] %v8091_v60  ;;  %v2774_v36 = vadd.f32 %v7766_v56, %v2334_v3  ;;  %v9191_v60 = vld [vmem:[#allocation142_spill] sm:$0xff] }
 0x3bf   : > { %4340 = vmatmul.bf16.vlgmr.msra.gmra.mxu3 %v9111_v25 }
 0x3c2   : > { %v2267_v41 = vpop.f32.mrf.mxu2  ;;  %v2996_v23 = vpop.f32.mrf.mxu3 }
 0x3c3   : > { %v2335_v45 = vadd.f32 %v2267_v41, %v9112_v44  ;;  %v8101_v19 = vadd.f32 %v2996_v23, %v2772_v43  ;;  %v9119_v41 = vld [vmem:[#allocation101_spill] sm:$0xff]  ;;  %v8117_v23 = vpop.f32.mrf.mxu1  ;;  %v9122_v44 = vld [vmem:[#allocation16_spill] sm:$0xff]  ;;  %v8121_v1 = vpop.f32.mrf.mxu0 }
 0x3c4   : > { %v9120_v43 = vpack.c.b16 %v9118_v2, %v9119_v41  ;;  %9121 = vst [vmem:[#allocation117_spill] sm:$0xff] %v8117_v23 }
 0x3c5   : > { %9113 = vst [vmem:[#allocation111_spill] sm:$0xff] %v8101_v19  ;;  %v9190_v19 = vld [vmem:[#allocation90_spill] sm:$0xff] }
 0x3c7   : > { %3800 = vmatmul.bf16.gmra.mxu2 %v9115_v33 }
 0x3ca   : > { %v2270_v37 = vpop.f32.mrf.mxu2  ;;  %v2998_v27 = vpop.f32.mrf.mxu3 }
 0x3cb   : > { %v2336_v10 = vadd.f32 %v2270_v37, %v9116_v29  ;;  %v8112_v13 = vadd.f32 %v2998_v27, %v2773_v58  ;;  %v5960_v58 = vld [vmem:[%s8640_s5 + $0x8] sm:$0xff]  ;;  %v8130_v37 = vpop.f32.mrf.mxu1  ;;  %v2775_v27 = vadd.f32 %v7781_v63, %v2335_v45  ;;  %v9126_v29 = vld [vmem:[#allocation147_spill] sm:$0xff]  ;;  %v9133_v63 = vld [vmem:[#allocation29_spill] sm:$0xff] }
 0x3cc   : > { %4161 = vmatmul.bf16.gmra.mxu0 %v9120_v43  ;;  %4707 = vmatpush.bf16.msrb.mxu1 %v5960_v58  ;;  %9125 = vst [vmem:[#allocation25_spill] sm:$0xff] %v8130_v37  ;;  %v9128_v43 = vld [vmem:[#allocation112_spill] sm:$0xff] }
 0x3cd   : > { %9117 = vst [vmem:[#allocation21_spill] sm:$0xff] %v8112_v13 }
 0x3cf   : > { %4345 = vmatmul.bf16.gmra.mxu3 %v9122_v44 }
 0x3d2   : > { %v2272_v4 = vpop.f32.mrf.mxu2  ;;  %v3001_v33 = vpop.f32.mrf.mxu3 }
 0x3d3   : > { %v2337_v40 = vadd.f32 %v2272_v4, %v9123_v20  ;;  %v8124_v8 = vadd.f32 %v3001_v33, %v2774_v36  ;;  %v9129_v36 = vld [vmem:[#allocation103_spill] sm:$0xff]  ;;  %v8139_v33 = vpop.f32.mrf.mxu0  ;;  %v9131_v20 = vld [vmem:[#allocation17_spill] sm:$0xff]  ;;  %v8143_v23 = vpop.f32.mrf.mxu1 }
 0x3d4   : > { %v9130_v4 = vpack.c.b16 %v9128_v43, %v9129_v36  ;;  %9132 = vst [vmem:[#allocation109_spill] sm:$0xff] %v8143_v23  ;;  %v9135_v43 = vld [vmem:[#allocation18_spill] sm:$0xff] }
 0x3d5   : > { %9124 = vst [vmem:[#allocation118_spill] sm:$0xff] %v8124_v8 }
 0x3d7   : > { %3805 = vmatmul.bf16.gmra.mxu2 %v9111_v25  ;;  %v2776_v25 = vadd.f32 %v7789_v22, %v2336_v10  ;;  %v9137_v22 = vld [vmem:[#allocation114_spill] sm:$0xff]  ;;  %v9138_v10 = vld [vmem:[#allocation113_spill] sm:$0xff] }
 0x3da   : > { %v2275_v56 = vpop.f32.mrf.mxu2  ;;  %v3003_v3 = vpop.f32.mrf.mxu3 }
 0x3db   : > { %v2338_v2 = vadd.f32 %v2275_v56, %v9126_v29  ;;  %v8134_v41 = vadd.f32 %v3003_v3, %v2775_v27  ;;  %v8148_v27 = vpop.f32.mrf.mxu0  ;;  %v2777_v56 = vadd.f32 %v7807_v62, %v2337_v40  ;;  %v8158_v23 = vpop.f32.mrf.mxu1  ;;  %v9142_v40 = vld [vmem:[#allocation36_spill] sm:$0xff] }
 0x3dc   : > { %4166 = vmatmul.bf16.gmra.mxu0 %v9130_v4  ;;  %9140 = vst [vmem:[#allocation110_spill] sm:$0xff] %v8158_v23 }
 0x3dd   : > { %9127 = vst [vmem:[#allocation24_spill] sm:$0xff] %v8134_v41  ;;  %v9139_v41 = vpack.c.b16 %v9137_v22, %v9138_v10  ;;  %v9145_v22 = vld [vmem:[#allocation151_spill] sm:$0xff] }
 0x3df   : > { %4350 = vmatmul.bf16.gmra.mxu3 %v9131_v20 }
 0x3e2   : > { %v2277_v58 = vpop.f32.mrf.mxu2  ;;  %v3006_v37 = vpop.f32.mrf.mxu3 }
 0x3e3   : > { %v2339_v45 = vadd.f32 %v2277_v58, %v9133_v63  ;;  %v8146_v8 = vadd.f32 %v3006_v37, %v2776_v25  ;;  %v9141_v37 = vld [vmem:[#allocation23_spill] sm:$0xff]  ;;  %v8161_v25 = vpop.f32.mrf.mxu0 }
 0x3e5   : > { %9134 = vst [vmem:[#allocation33_spill] sm:$0xff] %v8146_v8 }
 0x3e7   : > { %3810 = vmatmul.bf16.gmra.mxu2 %v9122_v44  ;;  %v2778_v44 = vadd.f32 %v7822_v54, %v2338_v2  ;;  %v9147_v54 = vld [vmem:[#allocation121_spill] sm:$0xff]  ;;  %v9148_v2 = vld [vmem:[#allocation120_spill] sm:$0xff] }
 0x3ea   : > { %v2280_v3 = vpop.f32.mrf.mxu2  ;;  %v3008_v29 = vpop.f32.mrf.mxu3 }
 0x3eb   : > { %v2340_v36 = vadd.f32 %v2280_v3, %v9135_v43  ;;  %v8153_v4 = vadd.f32 %v3008_v29, %v2777_v56  ;;  %v8167_v56 = vpop.f32.mrf.mxu1  ;;  %v8171_v43 = vpop.f32.mrf.mxu0 }
 0x3ec   : > { %4171 = vmatmul.bf16.gmra.mxu0 %v9139_v41  ;;  %9144 = vst [vmem:[#allocation125_spill] sm:$0xff] %v8167_v56  ;;  %v2779_v41 = vadd.f32 %v7839_v52, %v2339_v45 }
 0x3ed   : > { %9136 = vst [vmem:[#allocation26_spill] sm:$0xff] %v8153_v4  ;;  %v9149_v4 = vpack.c.b16 %v9147_v54, %v9148_v2  ;;  %v2780_v52 = vadd.f32 %v7852_v24, %v2340_v36 }
 0x3ef   : > { %4355 = vmatmul.bf16.gmra.mxu3 %v9141_v37 }
 0x3f2   : > { %v2282_v58 = vpop.f32.mrf.mxu2  ;;  %v3011_v62 = vpop.f32.mrf.mxu3 }
 0x3f3   : > { %v2341_v63 = vadd.f32 %v2282_v58, %v9142_v40  ;;  %v8165_v8 = vadd.f32 %v3011_v62, %v2778_v44  ;;  %v9150_v44 = vld [vmem:[#allocation66_spill] sm:$0xff]  ;;  %v9151_v62 = vld [vmem:[#allocation27_spill] sm:$0xff]  ;;  %v8181_v40 = vpop.f32.mrf.mxu1  ;;  %v8193_v2 = vpop.f32.mrf.mxu0 }
 0x3f4   : > { %v3410_v58 = vrot.slane %v9150_v44, 1  ;;  %9152 = vst [vmem:[#allocation34_spill] sm:$0xff] %v8181_v40 }
 0x3f5   : > { %9143 = vst [vmem:[#allocation79_spill] sm:$0xff] %v8165_v8  ;;  %v2781_v36 = vadd.f32 %v7865_v14, %v2341_v63 }
 0x3f7   : > { %3815 = vmatmul.bf16.gmra.mxu2 %v9131_v20  ;;  %v9153_v20 = vld [vmem:[#allocation65_spill] sm:$0xff] }
 0x3f8   : > { %v9154_v45 = vrot.slane %v9153_v20, 1 }
 0x3fa   : > { %v2285_v3 = vpop.f32.mrf.mxu2  ;;  %v3013_v29 = vpop.f32.mrf.mxu3  ;;  %v3411_v56 = vsel %vm3338_vm1, %v9154_v45, %v3410_v58  ;;  %v9157_v45 = vld [vmem:[#allocation122_spill] sm:$0xff] }
 0x3fb   : > { %v2342_v10 = vadd.f32 %v2285_v3, %v9145_v22  ;;  %v8174_v23 = vadd.f32 %v3013_v29, %v2779_v41  ;;  %v9155_v41 = vld [vmem:[#allocation153_spill] sm:$0xff]  ;;  %v3561_v54 = vpack.c.bf16 %v3411_v56, %v3411_v56  ;;  %v8206_v56 = vpop.f32.mrf.mxu0 }
 0x3fc   : > { %4176 = vmatmul.bf16.gmra.mxu0 %v9149_v4  ;;  %v5959_v4 = vld [vmem:[%s8640_s5] sm:$0xff] }
 0x3fd   : > { %9146 = vst [vmem:[#allocation35_spill] sm:$0xff] %v8174_v23  ;;  %4708 = vmatpush.bf16.msrb.mxu1 %v5959_v4  ;;  %v8196_v24 = vunpack.c.l.b16 %v3561_v54  ;;  %v9161_v4 = vld [vmem:[#allocation28_spill] sm:$0xff]  ;;  %v2782_v14 = vadd.f32 %v7875_v42, %v2342_v10  ;;  %v9165_v42 = vld [vmem:[#allocation71_spill] sm:$0xff] }
 0x3ff   : > { %4360 = vmatmul.bf16.gmra.mxu3 %v9151_v62 }
 0x402   : > { %v2287_v8 = vpop.f32.mrf.mxu2  ;;  %v3016_v3 = vpop.f32.mrf.mxu3 }
 0x403   : > { %v2343_v29 = vadd.f32 %v2287_v8, %v9155_v41  ;;  %v8188_v22 = vadd.f32 %v3016_v3, %v2780_v52  ;;  %v4001_v8 = vpack.c.b16 %v8196_v24, %v9157_v45  ;;  %v8201_v52 = vpop.f32.mrf.mxu1  ;;  %v9159_v3 = vld [vmem:[#allocation155_spill] sm:$0xff]  ;;  %v9162_v45 = vld [vmem:[#allocation158_spill] sm:$0xff] }
 0x404   : > { %9158 = vst [vmem:[#allocation127_spill] sm:$0xff] %v8201_v52 }
 0x405   : > { %9156 = vst [vmem:[#allocation126_spill] sm:$0xff] %v8188_v22 }
 0x407   : > { %3820 = vmatmul.bf16.gmra.mxu2 %v9141_v37  ;;  %v3413_v37 = vsel %vm3338_vm1, %v3410_v58, %v9093_v28 }
 0x408   : > { %v3562_v22 = vpack.c.bf16 %v3413_v37, %v3413_v37  ;;  %v9166_v37 = vld [vmem:[#allocation41_spill] sm:$0xff] }
 0x40a   : > { %v2290_v44 = vpop.f32.mrf.mxu2  ;;  %v3018_v20 = vpop.f32.mrf.mxu3 }
 0x40b   : > { %v2344_v41 = vadd.f32 %v2290_v44, %v9159_v3  ;;  %v8204_v40 = vadd.f32 %v3018_v20, %v2781_v36  ;;  %v8215_v44 = vpop.f32.mrf.mxu1  ;;  %v8217_v36 = vunpack.c.l.b16 %v3562_v22  ;;  %v8220_v20 = vpop.f32.mrf.mxu0 }
 0x40c   : > { %4181 = vmatmul.bf16.gmra.mxu0 %v4001_v8  ;;  %9164 = vst [vmem:[#allocation98_spill] sm:$0xff] %v8215_v44  ;;  %v2783_v8 = vadd.f32 %v7888_v50, %v2343_v29  ;;  %v9169_v50 = vld [vmem:[#allocation159_spill] sm:$0xff] }
 0x40d   : > { %9160 = vst [vmem:[#allocation44_spill] sm:$0xff] %v8204_v40  ;;  %v4002_v10 = vpack.c.b16 %v9165_v42, %v8217_v36  ;;  %v2784_v22 = vadd.f32 %v7904_v53, %v2344_v41 }
 0x40f   : > { %4365 = vmatmul.bf16.gmra.mxu3 %v9161_v4 }
 0x412   : > { %v2292_v63 = vpop.f32.mrf.mxu2  ;;  %v3021_v54 = vpop.f32.mrf.mxu3 }
 0x413   : > { %v2345_v23 = vadd.f32 %v2292_v63, %v9162_v45  ;;  %v8213_v52 = vadd.f32 %v3021_v54, %v2782_v14  ;;  %v3280_v14 = vpop.f32.mrf.mxu1  ;;  %v9168_v54 = vld [vmem:[#allocation37_spill] sm:$0xff]  ;;  %v8230_v44 = vpop.f32.mrf.mxu0 }
 0x415   : > { %9163 = vst [vmem:[#allocation42_spill] sm:$0xff] %v8213_v52 }
 0x417   : > { %3825 = vmatmul.bf16.gmra.mxu2 %v9151_v62 }
 0x41a   : > { %v2295_v58 = vpop.f32.mrf.mxu2  ;;  %v3023_v3 = vpop.f32.mrf.mxu3 }
 0x41b   : > { %v2346_v40 = vadd.f32 %v2295_v58, %v9166_v37  ;;  %v8226_v63 = vadd.f32 %v3023_v3, %v2783_v8  ;;  %v8236_v58 = vpop.f32.mrf.mxu1  ;;  %v2785_v8 = vadd.f32 %v7918_v57, %v2345_v23  ;;  %v9173_v37 = vld [vmem:[#allocation91_spill] sm:$0xff] }
 0x41c   : > { %4186 = vmatmul.bf16.gmra.mxu0 %v4002_v10  ;;  %9171 = vst [vmem:[#allocation128_spill] sm:$0xff] %v8236_v58  ;;  %v9172_v10 = vld [vmem:[#allocation74_spill] sm:$0xff] }
 0x41d   : > { %9167 = vst [vmem:[#allocation97_spill] sm:$0xff] %v8226_v63  ;;  %v4003_v53 = vpack.c.b16 %v9173_v37, %v9172_v10  ;;  %v8243_v63 = vpop.f32.mrf.mxu0  ;;  %v9178_v37 = vld [vmem:[#allocation92_spill] sm:$0xff] }
 0x41f   : > { %4370 = vmatmul.bf16.gmra.mxu3 %v9168_v54 }
 0x422   : > { %v2297_v62 = vpop.f32.mrf.mxu2  ;;  %v3026_v45 = vpop.f32.mrf.mxu3 }
 0x423   : > { %v2347_v29 = vadd.f32 %v2297_v62, %v9169_v50  ;;  %v3080_v52 = vadd.f32 %v3026_v45, %v2784_v22  ;;  %v9175_v62 = vld [vmem:[#allocation46_spill] sm:$0xff] }
 0x425   : > { %v8233_v13 = vadd.f32 %v3280_v14, %v3080_v52  ;;  %v2786_v52 = vadd.f32 %v7930_v9, %v2346_v40  ;;  %v3285_v14 = vpop.f32.mrf.mxu1  ;;  %v8249_v57 = vpop.f32.mrf.mxu0  ;;  %v2787_v23 = vadd.f32 %v7940_v51, %v2347_v29  ;;  %v9181_v9 = vld [vmem:[#allocation32_spill] sm:$0xff]  ;;  %v9182_v40 = vld [vmem:[#allocation135_spill] sm:$0xff] }
 0x427   : > { %9170 = vst [vmem:[#allocation150_spill] sm:$0xff] %v8233_v13  ;;  %3830 = vmatmul.bf16.gmra.mxu2 %v9161_v4 }
 0x42a   : > { %v3028_v3 = vpop.f32.mrf.mxu3  ;;  %v3791_v42 = vpop.f32.mrf.mxu2 }
 0x42b   : > { %v8241_v41 = vadd.f32 %v3028_v3, %v2785_v8 }
 0x42c   : > { %4191 = vmatmul.bf16.gmra.mxu0 %v4003_v53  ;;  %v9179_v53 = vld [vmem:[#allocation93_spill] sm:$0xff] }
 0x42d   : > { %9174 = vst [vmem:[#allocation56_spill] sm:$0xff] %v8241_v41  ;;  %v9180_v58 = vpack.c.b16 %v9178_v37, %v9179_v53  ;;  %v3290_v41 = vadd.f32 %v9182_v40, %v9181_v9 }
 0x42f   : > { %4375 = vmatmul.bf16.gmra.mxu3 %v9175_v62  ;;  %v3911_v51 = vadd.f32 %v3791_v42, %v3290_v41 }
 0x432   : > { %v3031_v4 = vpop.f32.mrf.mxu3  ;;  %v3793_v22 = vpop.f32.mrf.mxu2 }
 0x433   : > { %v3082_v45 = vadd.f32 %v3031_v4, %v2786_v52  ;;  %v9183_v52 = vld [vmem:[#allocation47_spill] sm:$0xff]  ;;  %v8265_v4 = vpop.f32.mrf.mxu0 }
 0x435   : > { %v8247_v50 = vadd.f32 %v3285_v14, %v3082_v45  ;;  %v9184_v14 = vrot.slane %v8997_v15, 1  ;;  %v8275_v15 = vld [vmem:[%s8642_s7] ss:$0 sm:$0xff] }
 0x437   : > { %9176 = vst [vmem:[#allocation45_spill] sm:$0xff] %v8247_v50  ;;  %3835 = vmatmul.bf16.gmra.mxu2 %v9168_v54  ;;  %v3517_v54 = vsel %vm3338_vm1, %v9093_v28, %v9184_v14  ;;  %v9186_v14 = vld [vmem:[#allocation105_spill] sm:$0xff] }
 0x43a   : > { %v3033_v8 = vpop.f32.mrf.mxu3  ;;  %v3796_v3 = vpop.f32.mrf.mxu2 }
 0x43b   : > { %v8253_v10 = vadd.f32 %v3033_v8, %v2787_v23  ;;  %v3569_v23 = vpack.c.bf16 %v3517_v54, %v3517_v54  ;;  %v9185_v8 = vld [vmem:[#allocation137_spill] sm:$0xff]  ;;  %v8282_v54 = vpop.f32.mrf.mxu0 }
 0x43c   : > { %4196 = vmatmul.bf16.gmra.mxu0 %v9180_v58  ;;  %v3291_v53 = vadd.f32 %v9185_v8, %v7718_v59 }
 0x43d   : > { %9177 = vst [vmem:[#allocation157_spill] sm:$0xff] %v8253_v10  ;;  %v4207_v10 = vadd.f32 %v7957_v35, %v3911_v51  ;;  %v8270_v9 = vunpack.c.l.b16 %v3569_v23  ;;  %v9187_v51 = vld [vmem:[#allocation38_spill] sm:$0xff] }
 0x43e   : > { %v3912_v58 = vadd.f32 %v3793_v22, %v3291_v53  ;;  %v9189_v53 = vld [vmem:[#allocation60_spill] sm:$0xff] }
 0x43f   : > { %4380 = vmatmul.bf16.gmra.mxu3 %v9183_v52  ;;  %v4005_v59 = vpack.c.b16 %v8270_v9, %v9186_v14 }
 0x440   : > { %v4208_v28 = vadd.f32 %v7974_v11, %v3912_v58 }
 0x442   : > { %v3798_v29 = vpop.f32.mrf.mxu2  ;;  %v4341_v45 = vpop.f32.mrf.mxu3 }
 0x443   : > { %v4461_v40 = vadd.f32 %v4341_v45, %v4207_v10  ;;  %v9188_v45 = vld [vmem:[#allocation140_spill] sm:$0xff] }
 0x444   : > { %v3292_v23 = vadd.f32 %v9188_v45, %v9187_v51 }
 0x445   : > { %v4513_v22 = vadd.f32 %v8275_v15, %v4461_v40  ;;  %v3293_v40 = vadd.f32 %v9191_v60, %v9190_v19 }
 0x446   : > { %v3913_v11 = vadd.f32 %v3796_v3, %v3292_v23  ;;  %v9192_v23 = vld [vmem:[#allocation61_spill] sm:$0xff] }
 0x447   : > { %3840 = vmatmul.bf16.gmra.mxu2 %v9175_v62  ;;  %v4561_v8 = vmax.f32 %v4513_v22, 0.0 }
 0x44a   : > { %v3801_v42 = vpop.f32.mrf.mxu2  ;;  %v4343_v41 = vpop.f32.mrf.mxu3 }
 0x44b   : > { %v4462_v35 = vadd.f32 %v4343_v41, %v4208_v28  ;;  %v3914_v28 = vadd.f32 %v3798_v29, %v3293_v40  ;;  %v4209_v41 = vadd.f32 %v7991_v18, %v3913_v11  ;;  %v9194_v29 = vld [vmem:[#allocation72_spill] sm:$0xff] }
 0x44c   : > { %4201 = vmatmul.bf16.gmra.mxu0 %v4005_v59 }
 0x44d   : > { %v4514_v10 = vadd.f32 %v8275_v15, %v4462_v35  ;;  %v4210_v35 = vadd.f32 %v8005_v0, %v3914_v28  ;;  %v9196_v0 = vld [vmem:[#allocation146_spill] sm:$0xff] }
 0x44f   : > { %v4562_v62 = vmax.f32 %v4514_v10, 0.0  ;;  %4385 = vmatmul.bf16.gmra.mxu3 %v9189_v53 }
 0x451   : > { %v4609_v58 = vpack.c.bf16 %v4562_v62, %v4561_v8  ;;  %v9193_v8 = vld [vmem:[#allocation144_spill] sm:$0xff] }
 0x452   : > { %v3803_v50 = vpop.f32.mrf.mxu2  ;;  %v4346_v13 = vpop.f32.mrf.mxu3  ;;  %v3294_v62 = vadd.f32 %v9193_v8, %v9192_v23  ;;  %v9197_v23 = vld [vmem:[#allocation63_spill] sm:$0xff]  ;;  %v9198_v8 = vld [vmem:[#allocation148_spill] sm:$0xff] }
 0x453   : > { %4709 = vmatmul.bf16.vlgmr.msrb.gmra.mxu1 %v4609_v58  ;;  %v4463_v59 = vadd.f32 %v4346_v13, %v4209_v41  ;;  %v9195_v58 = vld [vmem:[#allocation76_spill] sm:$0xff] }
 0x454   : > { %v3915_v18 = vadd.f32 %v3801_v42, %v3294_v62  ;;  %v3295_v40 = vadd.f32 %v9196_v0, %v9195_v58  ;;  %v3296_v62 = vadd.f32 %v9198_v8, %v9197_v23 }
 0x455   : > { %v4515_v51 = vadd.f32 %v8275_v15, %v4463_v59 }
 0x456   : > { %v3916_v28 = vadd.f32 %v3803_v50, %v3295_v40  ;;  %v4211_v41 = vadd.f32 %v8021_v49, %v3915_v18  ;;  %v9199_v50 = vld [vmem:[#allocation75_spill] sm:$0xff] }
 0x457   : > { %3845 = vmatmul.bf16.gmra.mxu2 %v9183_v52  ;;  %v4563_v60 = vmax.f32 %v4515_v51, 0.0 }
 0x45a   : > { %v3806_v22 = vpop.f32.mrf.mxu2  ;;  %v4348_v10 = vpop.f32.mrf.mxu3 }
 0x45b   : > { %v4464_v3 = vadd.f32 %v4348_v10, %v4210_v35  ;;  %v4212_v35 = vadd.f32 %v8032_v39, %v3916_v28  ;;  %v3917_v49 = vadd.f32 %v3806_v22, %v3296_v62  ;;  %v9201_v39 = vld [vmem:[#allocation149_spill] sm:$0xff] }
 0x45d   : > { %v4516_v45 = vadd.f32 %v8275_v15, %v4464_v3  ;;  %v4213_v40 = vadd.f32 %v8048_v26, %v3917_v49  ;;  %v9205_v49 = vld [vmem:[#allocation87_spill] sm:$0xff] }
 0x45f   : > { %v4564_v19 = vmax.f32 %v4516_v45, 0.0  ;;  %4390 = vmatmul.bf16.gmra.mxu3 %v9194_v29 }
 0x461   : > { %v4610_v13 = vpack.c.bf16 %v4564_v19, %v4563_v60 }
 0x462   : > { %v3808_v11 = vpop.f32.mrf.mxu2  ;;  %v4351_v52 = vpop.f32.mrf.mxu3 }
 0x463   : > { %4714 = vmatmul.bf16.gmra.mxu1 %v4610_v13  ;;  %v4465_v59 = vadd.f32 %v4351_v52, %v4211_v41  ;;  %v9200_v52 = vld [vmem:[#allocation6_spill] sm:$0xff] }
 0x464   : > { %v3297_v58 = vadd.f32 %v9201_v39, %v9200_v52 }
 0x465   : > { %v4517_v3 = vadd.f32 %v8275_v15, %v4465_v59 }
 0x466   : > { %v3918_v0 = vadd.f32 %v3808_v11, %v3297_v58  ;;  %v9204_v11 = vld [vmem:[#allocation88_spill] sm:$0xff] }
 0x467   : > { %3850 = vmatmul.bf16.gmra.mxu2 %v9189_v53  ;;  %v4565_v60 = vmax.f32 %v4517_v3, 0.0 }
 0x468   : > { %v4214_v41 = vadd.f32 %v8067_v6, %v3918_v0  ;;  %v9206_v6 = vld [vmem:[#allocation152_spill] sm:$0xff] }
 0x46a   : > { %v3811_v10 = vpop.f32.mrf.mxu2  ;;  %v4353_v51 = vpop.f32.mrf.mxu3 }
 0x46b   : > { %v4466_v42 = vadd.f32 %v4353_v51, %v4212_v35 }
 0x46d   : > { %v4518_v45 = vadd.f32 %v8275_v15, %v4466_v42  ;;  %v9202_v42 = vld [vmem:[#allocation67_spill] sm:$0xff] }
 0x46f   : > { %v4566_v19 = vmax.f32 %v4518_v45, 0.0  ;;  %4395 = vmatmul.bf16.gmra.mxu3 %v9199_v50  ;;  %v9203_v45 = vld [vmem:[#allocation19_spill] sm:$0xff] }
 0x470   : > { %v3298_v23 = vadd.f32 %v9203_v45, %v9202_v42 }
 0x471   : > { %v4611_v18 = vpack.c.bf16 %v4566_v19, %v4565_v60 }
 0x472   : > { %v3813_v13 = vpop.f32.mrf.mxu2  ;;  %v4356_v53 = vpop.f32.mrf.mxu3  ;;  %v3919_v26 = vadd.f32 %v3811_v10, %v3298_v23 }
 0x473   : > { %4719 = vmatmul.bf16.gmra.mxu1 %v4611_v18  ;;  %v4467_v28 = vadd.f32 %v4356_v53, %v4213_v40  ;;  %v3299_v18 = vadd.f32 %v9206_v6, %v9205_v49 }
 0x474   : > { %v4215_v52 = vadd.f32 %v8083_v55, %v3919_v26 }
 0x475   : > { %v4519_v51 = vadd.f32 %v8275_v15, %v4467_v28  ;;  %v3920_v53 = vadd.f32 %v3813_v13, %v3299_v18  ;;  %v9209_v13 = vld [vmem:[#allocation104_spill] sm:$0xff] }
 0x477   : > { %3855 = vmatmul.bf16.gmra.mxu2 %v9194_v29  ;;  %v4567_v8 = vmax.f32 %v4519_v51, 0.0  ;;  %v4216_v58 = vadd.f32 %v8096_v31, %v3920_v53  ;;  %v9208_v51 = vld [vmem:[#allocation156_spill] sm:$0xff]  ;;  %v9210_v31 = vld [vmem:[#allocation39_spill] sm:$0xff] }
 0x47a   : > { %v3816_v59 = vpop.f32.mrf.mxu2  ;;  %v4358_v35 = vpop.f32.mrf.mxu3 }
 0x47b   : > { %v4468_v22 = vadd.f32 %v4358_v35, %v4214_v41  ;;  %v9207_v35 = vld [vmem:[#allocation9_spill] sm:$0xff] }
 0x47d   : > { %v4520_v3 = vadd.f32 %v8275_v15, %v4468_v22  ;;  %v3300_v22 = vadd.f32 %v9208_v51, %v9207_v35 }
 0x47f   : > { %v4568_v62 = vmax.f32 %v4520_v3, 0.0  ;;  %4400 = vmatmul.bf16.gmra.mxu3 %v9204_v11  ;;  %v3921_v55 = vadd.f32 %v3816_v59, %v3300_v22 }
 0x481   : > { %v4612_v60 = vpack.c.bf16 %v4568_v62, %v4567_v8  ;;  %v3301_v8 = vadd.f32 %v9210_v31, %v7856_v5  ;;  %v4217_v26 = vadd.f32 %v8108_v7, %v3921_v55  ;;  %v9215_v31 = vld [vmem:[#allocation51_spill] sm:$0xff] }
 0x482   : > { %v3818_v19 = vpop.f32.mrf.mxu2  ;;  %v4361_v29 = vpop.f32.mrf.mxu3 }
 0x483   : > { %4724 = vmatmul.bf16.gmra.mxu1 %v4612_v60  ;;  %v4469_v39 = vadd.f32 %v4361_v29, %v4215_v52  ;;  %v3922_v62 = vadd.f32 %v3818_v19, %v3301_v8  ;;  %v9211_v52 = vld [vmem:[#allocation54_spill] sm:$0xff]  ;;  %v3304_v8 = vadd.f32 %v9215_v31, %v7891_v32 }
 0x484   : > { %v9213_v19 = vld [vmem:[#allocation106_spill] sm:$0xff] }
 0x485   : > { %v4521_v28 = vadd.f32 %v8275_v15, %v4469_v39  ;;  %v4218_v29 = vadd.f32 %v8121_v1, %v3922_v62  ;;  %v9212_v39 = vld [vmem:[#allocation30_spill] sm:$0xff]  ;;  %v9214_v1 = vld [vmem:[#allocation48_spill] sm:$0xff] }
 0x487   : > { %3860 = vmatmul.bf16.gmra.mxu2 %v9199_v50  ;;  %v4569_v3 = vmax.f32 %v4521_v28, 0.0 }
 0x48a   : > { %v3821_v0 = vpop.f32.mrf.mxu2  ;;  %v4363_v40 = vpop.f32.mrf.mxu3 }
 0x48b   : > { %v4470_v10 = vadd.f32 %v4363_v40, %v4216_v58  ;;  %v3302_v58 = vadd.f32 %v9212_v39, %v9211_v52 }
 0x48d   : > { %v4522_v41 = vadd.f32 %v8275_v15, %v4470_v10  ;;  %v3923_v7 = vadd.f32 %v3821_v0, %v3302_v58 }
 0x48f   : > { %v4570_v42 = vmax.f32 %v4522_v41, 0.0  ;;  %4405 = vmatmul.bf16.gmra.mxu3 %v9209_v13  ;;  %v3303_v41 = vadd.f32 %v9214_v1, %v7879_v30  ;;  %v4219_v51 = vadd.f32 %v8139_v33, %v3923_v7 }
 0x491   : > { %v4613_v45 = vpack.c.bf16 %v4570_v42, %v4569_v3 }
 0x492   : > { %v3823_v23 = vpop.f32.mrf.mxu2  ;;  %v4366_v50 = vpop.f32.mrf.mxu3 }
 0x493   : > { %4729 = vmatmul.bf16.gmra.mxu1 %v4613_v45  ;;  %v4471_v60 = vadd.f32 %v4366_v50, %v4217_v26  ;;  %v3924_v35 = vadd.f32 %v3823_v23, %v3303_v41  ;;  %v9216_v23 = vld [vmem:[#allocation116_spill] sm:$0xff] }
 0x495   : > { %v4523_v18 = vadd.f32 %v8275_v15, %v4471_v60  ;;  %v4220_v3 = vadd.f32 %v8148_v27, %v3924_v35  ;;  %v9217_v27 = vld [vmem:[#allocation64_spill] sm:$0xff] }
 0x497   : > { %3865 = vmatmul.bf16.gmra.mxu2 %v9204_v11  ;;  %v4571_v5 = vmax.f32 %v4523_v18, 0.0 }
 0x49a   : > { %v3826_v49 = vpop.f32.mrf.mxu2  ;;  %v4368_v6 = vpop.f32.mrf.mxu3 }
 0x49b   : > { %v4472_v59 = vadd.f32 %v4368_v6, %v4218_v29  ;;  %v3925_v33 = vadd.f32 %v3826_v49, %v3304_v8  ;;  %v3305_v29 = vadd.f32 %v9217_v27, %v7896_v21  ;;  %v9222_v8 = vld [vmem:[#allocation124_spill] sm:$0xff] }
 0x49d   : > { %v4524_v53 = vadd.f32 %v8275_v15, %v4472_v59  ;;  %v4221_v18 = vadd.f32 %v8161_v25, %v3925_v33 }
 0x49f   : > { %v4572_v40 = vmax.f32 %v4524_v53, 0.0  ;;  %4410 = vmatmul.bf16.gmra.mxu3 %v9213_v19 }
 0x4a1   : > { %v4614_v28 = vpack.c.bf16 %v4572_v40, %v4571_v5  ;;  %v9218_v5 = vld [vmem:[#allocation55_spill] sm:$0xff] }
 0x4a2   : > { %v3828_v10 = vpop.f32.mrf.mxu2  ;;  %v4371_v11 = vpop.f32.mrf.mxu3  ;;  %v3306_v40 = vadd.f32 %v9218_v5, %v7913_v17 }
 0x4a3   : > { %4734 = vmatmul.bf16.gmra.mxu1 %v4614_v28  ;;  %v4473_v22 = vadd.f32 %v4371_v11, %v4219_v51  ;;  %v3926_v6 = vadd.f32 %v3828_v10, %v3305_v29  ;;  %v9219_v28 = vld [vmem:[#allocation123_spill] sm:$0xff] }
 0x4a5   : > { %v4525_v45 = vadd.f32 %v8275_v15, %v4473_v22  ;;  %v4222_v32 = vadd.f32 %v8171_v43, %v3926_v6  ;;  %v9220_v43 = vld [vmem:[#allocation43_spill] sm:$0xff]  ;;  %v8362_v22 = vpop.f32.mrf.mxu1 }
 0x4a6   : > { %v3307_v1 = vadd.f32 %v9220_v43, %v7923_v16  ;;  %v9221_v16 = vld [vmem:[#allocation7_spill] sm:$0xff] }
 0x4a7   : > { %3870 = vmatmul.bf16.gmra.mxu2 %v9209_v13  ;;  %v4573_v30 = vmax.f32 %v4525_v45, 0.0 }
 0x4aa   : > { %v3831_v42 = vpop.f32.mrf.mxu2  ;;  %v4373_v55 = vpop.f32.mrf.mxu3 }
 0x4ab   : > { %v4474_v0 = vadd.f32 %v4373_v55, %v4220_v3  ;;  %v3927_v25 = vadd.f32 %v3831_v42, %v3306_v40 }
 0x4ad   : > { %v4526_v50 = vadd.f32 %v8275_v15, %v4474_v0  ;;  %v4223_v35 = vadd.f32 %v8193_v2, %v3927_v25 }
 0x4af   : > { %v4574_v62 = vmax.f32 %v4526_v50, 0.0  ;;  %4415 = vmatmul.bf16.gmra.mxu3 %v9216_v23  ;;  %v3308_v50 = vadd.f32 %v9221_v16, %v7934_v47  ;;  %v9223_v47 = vld [vmem:[#allocation53_spill] sm:$0xff] }
 0x4b0   : > { %v3309_v27 = vadd.f32 %v9223_v47, %v7943_v61 }
 0x4b1   : > { %v4615_v26 = vpack.c.bf16 %v4574_v62, %v4573_v30  ;;  %v8370_v62 = vpop.f32.mrf.mxu0 }
 0x4b2   : > { %v3833_v60 = vpop.f32.mrf.mxu2  ;;  %v4376_v13 = vpop.f32.mrf.mxu3 }
 0x4b3   : > { %4739 = vmatmul.bf16.gmra.mxu1 %v4615_v26  ;;  %v4475_v59 = vadd.f32 %v4376_v13, %v4221_v18  ;;  %v3928_v41 = vadd.f32 %v3833_v60, %v3307_v1  ;;  %v5968_v26 = vld [vmem:[%s6416_s15] sm:$0xff]  }
 0x4b4   : > { %v5969_v18 = vunpack.c.l.bf16 %v5968_v26 }
 0x4b5   : > { %v4527_v39 = vadd.f32 %v8275_v15, %v4475_v59  ;;  %v4224_v17 = vadd.f32 %v8206_v56, %v3928_v41  ;;  %v8375_v56 = vld [vmem:[%s8643_s8] ss:$0 sm:$0xff] }
 0x4b7   : > { %3875 = vmatmul.bf16.gmra.mxu2 %v9213_v19  ;;  %v4575_v21 = vmax.f32 %v4527_v39, 0.0 }
 0x4b9   : > { %v8386_v40 = vpop.f32.mrf.mxu0 }
 0x4ba   : > { %v3836_v53 = vpop.f32.mrf.mxu2  ;;  %v4378_v52 = vpop.f32.mrf.mxu3 }
 0x4bb   : > { %v4476_v49 = vadd.f32 %v4378_v52, %v4222_v32 }
 0x4bd   : > { %v4528_v58 = vadd.f32 %v8275_v15, %v4476_v49 }
 0x4bf   : > { %v4576_v7 = vmax.f32 %v4528_v58, 0.0  ;;  %4420 = vmatmul.bf16.gmra.mxu3 %v9219_v28 }
 0x4c1   : > { %v4616_v10 = vpack.c.bf16 %v4576_v7, %v4575_v21 }
 0x4c2   : > { %v3838_v11 = vpop.f32.mrf.mxu2  ;;  %v4381_v19 = vpop.f32.mrf.mxu3 }
 0x4c3   : > { %4744 = vmatmul.bf16.gmra.mxu1 %v4616_v10  ;;  %v4477_v51 = vadd.f32 %v4381_v19, %v4223_v35  ;;  %v3930_v29 = vadd.f32 %v3838_v11, %v3309_v27  ;;  %v3707_v11 = vpack.c.b16 %v8217_v36, %v8196_v24  ;;  %v9225_v36 = vld [vmem:[#allocation73_spill] sm:$0xff] }
 0x4c5   : > { %v4529_v55 = vadd.f32 %v8275_v15, %v4477_v51  ;;  %v4226_v58 = vadd.f32 %v8230_v44, %v3930_v29  ;;  %v9224_v44 = vld [vmem:[#allocation52_spill] sm:$0xff] }
 0x4c6   : > { %v3310_v19 = vadd.f32 %v9224_v44, %v7955_v38 }
 0x4c7   : > { %3880 = vmatmul.bf16.gmra.mxu2 %v9216_v23  ;;  %v4577_v31 = vmax.f32 %v4529_v55, 0.0  ;;  %v3929_v23 = vadd.f32 %v3836_v53, %v3308_v50  ;;  %v5970_v53 = vunpack.c.h.bf16 %v5968_v26 }
 0x4c9   : > { %v4225_v59 = vadd.f32 %v8220_v20, %v3929_v23 }
 0x4ca   : > { %v3841_v3 = vpop.f32.mrf.mxu2  ;;  %v4383_v42 = vpop.f32.mrf.mxu3 }
 0x4cb   : > { %v4478_v45 = vadd.f32 %v4383_v42, %v4224_v17  ;;  %v3931_v51 = vadd.f32 %v3841_v3, %v3310_v19  ;;  %v6183_v42 = vld [vmem:[%s6416_s15 + $0x8] sm:$0xff]  }
 0x4cc   : > { %v5973_v50 = vunpack.c.l.bf16 %v6183_v42  ;;  %v5974_v3 = vunpack.c.h.bf16 %v6183_v42 }
 0x4cd   : > { %v4530_v0 = vadd.f32 %v8275_v15, %v4478_v45  ;;  %v3311_v45 = vadd.f32 %v9225_v36, %v7964_v46 }
 0x4cf   : > { %v4578_v2 = vmax.f32 %v4530_v0, 0.0  ;;  %4425 = vmatmul.bf16.gmra.mxu3 %v9222_v8  ;;  %v8403_v0 = vpop.f32.mrf.mxu0 }
 0x4d0   : > { %v4710_v30 = vpop.f32.mrf.mxu1 }
 0x4d1   : > { %v4617_v33 = vpack.c.bf16 %v4578_v2, %v4577_v31  ;;  %v4711_v6 = vadd.f32 %v8375_v56, %v4710_v30  ;;  %v4227_v31 = vadd.f32 %v8243_v63, %v3931_v51 }
 0x4d2   : > { %v3843_v60 = vpop.f32.mrf.mxu2  ;;  %v4386_v13 = vpop.f32.mrf.mxu3 }
 0x4d3   : > { %4749 = vmatmul.bf16.gmra.mxu1 %v4617_v33  ;;  %v4479_v32 = vadd.f32 %v4386_v13, %v4225_v59  ;;  %v4926_v39 = vadd.f32 %v5969_v18, %v4711_v6  ;;  %v3932_v16 = vadd.f32 %v3843_v60, %v3311_v45  ;;  %v9226_v18 = vld [vmem:[#allocation10_spill] sm:$0xff]  ;;  %v9227_v59 = vld [vmem:[#allocation8_spill] sm:$0xff] }
 0x4d5   : > { %v4531_v21 = vadd.f32 %v8275_v15, %v4479_v32  ;;  %v4974_v25 = vmax.f32 %v4926_v39, 0.0  ;;  %v4228_v26 = vadd.f32 %v8249_v57, %v3932_v16  ;;  %v3312_v32 = vadd.f32 %v9227_v59, %v9226_v18  ;;  %v9228_v39 = vld [vmem:[#allocation77_spill] sm:$0xff]  ;;  %v9235_v18 = vld [vmem:[#allocation78_spill] sm:$0xff] }
 0x4d7   : > { %3885 = vmatmul.bf16.gmra.mxu2 %v9219_v28  ;;  %v4579_v43 = vmax.f32 %v4531_v21, 0.0  ;;  %v6184_v21 = vld [vmem:[%s6416_s15 + $0x10] sm:$0xff]  }
 0x4d8   : > { %v4712_v52 = vpop.f32.mrf.mxu1 }
 0x4d9   : > { %v4713_v49 = vadd.f32 %v8375_v56, %v4712_v52 }
 0x4da   : > { %v3846_v5 = vpop.f32.mrf.mxu2  ;;  %v4388_v61 = vpop.f32.mrf.mxu3 }
 0x4db   : > { %v4927_v7 = vadd.f32 %v5970_v53, %v4713_v49  ;;  %v4480_v20 = vadd.f32 %v4388_v61, %v4226_v58  ;;  %v3933_v58 = vadd.f32 %v3846_v5, %v3312_v32 }
 0x4dd   : > { %v4975_v10 = vmax.f32 %v4927_v7, 0.0  ;;  %v4532_v28 = vadd.f32 %v8275_v15, %v4480_v20 }
 0x4df   : > { %v6066_v1 = vpack.c.bf16 %v4975_v10, %v4974_v25  ;;  %v4580_v41 = vmax.f32 %v4532_v28, 0.0  ;;  %4430 = vmatmul.bf16.gmra.mxu3 %v3707_v11  ;;  %v9229_v25 = vld [vmem:[#allocation83_spill] sm:$0xff]  ;;  %v9230_v10 = vld [vmem:[#allocation62_spill] sm:$0xff] }
 0x4e0   : > { %v4715_v35 = vpop.f32.mrf.mxu1  ;;  %v3313_v28 = vadd.f32 %v9230_v10, %v9229_v25 }
 0x4e1   : > { %6067 = vst [vmem:[%s8395_s30] sm:$0xff] %v6066_v1   ;;  %v4618_v17 = vpack.c.bf16 %v4580_v41, %v4579_v43  ;;  %v4716_v38 = vadd.f32 %v8375_v56, %v4715_v35  ;;  %v5977_v43 = vunpack.c.l.bf16 %v6184_v21  ;;  %v4229_v1 = vadd.f32 %v8265_v4, %v3933_v58 }
 0x4e2   : > { %v3848_v55 = vpop.f32.mrf.mxu2  ;;  %v4391_v24 = vpop.f32.mrf.mxu3  ;;  %v5978_v35 = vunpack.c.h.bf16 %v6184_v21 }
 0x4e3   : > { %4754 = vmatmul.bf16.gmra.mxu1 %v4618_v17  ;;  %v4481_v2 = vadd.f32 %v4391_v24, %v4227_v31  ;;  %v4928_v23 = vadd.f32 %v5973_v50, %v4716_v38  ;;  %v3934_v44 = vadd.f32 %v3848_v55, %v3313_v28  ;;  %v9231_v31 = vld [vmem:[#allocation95_spill] sm:$0xff] }
 0x4e5   : > { %v4533_v60 = vadd.f32 %v8275_v15, %v4481_v2  ;;  %v4976_v29 = vmax.f32 %v4928_v23, 0.0  ;;  %v4230_v24 = vadd.f32 %v8282_v54, %v3934_v44  ;;  %v9232_v2 = vld [vmem:[#allocation96_spill] sm:$0xff] }
 0x4e7   : > { %3890 = vmatmul.bf16.gmra.mxu2 %v9222_v8  ;;  %v8412_v8 = vpop.f32.mrf.mxu0  ;;  %v4581_v53 = vmax.f32 %v4533_v60, 0.0 }
 0x4e8   : > { %v4717_v30 = vpop.f32.mrf.mxu1 }
 0x4e9   : > { %v4718_v33 = vadd.f32 %v8375_v56, %v4717_v30 }
 0x4ea   : > { %v3851_v46 = vpop.f32.mrf.mxu2  ;;  %v4393_v13 = vpop.f32.mrf.mxu3 }
 0x4eb   : > { %v4929_v47 = vadd.f32 %v5974_v3, %v4718_v33  ;;  %v4482_v27 = vadd.f32 %v4393_v13, %v4228_v26  ;;  %v3314_v3 = vadd.f32 %v9232_v2, %v9231_v31  ;;  %v9233_v26 = vld [vmem:[#allocation94_spill] sm:$0xff] }
 0x4ed   : > { %v4977_v63 = vmax.f32 %v4929_v47, 0.0  ;;  %v4534_v6 = vadd.f32 %v8275_v15, %v4482_v27  ;;  %v3935_v13 = vadd.f32 %v3851_v46, %v3314_v3  ;;  %v6185_v47 = vld [vmem:[%s6416_s15 + $0x18] sm:$0xff]  }
 0x4ee   : > { %v5982_v46 = vunpack.c.h.bf16 %v6185_v47 }
 0x4ef   : > { %v6071_v52 = vpack.c.bf16 %v4977_v63, %v4976_v29  ;;  %v4582_v57 = vmax.f32 %v4534_v6, 0.0  ;;  %4435 = vmatmul.bf16.gmra.mxu3 %v9228_v39  ;;  %v8423_v5 = vpop.f32.mrf.mxu0  ;;  %v9234_v6 = vld [vmem:[#allocation13_spill] sm:$0xff] }
 0x4f0   : > { %v4720_v49 = vpop.f32.mrf.mxu1  ;;  %v3315_v59 = vadd.f32 %v9235_v18, %v9234_v6 }
 0x4f1   : > { %6206 = vst [vmem:[%s8395_s30 + $0x8] sm:$0xff] %v6071_v52   ;;  %v4619_v61 = vpack.c.bf16 %v4582_v57, %v4581_v53  ;;  %v4721_v19 = vadd.f32 %v8375_v56, %v4720_v49  ;;  %v5981_v52 = vunpack.c.l.bf16 %v6185_v47  ;;  %v4231_v57 = vadd.f32 %v8370_v62, %v3935_v13 }
 0x4f2   : > { %v3853_v7 = vpop.f32.mrf.mxu2  ;;  %v4396_v20 = vpop.f32.mrf.mxu3 }
 0x4f3   : > { %4759 = vmatmul.bf16.gmra.mxu1 %v4619_v61  ;;  %v4483_v41 = vadd.f32 %v4396_v20, %v4229_v1  ;;  %v4930_v17 = vadd.f32 %v5977_v43, %v4721_v19  ;;  %v3936_v32 = vadd.f32 %v3853_v7, %v3315_v59  ;;  %v9236_v1 = vld [vmem:[#allocation99_spill] sm:$0xff] }
 0x4f5   : > { %v4535_v55 = vadd.f32 %v8275_v15, %v4483_v41  ;;  %v4978_v4 = vmax.f32 %v4930_v17, 0.0  ;;  %v4232_v20 = vadd.f32 %v8386_v40, %v3936_v32  ;;  %v9237_v41 = vld [vmem:[#allocation11_spill] sm:$0xff] }
 0x4f7   : > { %3895 = vmatmul.bf16.gmra.mxu2 %v3707_v11  ;;  %v4583_v30 = vmax.f32 %v4535_v55, 0.0  ;;  %v8434_v63 = vpop.f32.mrf.mxu0 }
 0x4f8   : > { %v4722_v51 = vpop.f32.mrf.mxu1 }
 0x4f9   : > { %v4723_v42 = vadd.f32 %v8375_v56, %v4722_v51 }
 0x4fa   : > { %v3856_v36 = vpop.f32.mrf.mxu2  ;;  %v4398_v45 = vpop.f32.mrf.mxu3 }
 0x4fb   : > { %v4931_v16 = vadd.f32 %v5978_v35, %v4723_v42  ;;  %v4484_v38 = vadd.f32 %v4398_v45, %v4230_v24  ;;  %v3316_v35 = vadd.f32 %v9237_v41, %v9236_v1  ;;  %v9238_v42 = vpack.c.b16 %v9186_v14, %v9178_v37 }
 0x4fd   : > { %v4979_v50 = vmax.f32 %v4931_v16, 0.0  ;;  %v4536_v11 = vadd.f32 %v8275_v15, %v4484_v38  ;;  %v3937_v45 = vadd.f32 %v3856_v36, %v3316_v35  ;;  %v6186_v16 = vld [vmem:[%s6416_s15 + $0x20] sm:$0xff]  }
 0x4fe   : > { %v5986_v14 = vunpack.c.h.bf16 %v6186_v16 }
 0x4ff   : > { %v6076_v23 = vpack.c.bf16 %v4979_v50, %v4978_v4  ;;  %v4584_v33 = vmax.f32 %v4536_v11, 0.0  ;;  %4440 = vmatmul.bf16.gmra.mxu3 %v9233_v26  ;;  %v8444_v19 = vpop.f32.mrf.mxu0  ;;  %v9239_v50 = vld [vmem:[#allocation115_spill] sm:$0xff]  ;;  %v9240_v11 = vld [vmem:[#allocation82_spill] sm:$0xff] }
 0x500   : > { %v4725_v54 = vpop.f32.mrf.mxu1  ;;  %v3317_v31 = vadd.f32 %v9240_v11, %v9239_v50 }
 0x501   : > { %6207 = vst [vmem:[%s8395_s30 + $0x10] sm:$0xff] %v6076_v23   ;;  %v4620_v60 = vpack.c.bf16 %v4584_v33, %v4583_v30  ;;  %v4726_v53 = vadd.f32 %v8375_v56, %v4725_v54  ;;  %v5985_v30 = vunpack.c.l.bf16 %v6186_v16  ;;  %v4233_v23 = vadd.f32 %v8403_v0, %v3937_v45 }
 0x502   : > { %v3858_v27 = vpop.f32.mrf.mxu2  ;;  %v4401_v29 = vpop.f32.mrf.mxu3 }
 0x503   : > { %4764 = vmatmul.bf16.gmra.mxu1 %v4620_v60  ;;  %v4485_v49 = vadd.f32 %v4401_v29, %v4231_v57  ;;  %v4932_v61 = vadd.f32 %v5981_v52, %v4726_v53  ;;  %v3938_v2 = vadd.f32 %v3858_v27, %v3317_v31  ;;  %v9241_v53 = vld [vmem:[#allocation107_spill] sm:$0xff]  ;;  %v9242_v52 = vld [vmem:[#allocation100_spill] sm:$0xff] }
 0x504   : > { %v3318_v57 = vadd.f32 %v9242_v52, %v9241_v53 }
 0x505   : > { %v4537_v7 = vadd.f32 %v8275_v15, %v4485_v49  ;;  %v4980_v62 = vmax.f32 %v4932_v61, 0.0  ;;  %v4234_v60 = vadd.f32 %v8412_v8, %v3938_v2  ;;  %v9245_v2 = vld [vmem:[#allocation20_spill] sm:$0xff] }
 0x507   : > { %3900 = vmatmul.bf16.gmra.mxu2 %v9228_v39  ;;  %v4585_v51 = vmax.f32 %v4537_v7, 0.0  ;;  %v8458_v33 = vpop.f32.mrf.mxu0 }
 0x508   : > { %v4727_v58 = vpop.f32.mrf.mxu1 }
 0x509   : > { %v4728_v21 = vadd.f32 %v8375_v56, %v4727_v58 }
 0x50a   : > { %v3861_v25 = vpop.f32.mrf.mxu2  ;;  %v4403_v10 = vpop.f32.mrf.mxu3 }
 0x50b   : > { %v4933_v28 = vadd.f32 %v5982_v46, %v4728_v21  ;;  %v4486_v44 = vadd.f32 %v4403_v10, %v4232_v20  ;;  %v3939_v21 = vadd.f32 %v3861_v25, %v3318_v57  ;;  %v6187_v10 = vld [vmem:[%s6416_s15 + $0x28] sm:$0xff]  }
 0x50c   : > { %v5990_v41 = vunpack.c.h.bf16 %v6187_v10 }
 0x50d   : > { %v4981_v43 = vmax.f32 %v4933_v28, 0.0  ;;  %v4538_v39 = vadd.f32 %v8275_v15, %v4486_v44  ;;  %v9243_v44 = vld [vmem:[#allocation14_spill] sm:$0xff] }
 0x50f   : > { %v6081_v17 = vpack.c.bf16 %v4981_v43, %v4980_v62  ;;  %v4586_v40 = vmax.f32 %v4538_v39, 0.0  ;;  %4445 = vmatmul.bf16.gmra.mxu3 %v9238_v42  ;;  %v8469_v61 = vpop.f32.mrf.mxu0  ;;  %v3319_v62 = vadd.f32 %v9243_v44, %v8070_v34  ;;  %v5989_v43 = vunpack.c.l.bf16 %v6187_v10  ;;  %v9248_v10 = vld [vmem:[#allocation111_spill] sm:$0xff] }
 0x510   : > { %v4730_v24 = vpop.f32.mrf.mxu1  ;;  %v4235_v39 = vadd.f32 %v8423_v5, %v3939_v21 }
 0x511   : > { %6208 = vst [vmem:[%s8395_s30 + $0x18] sm:$0xff] %v6081_v17   ;;  %v4621_v55 = vpack.c.bf16 %v4586_v40, %v4585_v51  ;;  %v4731_v3 = vadd.f32 %v8375_v56, %v4730_v24 }
 0x512   : > { %v3863_v38 = vpop.f32.mrf.mxu2  ;;  %v4406_v4 = vpop.f32.mrf.mxu3 }
 0x513   : > { %4769 = vmatmul.bf16.gmra.mxu1 %v4621_v55  ;;  %v4487_v37 = vadd.f32 %v4406_v4, %v4233_v23  ;;  %v4934_v54 = vadd.f32 %v5985_v30, %v4731_v3  ;;  %v9244_v4 = vld [vmem:[#allocation80_spill] sm:$0xff] }
 0x514   : > { %v3320_v50 = vadd.f32 %v9244_v4, %v8081_v48 }
 0x515   : > { %v4539_v27 = vadd.f32 %v8275_v15, %v4487_v37  ;;  %v4982_v18 = vmax.f32 %v4934_v54, 0.0  ;;  %v6188_v37 = vld [vmem:[%s6416_s15 + $0x30] sm:$0xff]   ;;  %v9246_v54 = vld [vmem:[#allocation119_spill] sm:$0xff] }
 0x517   : > { %3905 = vmatmul.bf16.gmra.mxu2 %v9233_v26  ;;  %v4279_v26 = vpack.c.b16 %v8051_v12, %v8270_v9  ;;  %v4587_v49 = vmax.f32 %v4539_v27, 0.0  ;;  %v3940_v12 = vadd.f32 %v3863_v38, %v3319_v62  ;;  %v8479_v24 = vpop.f32.mrf.mxu0 }
 0x518   : > { %v4732_v36 = vpop.f32.mrf.mxu1 }
 0x519   : > { %v4733_v13 = vadd.f32 %v8375_v56, %v4732_v36  ;;  %v4236_v17 = vadd.f32 %v8434_v63, %v3940_v12 }
 0x51a   : > { %v3866_v47 = vpop.f32.mrf.mxu2  ;;  %v4408_v29 = vpop.f32.mrf.mxu3 }
 0x51b   : > { %v4935_v6 = vadd.f32 %v5986_v14, %v4733_v13  ;;  %v4488_v0 = vadd.f32 %v4408_v29, %v4234_v60  ;;  %v3941_v30 = vadd.f32 %v3866_v47, %v3320_v50  ;;  %v9247_v13 = vld [vmem:[#allocation50_spill] sm:$0xff] }
 0x51c   : > { %v3321_v60 = vadd.f32 %v9247_v13, %v9246_v54 }
 0x51d   : > { %v4983_v59 = vmax.f32 %v4935_v6, 0.0  ;;  %v4540_v32 = vadd.f32 %v8275_v15, %v4488_v0  ;;  %v5993_v6 = vunpack.c.l.bf16 %v6188_v37  ;;  %v4237_v0 = vadd.f32 %v8444_v19, %v3941_v30 }
 0x51f   : > { %v6086_v8 = vpack.c.bf16 %v4983_v59, %v4982_v18  ;;  %v4588_v46 = vmax.f32 %v4540_v32, 0.0  ;;  %4450 = vmatmul.bf16.gmra.mxu3 %v4279_v26  ;;  %v8490_v29 = vpop.f32.mrf.mxu0  ;;  %v5994_v59 = vunpack.c.h.bf16 %v6188_v37  ;;  %v9252_v37 = vld [vmem:[#allocation118_spill] sm:$0xff] }
 0x520   : > { %v4735_v58 = vpop.f32.mrf.mxu1 }
 0x521   : > { %6209 = vst [vmem:[%s8395_s30 + $0x20] sm:$0xff] %v6086_v8   ;;  %v4622_v20 = vpack.c.bf16 %v4588_v46, %v4587_v49  ;;  %v4736_v9 = vadd.f32 %v8375_v56, %v4735_v58 }
 0x522   : > { %v3868_v7 = vpop.f32.mrf.mxu2  ;;  %v4411_v28 = vpop.f32.mrf.mxu3 }
 0x523   : > { %4774 = vmatmul.bf16.gmra.mxu1 %v4622_v20  ;;  %v4489_v1 = vadd.f32 %v4411_v28, %v4235_v39  ;;  %v4936_v51 = vadd.f32 %v5989_v43, %v4736_v9  ;;  %v3942_v27 = vadd.f32 %v3868_v7, %v3321_v60  ;;  %v9249_v7 = vld [vmem:[#allocation15_spill] sm:$0xff]  ;;  %v6189_v39 = vld [vmem:[%s6416_s15 + $0x38] sm:$0xff]  }
 0x524   : > { %v3322_v28 = vadd.f32 %v9249_v7, %v9248_v10 }
 0x525   : > { %v4541_v34 = vadd.f32 %v8275_v15, %v4489_v1  ;;  %v4984_v16 = vmax.f32 %v4936_v51, 0.0  ;;  %v4238_v53 = vadd.f32 %v8458_v33, %v3942_v27  ;;  %v9251_v51 = vld [vmem:[#allocation81_spill] sm:$0xff] }
 0x527   : > { %v4589_v11 = vmax.f32 %v4541_v34, 0.0  ;;  %v4174_v20 = vpop.f32.mrf.mxu0  ;;  %v5997_v34 = vunpack.c.l.bf16 %v6189_v39 }
 0x528   : > { %v4737_v35 = vpop.f32.mrf.mxu1 }
 0x529   : > { %v4738_v25 = vadd.f32 %v8375_v56, %v4737_v35  ;;  %v9250_v35 = vld [vmem:[#allocation21_spill] sm:$0xff] }
 0x52a   : > { %v3871_v40 = vpop.f32.mrf.mxu2  ;;  %v4413_v42 = vpop.f32.mrf.mxu3 }
 0x52b   : > { %v4937_v45 = vadd.f32 %v5990_v41, %v4738_v25  ;;  %v4490_v55 = vadd.f32 %v4413_v42, %v4236_v17  ;;  %v3943_v9 = vadd.f32 %v3871_v40, %v3322_v28  ;;  %v3323_v25 = vadd.f32 %v9251_v51, %v9250_v35 }
 0x52d   : > { %v4985_v5 = vmax.f32 %v4937_v45, 0.0  ;;  %v4542_v38 = vadd.f32 %v8275_v15, %v4490_v55  ;;  %v4239_v45 = vadd.f32 %v8469_v61, %v3943_v9 }
 0x52f   : > { %v6091_v31 = vpack.c.bf16 %v4985_v5, %v4984_v16  ;;  %v4590_v63 = vmax.f32 %v4542_v38, 0.0  ;;  %4455 = vmatmul.bf16.gmra.mxu3 %v9245_v2  ;;  %v5998_v16 = vunpack.c.h.bf16 %v6189_v39  ;;  %v4177_v38 = vpop.f32.mrf.mxu0  ;;  %v9256_v39 = vld [vmem:[#allocation33_spill] sm:$0xff] }
 0x530   : > { %v4740_v3 = vpop.f32.mrf.mxu1 }
 0x531   : > { %6210 = vst [vmem:[%s8395_s30 + $0x28] sm:$0xff] %v6091_v31   ;;  %v4623_v23 = vpack.c.bf16 %v4590_v63, %v4589_v11  ;;  %v4741_v48 = vadd.f32 %v8375_v56, %v4740_v3 }
 0x532   : > { %v3873_v14 = vpop.f32.mrf.mxu2  ;;  %v4416_v36 = vpop.f32.mrf.mxu3 }
 0x533   : > { %4779 = vmatmul.bf16.gmra.mxu1 %v4623_v23  ;;  %v4491_v18 = vadd.f32 %v4416_v36, %v4237_v0  ;;  %v4938_v32 = vadd.f32 %v5993_v6, %v4741_v48  ;;  %v3944_v17 = vadd.f32 %v3873_v14, %v3323_v25  ;;  %v9253_v14 = vld [vmem:[#allocation108_spill] sm:$0xff]  ;;  %v6190_v6 = vld [vmem:[%s6416_s15 + $0x40] sm:$0xff]  }
 0x534   : > { %v3324_v36 = vadd.f32 %v9253_v14, %v9252_v37 }
 0x535   : > { %v4543_v49 = vadd.f32 %v8275_v15, %v4491_v18  ;;  %v4986_v58 = vmax.f32 %v4938_v32, 0.0  ;;  %v4240_v50 = vadd.f32 %v8479_v24, %v3944_v17 }
 0x537   : > { %v4591_v44 = vmax.f32 %v4543_v49, 0.0  ;;  %v6001_v49 = vunpack.c.l.bf16 %v6190_v6 }
 0x538   : > { %v4742_v47 = vpop.f32.mrf.mxu1 }
 0x539   : > { %v4743_v26 = vadd.f32 %v8375_v56, %v4742_v47  ;;  %v9255_v47 = vld [vmem:[#allocation22_spill] sm:$0xff] }
 0x53a   : > { %v3876_v52 = vpop.f32.mrf.mxu2  ;;  %v4418_v57 = vpop.f32.mrf.mxu3 }
 0x53b   : > { %v4939_v8 = vadd.f32 %v5994_v59, %v4743_v26  ;;  %v4492_v46 = vadd.f32 %v4418_v57, %v4238_v53  ;;  %v3945_v48 = vadd.f32 %v3876_v52, %v3324_v36  ;;  %v9254_v59 = vld [vmem:[#allocation24_spill] sm:$0xff]  ;;  %v4179_v26 = vpop.f32.mrf.mxu0 }
 0x53c   : > { %v3325_v32 = vadd.f32 %v9255_v47, %v9254_v59 }
 0x53d   : > { %v4987_v21 = vmax.f32 %v4939_v8, 0.0  ;;  %v4544_v19 = vadd.f32 %v8275_v15, %v4492_v46  ;;  %v4241_v8 = vadd.f32 %v8490_v29, %v3945_v48 }
 0x53f   : > { %v6096_v62 = vpack.c.bf16 %v4987_v21, %v4986_v58  ;;  %v4592_v12 = vmax.f32 %v4544_v19, 0.0  ;;  %v6002_v58 = vunpack.c.h.bf16 %v6190_v6  ;;  %v9260_v6 = vld [vmem:[#allocation79_spill] sm:$0xff] }
 0x540   : > { %v4745_v33 = vpop.f32.mrf.mxu1 }
 0x541   : > { %6211 = vst [vmem:[%s8395_s30 + $0x30] sm:$0xff] %v6096_v62   ;;  %v4624_v43 = vpack.c.bf16 %v4592_v12, %v4591_v44  ;;  %v4746_v42 = vadd.f32 %v8375_v56, %v4745_v33 }
 0x542   : > { %v3878_v1 = vpop.f32.mrf.mxu2  ;;  %v4421_v41 = vpop.f32.mrf.mxu3 }
 0x543   : > { %4784 = vmatmul.bf16.gmra.mxu1 %v4624_v43  ;;  %v4493_v55 = vadd.f32 %v4421_v41, %v4239_v45  ;;  %v4940_v40 = vadd.f32 %v5997_v34, %v4746_v42  ;;  %v3946_v53 = vadd.f32 %v3878_v1, %v3325_v32  ;;  %v4182_v29 = vpop.f32.mrf.mxu0  ;;  %v9257_v1 = vld [vmem:[#allocation117_spill] sm:$0xff]  ;;  %v6191_v34 = vld [vmem:[%s6416_s15 + $0x48] sm:$0xff]  }
 0x544   : > { %v3326_v41 = vadd.f32 %v9257_v1, %v9256_v39 }
 0x545   : > { %v4545_v63 = vadd.f32 %v8275_v15, %v4493_v55  ;;  %v4988_v30 = vmax.f32 %v4940_v40, 0.0  ;;  %v4242_v10 = vadd.f32 %v4174_v20, %v3946_v53 }
 0x547   : > { %v4593_v54 = vmax.f32 %v4545_v63, 0.0 }
 0x548   : > { %v4747_v5 = vpop.f32.mrf.mxu1 }
 0x549   : > { %v4748_v4 = vadd.f32 %v8375_v56, %v4747_v5  ;;  %v9259_v5 = vld [vmem:[#allocation25_spill] sm:$0xff] }
 0x54a   : > { %v3881_v11 = vpop.f32.mrf.mxu2  ;;  %v4423_v31 = vpop.f32.mrf.mxu3 }
 0x54b   : > { %v4941_v2 = vadd.f32 %v5998_v16, %v4748_v4  ;;  %v4494_v3 = vadd.f32 %v4423_v31, %v4240_v50  ;;  %v3947_v17 = vadd.f32 %v3881_v11, %v3326_v41  ;;  %v9258_v16 = vld [vmem:[#allocation26_spill] sm:$0xff]  ;;  %v6005_v31 = vunpack.c.l.bf16 %v6191_v34 }
 0x54c   : > { %v3327_v40 = vadd.f32 %v9259_v5, %v9258_v16 }
 0x54d   : > { %v4989_v23 = vmax.f32 %v4941_v2, 0.0  ;;  %v4546_v61 = vadd.f32 %v8275_v15, %v4494_v3  ;;  %v4243_v63 = vadd.f32 %v4177_v38, %v3947_v17  ;;  %v6006_v3 = vunpack.c.h.bf16 %v6191_v34  ;;  %v8533_v38 = vld [vmem:[%s8642_s7] ss:$0 sm:$0xff]  ;;  %v9264_v17 = vld [vmem:[#allocation126_spill] sm:$0xff] }
 0x54f   : > { %v6101_v13 = vpack.c.bf16 %v4989_v23, %v4988_v30  ;;  %v4594_v60 = vmax.f32 %v4546_v61, 0.0  ;;  %v4184_v30 = vpop.f32.mrf.mxu0 }
 0x550   : > { %v4750_v27 = vpop.f32.mrf.mxu1 }
 0x551   : > { %6212 = vst [vmem:[%s8395_s30 + $0x38] sm:$0xff] %v6101_v13   ;;  %v4625_v24 = vpack.c.bf16 %v4594_v60, %v4593_v54  ;;  %v4751_v57 = vadd.f32 %v8375_v56, %v4750_v27 }
 0x552   : > { %v3883_v0 = vpop.f32.mrf.mxu2  ;;  %v4426_v18 = vpop.f32.mrf.mxu3 }
 0x553   : > { %4789 = vmatmul.bf16.gmra.mxu1 %v4625_v24  ;;  %v4495_v46 = vadd.f32 %v4426_v18, %v4241_v8  ;;  %v4942_v52 = vadd.f32 %v6001_v49, %v4751_v57  ;;  %v3948_v4 = vadd.f32 %v3883_v0, %v3327_v40  ;;  %v9261_v0 = vld [vmem:[#allocation109_spill] sm:$0xff] }
 0x554   : > { %v3328_v18 = vadd.f32 %v9261_v0, %v9260_v6  ;;  %v6192_v49 = vld [vmem:[%s6416_s15 + $0x50] sm:$0xff]  }
 0x555   : > { %v4547_v44 = vadd.f32 %v8275_v15, %v4495_v46  ;;  %v4990_v33 = vmax.f32 %v4942_v52, 0.0  ;;  %v4244_v37 = vadd.f32 %v4179_v26, %v3948_v4  ;;  %v9262_v46 = vld [vmem:[#allocation35_spill] sm:$0xff] }
 0x557   : > { %v4595_v35 = vmax.f32 %v4547_v44, 0.0  ;;  %v4187_v57 = vpop.f32.mrf.mxu0 }
 0x558   : > { %v4752_v21 = vpop.f32.mrf.mxu1 }
 0x559   : > { %v4753_v19 = vadd.f32 %v8375_v56, %v4752_v21 }
 0x55a   : > { %v3886_v7 = vpop.f32.mrf.mxu2  ;;  %v4428_v28 = vpop.f32.mrf.mxu3 }
 0x55b   : > { %v4943_v62 = vadd.f32 %v6002_v58, %v4753_v19  ;;  %v4496_v12 = vadd.f32 %v4428_v28, %v4242_v10  ;;  %v3949_v26 = vadd.f32 %v3886_v7, %v3328_v18  ;;  %v9263_v58 = vld [vmem:[#allocation110_spill] sm:$0xff]  ;;  %v6009_v10 = vunpack.c.l.bf16 %v6192_v49 }
 0x55c   : > { %v3329_v21 = vadd.f32 %v9263_v58, %v9262_v46 }
 0x55d   : > { %v4991_v9 = vmax.f32 %v4943_v62, 0.0  ;;  %v4548_v43 = vadd.f32 %v8275_v15, %v4496_v12  ;;  %v4245_v28 = vadd.f32 %v4182_v29, %v3949_v26  ;;  %v6010_v12 = vunpack.c.h.bf16 %v6192_v49  ;;  %v9268_v26 = vld [vmem:[#allocation42_spill] sm:$0xff] }
 0x55f   : > { %v6106_v51 = vpack.c.bf16 %v4991_v9, %v4990_v33  ;;  %v4596_v25 = vmax.f32 %v4548_v43, 0.0 }
 0x560   : > { %v4755_v20 = vpop.f32.mrf.mxu1 }
 0x561   : > { %6213 = vst [vmem:[%s8395_s30 + $0x40] sm:$0xff] %v6106_v51   ;;  %v4626_v42 = vpack.c.bf16 %v4596_v25, %v4595_v35  ;;  %v4756_v50 = vadd.f32 %v8375_v56, %v4755_v20  ;;  %v4189_v51 = vpop.f32.mrf.mxu0 }
 0x562   : > { %v3888_v45 = vpop.f32.mrf.mxu2  ;;  %v4431_v55 = vpop.f32.mrf.mxu3 }
 0x563   : > { %4794 = vmatmul.bf16.gmra.mxu1 %v4626_v42  ;;  %v4497_v2 = vadd.f32 %v4431_v55, %v4243_v63  ;;  %v4944_v61 = vadd.f32 %v6005_v31, %v4756_v50  ;;  %v3950_v52 = vadd.f32 %v3888_v45, %v3329_v21  ;;  %v9265_v42 = vld [vmem:[#allocation125_spill] sm:$0xff]  ;;  %v6193_v31 = vld [vmem:[%s6416_s15 + $0x58] sm:$0xff]  }
 0x564   : > { %v3330_v34 = vadd.f32 %v9265_v42, %v9264_v17 }
 0x565   : > { %v4549_v36 = vadd.f32 %v8275_v15, %v4497_v2  ;;  %v4992_v27 = vmax.f32 %v4944_v61, 0.0  ;;  %v4246_v43 = vadd.f32 %v4184_v30, %v3950_v52  ;;  %v9266_v2 = vld [vmem:[#allocation44_spill] sm:$0xff] }
 0x567   : > { %v4597_v59 = vmax.f32 %v4549_v36, 0.0 }
 0x568   : > { %v4757_v23 = vpop.f32.mrf.mxu1 }
 0x569   : > { %v4758_v11 = vadd.f32 %v8375_v56, %v4757_v23 }
 0x56a   : > { %v4433_v14 = vpop.f32.mrf.mxu3  ;;  %v3891_v60 = vpop.f32.mrf.mxu2 }
 0x56b   : > { %v4945_v54 = vadd.f32 %v6006_v3, %v4758_v11  ;;  %v4498_v13 = vadd.f32 %v4433_v14, %v4244_v37  ;;  %v3951_v4 = vadd.f32 %v3891_v60, %v3330_v34  ;;  %v9267_v3 = vld [vmem:[#allocation34_spill] sm:$0xff]  ;;  %v6013_v11 = vunpack.c.l.bf16 %v6193_v31  ;;  %v4192_v14 = vpop.f32.mrf.mxu0 }
 0x56c   : > { %v3331_v30 = vadd.f32 %v9267_v3, %v9266_v2  ;;  %v9272_v2 = vld [vmem:[#allocation150_spill] sm:$0xff] }
 0x56d   : > { %v4993_v48 = vmax.f32 %v4945_v54, 0.0  ;;  %v4550_v24 = vadd.f32 %v8533_v38, %v4498_v13  ;;  %v4247_v37 = vadd.f32 %v4187_v57, %v3951_v4  ;;  %v6014_v54 = vunpack.c.h.bf16 %v6193_v31 }
 0x56f   : > { %v6111_v47 = vpack.c.bf16 %v4993_v48, %v4992_v27  ;;  %v4598_v32 = vmax.f32 %v4550_v24, 0.0 }
 0x570   : > { %v4760_v15 = vpop.f32.mrf.mxu1 }
 0x571   : > { %6214 = vst [vmem:[%s8395_s30 + $0x48] sm:$0xff] %v6111_v47   ;;  %v4627_v53 = vpack.c.bf16 %v4598_v32, %v4597_v59  ;;  %v4761_v19 = vadd.f32 %v8375_v56, %v4760_v15 }
 0x572   : > { %v4436_v8 = vpop.f32.mrf.mxu3  ;;  %v3893_v44 = vpop.f32.mrf.mxu2 }
 0x573   : > { %4799 = vmatmul.bf16.gmra.mxu1 %v4627_v53  ;;  %v4499_v62 = vadd.f32 %v4436_v8, %v4245_v28  ;;  %v4946_v9 = vadd.f32 %v6009_v10, %v4761_v19  ;;  %v3952_v23 = vadd.f32 %v3893_v44, %v3331_v30  ;;  %v9269_v53 = vld [vmem:[#allocation127_spill] sm:$0xff]  ;;  %v4194_v58 = vpop.f32.mrf.mxu0  ;;  %v9270_v44 = vld [vmem:[#allocation97_spill] sm:$0xff] }
 0x574   : > { %v3332_v57 = vadd.f32 %v9269_v53, %v9268_v26  ;;  %v6194_v10 = vld [vmem:[%s6416_s15 + $0x60] sm:$0xff]  }
 0x575   : > { %v4551_v1 = vadd.f32 %v8533_v38, %v4499_v62  ;;  %v4994_v25 = vmax.f32 %v4946_v9, 0.0  ;;  %v4248_v48 = vadd.f32 %v4189_v51, %v3952_v23  ;;  %v9271_v62 = vld [vmem:[#allocation98_spill] sm:$0xff]  ;;  %v6195_v23 = vld [vmem:[%s6416_s15 + $0x68] sm:$0xff]  }
 0x577   : > { %v4599_v45 = vmax.f32 %v4551_v1, 0.0 }
 0x578   : > { %v4762_v33 = vpop.f32.mrf.mxu1 }
 0x579   : > { %v4763_v7 = vadd.f32 %v8375_v56, %v4762_v33 }
 0x57a   : > { %v4438_v39 = vpop.f32.mrf.mxu3  ;;  %v3896_v5 = vpop.f32.mrf.mxu2 }
 0x57b   : > { %v4947_v41 = vadd.f32 %v6010_v12, %v4763_v7  ;;  %v4500_v35 = vadd.f32 %v4438_v39, %v4246_v43  ;;  %v3953_v52 = vadd.f32 %v3896_v5, %v3332_v57  ;;  %v3333_v12 = vadd.f32 %v9271_v62, %v9270_v44 }
 0x57c   : > { %v6017_v43 = vunpack.c.l.bf16 %v6194_v10 }
 0x57d   : > { %v4995_v20 = vmax.f32 %v4947_v41, 0.0  ;;  %v4552_v29 = vadd.f32 %v8533_v38, %v4500_v35  ;;  %v4249_v39 = vadd.f32 %v4192_v14, %v3953_v52  ;;  %v6018_v41 = vunpack.c.h.bf16 %v6194_v10  ;;  %v9275_v10 = vld [vmem:[#allocation45_spill] sm:$0xff] }
 0x57f   : > { %v6116_v55 = vpack.c.bf16 %v4995_v20, %v4994_v25  ;;  %v4600_v16 = vmax.f32 %v4552_v29, 0.0  ;;  %v4197_v29 = vpop.f32.mrf.mxu0 }
 0x580   : > { %v4765_v40 = vpop.f32.mrf.mxu1 }
 0x581   : > { %6215 = vst [vmem:[%s8395_s30 + $0x50] sm:$0xff] %v6116_v55   ;;  %v4628_v50 = vpack.c.bf16 %v4600_v16, %v4599_v45  ;;  %v4766_v61 = vadd.f32 %v8375_v56, %v4765_v40 }
 0x582   : > { %v4441_v63 = vpop.f32.mrf.mxu3  ;;  %v3898_v24 = vpop.f32.mrf.mxu2 }
 0x583   : > { %4804 = vmatmul.bf16.gmra.mxu1 %v4628_v50  ;;  %v4501_v36 = vadd.f32 %v4441_v63, %v4247_v37  ;;  %v4948_v27 = vadd.f32 %v6013_v11, %v4766_v61  ;;  %v3954_v9 = vadd.f32 %v3898_v24, %v3333_v12  ;;  %v9273_v11 = vld [vmem:[#allocation56_spill] sm:$0xff]  ;;  %v6022_v24 = vunpack.c.h.bf16 %v6195_v23  ;;  %v6196_v12 = vld [vmem:[%s6416_s15 + $0x70] sm:$0xff]  }
 0x584   : > { %v9274_v37 = vld [vmem:[#allocation128_spill] sm:$0xff] }
 0x585   : > { %v4553_v0 = vadd.f32 %v8533_v38, %v4501_v36  ;;  %v4996_v47 = vmax.f32 %v4948_v27, 0.0  ;;  %v4250_v20 = vadd.f32 %v4194_v58, %v3954_v9  ;;  %v3335_v14 = vadd.f32 %v9274_v37, %v9273_v11  ;;  %v9276_v9 = vld [vmem:[#allocation157_spill] sm:$0xff] }
 0x586   : > { %v6021_v27 = vunpack.c.l.bf16 %v6195_v23 }
 0x587   : > { %v4601_v49 = vmax.f32 %v4553_v0, 0.0  ;;  %v4199_v36 = vpop.f32.mrf.mxu0 }
 0x588   : > { %v4767_v13 = vpop.f32.mrf.mxu1 }
 0x589   : > { %v4768_v60 = vadd.f32 %v8375_v56, %v4767_v13 }
 0x58a   : > { %v4443_v6 = vpop.f32.mrf.mxu3  ;;  %v3901_v33 = vpop.f32.mrf.mxu2 }
 0x58b   : > { %v4949_v18 = vadd.f32 %v6014_v54, %v4768_v60  ;;  %v4502_v59 = vadd.f32 %v4443_v6, %v4248_v48  ;;  %v3955_v3 = vadd.f32 %v3901_v33, %v9272_v2 }
 0x58d   : > { %v4997_v32 = vmax.f32 %v4949_v18, 0.0  ;;  %v4554_v15 = vadd.f32 %v8533_v38, %v4502_v59  ;;  %v4251_v60 = vadd.f32 %v4197_v29, %v3955_v3  ;;  %v6197_v3 = vld [vmem:[%s6416_s15 + $0x78] sm:$0xff]  }
 0x58e   : > { %v6029_v23 = vunpack.c.l.bf16 %v6197_v3 }
 0x58f   : > { %v6121_v8 = vpack.c.bf16 %v4997_v32, %v4996_v47  ;;  %v4602_v46 = vmax.f32 %v4554_v15, 0.0 }
 0x590   : > { %v4770_v21 = vpop.f32.mrf.mxu1 }
 0x591   : > { %6216 = vst [vmem:[%s8395_s30 + $0x58] sm:$0xff] %v6121_v8   ;;  %v4629_v19 = vpack.c.bf16 %v4602_v46, %v4601_v49  ;;  %v4771_v7 = vadd.f32 %v8375_v56, %v4770_v21  ;;  %v4202_v46 = vpop.f32.mrf.mxu0 }
 0x592   : > { %v4446_v28 = vpop.f32.mrf.mxu3  ;;  %v3903_v40 = vpop.f32.mrf.mxu2 }
 0x593   : > { %4809 = vmatmul.bf16.gmra.mxu1 %v4629_v19  ;;  %v4503_v1 = vadd.f32 %v4446_v28, %v4249_v39  ;;  %v4950_v51 = vadd.f32 %v6017_v43, %v4771_v7  ;;  %v3956_v54 = vadd.f32 %v3903_v40, %v3335_v14  ;;  %v3337_v7 = vadd.f32 %v8362_v22, %v9276_v9 }
 0x595   : > { %v4555_v42 = vadd.f32 %v8533_v38, %v4503_v1  ;;  %v4998_v55 = vmax.f32 %v4950_v51, 0.0  ;;  %v4252_v47 = vadd.f32 %v4199_v36, %v3956_v54  ;;  %v6025_v1 = vunpack.c.l.bf16 %v6196_v12 }
 0x596   : > { %v6026_v51 = vunpack.c.h.bf16 %v6196_v12  ;;  %v6200_v12 = vld [vmem:[%s6416_s15 + $0x90] sm:$0xff]  }
 0x597   : > { %v4603_v4 = vmax.f32 %v4555_v42, 0.0  ;;  %v6041_v9 = vunpack.c.l.bf16 %v6200_v12 }
 0x598   : > { %v4772_v35 = vpop.f32.mrf.mxu1 }
 0x599   : > { %v4773_v25 = vadd.f32 %v8375_v56, %v4772_v35 }
 0x59a   : > { %v4448_v17 = vpop.f32.mrf.mxu3  ;;  %v3906_v6 = vpop.f32.mrf.mxu2 }
 0x59b   : > { %v4951_v34 = vadd.f32 %v6018_v41, %v4773_v25  ;;  %v4504_v45 = vadd.f32 %v4448_v17, %v4250_v20  ;;  %v3957_v28 = vadd.f32 %v3906_v6, %v9275_v10  ;;  %v4204_v25 = vpop.f32.mrf.mxu0 }
 0x59d   : > { %v4999_v16 = vmax.f32 %v4951_v34, 0.0  ;;  %v4556_v5 = vadd.f32 %v8533_v38, %v4504_v45  ;;  %v4253_v41 = vadd.f32 %v4202_v46, %v3957_v28 }
 0x59f   : > { %v6126_v50 = vpack.c.bf16 %v4999_v16, %v4998_v55  ;;  %v4604_v31 = vmax.f32 %v4556_v5, 0.0 }
 0x5a0   : > { %v4775_v63 = vpop.f32.mrf.mxu1 }
 0x5a1   : > { %6217 = vst [vmem:[%s8395_s30 + $0x60] sm:$0xff] %v6126_v50   ;;  %v4630_v30 = vpack.c.bf16 %v4604_v31, %v4603_v4  ;;  %v4776_v13 = vadd.f32 %v8375_v56, %v4775_v63 }
 0x5a2   : > { %v4451_v61 = vpop.f32.mrf.mxu3  ;;  %v3908_v62 = vpop.f32.mrf.mxu2 }
 0x5a3   : > { %4814 = vmatmul.bf16.gmra.mxu1 %v4630_v30  ;;  %v4505_v48 = vadd.f32 %v4451_v61, %v4251_v60  ;;  %v4952_v18 = vadd.f32 %v6021_v27, %v4776_v13  ;;  %v3958_v43 = vadd.f32 %v3908_v62, %v3337_v7  ;;  %v6030_v61 = vunpack.c.h.bf16 %v6197_v3  ;;  %v6198_v60 = vld [vmem:[%s6416_s15 + $0x80] sm:$0xff]  }
 0x5a4   : > { %v6033_v6 = vunpack.c.l.bf16 %v6198_v60  ;;  %v6042_v7 = vunpack.c.h.bf16 %v6200_v12 }
 0x5a5   : > { %v4557_v15 = vadd.f32 %v8533_v38, %v4505_v48  ;;  %v5000_v57 = vmax.f32 %v4952_v18, 0.0  ;;  %v4254_v42 = vadd.f32 %v4204_v25, %v3958_v43  ;;  %v8593_v48 = vld [vmem:[%s8643_s8] ss:$0 sm:$0xff] }
 0x5a7   : > { %v4605_v58 = vmax.f32 %v4557_v15, 0.0 }
 0x5a8   : > { %v4777_v0 = vpop.f32.mrf.mxu1 }
 0x5a9   : > { %v4778_v59 = vadd.f32 %v8375_v56, %v4777_v0  ;;  %v6034_v0 = vunpack.c.h.bf16 %v6198_v60 }
 0x5aa   : > { %v4453_v32 = vpop.f32.mrf.mxu3 }
 0x5ab   : > { %v4953_v26 = vadd.f32 %v6022_v24, %v4778_v59  ;;  %v4506_v53 = vadd.f32 %v4453_v32, %v4252_v47 }
 0x5ad   : > { %v5001_v49 = vmax.f32 %v4953_v26, 0.0  ;;  %v4558_v8 = vadd.f32 %v8533_v38, %v4506_v53 }
 0x5af   : > { %v6131_v21 = vpack.c.bf16 %v5001_v49, %v5000_v57  ;;  %v4606_v52 = vmax.f32 %v4558_v8, 0.0  ;;  %v6199_v57 = vld [vmem:[%s6416_s15 + $0x88] sm:$0xff]  }
 0x5b0   : > { %v4780_v19 = vpop.f32.mrf.mxu1  ;;  %v6037_v8 = vunpack.c.l.bf16 %v6199_v57  ;;  %v6038_v46 = vunpack.c.h.bf16 %v6199_v57 }
 0x5b1   : > { %6218 = vst [vmem:[%s8395_s30 + $0x68] sm:$0xff] %v6131_v21   ;;  %v4631_v44 = vpack.c.bf16 %v4606_v52, %v4605_v58  ;;  %v4781_v39 = vadd.f32 %v8375_v56, %v4780_v19 }
 0x5b2   : > { %v4456_v33 = vpop.f32.mrf.mxu3 }
 0x5b3   : > { %4819 = vmatmul.bf16.gmra.mxu1 %v4631_v44  ;;  %v4507_v35 = vadd.f32 %v4456_v33, %v4253_v41  ;;  %v4954_v29 = vadd.f32 %v6025_v1, %v4781_v39 }
 0x5b5   : > { %v4559_v45 = vadd.f32 %v8533_v38, %v4507_v35  ;;  %v5002_v16 = vmax.f32 %v4954_v29, 0.0  ;;  %v6201_v29 = vld [vmem:[%s6416_s15 + $0x98] sm:$0xff]  }
 0x5b7   : > { %v4607_v4 = vmax.f32 %v4559_v45, 0.0 }
 0x5b8   : > { %v4782_v20 = vpop.f32.mrf.mxu1 }
 0x5b9   : > { %v4783_v17 = vadd.f32 %v8375_v56, %v4782_v20 }
 0x5ba   : > { %v4458_v34 = vpop.f32.mrf.mxu3 }
 0x5bb   : > { %v4955_v22 = vadd.f32 %v6026_v51, %v4783_v17  ;;  %v4508_v55 = vadd.f32 %v4458_v34, %v4254_v42  ;;  %v6045_v42 = vunpack.c.l.bf16 %v6201_v29  ;;  %v6046_v34 = vunpack.c.h.bf16 %v6201_v29 }
 0x5bd   : > { %v5003_v5 = vmax.f32 %v4955_v22, 0.0  ;;  %v4560_v40 = vadd.f32 %v8533_v38, %v4508_v55 }
 0x5bf   : > { %v6136_v50 = vpack.c.bf16 %v5003_v5, %v5002_v16  ;;  %v4608_v31 = vmax.f32 %v4560_v40, 0.0 }
 0x5c0   : > { %v4785_v63 = vpop.f32.mrf.mxu1 }
 0x5c1   : > { %6219 = vst [vmem:[%s8395_s30 + $0x70] sm:$0xff] %v6136_v50   ;;  %v4632_v2 = vpack.c.bf16 %v4608_v31, %v4607_v4  ;;  %v4786_v30 = vadd.f32 %v8375_v56, %v4785_v63  ;;  %v6202_v31 = vld [vmem:[%s6416_s15 + $0xa0] sm:$0xff]  }
 0x5c2   : > { %v6050_v3 = vunpack.c.h.bf16 %v6202_v31 }
 0x5c3   : > { %4824 = vmatmul.bf16.gmra.mxu1 %v4632_v2  ;;  %v4956_v37 = vadd.f32 %v6029_v23, %v4786_v30  ;;  %v6049_v2 = vunpack.c.l.bf16 %v6202_v31 }
 0x5c5   : > { %v5004_v38 = vmax.f32 %v4956_v37, 0.0 }
 0x5c8   : > { %v4787_v11 = vpop.f32.mrf.mxu1 }
 0x5c9   : > { %v4788_v14 = vadd.f32 %v8375_v56, %v4787_v11 }
 0x5cb   : > { %v4957_v36 = vadd.f32 %v6030_v61, %v4788_v14 }
 0x5cd   : > { %v5005_v54 = vmax.f32 %v4957_v36, 0.0 }
 0x5cf   : > { %v6141_v13 = vpack.c.bf16 %v5005_v54, %v5004_v38  ;;  %v6203_v54 = vld [vmem:[%s6416_s15 + $0xa8] sm:$0xff]  }
 0x5d0   : > { %v4790_v27 = vpop.f32.mrf.mxu1  ;;  %v6054_v60 = vunpack.c.h.bf16 %v6203_v54 }
 0x5d1   : > { %6220 = vst [vmem:[%s8395_s30 + $0x78] sm:$0xff] %v6141_v13   ;;  %v4791_v24 = vadd.f32 %v8593_v48, %v4790_v27  ;;  %v6053_v27 = vunpack.c.l.bf16 %v6203_v54 }
 0x5d3   : > { %v4958_v56 = vadd.f32 %v6033_v6, %v4791_v24 }
 0x5d5   : > { %v5006_v32 = vmax.f32 %v4958_v56, 0.0 }
 0x5d8   : > { %v4792_v18 = vpop.f32.mrf.mxu1 }
 0x5d9   : > { %v4793_v59 = vadd.f32 %v8593_v48, %v4792_v18 }
 0x5db   : > { %v4959_v47 = vadd.f32 %v6034_v0, %v4793_v59 }
 0x5dd   : > { %v5007_v15 = vmax.f32 %v4959_v47, 0.0 }
 0x5df   : > { %v6146_v26 = vpack.c.bf16 %v5007_v15, %v5006_v32  ;;  %v6204_v15 = vld [vmem:[%s6416_s15 + $0xb0] sm:$0xff]  }
 0x5e0   : > { %v4795_v53 = vpop.f32.mrf.mxu1  ;;  %v6058_v57 = vunpack.c.h.bf16 %v6204_v15 }
 0x5e1   : > { %6221 = vst [vmem:[%s8395_s30 + $0x80] sm:$0xff] %v6146_v26   ;;  %v4796_v49 = vadd.f32 %v8593_v48, %v4795_v53  ;;  %v6057_v53 = vunpack.c.l.bf16 %v6204_v15 }
 0x5e3   : > { %v4960_v21 = vadd.f32 %v6037_v8, %v4796_v49 }
 0x5e5   : > { %v5008_v10 = vmax.f32 %v4960_v21, 0.0 }
 0x5e8   : > { %v4797_v58 = vpop.f32.mrf.mxu1 }
 0x5e9   : > { %v4798_v52 = vadd.f32 %v8593_v48, %v4797_v58 }
 0x5eb   : > { %v4961_v19 = vadd.f32 %v6038_v46, %v4798_v52 }
 0x5ed   : > { %v5009_v28 = vmax.f32 %v4961_v19, 0.0 }
 0x5ef   : > { %v6151_v44 = vpack.c.bf16 %v5009_v28, %v5008_v10  ;;  %v6205_v28 = vld [vmem:[%s6416_s15 + $0xb8] sm:$0xff]  }
 0x5f0   : > { %v4800_v62 = vpop.f32.mrf.mxu1  ;;  %v6062_v12 = vunpack.c.h.bf16 %v6205_v28 }
 0x5f1   : > { %6222 = vst [vmem:[%s8395_s30 + $0x88] sm:$0xff] %v6151_v44   ;;  %v4801_v33 = vadd.f32 %v8593_v48, %v4800_v62  ;;  %v6061_v62 = vunpack.c.l.bf16 %v6205_v28 }
 0x5f3   : > { %v4962_v39 = vadd.f32 %v6041_v9, %v4801_v33 }
 0x5f5   : > { %v5010_v35 = vmax.f32 %v4962_v39, 0.0 }
 0x5f8   : > { %v4802_v43 = vpop.f32.mrf.mxu1 }
 0x5f9   : > { %v4803_v1 = vadd.f32 %v8593_v48, %v4802_v43 }
 0x5fb   : > { %v4963_v41 = vadd.f32 %v6042_v7, %v4803_v1 }
 0x5fd   : > { %v5011_v51 = vmax.f32 %v4963_v41, 0.0 }
 0x5ff   : > { %v6156_v25 = vpack.c.bf16 %v5011_v51, %v5010_v35 }
 0x600   : > { %v4805_v20 = vpop.f32.mrf.mxu1 }
 0x601   : > { %6223 = vst [vmem:[%s8395_s30 + $0x90] sm:$0xff] %v6156_v25   ;;  %v4806_v17 = vadd.f32 %v8593_v48, %v4805_v20 }
 0x603   : > { %v4964_v22 = vadd.f32 %v6045_v42, %v4806_v17 }
 0x605   : > { %v5012_v5 = vmax.f32 %v4964_v22, 0.0 }
 0x608   : > { %v4807_v45 = vpop.f32.mrf.mxu1 }
 0x609   : > { %v4808_v55 = vadd.f32 %v8593_v48, %v4807_v45 }
 0x60b   : > { %v4965_v16 = vadd.f32 %v6046_v34, %v4808_v55 }
 0x60d   : > { %v5013_v40 = vmax.f32 %v4965_v16, 0.0 }
 0x60f   : > { %v6161_v4 = vpack.c.bf16 %v5013_v40, %v5012_v5 }
 0x610   : > { %v4810_v50 = vpop.f32.mrf.mxu1 }
 0x611   : > { %6224 = vst [vmem:[%s8395_s30 + $0x98] sm:$0xff] %v6161_v4   ;;  %v4811_v63 = vadd.f32 %v8593_v48, %v4810_v50 }
 0x613   : > { %v4966_v23 = vadd.f32 %v6049_v2, %v4811_v63 }
 0x615   : > { %v5014_v37 = vmax.f32 %v4966_v23, 0.0 }
 0x618   : > { %v4812_v30 = vpop.f32.mrf.mxu1 }
 0x619   : > { %v4813_v61 = vadd.f32 %v8593_v48, %v4812_v30 }
 0x61b   : > { %v4967_v11 = vadd.f32 %v6050_v3, %v4813_v61 }
 0x61d   : > { %v5015_v14 = vmax.f32 %v4967_v11, 0.0 }
 0x61f   : > { %v6166_v36 = vpack.c.bf16 %v5015_v14, %v5014_v37 }
 0x620   : > { %v4815_v38 = vpop.f32.mrf.mxu1 }
 0x621   : > { %6225 = vst [vmem:[%s8395_s30 + $0xa0] sm:$0xff] %v6166_v36   ;;  %v4816_v13 = vadd.f32 %v8593_v48, %v4815_v38 }
 0x623   : > { %v4968_v6 = vadd.f32 %v6053_v27, %v4816_v13 }
 0x625   : > { %v5016_v56 = vmax.f32 %v4968_v6, 0.0 }
 0x628   : > { %v4817_v24 = vpop.f32.mrf.mxu1 }
 0x629   : > { %v4818_v0 = vadd.f32 %v8593_v48, %v4817_v24 }
 0x62b   : > { %v4969_v18 = vadd.f32 %v6054_v60, %v4818_v0 }
 0x62d   : > { %v5017_v59 = vmax.f32 %v4969_v18, 0.0 }
 0x62f   : > { %v6171_v47 = vpack.c.bf16 %v5017_v59, %v5016_v56 }
 0x630   : > { %v4820_v32 = vpop.f32.mrf.mxu1 }
 0x631   : > { %6226 = vst [vmem:[%s8395_s30 + $0xa8] sm:$0xff] %v6171_v47   ;;  %v4821_v26 = vadd.f32 %v8593_v48, %v4820_v32 }
 0x633   : > { %v4970_v8 = vadd.f32 %v6057_v53, %v4821_v26 }
 0x635   : > { %v5018_v21 = vmax.f32 %v4970_v8, 0.0 }
 0x638   : > { %v4822_v49 = vpop.f32.mrf.mxu1 }
 0x639   : > { %v4823_v46 = vadd.f32 %v8593_v48, %v4822_v49 }
 0x63b   : > { %v4971_v58 = vadd.f32 %v6058_v57, %v4823_v46 }
 0x63d   : > { %v5019_v52 = vmax.f32 %v4971_v58, 0.0 }
 0x63f   : > { %v6176_v19 = vpack.c.bf16 %v5019_v52, %v5018_v21 }
 0x640   : > { %v4825_v10 = vpop.f32.mrf.mxu1 }
 0x641   : > { %6227 = vst [vmem:[%s8395_s30 + $0xb0] sm:$0xff] %v6176_v19   ;;  %v4826_v44 = vadd.f32 %v8593_v48, %v4825_v10 }
 0x643   : > { %v4972_v9 = vadd.f32 %v6061_v62, %v4826_v44 }
 0x645   : > { %v5020_v39 = vmax.f32 %v4972_v9, 0.0 }
 0x648   : > { %v4827_v33 = vpop.f32.mrf.mxu1 }
 0x649   : > { %v4828_v7 = vadd.f32 %v8593_v48, %v4827_v33 }
 0x64b   : > { %v4973_v43 = vadd.f32 %v6062_v12, %v4828_v7 }
 0x64d   : > { %v5021_v1 = vmax.f32 %v4973_v43, 0.0 }
 0x64f   : > { %v6181_v41 = vpack.c.bf16 %v5021_v1, %v5020_v39 }
 0x651   : > { %6228 = vst [vmem:[%s8395_s30 + $0xb8] sm:$0xff] %v6181_v41  }
 0x652 PF: > { %s19_s11 = sadd.s32 1, %s6311_s11   ;;  %s9277_s30 = smov %s6307_s10 }
 0x653   : > { %p16_p5 = scmp.ge.s32.totalorder %s19_s11, 4   ;;  %s9278_s10 = smov %s9280_s12 }
 0x655   :  { %18 = sbr.rel (!%p16_p5) target bundleno = 2 (0x2), region = 102 }

</bundles_post_ra>
